<compile_context>
chip_gen: v5e
topology: v5e:2x2
jax: 0.10.0
libtpu: 0.0.40
codegen_flags: <defaults>
</compile_context>

<pallas_src>
import numpy as np
import jax
import jax.numpy as jnp
from jax.experimental import pallas as pl
from jax.experimental.pallas import tpu as pltpu


# ----------------------------- Pallas kernels -----------------------------

def _pfn_kernel(feat_ref, npts_ref, w_ref, shift_ref, out_ref):
    """PillarVFE PFN layer over TP pillars (single grid step at demo size).

    feat_ref : (TP*P, K) augmented point features
    npts_ref : (TP, 1)   valid point count per pillar (int32)
    w_ref    : (K, C)    linear weight with BN scale folded in
    shift_ref: (1, C)    folded BN shift
    out_ref  : (TP, C)   per-pillar max-pooled features
    """
    tp, c = out_ref.shape
    rows = feat_ref.shape[0]
    p = rows // tp
    y = jnp.dot(feat_ref[...], w_ref[...],
                preferred_element_type=jnp.float32)          # (TP*P, C)
    y = jnp.maximum(y + shift_ref[...], 0.0)                 # folded BN + ReLU
    # In-kernel padding mask from num_points, applied AFTER the ReLU so padded
    # points contribute 0 to the per-pillar max.
    pt_idx = jax.lax.broadcasted_iota(jnp.int32, (tp, p, 1), 1)
    valid = (pt_idx < npts_ref[...].reshape(tp, 1, 1)).astype(jnp.float32)
    y = y.reshape(tp, p, c) * valid
    out_ref[...] = jnp.max(y, axis=1)                        # (TP, C)


def _fuse_proj_heads_kernel(offs_ref, rl_ref, feat_ref, pw_ref, pb_ref,
                            hw_ref, hb_ref, out_ref, acc_ref):
    """Fused backbone projection + CAV max-fusion + cls/reg heads.

    Grid: (B, HW_tiles, max_cav) with max_cav as the reduction axis.
    feat_ref: (1, TILE_HW, 64) bf16  one CAV's scattered BEV tile (index_map pick)
    pw_ref  : (64, 384) bf16         backbone 1x1-conv weight (resident)
    pb_ref  : (1, 384)  f32          backbone bias
    hw_ref  : (A+7A, 384) bf16       fused cls+reg head weight (channel-first)
    hb_ref  : (A+7A, 1) f32          fused head bias
    out_ref : (1, A+7A, TILE_HW) f32 channel-first, lane-dense store
    acc_ref : (TILE_HW, 384) f32     running-max scratch (f32: v5e-friendly)
    """
    b = pl.program_id(0)
    cav = pl.program_id(2)
    rl = rl_ref[b]

    @pl.when(cav < rl)
    def _():                                                 # valid CAV frame
        x = feat_ref[0]                                      # (TILE_HW, 64) bf16
        y = jnp.dot(x, pw_ref[...], preferred_element_type=jnp.float32)
        y = jnp.maximum(y + pb_ref[...], 0.0)                # proj + ReLU, f32
        acc_ref[...] = jnp.where(cav == 0, y,
                                 jnp.maximum(acc_ref[...], y))

    @pl.when(cav == pl.num_programs(2) - 1)
    def _():                                                 # finalize: heads
        fused = acc_ref[...].astype(jnp.bfloat16)            # (TILE_HW, 384)
        heads = jax.lax.dot_general(                         # (A+7A, TILE_HW)
            hw_ref[...], fused,
            dimension_numbers=(((1,), (1,)), ((), ())),
            preferred_element_type=jnp.float32)
        out_ref[0] = heads + hb_ref[...]


# ----------------------------- kernel wrappers -----------------------------

def pillar_vfe_pallas(aug_flat, num_points, w_folded, shift, n_pillars_pad, tp):
    rows, k = aug_flat.shape
    c = w_folded.shape[1]
    p = rows // n_pillars_pad
    return pl.pallas_call(
        _pfn_kernel,
        out_shape=jax.ShapeDtypeStruct((n_pillars_pad, c), jnp.float32),
        grid=(n_pillars_pad // tp,),
        in_specs=[
            pl.BlockSpec((tp * p, k), lambda i: (i, 0)),
            pl.BlockSpec((tp, 1), lambda i: (i, 0)),
            pl.BlockSpec((k, c), lambda i: (0, 0)),
            pl.BlockSpec((1, c), lambda i: (0, 0)),
        ],
        out_specs=pl.BlockSpec((tp, c), lambda i: (i, 0)),
        compiler_params=pltpu.CompilerParams(dimension_semantics=("parallel",)),
    )(aug_flat, num_points, w_folded, shift)


def fuse_proj_heads_pallas(cav_feats, offs, record_len, proj_w, proj_b,
                           w_heads, b_heads, batch, max_cav, tile_hw):
    n_agents, hw, cin = cav_feats.shape
    cmid = proj_w.shape[1]
    n_out = w_heads.shape[0]

    def feat_map(b, h, cav, offs_ref, rl_ref):
        # Valid CAVs of sample b straight out of the ungrouped agent tensor;
        # dead slots (cav >= record_len) repeat the previous block index so the
        # pipeliner skips their DMA entirely (and stays within the sample).
        cav_in_sample = jnp.minimum(cav, rl_ref[b] - 1)
        return (offs_ref[b] + cav_in_sample, h, 0)

    return pl.pallas_call(
        _fuse_proj_heads_kernel,
        out_shape=jax.ShapeDtypeStruct((batch, n_out, hw), jnp.float32),
        grid_spec=pltpu.PrefetchScalarGridSpec(
            num_scalar_prefetch=2,
            grid=(batch, hw // tile_hw, max_cav),
            in_specs=[
                pl.BlockSpec((1, tile_hw, cin), feat_map),
                pl.BlockSpec((cin, cmid), lambda b, h, cav, offs, rl: (0, 0)),
                pl.BlockSpec((1, cmid), lambda b, h, cav, offs, rl: (0, 0)),
                pl.BlockSpec((n_out, cmid), lambda b, h, cav, offs, rl: (0, 0)),
                pl.BlockSpec((n_out, 1), lambda b, h, cav, offs, rl: (0, 0)),
            ],
            out_specs=pl.BlockSpec((1, n_out, tile_hw),
                                   lambda b, h, cav, offs, rl: (b, 0, h)),
            scratch_shapes=[pltpu.VMEM((tile_hw, cmid), jnp.float32)],
        ),
        compiler_params=pltpu.CompilerParams(
            dimension_semantics=("parallel", "parallel", "arbitrary")),
    )(offs, record_len, cav_feats, proj_w, proj_b, w_heads, b_heads)


# ----------------------------- plain-JAX glue -----------------------------

def augment_pillar_features(voxel_features, voxel_num_points, voxel_coords,
                            voxel_size, pc_range):
    """PillarVFE feature augmentation (xyz+i, cluster offsets, center offsets)."""
    n, p, _ = voxel_features.shape
    xyz = voxel_features[..., :3]
    valid = (jnp.arange(p)[None, :] <
             voxel_num_points[:, None]).astype(jnp.float32)[..., None]  # (N,P,1)
    npts = jnp.maximum(voxel_num_points[:, None, None].astype(jnp.float32), 1.0)
    points_mean = jnp.sum(xyz * valid, axis=1, keepdims=True) / npts
    f_cluster = xyz - points_mean
    vx, vy, vz = voxel_size
    x_off = vx / 2.0 + pc_range[0]
    y_off = vy / 2.0 + pc_range[1]
    z_off = vz / 2.0 + pc_range[2]
    cx = voxel_coords[:, 3].astype(jnp.float32) * vx + x_off
    cy = voxel_coords[:, 2].astype(jnp.float32) * vy + y_off
    cz = voxel_coords[:, 1].astype(jnp.float32) * vz + z_off
    f_center = jnp.stack([xyz[..., 0] - cx[:, None],
                          xyz[..., 1] - cy[:, None],
                          xyz[..., 2] - cz[:, None]], axis=-1)
    return jnp.concatenate([voxel_features, f_cluster, f_center], axis=-1)  # (N,P,10)


def pointpillar_scatter(pillar_features, coords, num_agents, ny, nx):
    """Scatter pillar features onto per-agent BEV canvases.

    TODO(synk): data-dependent scatter kept in XLA (.at[].set); result is
    last-write-wins if voxel coords are not unique per agent.
    """
    c = pillar_features.shape[-1]
    canvas = jnp.zeros((num_agents, ny * nx, c), jnp.float32)
    flat_idx = coords[:, 2] * nx + coords[:, 3]
    return canvas.at[coords[:, 0], flat_idx].set(pillar_features)


# ----------------------------- end-to-end forward -----------------------------

if __name__ == "__main__":
    # Small deterministic config (use_temporal=False branch of PointPillarMRCNet).
    max_cav = 2
    anchor_number = 2
    voxel_size = (0.4, 0.4, 4.0)
    pc_range = (0.0, 0.0, -3.0, 6.4, 6.4, 1.0)
    nx, ny = 16, 16
    HW = nx * ny
    TILE_HW = 256                                          # HW tile (multiple of 256)
    B = 2
    record_len_np = np.array([2, 1], dtype=np.int32)       # CAVs per sample
    num_agents = int(record_len_np.sum())                  # 3 total agent frames
    P = 8                                                  # max points per pillar
    pillars_per_agent = 50
    N = num_agents * pillars_per_agent                     # 150 pillars
    TP = 256                                               # pillars per PFN grid step
    C_pfn = 64
    C_bev = 128 * 3                                        # head input channels
    N_HEAD = anchor_number + 7 * anchor_number             # fused head output channels

    keys = iter(jax.random.split(jax.random.PRNGKey(0), 16))

    # --- synthetic voxelized lidar input (data_dict['processed_lidar']) ---
    xy = jax.random.uniform(next(keys), (N, P, 2), minval=0.0, maxval=6.4)
    z = jax.random.uniform(next(keys), (N, P, 1), minval=-3.0, maxval=1.0)
    inten = jax.random.uniform(next(keys), (N, P, 1))
    voxel_features = jnp.concatenate([xy, z, inten], axis=-1)          # (N, P, 4)
    voxel_num_points = jax.random.randint(next(keys), (N,), 1, P + 1)  # (N,)
    coords_yx = jax.random.randint(next(keys), (N, 2), 0, nx)
    agent_idx = jnp.repeat(jnp.arange(num_agents, dtype=jnp.int32), pillars_per_agent)
    voxel_coords = jnp.concatenate(
        [agent_idx[:, None], jnp.zeros((N, 1), jnp.int32), coords_yx],
        axis=-1).astype(jnp.int32)                                     # (N, 4)

    # --- deterministic parameters ---
    pfn_w = 0.05 * jax.random.normal(next(keys), (10, C_pfn), jnp.float32)
    eps = 1e-3
    gamma = jnp.ones((C_pfn,)); beta = jnp.zeros((C_pfn,))
    r_mean = jnp.zeros((C_pfn,)); r_var = jnp.ones((C_pfn,))
    pfn_scale = gamma / jnp.sqrt(r_var + eps)
    pfn_shift = (beta - r_mean * pfn_scale).reshape(1, C_pfn)
    pfn_w_folded = pfn_w * pfn_scale[None, :]              # BN scale folded into W

    proj_w = 0.05 * jax.random.normal(next(keys), (C_pfn, C_bev), jnp.float32)
    proj_b = 0.01 * jax.random.normal(next(keys), (1, C_bev), jnp.float32)

    cls_w = 0.05 * jax.random.normal(next(keys), (C_bev, anchor_number), jnp.float32)
    cls_b = 0.01 * jax.random.normal(next(keys), (1, anchor_number), jnp.float32)
    reg_w = 0.05 * jax.random.normal(next(keys), (C_bev, 7 * anchor_number), jnp.float32)
    reg_b = 0.01 * jax.random.normal(next(keys), (1, 7 * anchor_number), jnp.float32)

    # Fused channel-first head weight/bias (one matmul for cls + reg).
    w_heads = jnp.concatenate([cls_w.T, reg_w.T], axis=0).astype(jnp.bfloat16)  # (16, 384)
    b_heads = jnp.concatenate([cls_b.reshape(-1), reg_b.reshape(-1)]
                              ).reshape(N_HEAD, 1).astype(jnp.float32)          # (16, 1)

    # --- PillarVFE (Pallas kernel, single grid step, in-kernel padding mask) ---
    aug = augment_pillar_features(voxel_features, voxel_num_points,
                                  voxel_coords, voxel_size, pc_range)   # (N, P, 10)
    n_pad = ((N + TP - 1) // TP) * TP
    pad = n_pad - N
    aug_flat = jnp.pad(aug, ((0, pad), (0, 0), (0, 0))).reshape(n_pad * P, 10)
    npts_pad = jnp.pad(voxel_num_points, (0, pad)).reshape(n_pad, 1).astype(jnp.int32)
    pillar_feats = pillar_vfe_pallas(aug_flat, npts_pad, pfn_w_folded,
                                     pfn_shift, n_pad, TP)[:N]          # (N, 64)

    # --- PointPillarScatter (plain JAX: data-dependent scatter) ---
    spatial = pointpillar_scatter(pillar_feats, voxel_coords, num_agents, ny, nx)
    spatial_bf16 = spatial.astype(jnp.bfloat16)             # (n_agents, HW, 64)

    # --- backbone proj + CAV max-fusion + fused cls/reg heads: ONE Pallas kernel ---
    offs_np = np.concatenate([[0], np.cumsum(record_len_np)[:-1]]).astype(np.int32)
    heads_out = fuse_proj_heads_pallas(
        spatial_bf16, jnp.asarray(offs_np), jnp.asarray(record_len_np),
        proj_w.astype(jnp.bfloat16), proj_b, w_heads, b_heads,
        B, max_cav, TILE_HW)                                 # (B, 16, HW) f32

    # Channel-first output -> NCHW is a pure reshape (no transpose).
    psm = heads_out[:, :anchor_number, :].reshape(B, anchor_number, ny, nx)
    rm = heads_out[:, anchor_number:, :].reshape(B, 7 * anchor_number, ny, nx)
    # TODO(synk): exact batch_comm_volume formula of MSRobustFusion unavailable;
    # report transmitted-element count of non-ego agents as a placeholder.
    com = int(((record_len_np - 1) * HW * C_bev).sum())

    output_dict = {"psm": psm, "rm": rm, "com": com}
    jax.block_until_ready((output_dict["psm"], output_dict["rm"]))
    assert output_dict["psm"].shape == (B, anchor_number, ny, nx)
    assert output_dict["rm"].shape == (B, 7 * anchor_number, ny, nx)
    assert bool(jnp.all(jnp.isfinite(output_dict["psm"])))
    assert bool(jnp.all(jnp.isfinite(output_dict["rm"])))
    print("KERNEL_OK")
</pallas_src>

<mosaic_0001>
module attributes {stable_mosaic.version = 11 : i64} {
  func.func @_pfn_kernel(%arg0: i32, %arg1: memref<2048x10xf32, #tpu.memory_space<vmem>>, %arg2: memref<256x1xi32, #tpu.memory_space<vmem>>, %arg3: memref<10x64xf32, #tpu.memory_space<vmem>>, %arg4: memref<1x64xf32, #tpu.memory_space<vmem>>, %arg5: memref<256x64xf32, #tpu.memory_space<vmem>>) attributes {dimension_semantics = [#tpu.dimension_semantics<parallel>], iteration_bounds = array<i64: 1>, scalar_prefetch = 0 : i64, scratch_operands = 0 : i64, tpu.core_type = #tpu.core_type<tc>, window_params = [{transform_indices = @transform_0, window_bounds = array<i64: 2048, 10>}, {transform_indices = @transform_1, window_bounds = array<i64: 256, 1>}, {pipeline_mode = #tpu.pipeline_mode<synchronous>, transform_indices = @transform_2, window_bounds = array<i64: 10, 64>}, {pipeline_mode = #tpu.pipeline_mode<synchronous>, transform_indices = @transform_3, window_bounds = array<i64: 1, 64>}, {transform_indices = @transform_4, window_bounds = array<i64: 256, 64>}]} {
    %c0 = arith.constant 0 : index
    %c0_0 = arith.constant 0 : index
    %0 = vector.load %arg1[%c0, %c0_0] : memref<2048x10xf32, #tpu.memory_space<vmem>>, vector<2048x10xf32>
    %c0_1 = arith.constant 0 : index
    %c0_2 = arith.constant 0 : index
    %1 = vector.load %arg3[%c0_1, %c0_2] : memref<10x64xf32, #tpu.memory_space<vmem>>, vector<10x64xf32>
    %cst = arith.constant dense<0.000000e+00> : vector<2048x64xf32>
    %2 = tpu.matmul %0, %1, %cst {dimension_numbers = #tpu.dot_dimension_numbers<[1], [0], [0], [1], [0, 0, 1, 1], [], []>} : vector<2048x10xf32>, vector<10x64xf32>, vector<2048x64xf32> -> vector<2048x64xf32>
    %c0_3 = arith.constant 0 : index
    %c0_4 = arith.constant 0 : index
    %3 = vector.load %arg4[%c0_3, %c0_4] : memref<1x64xf32, #tpu.memory_space<vmem>>, vector<1x64xf32>
    %4 = vector.broadcast %3 : vector<1x64xf32> to vector<2048x64xf32>
    %5 = arith.addf %2, %4 : vector<2048x64xf32>
    %cst_5 = arith.constant 0.000000e+00 : f32
    %6 = vector.broadcast %cst_5 : f32 to vector<2048x64xf32>
    %7 = arith.maximumf %5, %6 : vector<2048x64xf32>
    %8 = tpu.iota {dimensions = array<i32: 1>} : vector<256x8x1xi32>
    %c0_6 = arith.constant 0 : index
    %c0_7 = arith.constant 0 : index
    %9 = vector.load %arg2[%c0_6, %c0_7] : memref<256x1xi32, #tpu.memory_space<vmem>>, vector<256x1xi32>
    %10 = vector.shape_cast %9 : vector<256x1xi32> to vector<256x1x1xi32>
    %11 = vector.broadcast %10 : vector<256x1x1xi32> to vector<256x8x1xi32>
    %12 = arith.cmpi slt, %8, %11 : vector<256x8x1xi32>
    %13 = arith.extui %12 : vector<256x8x1xi1> to vector<256x8x1xi32>
    %14 = arith.sitofp %13 : vector<256x8x1xi32> to vector<256x8x1xf32>
    %15 = vector.shape_cast %7 : vector<2048x64xf32> to vector<256x8x64xf32>
    %16 = vector.broadcast %14 : vector<256x8x1xf32> to vector<256x8x64xf32>
    %17 = arith.mulf %15, %16 : vector<256x8x64xf32>
    %cst_8 = arith.constant dense<0xFF800000> : vector<256x64xf32>
    %18 = vector.multi_reduction <maximumf>, %17, %cst_8 [1] : vector<256x8x64xf32> to vector<256x64xf32>
    %c0_9 = arith.constant 0 : index
    %c0_10 = arith.constant 0 : index
    %19 = vector.load %arg5[%c0_9, %c0_10] : memref<256x64xf32, #tpu.memory_space<vmem>>, vector<256x64xf32>
    tpu.vector_store %arg5[%c0_9, %c0_10], %18 {strides = array<i32>} : memref<256x64xf32, #tpu.memory_space<vmem>>, vector<256x64xf32>,
    return
  }
  func.func @transform_0(%arg0: i32) -> (i32, i32) {
    %c0_i32 = arith.constant 0 : i32
    %c0_i32_0 = arith.constant 0 : i32
    return %arg0, %c0_i32 : i32, i32
  }
  func.func @transform_1(%arg0: i32) -> (i32, i32) {
    %c0_i32 = arith.constant 0 : i32
    %c0_i32_0 = arith.constant 0 : i32
    return %arg0, %c0_i32 : i32, i32
  }
  func.func @transform_2(%arg0: i32) -> (i32, i32) {
    %c0_i32 = arith.constant 0 : i32
    %c0_i32_0 = arith.constant 0 : i32
    %c0_i32_1 = arith.constant 0 : i32
    return %c0_i32, %c0_i32_0 : i32, i32
  }
  func.func @transform_3(%arg0: i32) -> (i32, i32) {
    %c0_i32 = arith.constant 0 : i32
    %c0_i32_0 = arith.constant 0 : i32
    %c0_i32_1 = arith.constant 0 : i32
    return %c0_i32, %c0_i32_0 : i32, i32
  }
  func.func @transform_4(%arg0: i32) -> (i32, i32) {
    %c0_i32 = arith.constant 0 : i32
    %c0_i32_0 = arith.constant 0 : i32
    return %arg0, %c0_i32 : i32, i32
  }
}

</mosaic_0001>

<bundles_post_ra>
// kernel: tpu_custom_call.1
= control target key start
LH: loop header
LB: loop body
LE: loop exit
PB: predicated region body
PF: predicated region fallthrough
CT: control target
= control target key end

     0   :  { %vm1048_vm0 = vcmask 1041408   ;;  %v2093_v0 = vlaneseq  ;;  %v8432_v3 = vmov 0   ;;  %vm279_vm1 = vcmask 80896   ;;  %s13151_s2 = inlined_call_operand.vmem [shape: f32[10,64], index: 2, kind: input, shape index: {}]   ;;  %s13152_s0 = inlined_call_operand.vmem [shape: f32[2048,10], index: 0, kind: input, shape index: {}]   ;;  %s13153_s1 = inlined_call_operand.vmem [shape: s32[256,1], index: 1, kind: input, shape index: {}]   ;;  %s13154_s3 = inlined_call_operand.vmem [shape: f32[1,64], index: 3, kind: input, shape index: {}]   ;;  %s13155_s4 = inlined_call_operand.vmem [shape: f32[256,64], index: 4, kind: output, shape index: {}]  }
   0x1   :  { %v274_v1 = vld [vmem:[%s13151_s2 + $0x8] sm:$0x3]  ;;  %v273_v2 = vld [vmem:[%s13151_s2] sm:$0xff]  ;;  %7802 = vset.pattern.permute.xlu2 %v8432_v3  ;;  %7791 = vset.pattern.permute.xlu1 %v8432_v3  ;;  %v13174_v22 = vmov 0.0   ;;  %v8516_v34 = vld [vmem:[%s13153_s1 + $0x10] sm:$0xff] }
   0x2   :  { %7259 = vmatpush.msk.msra.mxu0 %vm1048_vm0, %v274_v1  ;;  %7772 = vmatpush.msk.msra.mxu1 %vm1048_vm0, %v274_v1  ;;  %v17_v4 = vld [vmem:[%s13152_s0] sm:$0xff]  ;;  %v8468_v5 = vshrl.u32 %v2093_v0, 7  ;;  %v8476_v7 = vld [vmem:[%s13153_s1 + $0x8] sm:$0xff]  ;;  %v2141_v48 = vrot.slane %v8516_v34, 1  ;;  %v2367_v52 = vperm.slane %v8516_v34, 0  ;;  %v19_v63 = vld [vmem:[%s13152_s0 + $0x10] sm:$0xff] }
   0x3   :  { %7773 = vmatpush.msk.msra.mxu2 %vm1048_vm0, %v274_v1  ;;  %7774 = vmatpush.msk.msra.mxu3 %vm1048_vm0, %v274_v1  ;;  %v81_v6 = vld [vmem:[%s13152_s0 + $0x200] sm:$0xff]  ;;  %v2134_v11 = vrot.slane %v8476_v7, 1  ;;  %v2359_v12 = vperm.slane %v8476_v7, 0  ;;  %v2135_v17 = vrot.slane %v8476_v7, 2  ;;  %v2136_v18 = vrot.slane %v8476_v7, 3  ;;  %v18_v36 = vld [vmem:[%s13152_s0 + $0x8] sm:$0xff] }
   0x4   :  { %v8481_v8 = vld [vmem:[%s13153_s1] sm:$0xff]  ;;  %1067 = vmatpush.msra.mxu0 %v273_v2  ;;  %7775 = vmatpush.msra.mxu1 %v273_v2  ;;  %v82_v37 = vld [vmem:[%s13152_s0 + $0x208] sm:$0xff]  ;;  %v2368_v53 = vperm.slane %v2141_v48, 0  ;;  %v2139_v54 = vrot.slane %v8476_v7, 6  ;;  %vm2623_vm14 = vcmp.lt.s32.totalorder %v8468_v5, %v2367_v52  ;;  %v2140_v62 = vrot.slane %v8476_v7, 7  ;;  %v83_v0 = vld [vmem:[%s13152_s0 + $0x210] sm:$0xff] }
   0x5   :  { %v145_v9 = vld [vmem:[%s13152_s0 + $0x400] sm:$0xff]  ;;  %v2130_v13 = vrot.slane %v8481_v8, 4  ;;  %v2131_v14 = vrot.slane %v8481_v8, 5  ;;  %7776 = vmatpush.msra.mxu2 %v273_v2  ;;  %7777 = vmatpush.msra.mxu3 %v273_v2  ;;  %v2127_v15 = vrot.slane %v8481_v8, 1  ;;  %v2351_v16 = vperm.slane %v8481_v8, 0  ;;  %v146_v40 = vld [vmem:[%s13152_s0 + $0x408] sm:$0xff] }
   0x6   :  { %v209_v10 = vld [vmem:[%s13152_s0 + $0x600] sm:$0xff]  ;;  %7260 = vmatmul.msk.f32.vlgmr.msra.gmra.mxu0 %vm279_vm1, %v17_v4  ;;  %7324 = vmatmul.msk.f32.vlgmr.msra.gmra.mxu1 %vm279_vm1, %v81_v6  ;;  %v2360_v19 = vperm.slane %v2134_v11, 0  ;;  %vm2615_vm2 = vcmp.lt.s32.totalorder %v8468_v5, %v2359_v12  ;;  %v2361_v25 = vperm.slane %v2135_v17, 0  ;;  %v2362_v33 = vperm.slane %v2136_v18, 0  ;;  %v210_v41 = vld [vmem:[%s13152_s0 + $0x608] sm:$0xff]  ;;  %v147_v6 = vld [vmem:[%s13152_s0 + $0x410] sm:$0xff] }
   0x7   :  { %v2355_v20 = vperm.slane %v2130_v13, 0  ;;  %v2356_v21 = vperm.slane %v2131_v14, 0  ;;  %7388 = vmatmul.msk.f32.vlgmr.msra.gmra.mxu2 %vm279_vm1, %v145_v9  ;;  %7452 = vmatmul.msk.f32.vlgmr.msra.gmra.mxu3 %vm279_vm1, %v209_v10  ;;  %v7524_v23 = vsel %vm2615_vm2, 1.0, %v13174_v22  ;;  %v2352_v24 = vperm.slane %v2127_v15, 0 }
   0x8   :  { %vm2607_vm3 = vcmp.lt.s32.totalorder %v8468_v5, %v2351_v16  ;;  %7780 = vset.pattern.permute.xlu0 %v8432_v3  ;;  %vm2616_vm4 = vcmp.lt.s32.totalorder %v8468_v5, %v2360_v19  ;;  %vm2617_vm8 = vcmp.lt.s32.totalorder %v8468_v5, %v2361_v25  ;;  %v2132_v38 = vrot.slane %v8481_v8, 6 }
   0x9   :  { %vm2611_vm5 = vcmp.lt.s32.totalorder %v8468_v5, %v2355_v20  ;;  %vm2612_vm6 = vcmp.lt.s32.totalorder %v8468_v5, %v2356_v21  ;;  %v7516_v26 = vsel %vm2607_vm3, 1.0, %v13174_v22  ;;  %v7525_v27 = vsel %vm2616_vm4, 1.0, %v13174_v22 }
   0xa   :  { %v7520_v28 = vsel %vm2611_vm5, 1.0, %v13174_v22  ;;  %v7521_v29 = vsel %vm2612_vm6, 1.0, %v13174_v22  ;;  %vm2608_vm7 = vcmp.lt.s32.totalorder %v8468_v5, %v2352_v24  ;;  %v7803_v30 = vpack.i.bf16 %v7525_v27, %v7524_v23  ;;  %v8592_v24 = vld [vmem:[%s13153_s1 + $0x18] sm:$0xff] }
   0xb   :  { %v7792_v31 = vpack.i.bf16 %v7521_v29, %v7520_v28  ;;  %v7517_v32 = vsel %vm2608_vm7, 1.0, %v13174_v22  ;;  %v2133_v39 = vrot.slane %v8481_v8, 7  ;;  %vm2618_vm9 = vcmp.lt.s32.totalorder %v8468_v5, %v2362_v33 }
   0xc   :  { %v7781_v35 = vpack.i.bf16 %v7517_v32, %v7516_v26  ;;  %7804 = vperm.xlu2 %7802, %v7803_v30   ;;  %v7526_v42 = vsel %vm2617_vm8, 1.0, %v13174_v22  ;;  %v2128_v43 = vrot.slane %v8481_v8, 2  ;;  %v2129_v44 = vrot.slane %v8481_v8, 3  ;;  %v211_v8 = vld [vmem:[%s13152_s0 + $0x610] sm:$0xff]  ;;  %v84_v32 = vld [vmem:[%s13152_s0 + $0x218] sm:$0xff] }
   0xd   :  { %7793 = vperm.xlu1 %7791, %v7792_v31   ;;  %v7527_v45 = vsel %vm2618_vm9, 1.0, %v13174_v22  ;;  %v2357_v46 = vperm.slane %v2132_v38, 0  ;;  %v2358_v47 = vperm.slane %v2133_v39, 0  ;;  %vm2624_vm15 = vcmp.lt.s32.totalorder %v8468_v5, %v2368_v53  ;;  %v20_v31 = vld [vmem:[%s13152_s0 + $0x18] sm:$0xff] }
   0xe   :  { %7782 = vperm.xlu0 %7780, %v7781_v35   ;;  %7261 = vmatmul.msk.f32.gmra.mxu0 %vm279_vm1, %v18_v36  ;;  %v7808_v49 = vpack.i.bf16 %v7527_v45, %v7526_v42  ;;  %v2353_v50 = vperm.slane %v2128_v43, 0  ;;  %v2354_v51 = vperm.slane %v2129_v44, 0  ;;  %v7532_v61 = vsel %vm2623_vm14, 1.0, %v13174_v22 }
   0xf   :  { %7325 = vmatmul.msk.f32.gmra.mxu1 %vm279_vm1, %v82_v37  ;;  %7389 = vmatmul.msk.f32.gmra.mxu2 %vm279_vm1, %v146_v40  ;;  %vm2613_vm10 = vcmp.lt.s32.totalorder %v8468_v5, %v2357_v46  ;;  %vm2614_vm11 = vcmp.lt.s32.totalorder %v8468_v5, %v2358_v47  ;;  %v7533_v1 = vsel %vm2624_vm15, 1.0, %v13174_v22  ;;  %v2365_v2 = vperm.slane %v2139_v54, 0  ;;  %v212_v37 = vld [vmem:[%s13152_s0 + $0x618] sm:$0xff] }
  0x10   :  { %7453 = vmatmul.msk.f32.gmra.mxu3 %vm279_vm1, %v210_v41  ;;  %v7522_v55 = vsel %vm2613_vm10, 1.0, %v13174_v22  ;;  %v7523_v56 = vsel %vm2614_vm11, 1.0, %v13174_v22  ;;  %vm2609_vm12 = vcmp.lt.s32.totalorder %v8468_v5, %v2353_v50  ;;  %vm2610_vm13 = vcmp.lt.s32.totalorder %v8468_v5, %v2354_v51 }
  0x11   :  { %v7797_v57 = vpack.i.bf16 %v7523_v56, %v7522_v55  ;;  %v7518_v58 = vsel %vm2609_vm12, 1.0, %v13174_v22  ;;  %v7519_v59 = vsel %vm2610_vm13, 1.0, %v13174_v22  ;;  %v2137_v3 = vrot.slane %v8476_v7, 4 }
  0x12   :  { %v7786_v60 = vpack.i.bf16 %v7519_v59, %v7518_v58  ;;  %v2138_v4 = vrot.slane %v8476_v7, 5  ;;  %v7823_v9 = vpack.i.bf16 %v7533_v1, %v7532_v61  ;;  %v2366_v10 = vperm.slane %v2140_v62, 0  ;;  %v85_v61 = vld [vmem:[%s13152_s0 + $0x220] sm:$0xff] }
  0x13   :  { %v2146_v11 = vrot.slane %v8516_v34, 6  ;;  %v2147_v12 = vrot.slane %v8516_v34, 7  ;;  %vm2621_vm0 = vcmp.lt.s32.totalorder %v8468_v5, %v2365_v2  ;;  %v2363_v7 = vperm.slane %v2137_v3, 0  ;;  %v213_v1 = vld [vmem:[%s13152_s0 + $0x620] sm:$0xff] }
  0x14   :  { %7809 = vperm.xlu2 %7802, %v7808_v49   ;;  %v2364_v13 = vperm.slane %v2138_v4, 0  ;;  %v2144_v14 = vrot.slane %v8516_v34, 4  ;;  %vm2622_vm2 = vcmp.lt.s32.totalorder %v8468_v5, %v2366_v10  ;;  %v7530_v15 = vsel %vm2621_vm0, 1.0, %v13174_v22  ;;  %v8631_v49 = vld [vmem:[%s13153_s1 + $0x20] sm:$0xff] }
  0x15   :  { %7798 = vperm.xlu1 %7791, %v7797_v57   ;;  %v2373_v16 = vperm.slane %v2146_v11, 0  ;;  %v2374_v17 = vperm.slane %v2147_v12, 0  ;;  %v7531_v18 = vsel %vm2622_vm2, 1.0, %v13174_v22  ;;  %vm2619_vm3 = vcmp.lt.s32.totalorder %v8468_v5, %v2363_v7  ;;  %v8669_v7 = vld [vmem:[%s13153_s1 + $0x28] sm:$0xff] }
  0x16   :  { %7787 = vperm.xlu0 %7780, %v7786_v60   ;;  %7262 = vmatmul.msk.f32.gmra.mxu0 %vm279_vm1, %v19_v63  ;;  %vm2620_vm4 = vcmp.lt.s32.totalorder %v8468_v5, %v2364_v13  ;;  %v2145_v19 = vrot.slane %v8516_v34, 5  ;;  %v7818_v20 = vpack.i.bf16 %v7531_v18, %v7530_v15  ;;  %v7528_v21 = vsel %vm2619_vm3, 1.0, %v13174_v22  ;;  %v21_v60 = vld [vmem:[%s13152_s0 + $0x20] sm:$0xff] }
  0x17   :  { %7326 = vmatmul.msk.f32.gmra.mxu1 %vm279_vm1, %v83_v0  ;;  %7390 = vmatmul.msk.f32.gmra.mxu2 %vm279_vm1, %v147_v6  ;;  %v7529_v23 = vsel %vm2620_vm4, 1.0, %v13174_v22  ;;  %vm2629_vm5 = vcmp.lt.s32.totalorder %v8468_v5, %v2373_v16  ;;  %vm2630_vm6 = vcmp.lt.s32.totalorder %v8468_v5, %v2374_v17  ;;  %v2371_v26 = vperm.slane %v2144_v14, 0  ;;  %v149_v0 = vld [vmem:[%s13152_s0 + $0x420] sm:$0xff] }
  0x18   :  { %7454 = vmatmul.msk.f32.gmra.mxu3 %vm279_vm1, %v211_v8  ;;  %v7813_v25 = vpack.i.bf16 %v7529_v23, %v7528_v21  ;;  %v7538_v27 = vsel %vm2629_vm5, 1.0, %v13174_v22  ;;  %v2372_v28 = vperm.slane %v2145_v19, 0  ;;  %v2142_v29 = vrot.slane %v8516_v34, 2 }
  0x19   :  { %v2143_v30 = vrot.slane %v8516_v34, 3  ;;  %v7539_v33 = vsel %vm2630_vm6, 1.0, %v13174_v22  ;;  %vm2627_vm7 = vcmp.lt.s32.totalorder %v8468_v5, %v2371_v26  ;;  %v2151_v35 = vrot.slane %v8592_v24, 4  ;;  %v148_v34 = vld [vmem:[%s13152_s0 + $0x418] sm:$0xff] }
  0x1a   :  { %v2152_v36 = vrot.slane %v8592_v24, 5  ;;  %vm2628_vm8 = vcmp.lt.s32.totalorder %v8468_v5, %v2372_v28  ;;  %v7536_v38 = vsel %vm2627_vm7, 1.0, %v13174_v22  ;;  %v2369_v39 = vperm.slane %v2142_v29, 0 }
  0x1b   :  { %v2370_v40 = vperm.slane %v2143_v30, 0  ;;  %v7537_v41 = vsel %vm2628_vm8, 1.0, %v13174_v22  ;;  %v2379_v42 = vperm.slane %v2151_v35, 0  ;;  %v2149_v44 = vrot.slane %v8592_v24, 2 }
  0x1c   :  { %7824 = vperm.xlu2 %7802, %v7823_v9   ;;  %v2380_v43 = vperm.slane %v2152_v36, 0  ;;  %vm2625_vm9 = vcmp.lt.s32.totalorder %v8468_v5, %v2369_v39  ;;  %v2150_v45 = vrot.slane %v8592_v24, 3  ;;  %v7838_v46 = vpack.i.bf16 %v7539_v33, %v7538_v27  ;;  %v22_v27 = vld [vmem:[%s13152_s0 + $0x28] sm:$0xff] }
  0x1d   :  { %7819 = vperm.xlu1 %7791, %v7818_v20   ;;  %vm2626_vm10 = vcmp.lt.s32.totalorder %v8468_v5, %v2370_v40  ;;  %v7534_v47 = vsel %vm2625_vm9, 1.0, %v13174_v22  ;;  %vm2635_vm11 = vcmp.lt.s32.totalorder %v8468_v5, %v2379_v42  ;;  %v7833_v50 = vpack.i.bf16 %v7537_v41, %v7536_v38 }
  0x1e   :  { %7814 = vperm.xlu0 %7780, %v7813_v25   ;;  %7263 = vmatmul.msk.f32.gmra.mxu0 %vm279_vm1, %v20_v31  ;;  %v7535_v48 = vsel %vm2626_vm10, 1.0, %v13174_v22  ;;  %vm2636_vm12 = vcmp.lt.s32.totalorder %v8468_v5, %v2380_v43  ;;  %v2377_v52 = vperm.slane %v2149_v44, 0  ;;  %v7544_v53 = vsel %vm2635_vm11, 1.0, %v13174_v22  ;;  %v150_v31 = vld [vmem:[%s13152_s0 + $0x428] sm:$0xff] }
  0x1f   :  { %7327 = vmatmul.msk.f32.gmra.mxu1 %vm279_vm1, %v84_v32  ;;  %7391 = vmatmul.msk.f32.gmra.mxu2 %vm279_vm1, %v148_v34  ;;  %v7828_v51 = vpack.i.bf16 %v7535_v48, %v7534_v47  ;;  %v2378_v54 = vperm.slane %v2150_v45, 0  ;;  %v2148_v55 = vrot.slane %v8592_v24, 1  ;;  %v2375_v56 = vperm.slane %v8592_v24, 0  ;;  %v214_v32 = vld [vmem:[%s13152_s0 + $0x628] sm:$0xff] }
  0x20   :  { %7455 = vmatmul.msk.f32.gmra.mxu3 %vm279_vm1, %v212_v37  ;;  %vm2633_vm13 = vcmp.lt.s32.totalorder %v8468_v5, %v2377_v52  ;;  %v2156_v57 = vrot.slane %v8631_v49, 2  ;;  %v2157_v58 = vrot.slane %v8631_v49, 3  ;;  %v2155_v59 = vrot.slane %v8631_v49, 1 }
  0x21   :  { %v7545_v62 = vsel %vm2636_vm12, 1.0, %v13174_v22  ;;  %vm2634_vm14 = vcmp.lt.s32.totalorder %v8468_v5, %v2378_v54  ;;  %v2376_v63 = vperm.slane %v2148_v55, 0  ;;  %vm2631_vm15 = vcmp.lt.s32.totalorder %v8468_v5, %v2375_v56  ;;  %v23_v54 = vld [vmem:[%s13152_s0 + $0x30] sm:$0xff] }
  0x22   :  { %v7542_v2 = vsel %vm2633_vm13, 1.0, %v13174_v22  ;;  %v7543_v3 = vsel %vm2634_vm14, 1.0, %v13174_v22  ;;  %v2385_v4 = vperm.slane %v2156_v57, 0  ;;  %v2386_v6 = vperm.slane %v2157_v58, 0  ;;  %v87_v55 = vld [vmem:[%s13152_s0 + $0x230] sm:$0xff] }
  0x23   :  { %vm2632_vm0 = vcmp.lt.s32.totalorder %v8468_v5, %v2376_v63  ;;  %v7540_v8 = vsel %vm2631_vm15, 1.0, %v13174_v22  ;;  %v2383_v9 = vperm.slane %v8631_v49, 0  ;;  %v2384_v10 = vperm.slane %v2155_v59, 0 }
  0x24   :  { %7839 = vperm.xlu2 %7802, %v7838_v46   ;;  %v7541_v11 = vsel %vm2632_vm0, 1.0, %v13174_v22  ;;  %vm2641_vm2 = vcmp.lt.s32.totalorder %v8468_v5, %v2385_v4  ;;  %v2153_v12 = vrot.slane %v8592_v24, 6  ;;  %v7853_v13 = vpack.i.bf16 %v7545_v62, %v7544_v53 }
  0x25   :  { %7834 = vperm.xlu1 %7791, %v7833_v50   ;;  %v7848_v14 = vpack.i.bf16 %v7543_v3, %v7542_v2  ;;  %vm2642_vm3 = vcmp.lt.s32.totalorder %v8468_v5, %v2386_v6  ;;  %v7843_v15 = vpack.i.bf16 %v7541_v11, %v7540_v8  ;;  %v7550_v16 = vsel %vm2641_vm2, 1.0, %v13174_v22 }
  0x26   :  { %7829 = vperm.xlu0 %7780, %v7828_v51   ;;  %7264 = vmatmul.msk.f32.gmra.mxu0 %vm279_vm1, %v21_v60  ;;  %vm2639_vm4 = vcmp.lt.s32.totalorder %v8468_v5, %v2383_v9  ;;  %v2154_v17 = vrot.slane %v8592_v24, 7  ;;  %vm2640_vm5 = vcmp.lt.s32.totalorder %v8468_v5, %v2384_v10  ;;  %v2381_v18 = vperm.slane %v2153_v12, 0  ;;  %v86_v24 = vld [vmem:[%s13152_s0 + $0x228] sm:$0xff]  ;;  %v151_v60 = vld [vmem:[%s13152_s0 + $0x430] sm:$0xff] }
  0x27   :  { %7328 = vmatmul.msk.f32.gmra.mxu1 %vm279_vm1, %v85_v61  ;;  %7392 = vmatmul.msk.f32.gmra.mxu2 %vm279_vm1, %v149_v0  ;;  %v2162_v19 = vrot.slane %v8669_v7, 1  ;;  %v2391_v20 = vperm.slane %v8669_v7, 0  ;;  %v7551_v21 = vsel %vm2642_vm3, 1.0, %v13174_v22  ;;  %v2160_v25 = vrot.slane %v8631_v49, 6  ;;  %v215_v61 = vld [vmem:[%s13152_s0 + $0x630] sm:$0xff] }
  0x28   :  { %7456 = vmatmul.msk.f32.gmra.mxu3 %vm279_vm1, %v213_v1  ;;  %v2382_v23 = vperm.slane %v2154_v17, 0  ;;  %v2161_v26 = vrot.slane %v8631_v49, 7  ;;  %v7548_v28 = vsel %vm2639_vm4, 1.0, %v13174_v22  ;;  %vm2637_vm6 = vcmp.lt.s32.totalorder %v8468_v5, %v2381_v18 }
  0x29   :  { %v2392_v29 = vperm.slane %v2162_v19, 0  ;;  %v2158_v30 = vrot.slane %v8631_v49, 4  ;;  %v7549_v33 = vsel %vm2640_vm5, 1.0, %v13174_v22  ;;  %vm2647_vm8 = vcmp.lt.s32.totalorder %v8468_v5, %v2391_v20 }
  0x2a   :  { %vm2638_vm7 = vcmp.lt.s32.totalorder %v8468_v5, %v2382_v23  ;;  %v2389_v35 = vperm.slane %v2160_v25, 0  ;;  %v7546_v36 = vsel %vm2637_vm6, 1.0, %v13174_v22  ;;  %v2390_v37 = vperm.slane %v2161_v26, 0  ;;  %v88_v23 = vld [vmem:[%s13152_s0 + $0x238] sm:$0xff] }
  0x2b   :  { %v7547_v34 = vsel %vm2638_vm7, 1.0, %v13174_v22  ;;  %v2159_v38 = vrot.slane %v8631_v49, 5  ;;  %v7868_v39 = vpack.i.bf16 %v7551_v21, %v7550_v16  ;;  %vm2648_vm9 = vcmp.lt.s32.totalorder %v8468_v5, %v2392_v29  ;;  %v8725_v49 = vld [vmem:[%s13153_s1 + $0x30] sm:$0xff]  ;;  %v24_v21 = vld [vmem:[%s13152_s0 + $0x38] sm:$0xff] }
  0x2c   :  { %7854 = vperm.xlu2 %7802, %v7853_v13   ;;  %v2387_v40 = vperm.slane %v2158_v30, 0  ;;  %v7863_v41 = vpack.i.bf16 %v7549_v33, %v7548_v28  ;;  %v8712_v42 = vsel %vm2647_vm8, 1.0, %v13174_v22  ;;  %vm2645_vm10 = vcmp.lt.s32.totalorder %v8468_v5, %v2389_v35  ;;  %v152_v28 = vld [vmem:[%s13152_s0 + $0x438] sm:$0xff] }
  0x2d   :  { %7849 = vperm.xlu1 %7791, %v7848_v14   ;;  %v2388_v43 = vperm.slane %v2159_v38, 0  ;;  %v7858_v44 = vpack.i.bf16 %v7547_v34, %v7546_v36  ;;  %vm2646_vm11 = vcmp.lt.s32.totalorder %v8468_v5, %v2390_v37  ;;  %v2167_v45 = vrot.slane %v8669_v7, 6  ;;  %v216_v29 = vld [vmem:[%s13152_s0 + $0x638] sm:$0xff] }
  0x2e   :  { %7844 = vperm.xlu0 %7780, %v7843_v15   ;;  %7265 = vmatmul.msk.f32.gmra.mxu0 %vm279_vm1, %v22_v27  ;;  %v2168_v46 = vrot.slane %v8669_v7, 7  ;;  %v7557_v47 = vsel %vm2648_vm9, 1.0, %v13174_v22  ;;  %vm2643_vm12 = vcmp.lt.s32.totalorder %v8468_v5, %v2387_v40  ;;  %v2165_v48 = vrot.slane %v8669_v7, 4 }
  0x2f   :  { %7329 = vmatmul.msk.f32.gmra.mxu1 %vm279_vm1, %v86_v24  ;;  %7393 = vmatmul.msk.f32.gmra.mxu2 %vm279_vm1, %v150_v31  ;;  %vm2644_vm13 = vcmp.lt.s32.totalorder %v8468_v5, %v2388_v43  ;;  %v7554_v50 = vsel %vm2645_vm10, 1.0, %v13174_v22  ;;  %v2397_v51 = vperm.slane %v2167_v45, 0  ;;  %v2166_v53 = vrot.slane %v8669_v7, 5 }
  0x30   :  { %7457 = vmatmul.msk.f32.gmra.mxu3 %vm279_vm1, %v214_v32  ;;  %v2398_v52 = vperm.slane %v2168_v46, 0  ;;  %v7555_v56 = vsel %vm2646_vm11, 1.0, %v13174_v22  ;;  %v2395_v57 = vperm.slane %v2165_v48, 0  ;;  %v2163_v58 = vrot.slane %v8669_v7, 2 }
  0x31   :  { %v2164_v59 = vrot.slane %v8669_v7, 3  ;;  %v7552_v62 = vsel %vm2643_vm12, 1.0, %v13174_v22  ;;  %v7553_v63 = vsel %vm2644_vm13, 1.0, %v13174_v22  ;;  %v2396_v0 = vperm.slane %v2166_v53, 0  ;;  %v8768_v7 = vld [vmem:[%s13153_s1 + $0x38] sm:$0xff]  ;;  %v89_v53 = vld [vmem:[%s13152_s0 + $0x240] sm:$0xff] }
  0x32   :  { %v2172_v1 = vrot.slane %v8725_v49, 4  ;;  %v7883_v2 = vpack.i.bf16 %v7557_v47, %v8712_v42  ;;  %vm2653_vm14 = vcmp.lt.s32.totalorder %v8468_v5, %v2397_v51  ;;  %v2393_v3 = vperm.slane %v2163_v58, 0 }
  0x33   :  { %v7878_v4 = vpack.i.bf16 %v7555_v56, %v7554_v50  ;;  %vm2654_vm15 = vcmp.lt.s32.totalorder %v8468_v5, %v2398_v52  ;;  %vm2651_vm0 = vcmp.lt.s32.totalorder %v8468_v5, %v2395_v57  ;;  %v2394_v6 = vperm.slane %v2164_v59, 0  ;;  %v25_v52 = vld [vmem:[%s13152_s0 + $0x40] sm:$0xff] }
  0x34   :  { %7869 = vperm.xlu2 %7802, %v7868_v39   ;;  %v7873_v8 = vpack.i.bf16 %v7553_v63, %v7552_v62  ;;  %vm2652_vm2 = vcmp.lt.s32.totalorder %v8468_v5, %v2396_v0  ;;  %vm2649_vm3 = vcmp.lt.s32.totalorder %v8468_v5, %v2393_v3  ;;  %v2173_v9 = vrot.slane %v8725_v49, 5  ;;  %v8814_v39 = vld [vmem:[%s13153_s1 + $0x40] sm:$0xff] }
  0x35   :  { %7864 = vperm.xlu1 %7791, %v7863_v41   ;;  %v7562_v10 = vsel %vm2653_vm14, 1.0, %v13174_v22  ;;  %vm2650_vm4 = vcmp.lt.s32.totalorder %v8468_v5, %v2394_v6  ;;  %v2403_v11 = vperm.slane %v2172_v1, 0  ;;  %v2170_v12 = vrot.slane %v8725_v49, 2  ;;  %v217_v56 = vld [vmem:[%s13152_s0 + $0x640] sm:$0xff] }
  0x36   :  { %7859 = vperm.xlu0 %7780, %v7858_v44   ;;  %7266 = vmatmul.msk.f32.gmra.mxu0 %vm279_vm1, %v23_v54  ;;  %v7563_v13 = vsel %vm2654_vm15, 1.0, %v13174_v22  ;;  %v7560_v14 = vsel %vm2651_vm0, 1.0, %v13174_v22  ;;  %v2404_v15 = vperm.slane %v2173_v9, 0  ;;  %v2171_v16 = vrot.slane %v8725_v49, 3 }
  0x37   :  { %7330 = vmatmul.msk.f32.gmra.mxu1 %vm279_vm1, %v87_v55  ;;  %7394 = vmatmul.msk.f32.gmra.mxu2 %vm279_vm1, %v151_v60  ;;  %v7561_v17 = vsel %vm2652_vm2, 1.0, %v13174_v22  ;;  %v7558_v18 = vsel %vm2649_vm3, 1.0, %v13174_v22  ;;  %v2401_v19 = vperm.slane %v2170_v12, 0  ;;  %v2169_v20 = vrot.slane %v8725_v49, 1 }
  0x38   :  { %7458 = vmatmul.msk.f32.gmra.mxu3 %vm279_vm1, %v215_v61  ;;  %v7559_v25 = vsel %vm2650_vm4, 1.0, %v13174_v22  ;;  %v2402_v26 = vperm.slane %v2171_v16, 0  ;;  %v2399_v27 = vperm.slane %v8725_v49, 0  ;;  %v2177_v24 = vrot.slane %v8768_v7, 2 }
  0x39   :  { %vm2659_vm5 = vcmp.lt.s32.totalorder %v8468_v5, %v2403_v11  ;;  %vm2660_vm6 = vcmp.lt.s32.totalorder %v8468_v5, %v2404_v15  ;;  %v2400_v30 = vperm.slane %v2169_v20, 0  ;;  %v2178_v31 = vrot.slane %v8768_v7, 3  ;;  %v154_v20 = vld [vmem:[%s13152_s0 + $0x448] sm:$0xff] }
  0x3a   :  { %v7898_v32 = vpack.i.bf16 %v7563_v13, %v7562_v10  ;;  %v7893_v33 = vpack.i.bf16 %v7561_v17, %v7560_v14  ;;  %vm2657_vm7 = vcmp.lt.s32.totalorder %v8468_v5, %v2401_v19  ;;  %vm2658_vm8 = vcmp.lt.s32.totalorder %v8468_v5, %v2402_v26  ;;  %v90_v17 = vld [vmem:[%s13152_s0 + $0x248] sm:$0xff] }
  0x3b   :  { %vm2655_vm9 = vcmp.lt.s32.totalorder %v8468_v5, %v2399_v27  ;;  %vm2656_vm10 = vcmp.lt.s32.totalorder %v8468_v5, %v2400_v30  ;;  %v2409_v35 = vperm.slane %v2177_v24, 0  ;;  %v7888_v36 = vpack.i.bf16 %v7559_v25, %v7558_v18 }
  0x3c   :  { %7884 = vperm.xlu2 %7802, %v7883_v2   ;;  %v8805_v34 = vsel %vm2659_vm5, 1.0, %v13174_v22  ;;  %v7569_v37 = vsel %vm2660_vm6, 1.0, %v13174_v22  ;;  %v2176_v38 = vrot.slane %v8768_v7, 1  ;;  %v7566_v40 = vsel %vm2657_vm7, 1.0, %v13174_v22 }
  0x3d   :  { %7879 = vperm.xlu1 %7791, %v7878_v4   ;;  %v2410_v41 = vperm.slane %v2178_v31, 0  ;;  %v2407_v42 = vperm.slane %v8768_v7, 0  ;;  %v2174_v43 = vrot.slane %v8725_v49, 6  ;;  %v7567_v44 = vsel %vm2658_vm8, 1.0, %v13174_v22 }
  0x3e   :  { %7874 = vperm.xlu0 %7780, %v7873_v8   ;;  %7267 = vmatmul.msk.f32.gmra.mxu0 %vm279_vm1, %v24_v21  ;;  %v7564_v45 = vsel %vm2655_vm9, 1.0, %v13174_v22  ;;  %v7565_v46 = vsel %vm2656_vm10, 1.0, %v13174_v22  ;;  %v2175_v47 = vrot.slane %v8725_v49, 7  ;;  %vm2665_vm11 = vcmp.lt.s32.totalorder %v8468_v5, %v2409_v35  ;;  %v153_v49 = vld [vmem:[%s13152_s0 + $0x440] sm:$0xff]  ;;  %v218_v21 = vld [vmem:[%s13152_s0 + $0x648] sm:$0xff] }
  0x3f   :  { %7331 = vmatmul.msk.f32.gmra.mxu1 %vm279_vm1, %v88_v23  ;;  %7395 = vmatmul.msk.f32.gmra.mxu2 %vm279_vm1, %v152_v28  ;;  %v2408_v48 = vperm.slane %v2176_v38, 0  ;;  %v2405_v50 = vperm.slane %v2174_v43, 0  ;;  %v2183_v51 = vrot.slane %v8814_v39, 1  ;;  %v7913_v54 = vpack.i.bf16 %v7569_v37, %v8805_v34  ;;  %v8914_v28 = vld [vmem:[%s13153_s1 + $0x48] sm:$0xff] }
  0x40   :  { %7459 = vmatmul.msk.f32.gmra.mxu3 %vm279_vm1, %v216_v29  ;;  %v2406_v55 = vperm.slane %v2175_v47, 0  ;;  %vm2666_vm12 = vcmp.lt.s32.totalorder %v8468_v5, %v2410_v41  ;;  %vm8840_vm13 = vcmp.lt.s32.totalorder %v8468_v5, %v2407_v42  ;;  %v2415_v58 = vperm.slane %v8814_v39, 0 }
  0x41   :  { %v2416_v59 = vperm.slane %v2183_v51, 0  ;;  %v7908_v60 = vpack.i.bf16 %v7567_v44, %v7566_v40  ;;  %v7903_v61 = vpack.i.bf16 %v7565_v46, %v7564_v45  ;;  %v8848_v62 = vsel %vm2665_vm11, 1.0, %v13174_v22 }
  0x42   :  { %v2181_v63 = vrot.slane %v8768_v7, 6  ;;  %vm2664_vm14 = vcmp.lt.s32.totalorder %v8468_v5, %v2408_v48  ;;  %vm2661_vm15 = vcmp.lt.s32.totalorder %v8468_v5, %v2405_v50  ;;  %vm2662_vm0 = vcmp.lt.s32.totalorder %v8468_v5, %v2406_v55  ;;  %v27_v48 = vld [vmem:[%s13152_s0 + $0x50] sm:$0xff] }
  0x43   :  { %v2182_v0 = vrot.slane %v8768_v7, 7  ;;  %v8862_v1 = vsel %vm2666_vm12, 1.0, %v13174_v22  ;;  %v8867_v2 = vsel %vm8840_vm13, 1.0, %v13174_v22  ;;  %vm2671_vm2 = vcmp.lt.s32.totalorder %v8468_v5, %v2415_v58  ;;  %v91_v50 = vld [vmem:[%s13152_s0 + $0x250] sm:$0xff] }
  0x44   :  { %7899 = vperm.xlu2 %7802, %v7898_v32   ;;  %v2413_v3 = vperm.slane %v2181_v63, 0  ;;  %vm2672_vm3 = vcmp.lt.s32.totalorder %v8468_v5, %v2416_v59  ;;  %v2179_v6 = vrot.slane %v8768_v7, 4  ;;  %v2180_v8 = vrot.slane %v8768_v7, 5  ;;  %v26_v7 = vld [vmem:[%s13152_s0 + $0x48] sm:$0xff] }
  0x45   :  { %7894 = vperm.xlu1 %7791, %v7893_v33   ;;  %v2414_v4 = vperm.slane %v2182_v0, 0  ;;  %v7573_v9 = vsel %vm2664_vm14, 1.0, %v13174_v22  ;;  %v8875_v10 = vsel %vm2661_vm15, 1.0, %v13174_v22  ;;  %v8878_v11 = vsel %vm2662_vm0, 1.0, %v13174_v22 }
  0x46   :  { %7889 = vperm.xlu0 %7780, %v7888_v36   ;;  %7268 = vmatmul.msk.f32.gmra.mxu0 %vm279_vm1, %v25_v52  ;;  %v2188_v12 = vrot.slane %v8814_v39, 6  ;;  %v8882_v13 = vsel %vm2671_vm2, 1.0, %v13174_v22  ;;  %v2411_v14 = vperm.slane %v2179_v6, 0  ;;  %v2412_v15 = vperm.slane %v2180_v8, 0 }
  0x47   :  { %7332 = vmatmul.msk.f32.gmra.mxu1 %vm279_vm1, %v89_v53  ;;  %7396 = vmatmul.msk.f32.gmra.mxu2 %vm279_vm1, %v153_v49  ;;  %v2189_v16 = vrot.slane %v8814_v39, 7  ;;  %v8892_v18 = vsel %vm2672_vm3, 1.0, %v13174_v22  ;;  %vm2669_vm4 = vcmp.lt.s32.totalorder %v8468_v5, %v2413_v3  ;;  %vm2670_vm5 = vcmp.lt.s32.totalorder %v8468_v5, %v2414_v4  ;;  %v155_v53 = vld [vmem:[%s13152_s0 + $0x450] sm:$0xff] }
  0x48   :  { %7460 = vmatmul.msk.f32.gmra.mxu3 %vm279_vm1, %v217_v56  ;;  %v2186_v19 = vrot.slane %v8814_v39, 4  ;;  %v7928_v23 = vpack.i.bf16 %v8862_v1, %v8848_v62  ;;  %vm2667_vm6 = vcmp.lt.s32.totalorder %v8468_v5, %v2411_v14  ;;  %v2187_v25 = vrot.slane %v8814_v39, 5  ;;  %v8977_v49 = vld [vmem:[%s13153_s1 + $0x50] sm:$0xff]  ;;  %v9036_v14 = vld [vmem:[%s13153_s1 + $0x58] sm:$0xff] }
  0x49   :  { %v7923_v26 = vpack.i.bf16 %v7573_v9, %v8867_v2  ;;  %v7918_v27 = vpack.i.bf16 %v8878_v11, %v8875_v10  ;;  %vm2668_vm7 = vcmp.lt.s32.totalorder %v8468_v5, %v2412_v15  ;;  %v2421_v24 = vperm.slane %v2188_v12, 0  ;;  %v28_v15 = vld [vmem:[%s13152_s0 + $0x58] sm:$0xff] }
  0x4a   :  { %v7943_v29 = vpack.i.bf16 %v8892_v18, %v8882_v13  ;;  %v8923_v30 = vsel %vm2669_vm4, 1.0, %v13174_v22  ;;  %v8928_v31 = vsel %vm2670_vm5, 1.0, %v13174_v22  ;;  %v2422_v32 = vperm.slane %v2189_v16, 0  ;;  %v92_v16 = vld [vmem:[%s13152_s0 + $0x258] sm:$0xff] }
  0x4b   :  { %v8935_v33 = vsel %vm2667_vm6, 1.0, %v13174_v22  ;;  %v2419_v35 = vperm.slane %v2186_v19, 0  ;;  %v2184_v36 = vrot.slane %v8814_v39, 2  ;;  %v2185_v34 = vrot.slane %v8814_v39, 3 }
  0x4c   :  { %7914 = vperm.xlu2 %7802, %v7913_v54   ;;  %v8940_v37 = vsel %vm2668_vm7, 1.0, %v13174_v22  ;;  %v2420_v38 = vperm.slane %v2187_v25, 0  ;;  %v2193_v40 = vrot.slane %v8914_v28, 4  ;;  %v2194_v41 = vrot.slane %v8914_v28, 5  ;;  %v219_v54 = vld [vmem:[%s13152_s0 + $0x650] sm:$0xff] }
  0x4d   :  { %7909 = vperm.xlu1 %7791, %v7908_v60   ;;  %vm2677_vm8 = vcmp.lt.s32.totalorder %v8468_v5, %v2421_v24  ;;  %v2417_v42 = vperm.slane %v2184_v36, 0  ;;  %v2418_v43 = vperm.slane %v2185_v34, 0  ;;  %v2191_v44 = vrot.slane %v8914_v28, 2 }
  0x4e   :  { %7904 = vperm.xlu0 %7780, %v7903_v61   ;;  %7269 = vmatmul.msk.f32.gmra.mxu0 %vm279_vm1, %v26_v7  ;;  %v7938_v45 = vpack.i.bf16 %v8928_v31, %v8923_v30  ;;  %v2427_v46 = vperm.slane %v2193_v40, 0  ;;  %v2428_v47 = vperm.slane %v2194_v41, 0  ;;  %v2192_v39 = vrot.slane %v8914_v28, 3 }
  0x4f   :  { %7333 = vmatmul.msk.f32.gmra.mxu1 %vm279_vm1, %v90_v17  ;;  %7397 = vmatmul.msk.f32.gmra.mxu2 %vm279_vm1, %v154_v20  ;;  %v7933_v51 = vpack.i.bf16 %v8940_v37, %v8935_v33  ;;  %vm2678_vm9 = vcmp.lt.s32.totalorder %v8468_v5, %v2422_v32  ;;  %vm2675_vm10 = vcmp.lt.s32.totalorder %v8468_v5, %v2419_v35  ;;  %v2190_v52 = vrot.slane %v8914_v28, 1 }
  0x50   :  { %7461 = vmatmul.msk.f32.gmra.mxu3 %vm279_vm1, %v218_v21  ;;  %v8969_v55 = vsel %vm2677_vm8, 1.0, %v13174_v22  ;;  %vm2676_vm11 = vcmp.lt.s32.totalorder %v8468_v5, %v2420_v38  ;;  %vm2673_vm12 = vcmp.lt.s32.totalorder %v8468_v5, %v2417_v42  ;;  %vm2674_vm13 = vcmp.lt.s32.totalorder %v8468_v5, %v2418_v43  ;;  %v156_v21 = vld [vmem:[%s13152_s0 + $0x458] sm:$0xff] }
  0x51   :  { %vm2683_vm14 = vcmp.lt.s32.totalorder %v8468_v5, %v2427_v46  ;;  %vm2684_vm15 = vcmp.lt.s32.totalorder %v8468_v5, %v2428_v47  ;;  %v2425_v56 = vperm.slane %v2191_v44, 0  ;;  %v2426_v57 = vperm.slane %v2192_v39, 0  ;;  %v29_v47 = vld [vmem:[%s13152_s0 + $0x60] sm:$0xff] }
  0x52   :  { %v8986_v58 = vsel %vm2678_vm9, 1.0, %v13174_v22  ;;  %v8991_v59 = vsel %vm2675_vm10, 1.0, %v13174_v22  ;;  %v2423_v60 = vperm.slane %v8914_v28, 0  ;;  %v2424_v61 = vperm.slane %v2190_v52, 0  ;;  %v93_v39 = vld [vmem:[%s13152_s0 + $0x260] sm:$0xff] }
  0x53   :  { %v8999_v62 = vsel %vm2676_vm11, 1.0, %v13174_v22  ;;  %v9004_v63 = vsel %vm2673_vm12, 1.0, %v13174_v22  ;;  %v2198_v0 = vrot.slane %v8977_v49, 2  ;;  %v2199_v1 = vrot.slane %v8977_v49, 3  ;;  %v221_v52 = vld [vmem:[%s13152_s0 + $0x660] sm:$0xff] }
  0x54   :  { %7929 = vperm.xlu2 %7802, %v7928_v23   ;;  %v9011_v2 = vsel %vm2674_vm13, 1.0, %v13174_v22  ;;  %v9016_v3 = vsel %vm2683_vm14, 1.0, %v13174_v22  ;;  %v9021_v4 = vsel %vm2684_vm15, 1.0, %v13174_v22  ;;  %v2197_v6 = vrot.slane %v8977_v49, 1  ;;  %v220_v23 = vld [vmem:[%s13152_s0 + $0x658] sm:$0xff] }
  0x55   :  { %7924 = vperm.xlu1 %7791, %v7923_v26   ;;  %vm2681_vm0 = vcmp.lt.s32.totalorder %v8468_v5, %v2425_v56  ;;  %vm2682_vm2 = vcmp.lt.s32.totalorder %v8468_v5, %v2426_v57  ;;  %vm9027_vm3 = vcmp.lt.s32.totalorder %v8468_v5, %v2423_v60  ;;  %v2433_v9 = vperm.slane %v2198_v0, 0 }
  0x56   :  { %7919 = vperm.xlu0 %7780, %v7918_v27   ;;  %7270 = vmatmul.msk.f32.gmra.mxu0 %vm279_vm1, %v27_v48  ;;  %vm2680_vm4 = vcmp.lt.s32.totalorder %v8468_v5, %v2424_v61  ;;  %v2434_v10 = vperm.slane %v2199_v1, 0  ;;  %v2431_v11 = vperm.slane %v8977_v49, 0  ;;  %v2432_v12 = vperm.slane %v2197_v6, 0 }
  0x57   :  { %7334 = vmatmul.msk.f32.gmra.mxu1 %vm279_vm1, %v91_v50  ;;  %7398 = vmatmul.msk.f32.gmra.mxu2 %vm279_vm1, %v155_v53  ;;  %v7958_v7 = vpack.i.bf16 %v8986_v58, %v8969_v55  ;;  %v7953_v17 = vpack.i.bf16 %v8999_v62, %v8991_v59  ;;  %v2195_v19 = vrot.slane %v8914_v28, 6  ;;  %v2196_v20 = vrot.slane %v8914_v28, 7 }
  0x58   :  { %7462 = vmatmul.msk.f32.gmra.mxu3 %vm279_vm1, %v219_v54  ;;  %v7948_v25 = vpack.i.bf16 %v9011_v2, %v9004_v63  ;;  %v7973_v26 = vpack.i.bf16 %v9021_v4, %v9016_v3  ;;  %v9066_v13 = vsel %vm2681_vm0, 1.0, %v13174_v22  ;;  %v9071_v18 = vsel %vm2682_vm2, 1.0, %v13174_v22  ;;  %v9189_v2 = vld [vmem:[%s13153_s1 + $0x60] sm:$0xff] }
  0x59   :  { %v9076_v27 = vsel %vm9027_vm3, 1.0, %v13174_v22  ;;  %v9081_v24 = vsel %vm2680_vm4, 1.0, %v13174_v22  ;;  %vm2689_vm5 = vcmp.lt.s32.totalorder %v8468_v5, %v2433_v9  ;;  %v2204_v28 = vrot.slane %v9036_v14, 1 }
  0x5a   :  { %vm2690_vm6 = vcmp.lt.s32.totalorder %v8468_v5, %v2434_v10  ;;  %vm9089_vm7 = vcmp.lt.s32.totalorder %v8468_v5, %v2431_v11  ;;  %vm2688_vm8 = vcmp.lt.s32.totalorder %v8468_v5, %v2432_v12  ;;  %v2429_v30 = vperm.slane %v2195_v19, 0 }
  0x5b   :  { %v2430_v31 = vperm.slane %v2196_v20, 0  ;;  %v2202_v32 = vrot.slane %v8977_v49, 6  ;;  %v2203_v33 = vrot.slane %v8977_v49, 7  ;;  %v7968_v35 = vpack.i.bf16 %v9071_v18, %v9066_v13 }
  0x5c   :  { %7944 = vperm.xlu2 %7802, %v7943_v29   ;;  %v7963_v36 = vpack.i.bf16 %v9081_v24, %v9076_v27  ;;  %v2439_v34 = vperm.slane %v9036_v14, 0  ;;  %v2200_v37 = vrot.slane %v8977_v49, 4  ;;  %v9107_v38 = vsel %vm2689_vm5, 1.0, %v13174_v22 }
  0x5d   :  { %7939 = vperm.xlu1 %7791, %v7938_v45   ;;  %v9110_v40 = vsel %vm2690_vm6, 1.0, %v13174_v22  ;;  %v2440_v41 = vperm.slane %v2204_v28, 0  ;;  %v2437_v42 = vperm.slane %v2202_v32, 0  ;;  %v9115_v43 = vsel %vm9089_vm7, 1.0, %v13174_v22  ;;  %v9259_v32 = vld [vmem:[%s13153_s1 + $0x68] sm:$0xff] }
  0x5e   :  { %7934 = vperm.xlu0 %7780, %v7933_v51   ;;  %7271 = vmatmul.msk.f32.gmra.mxu0 %vm279_vm1, %v28_v15  ;;  %v9120_v44 = vsel %vm2688_vm8, 1.0, %v13174_v22  ;;  %v2438_v45 = vperm.slane %v2203_v33, 0  ;;  %v2201_v46 = vrot.slane %v8977_v49, 5  ;;  %vm2685_vm9 = vcmp.lt.s32.totalorder %v8468_v5, %v2429_v30  ;;  %v157_v51 = vld [vmem:[%s13152_s0 + $0x460] sm:$0xff] }
  0x5f   :  { %7335 = vmatmul.msk.f32.gmra.mxu1 %vm279_vm1, %v92_v16  ;;  %7399 = vmatmul.msk.f32.gmra.mxu2 %vm279_vm1, %v156_v21  ;;  %vm2686_vm10 = vcmp.lt.s32.totalorder %v8468_v5, %v2430_v31  ;;  %v2435_v48 = vperm.slane %v2200_v37, 0  ;;  %v2209_v50 = vrot.slane %v9036_v14, 6  ;;  %v7988_v53 = vpack.i.bf16 %v9110_v40, %v9107_v38  ;;  %v158_v21 = vld [vmem:[%s13152_s0 + $0x468] sm:$0xff] }
  0x60   :  { %7463 = vmatmul.msk.f32.gmra.mxu3 %vm279_vm1, %v220_v23  ;;  %vm9141_vm11 = vcmp.lt.s32.totalorder %v8468_v5, %v2439_v34  ;;  %v2436_v55 = vperm.slane %v2201_v46, 0  ;;  %v2210_v49 = vrot.slane %v9036_v14, 7  ;;  %vm2696_vm12 = vcmp.lt.s32.totalorder %v8468_v5, %v2440_v41  ;;  %v222_v23 = vld [vmem:[%s13152_s0 + $0x668] sm:$0xff] }
  0x61   :  { %vm2693_vm13 = vcmp.lt.s32.totalorder %v8468_v5, %v2437_v42  ;;  %v2445_v56 = vperm.slane %v2209_v50, 0  ;;  %v2207_v57 = vrot.slane %v9036_v14, 4  ;;  %v9156_v59 = vsel %vm2685_vm9, 1.0, %v13174_v22  ;;  %v31_v50 = vld [vmem:[%s13152_s0 + $0x70] sm:$0xff] }
  0x62   :  { %v9161_v60 = vsel %vm2686_vm10, 1.0, %v13174_v22  ;;  %vm2694_vm14 = vcmp.lt.s32.totalorder %v8468_v5, %v2438_v45  ;;  %v2446_v61 = vperm.slane %v2210_v49, 0  ;;  %v9169_v62 = vsel %vm9141_vm11, 1.0, %v13174_v22  ;;  %v159_v49 = vld [vmem:[%s13152_s0 + $0x470] sm:$0xff] }
  0x63   :  { %vm2691_vm15 = vcmp.lt.s32.totalorder %v8468_v5, %v2435_v48  ;;  %vm2692_vm0 = vcmp.lt.s32.totalorder %v8468_v5, %v2436_v55  ;;  %vm2701_vm2 = vcmp.lt.s32.totalorder %v8468_v5, %v2445_v56  ;;  %v9177_v63 = vsel %vm2696_vm12, 1.0, %v13174_v22  ;;  %v223_v56 = vld [vmem:[%s13152_s0 + $0x670] sm:$0xff] }
  0x64   :  { %7959 = vperm.xlu2 %7802, %v7958_v7   ;;  %v9182_v0 = vsel %vm2693_vm13, 1.0, %v13174_v22  ;;  %vm2702_vm3 = vcmp.lt.s32.totalorder %v8468_v5, %v2446_v61  ;;  %v2208_v1 = vrot.slane %v9036_v14, 5  ;;  %v9192_v6 = vsel %vm2694_vm14, 1.0, %v13174_v22  ;;  %v30_v7 = vld [vmem:[%s13152_s0 + $0x68] sm:$0xff] }
  0x65   :  { %7954 = vperm.xlu1 %7791, %v7953_v17   ;;  %v2443_v8 = vperm.slane %v2207_v57, 0  ;;  %v2205_v9 = vrot.slane %v9036_v14, 2  ;;  %v2206_v10 = vrot.slane %v9036_v14, 3  ;;  %v9197_v11 = vsel %vm2691_vm15, 1.0, %v13174_v22  ;;  %v94_v17 = vld [vmem:[%s13152_s0 + $0x268] sm:$0xff] }
  0x66   :  { %7949 = vperm.xlu0 %7780, %v7948_v25   ;;  %v9149_v58 = vpop.permute.xlu2 %7804  ;;  %7272 = vmatmul.msk.f32.gmra.mxu0 %vm279_vm1, %v29_v47  ;;  %v9200_v12 = vsel %vm2692_vm0, 1.0, %v13174_v22  ;;  %v9203_v15 = vsel %vm2701_vm2, 1.0, %v13174_v22  ;;  %v2444_v16 = vperm.slane %v2208_v1, 0  ;;  %v9212_v14 = vsel %vm2702_vm3, 1.0, %v13174_v22 }
  0x67   :  { %7336 = vmatmul.msk.f32.gmra.mxu1 %vm279_vm1, %v93_v39  ;;  %7400 = vmatmul.msk.f32.gmra.mxu2 %vm279_vm1, %v157_v51  ;;  %vm2699_vm4 = vcmp.lt.s32.totalorder %v8468_v5, %v2443_v8  ;;  %v2441_v19 = vperm.slane %v2205_v9, 0  ;;  %v2214_v20 = vrot.slane %v9189_v2, 4  ;;  %v2442_v25 = vperm.slane %v2206_v10, 0  ;;  %v95_v51 = vld [vmem:[%s13152_s0 + $0x270] sm:$0xff] }
  0x68   :  { %7464 = vmatmul.msk.f32.gmra.mxu3 %vm279_vm1, %v221_v52  ;;  %vm2700_vm5 = vcmp.lt.s32.totalorder %v8468_v5, %v2444_v16  ;;  %v2215_v28 = vrot.slane %v9189_v2, 5  ;;  %v2212_v3 = vrot.slane %v9189_v2, 2  ;;  %v7983_v4 = vpack.i.bf16 %v9120_v44, %v9115_v43  ;;  %v9325_v9 = vld [vmem:[%s13153_s1 + $0x70] sm:$0xff] }
  0x69   :  { %v8003_v13 = vpack.i.bf16 %v9177_v63, %v9169_v62  ;;  %v7998_v18 = vpack.i.bf16 %v9192_v6, %v9182_v0  ;;  %v9251_v27 = vsel %vm2699_vm4, 1.0, %v13174_v22  ;;  %v9254_v24 = vsel %vm2700_vm5, 1.0, %v13174_v22 }
  0x6a   :  { %v7993_v33 = vpack.i.bf16 %v9200_v12, %v9197_v11  ;;  %vm2697_vm6 = vcmp.lt.s32.totalorder %v8468_v5, %v2441_v19  ;;  %vm2698_vm7 = vcmp.lt.s32.totalorder %v8468_v5, %v2442_v25  ;;  %v2452_v34 = vperm.slane %v2215_v28, 0 }
  0x6b   :  { %v2213_v37 = vrot.slane %v9189_v2, 3  ;;  %v2449_v41 = vperm.slane %v2212_v3, 0  ;;  %v8013_v42 = vpack.i.bf16 %v9254_v24, %v9251_v27  ;;  %v2211_v43 = vrot.slane %v9189_v2, 1 }
  0x6c   :  { %7974 = vperm.xlu2 %7802, %v7973_v26   ;;  %v7978_v26 = vpack.i.bf16 %v9161_v60, %v9156_v59  ;;  %v2447_v44 = vperm.slane %v9189_v2, 0  ;;  %v2219_v45 = vrot.slane %v9259_v32, 2  ;;  %v9276_v46 = vsel %vm2697_vm6, 1.0, %v13174_v22 }
  0x6d   :  { %7969 = vperm.xlu1 %7791, %v7968_v35   ;;  %v8018_v35 = vpack.i.bf16 %v9212_v14, %v9203_v15  ;;  %v2450_v47 = vperm.slane %v2213_v37, 0  ;;  %v2220_v39 = vrot.slane %v9259_v32, 3  ;;  %v2218_v48 = vrot.slane %v9259_v32, 1 }
  0x6e   :  { %7964 = vperm.xlu0 %7780, %v7963_v36   ;;  %v9244_v31 = vpop.permute.xlu2 %7809  ;;  %7273 = vmatmul.msk.f32.gmra.mxu0 %vm279_vm1, %v30_v7  ;;  %v2451_v36 = vperm.slane %v2214_v20, 0  ;;  %v9287_v52 = vsel %vm2698_vm7, 1.0, %v13174_v22  ;;  %v2448_v54 = vperm.slane %v2211_v43, 0  ;;  %v2457_v55 = vperm.slane %v2219_v45, 0  ;;  %v224_v45 = vld [vmem:[%s13152_s0 + $0x678] sm:$0xff] }
  0x6f   :  { %7337 = vmatmul.msk.f32.gmra.mxu1 %vm279_vm1, %v94_v17  ;;  %7401 = vmatmul.msk.f32.gmra.mxu2 %vm279_vm1, %v158_v21  ;;  %vm2708_vm9 = vcmp.lt.s32.totalorder %v8468_v5, %v2452_v34  ;;  %vm2705_vm10 = vcmp.lt.s32.totalorder %v8468_v5, %v2449_v41  ;;  %vm9302_vm11 = vcmp.lt.s32.totalorder %v8468_v5, %v2447_v44  ;;  %v2458_v38 = vperm.slane %v2220_v39, 0  ;;  %v96_v34 = vld [vmem:[%s13152_s0 + $0x278] sm:$0xff] }
  0x70   :  { %7465 = vmatmul.msk.f32.gmra.mxu3 %vm279_vm1, %v222_v23  ;;  %vm2707_vm8 = vcmp.lt.s32.totalorder %v8468_v5, %v2451_v36  ;;  %vm2706_vm12 = vcmp.lt.s32.totalorder %v8468_v5, %v2450_v47  ;;  %vm2704_vm13 = vcmp.lt.s32.totalorder %v8468_v5, %v2448_v54  ;;  %v2455_v40 = vperm.slane %v9259_v32, 0  ;;  %v32_v36 = vld [vmem:[%s13152_s0 + $0x78] sm:$0xff] }
  0x71   :  { %v8008_v1 = vpack.i.bf16 %v9287_v52, %v9276_v46  ;;  %v9320_v8 = vsel %vm2707_vm8, 1.0, %v13174_v22  ;;  %v9332_v10 = vsel %vm2708_vm9, 1.0, %v13174_v22  ;;  %v9337_v16 = vsel %vm2705_vm10, 1.0, %v13174_v22  ;;  %v160_v44 = vld [vmem:[%s13152_s0 + $0x478] sm:$0xff] }
  0x72   :  { %v9342_v7 = vsel %vm9302_vm11, 1.0, %v13174_v22  ;;  %vm2713_vm14 = vcmp.lt.s32.totalorder %v8468_v5, %v2457_v55  ;;  %v9348_v17 = vsel %vm2706_vm12, 1.0, %v13174_v22  ;;  %v9353_v19 = vsel %vm2704_vm13, 1.0, %v13174_v22  ;;  %v9438_v55 = vld [vmem:[%s13154_s3] ss:$0 sm:$0xff] }
  0x73   :  { %vm2714_vm15 = vcmp.lt.s32.totalorder %v8468_v5, %v2458_v38  ;;  %v2216_v20 = vrot.slane %v9189_v2, 6  ;;  %vm9358_vm0 = vcmp.lt.s32.totalorder %v8468_v5, %v2455_v40  ;;  %v2217_v23 = vrot.slane %v9189_v2, 7 }
  0x74   :  { %7989 = vperm.xlu2 %7802, %v7988_v53   ;;  %v2456_v53 = vperm.slane %v2218_v48, 0  ;;  %v2225_v25 = vrot.slane %v9325_v9, 1  ;;  %v9366_v28 = vsel %vm2713_vm14, 1.0, %v13174_v22  ;;  %v9377_v2 = vsel %vm2714_vm15, 1.0, %v13174_v22 }
  0x75   :  { %7984 = vperm.xlu1 %7791, %v7983_v4   ;;  %v2453_v3 = vperm.slane %v2216_v20, 0  ;;  %v2463_v4 = vperm.slane %v9325_v9, 0  ;;  %v2454_v37 = vperm.slane %v2217_v23, 0  ;;  %v2224_v43 = vrot.slane %v9259_v32, 7 }
  0x76   :  { %7979 = vperm.xlu0 %7780, %v7978_v26   ;;  %v9311_v61 = vpop.permute.xlu2 %7824  ;;  %7274 = vmatmul.msk.f32.gmra.mxu0 %vm279_vm1, %v31_v50  ;;  %vm2712_vm2 = vcmp.lt.s32.totalorder %v8468_v5, %v2456_v53  ;;  %v2223_v26 = vrot.slane %v9259_v32, 6  ;;  %v2464_v41 = vperm.slane %v2225_v25, 0  ;;  %v9395_v47 = vsel %vm9358_vm0, 1.0, %v13174_v22 }
  0x77   :  { %7338 = vmatmul.msk.f32.gmra.mxu1 %vm279_vm1, %v95_v51  ;;  %7402 = vmatmul.msk.f32.gmra.mxu2 %vm279_vm1, %v159_v49  ;;  %v9400_v62 = vsel %vm2712_vm2, 1.0, %v13174_v22  ;;  %vm2709_vm3 = vcmp.lt.s32.totalorder %v8468_v5, %v2453_v3  ;;  %v2221_v63 = vrot.slane %v9259_v32, 4  ;;  %vm2710_vm4 = vcmp.lt.s32.totalorder %v8468_v5, %v2454_v37 }
  0x78   :  { %7466 = vmatmul.msk.f32.gmra.mxu3 %vm279_vm1, %v223_v56  ;;  %vm9409_vm5 = vcmp.lt.s32.totalorder %v8468_v5, %v2463_v4  ;;  %v2461_v6 = vperm.slane %v2223_v26, 0  ;;  %v8033_v11 = vpack.i.bf16 %v9332_v10, %v9320_v8  ;;  %v8028_v12 = vpack.i.bf16 %v9348_v17, %v9337_v16 }
  0x79   :  { %vm2720_vm6 = vcmp.lt.s32.totalorder %v8468_v5, %v2464_v41  ;;  %vm4911_vm7 = vcmask 523264   ;;  %v8023_v51 = vpack.i.bf16 %v9353_v19, %v9342_v7  ;;  %v8048_v54 = vpack.i.bf16 %v9377_v2, %v9366_v28 }
  0x7a   :  { %v8043_v49 = vpack.i.bf16 %v9400_v62, %v9395_v47  ;;  %v9445_v56 = vsel %vm2709_vm3, 1.0, %v13174_v22  ;;  %v9450_v57 = vsel %vm2710_vm4, 1.0, %v13174_v22  ;;  %v9455_v38 = vsel %vm9409_vm5, 1.0, %v13174_v22 }
  0x7b   :  { %v9458_v40 = vsel %vm2720_vm6, 1.0, %v13174_v22  ;;  %vm2717_vm8 = vcmp.lt.s32.totalorder %v8468_v5, %v2461_v6  ;;  %v2459_v53 = vperm.slane %v2221_v63, 0  ;;  %v2230_v23 = vrot.slane %v9325_v9, 6  ;;  %v225_v63 = vld [vmem:[%s13152_s0 + $0x680] sm:$0xff] }
  0x7c   :  { %8004 = vperm.xlu2 %7802, %v8003_v13   ;;  %v2222_v13 = vrot.slane %v9259_v32, 5  ;;  %v2231_v25 = vrot.slane %v9325_v9, 7  ;;  %v2228_v37 = vrot.slane %v9325_v9, 4  ;;  %v9493_v0 = vsel %vm2717_vm8, 1.0, %v13174_v22  ;;  %v34_v32 = vld [vmem:[%s13152_s0 + $0x88] sm:$0xff] }
  0x7d   :  { %7999 = vperm.xlu1 %7791, %v7998_v18   ;;  %vm2715_vm10 = vcmp.lt.s32.totalorder %v8468_v5, %v2459_v53  ;;  %v2469_v27 = vperm.slane %v2230_v23, 0  ;;  %v8038_v53 = vpack.i.bf16 %v9450_v57, %v9445_v56  ;;  %vm6960_vm3 = vcmask 1041409  }
  0x7e   :  { %7994 = vperm.xlu0 %7780, %v7993_v33   ;;  %v9414_v18 = vpop.permute.xlu2 %7839  ;;  %7275 = vmatmul.msk.f32.gmra.mxu0 %vm279_vm1, %v32_v36  ;;  %v2462_v33 = vperm.slane %v2224_v43, 0  ;;  %v2460_v20 = vperm.slane %v2222_v13, 0  ;;  %v33_v36 = vld [vmem:[%s13152_s0 + $0x80] sm:$0xff]  ;;  %v2470_v24 = vperm.slane %v2231_v25, 0  ;;  %v9515_v46 = vsel %vm2715_vm10, 1.0, %v13174_v22 }
  0x7f   :  { %v9416_v39 = vpop.permute.xlu1 %7793  ;;  %7339 = vmatmul.msk.f32.gmra.mxu1 %vm279_vm1, %v96_v34  ;;  %7403 = vmatmul.msk.f32.gmra.mxu2 %vm279_vm1, %v160_v44  ;;  %v97_v34 = vld [vmem:[%s13152_s0 + $0x280] sm:$0xff]  ;;  %v2467_v25 = vperm.slane %v2228_v37, 0  ;;  %vm2725_vm12 = vcmp.lt.s32.totalorder %v8468_v5, %v2469_v27  ;;  %v162_v27 = vld [vmem:[%s13152_s0 + $0x488] sm:$0xff]  ;;  %vm6962_vm6 = vcmask 1042434   ;;  %vm6964_vm10 = vcmask 1043459  }
  0x80   :  { %v9427_v50 = vpop.permute.xlu0 %7782  ;;  %7467 = vmatmul.msk.f32.gmra.mxu3 %vm279_vm1, %v224_v45  ;;  %vm2718_vm9 = vcmp.lt.s32.totalorder %v8468_v5, %v2462_v33  ;;  %vm2716_vm11 = vcmp.lt.s32.totalorder %v8468_v5, %v2460_v20  ;;  %v161_v45 = vld [vmem:[%s13152_s0 + $0x480] sm:$0xff]  ;;  %v7795_v13 = vunpack.i.l.bf16 %v9416_v39  ;;  %v8063_v20 = vpack.i.bf16 %v9458_v40, %v9455_v38 }
  0x81   :  { %v7784_v43 = vunpack.i.l.bf16 %v9427_v50  ;;  %v9504_v14 = vsel %vm2718_vm9, 1.0, %v13174_v22  ;;  %v9520_v52 = vsel %vm2716_vm11, 1.0, %v13174_v22  ;;  %v7785_v33 = vunpack.i.h.bf16 %v9427_v50 }
  0x82   :  { %vm2726_vm13 = vcmp.lt.s32.totalorder %v8468_v5, %v2470_v24  ;;  %vm2723_vm14 = vcmp.lt.s32.totalorder %v8468_v5, %v2467_v25 }
  0x83   :  { %v1069_v4 = vpop.f32.mrf.mxu0  ;;  %v1261_v26 = vpop.f32.mrf.mxu1  ;;  %v9581_v8 = vsel %vm2726_vm13, 1.0, %v13174_v22 }
  0x84   :  { %8019 = vperm.xlu2 %7802, %v8018_v35   ;;  %v1070_v44 = vadd.f32 %v9438_v55, %v1069_v4  ;;  %v9499_v15 = vadd.f32 %v9438_v55, %v1261_v26  ;;  %v8058_v26 = vpack.i.bf16 %v9504_v14, %v9493_v0 }
  0x85   :  { %8014 = vperm.xlu1 %7791, %v8013_v42  }
  0x86   :  { %8009 = vperm.xlu0 %7780, %v8008_v1   ;;  %v1837_v35 = vmax.f32 %v1070_v44, 0.0  ;;  %v9506_v42 = vpop.permute.xlu2 %7854  ;;  %7276 = vmatmul.msk.f32.gmra.mxu0 %vm279_vm1, %v33_v36  ;;  %v2229_v1 = vrot.slane %v9325_v9, 5 }
  0x87   :  { %v9508_v6 = vpop.permute.xlu1 %7798  ;;  %7340 = vmatmul.msk.f32.gmra.mxu1 %vm279_vm1, %v97_v34  ;;  %7404 = vmatmul.msk.f32.gmra.mxu2 %vm279_vm1, %v161_v45  ;;  %v8053_v34 = vpack.i.bf16 %v9520_v52, %v9515_v46 }
  0x88   :  { %v9525_v23 = vpop.permute.xlu0 %7787  ;;  %7468 = vmatmul.msk.f32.gmra.mxu3 %vm279_vm1, %v225_v63  ;;  %v4655_v4 = vmul.f32 %v7784_v43, %v1837_v35  ;;  %v2468_v63 = vperm.slane %v2229_v1, 0  ;;  %v2226_v35 = vrot.slane %v9325_v9, 2  ;;  %v9556_v1 = vsel %vm2725_vm12, 1.0, %v13174_v22 }
  0x89   :  { %v7789_v7 = vunpack.i.l.bf16 %v9525_v23 }
  0x8a   :  { %v4912_v37 = vsel %vm4911_vm7, %v4655_v4, -inf  ;;  %v1453_v44 = vpop.f32.mrf.mxu2  ;;  %v1645_v45 = vpop.f32.mrf.mxu3  ;;  %v98_v4 = vld [vmem:[%s13152_s0 + $0x288] sm:$0xff]  ;;  %vm2724_vm15 = vcmp.lt.s32.totalorder %v8468_v5, %v2468_v63 }
  0x8b   :  { %v4913_v21 = vrot.slane %v4912_v37, 4  ;;  %v9545_v3 = vadd.f32 %v9438_v55, %v1453_v44  ;;  %v1072_v48 = vpop.f32.mrf.mxu0  ;;  %v9560_v44 = vadd.f32 %v9438_v55, %v1645_v45  ;;  %v226_v45 = vld [vmem:[%s13152_s0 + $0x688] sm:$0xff]  ;;  %v9621_v25 = vsel %vm2724_vm15, 1.0, %v13174_v22 }
  0x8c   :  { %v1264_v36 = vpop.f32.mrf.mxu1  ;;  %8034 = vperm.xlu2 %7802, %v8033_v11   ;;  %v1073_v43 = vadd.f32 %v9438_v55, %v1072_v48  ;;  %v2227_v11 = vrot.slane %v9325_v9, 3  ;;  %v8078_v9 = vpack.i.bf16 %v9581_v8, %v9556_v1 }
  0x8d   :  { %13268 = vst [vmem:[#allocation2_spill] sm:$0xff] %v9560_v44  ;;  %8029 = vperm.xlu1 %7791, %v8028_v12   ;;  %v9570_v59 = vadd.f32 %v9438_v55, %v1264_v36  ;;  %v4914_v10 = vmax.f32 %v4912_v37, %v4913_v21  ;;  %v7790_v12 = vunpack.i.h.bf16 %v9525_v23  ;;  %v2465_v21 = vperm.slane %v2226_v35, 0  ;;  %v165_v23 = vld [vmem:[%s13152_s0 + $0x4a0] sm:$0xff] }
  0x8e   :  { %8024 = vperm.xlu0 %7780, %v8023_v51   ;;  %v1838_v48 = vmax.f32 %v1073_v43, 0.0  ;;  %v9590_v36 = vpop.permute.xlu2 %7869  ;;  %7277 = vmatmul.msk.f32.gmra.mxu0 %vm279_vm1, %v34_v32  ;;  %v9607_v32 = vsel %vm2723_vm14, 1.0, %v13174_v22  ;;  %v2466_v29 = vperm.slane %v2227_v11, 0  ;;  %v35_v11 = vld [vmem:[%s13152_s0 + $0x90] sm:$0xff]  ;;  %vm6966_vm14 = vcmask 1044484  }
  0x8f   :  { %13269 = vst [vmem:[#allocation3_spill] sm:$0xff] %v9590_v36  ;;  %v9592_v60 = vpop.permute.xlu1 %7819  ;;  %7341 = vmatmul.msk.f32.gmra.mxu1 %vm279_vm1, %v98_v4  ;;  %v4915_v24 = vrot.slane %v4914_v10, 2  ;;  %7405 = vmatmul.msk.f32.gmra.mxu2 %vm279_vm1, %v162_v27  ;;  %v9615_v4 = vld [vmem:[%s13153_s1 + $0x78] sm:$0xff]  ;;  %vm2721_vm0 = vcmp.lt.s32.totalorder %v8468_v5, %v2465_v21  ;;  %v8073_v56 = vpack.i.bf16 %v9621_v25, %v9607_v32 }
  0x90   :  { %v9598_v19 = vpop.permute.xlu0 %7814  ;;  %7469 = vmatmul.msk.f32.gmra.mxu3 %vm279_vm1, %v226_v45  ;;  %v4656_v43 = vmul.f32 %v7785_v33, %v1838_v48  ;;  %v2235_v33 = vrot.slane %v9615_v4, 4  ;;  %v163_v48 = vld [vmem:[%s13152_s0 + $0x490] sm:$0xff]  ;;  %vm2722_vm2 = vcmp.lt.s32.totalorder %v8468_v5, %v2466_v29  ;;  %v2236_v2 = vrot.slane %v9615_v4, 5 }
  0x91   :  { %v4916_v27 = vmax.f32 %v4914_v10, %v4915_v24  ;;  %v9675_v57 = vsel %vm2721_vm0, 1.0, %v13174_v22  ;;  %v2471_v25 = vperm.slane %v9615_v4, 0 }
  0x92   :  { %v4919_v51 = vsel %vm4911_vm7, %v4656_v43, -inf  ;;  %v1456_v37 = vpop.f32.mrf.mxu2  ;;  %v99_v43 = vld [vmem:[%s13152_s0 + $0x290] sm:$0xff]  ;;  %v2476_v28 = vperm.slane %v2236_v2, 0  ;;  %v36_v2 = vld [vmem:[%s13152_s0 + $0x98] sm:$0xff] }
  0x93   :  { %v1648_v30 = vpop.f32.mrf.mxu3  ;;  %v4917_v16 = vrot.slane %v4916_v27, 1  ;;  %v4920_v10 = vrot.slane %v4919_v51, 4  ;;  %v9628_v24 = vadd.f32 %v9438_v55, %v1456_v37  ;;  %v1075_v45 = vpop.f32.mrf.mxu0  ;;  %vm2727_vm11 = vcmp.lt.s32.totalorder %v8468_v5, %v2471_v25 }
  0x94   :  { %v1267_v63 = vpop.f32.mrf.mxu1  ;;  %v9639_v35 = vadd.f32 %v9438_v55, %v1648_v30  ;;  %8049 = vperm.xlu2 %7802, %v8048_v54   ;;  %v1076_v37 = vadd.f32 %v9438_v55, %v1075_v45  ;;  %v227_v30 = vld [vmem:[%s13152_s0 + $0x690] sm:$0xff]  ;;  %vm2732_vm5 = vcmp.lt.s32.totalorder %v8468_v5, %v2476_v28  ;;  %v2232_v28 = vrot.slane %v9615_v4, 1 }
  0x95   :  { %8044 = vperm.xlu1 %7791, %v8043_v49   ;;  %v9649_v50 = vadd.f32 %v9438_v55, %v1267_v63  ;;  %v4921_v17 = vmax.f32 %v4919_v51, %v4920_v10  ;;  %v2475_v63 = vperm.slane %v2235_v33, 0 }
  0x96   :  { %13270 = vst [vmem:[#allocation4_spill] sm:$0xff] %v9639_v35  ;;  %8039 = vperm.xlu0 %7780, %v8038_v53   ;;  %v1839_v62 = vmax.f32 %v1076_v37, 0.0  ;;  %v9664_v54 = vpop.permute.xlu2 %7884  ;;  %7278 = vmatmul.msk.f32.gmra.mxu0 %vm279_vm1, %v35_v11  ;;  %v9677_v53 = vmax.f32 %v4916_v27, %v4917_v16  ;;  %v9689_v16 = vsel %vm2722_vm2, 1.0, %v13174_v22  ;;  %v164_v27 = vld [vmem:[%s13152_s0 + $0x498] sm:$0xff] }
  0x97   :  { %13271 = vst [vmem:[#allocation5_spill] sm:$0xff] %v9664_v54  ;;  %v9666_v49 = vpop.permute.xlu1 %7834  ;;  %7342 = vmatmul.msk.f32.gmra.mxu1 %vm279_vm1, %v99_v43  ;;  %v4922_v51 = vrot.slane %v4921_v17, 2  ;;  %7406 = vmatmul.msk.f32.gmra.mxu2 %vm279_vm1, %v163_v48  ;;  %vm2731_vm4 = vcmp.lt.s32.totalorder %v8468_v5, %v2475_v63 }
  0x98   :  { %v9680_v10 = vpop.permute.xlu0 %7829  ;;  %7470 = vmatmul.msk.f32.gmra.mxu3 %vm279_vm1, %v227_v30  ;;  %v4657_v43 = vmul.f32 %v7789_v7, %v1839_v62  ;;  %v2233_v7 = vrot.slane %v9615_v4, 2  ;;  %v2234_v62 = vrot.slane %v9615_v4, 3 }
  0x99   :  { %v4923_v21 = vmax.f32 %v4921_v17, %v4922_v51 }
  0x9a   :  { %v4926_v48 = vsel %vm4911_vm7, %v4657_v43, -inf  ;;  %v1459_v30 = vpop.f32.mrf.mxu2  ;;  %v100_v43 = vld [vmem:[%s13152_s0 + $0x298] sm:$0xff]  ;;  %v2473_v40 = vperm.slane %v2233_v7, 0 }
  0x9b   :  { %v1651_v11 = vpop.f32.mrf.mxu3  ;;  %v4924_v47 = vrot.slane %v4923_v21, 1  ;;  %v4927_v29 = vrot.slane %v4926_v48, 4  ;;  %v9698_v37 = vadd.f32 %v9438_v55, %v1459_v30  ;;  %v1078_v17 = vpop.f32.mrf.mxu0 }
  0x9c   :  { %v1270_v51 = vpop.f32.mrf.mxu1  ;;  %v9709_v45 = vadd.f32 %v9438_v55, %v1651_v11  ;;  %8064 = vperm.xlu2 %7802, %v8063_v20   ;;  %v1079_v30 = vadd.f32 %v9438_v55, %v1078_v17  ;;  %v228_v11 = vld [vmem:[%s13152_s0 + $0x698] sm:$0xff]  ;;  %vm2729_vm8 = vcmp.lt.s32.totalorder %v8468_v5, %v2473_v40  ;;  %v2472_v40 = vperm.slane %v2232_v28, 0 }
  0x9d   :  { %8059 = vperm.xlu1 %7791, %v8058_v26   ;;  %v9719_v33 = vadd.f32 %v9438_v55, %v1270_v51  ;;  %v4925_v41 = vmax.f32 %v4923_v21, %v4924_v47  ;;  %v4928_v38 = vmax.f32 %v4926_v48, %v4927_v29  ;;  %v2474_v47 = vperm.slane %v2234_v62, 0 }
  0x9e   :  { %13272 = vst [vmem:[#allocation6_spill] sm:$0xff] %v9709_v45  ;;  %8054 = vperm.xlu0 %7780, %v8053_v34   ;;  %v1840_v20 = vmax.f32 %v1079_v30, 0.0  ;;  %v9733_v26 = vpop.permute.xlu2 %7899  ;;  %7279 = vmatmul.msk.f32.gmra.mxu0 %vm279_vm1, %v36_v2  ;;  %v8068_v21 = vpack.i.bf16 %v9689_v16, %v9675_v57  ;;  %v9749_v48 = vsel %vm2731_vm4, 1.0, %v13174_v22  ;;  %v7638_v1 = vsel %vm2729_vm8, 1.0, %v13174_v22 }
  0x9f   :  { %13273 = vst [vmem:[#allocation7_spill] sm:$0xff] %v9733_v26  ;;  %v9735_v17 = vpop.permute.xlu1 %7849  ;;  %7343 = vmatmul.msk.f32.gmra.mxu1 %vm279_vm1, %v100_v43  ;;  %v4929_v46 = vrot.slane %v4928_v38, 2  ;;  %7407 = vmatmul.msk.f32.gmra.mxu2 %vm279_vm1, %v164_v27  ;;  %v9758_v27 = vsel %vm2732_vm5, 1.0, %v13174_v22  ;;  %v6961_v57 = vsel %vm6960_vm3, %v4925_v41, %v9677_v53  ;;  %vm2730_vm9 = vcmp.lt.s32.totalorder %v8468_v5, %v2474_v47 }
  0xa0   :  { %v9740_v34 = vpop.permute.xlu0 %7844  ;;  %7471 = vmatmul.msk.f32.gmra.mxu3 %vm279_vm1, %v228_v11  ;;  %v4658_v62 = vmul.f32 %v7790_v12, %v1840_v20  ;;  %v37_v20 = vld [vmem:[%s13152_s0 + $0xa0] sm:$0xff]  ;;  %v7639_v32 = vsel %vm2730_vm9, 1.0, %v13174_v22  ;;  %vm2728_vm12 = vcmp.lt.s32.totalorder %v8468_v5, %v2472_v40  ;;  %vm6968_vm8 = vcmask 1045509  }
  0xa1   :  { %v4930_v16 = vmax.f32 %v4928_v38, %v4929_v46  ;;  %v101_v46 = vld [vmem:[%s13152_s0 + $0x2a0] sm:$0xff]  ;;  %vm6970_vm9 = vcmask 1046534  }
  0xa2   :  { %v4933_v51 = vsel %vm4911_vm7, %v4658_v62, -inf  ;;  %v1462_v12 = vpop.f32.mrf.mxu2 }
  0xa3   :  { %v1654_v2 = vpop.f32.mrf.mxu3  ;;  %v4931_v43 = vrot.slane %v4930_v16, 1  ;;  %v4934_v30 = vrot.slane %v4933_v51, 4  ;;  %v9770_v41 = vadd.f32 %v9438_v55, %v1462_v12  ;;  %v1081_v53 = vpop.f32.mrf.mxu0 }
  0xa4   :  { %v1273_v38 = vpop.f32.mrf.mxu1  ;;  %v9779_v62 = vadd.f32 %v9438_v55, %v1654_v2  ;;  %8079 = vperm.xlu2 %7802, %v8078_v9   ;;  %v1082_v12 = vadd.f32 %v9438_v55, %v1081_v53  ;;  %v229_v2 = vld [vmem:[%s13152_s0 + $0x6a0] sm:$0xff] }
  0xa5   :  { %8074 = vperm.xlu1 %7791, %v8073_v56   ;;  %v9789_v63 = vadd.f32 %v9438_v55, %v1273_v38  ;;  %v4932_v8 = vmax.f32 %v4930_v16, %v4931_v43  ;;  %v4935_v9 = vmax.f32 %v4933_v51, %v4934_v30  ;;  %v8093_v51 = vpack.i.bf16 %v9758_v27, %v9749_v48  ;;  %v9830_v48 = vld [vmem:[%s13153_s1 + $0x80] sm:$0xff] }
  0xa6   :  { %13274 = vst [vmem:[#allocation8_spill] sm:$0xff] %v9779_v62  ;;  %8069 = vperm.xlu0 %7780, %v8068_v21   ;;  %v1841_v38 = vmax.f32 %v1082_v12, 0.0  ;;  %v9806_v7 = vpop.permute.xlu2 %7914  ;;  %7280 = vmatmul.msk.f32.gmra.mxu0 %vm279_vm1, %v37_v20  ;;  %v2240_v53 = vrot.slane %v9830_v48, 2  ;;  %v2241_v14 = vrot.slane %v9830_v48, 3  ;;  %v2238_v20 = vrot.slane %v9615_v4, 7 }
  0xa7   :  { %13275 = vst [vmem:[#allocation9_spill] sm:$0xff] %v9806_v7  ;;  %7344 = vmatmul.msk.f32.gmra.mxu1 %vm279_vm1, %v101_v46  ;;  %v4936_v16 = vrot.slane %v4935_v9, 2  ;;  %7408 = vmatmul.msk.f32.gmra.mxu2 %vm279_vm1, %v165_v23  ;;  %v9820_v28 = vpop.permute.xlu1 %7864  ;;  %v8088_v46 = vpack.i.bf16 %v7639_v32, %v7638_v1  ;;  %v6963_v12 = vsel %vm6962_vm6, %v4932_v8, %v6961_v57  ;;  %v7636_v57 = vsel %vm2727_vm11, 1.0, %v13174_v22 }
  0xa8   :  { %7472 = vmatmul.msk.f32.gmra.mxu3 %vm279_vm1, %v229_v2  ;;  %v4659_v30 = vmul.f32 %v7795_v13, %v1841_v38  ;;  %13276 = vst [vmem:[#allocation10_spill] sm:$0xff] %v9820_v28  ;;  %v9823_v56 = vpop.permute.xlu0 %7859  ;;  %v7637_v1 = vsel %vm2728_vm12, 1.0, %v13174_v22  ;;  %v2478_v7 = vperm.slane %v2238_v20, 0 }
  0xa9   :  { %v4937_v11 = vmax.f32 %v4935_v9, %v4936_v16  ;;  %13277 = vst [vmem:[#allocation11_spill] sm:$0xff] %v9823_v56  ;;  %v38_v16 = vld [vmem:[%s13152_s0 + $0xa8] sm:$0xff] }
  0xaa   :  { %v4940_v13 = vsel %vm4911_vm7, %v4659_v30, -inf  ;;  %v1465_v23 = vpop.f32.mrf.mxu2  ;;  %v8083_v30 = vpack.i.bf16 %v7637_v1, %v7636_v57  ;;  %v230_v57 = vld [vmem:[%s13152_s0 + $0x6a8] sm:$0xff]  ;;  %vm2734_vm5 = vcmp.lt.s32.totalorder %v8468_v5, %v2478_v7 }
  0xab   :  { %v1657_v2 = vpop.f32.mrf.mxu3  ;;  %v4938_v8 = vrot.slane %v4937_v11, 1  ;;  %v4941_v9 = vrot.slane %v4940_v13, 4  ;;  %v9837_v32 = vadd.f32 %v9438_v55, %v1465_v23  ;;  %v1084_v38 = vpop.f32.mrf.mxu0  ;;  %v102_v23 = vld [vmem:[%s13152_s0 + $0x2a8] sm:$0xff] }
  0xac   :  { %v9840_v25 = vadd.f32 %v9438_v55, %v1657_v2  ;;  %v1276_v40 = vpop.f32.mrf.mxu1  ;;  %8094 = vperm.xlu2 %7802, %v8093_v51   ;;  %v1085_v27 = vadd.f32 %v9438_v55, %v1084_v38  ;;  %v166_v2 = vld [vmem:[%s13152_s0 + $0x4a8] sm:$0xff] }
  0xad   :  { %8089 = vperm.xlu1 %7791, %v8088_v46   ;;  %v9847_v43 = vadd.f32 %v9438_v55, %v1276_v40  ;;  %v4939_v21 = vmax.f32 %v4937_v11, %v4938_v8  ;;  %v4942_v0 = vmax.f32 %v4940_v13, %v4941_v9  ;;  %v2481_v11 = vperm.slane %v2240_v53, 0 }
  0xae   :  { %13278 = vst [vmem:[#allocation12_spill] sm:$0xff] %v9840_v25  ;;  %8084 = vperm.xlu0 %7780, %v8083_v30   ;;  %v1842_v38 = vmax.f32 %v1085_v27, 0.0  ;;  %v9862_v40 = vpop.permute.xlu2 %7929  ;;  %7281 = vmatmul.msk.f32.gmra.mxu0 %vm279_vm1, %v38_v16  ;;  %v13280_v16 = vunpack.i.h.bf16 %v9416_v39  ;;  %v2482_v9 = vperm.slane %v2241_v14, 0  ;;  %v2239_v39 = vrot.slane %v9830_v48, 1 }
  0xaf   :  { %13279 = vst [vmem:[#allocation13_spill] sm:$0xff] %v9862_v40  ;;  %v4943_v13 = vrot.slane %v4942_v0, 2  ;;  %7345 = vmatmul.msk.f32.gmra.mxu1 %vm279_vm1, %v102_v23  ;;  %7409 = vmatmul.msk.f32.gmra.mxu2 %vm279_vm1, %v166_v2  ;;  %v9872_v27 = vsel %vm6964_vm10, %v4939_v21, %v6963_v12  ;;  %vm2737_vm13 = vcmp.lt.s32.totalorder %v8468_v5, %v2481_v11  ;;  %v9883_v12 = vpop.permute.xlu1 %7879  ;;  %v2237_v21 = vrot.slane %v9615_v4, 6 }
  0xb0   :  { %v4660_v46 = vmul.f32 %v13280_v16, %v1842_v38  ;;  %7473 = vmatmul.msk.f32.gmra.mxu3 %vm279_vm1, %v230_v57  ;;  %13281 = vst [vmem:[#allocation14_spill] sm:$0xff] %v9883_v12  ;;  %v2479_v38 = vperm.slane %v9830_v48, 0  ;;  %v7646_v14 = vsel %vm2737_vm13, 1.0, %v13174_v22  ;;  %v9893_v11 = vpop.permute.xlu0 %7874  ;;  %vm2738_vm15 = vcmp.lt.s32.totalorder %v8468_v5, %v2482_v9  ;;  %v167_v57 = vld [vmem:[%s13152_s0 + $0x4b0] sm:$0xff] }
  0xb1   :  { %v4944_v1 = vmax.f32 %v4942_v0, %v4943_v13  ;;  %13282 = vst [vmem:[#allocation15_spill] sm:$0xff] %v9893_v11  ;;  %v2480_v8 = vperm.slane %v2239_v39, 0  ;;  %v103_v0 = vld [vmem:[%s13152_s0 + $0x2b0] sm:$0xff]  ;;  %v2243_v11 = vrot.slane %v9830_v48, 5 }
  0xb2   :  { %v4947_v23 = vsel %vm4911_vm7, %v4660_v46, -inf  ;;  %v1468_v2 = vpop.f32.mrf.mxu2  ;;  %v39_v46 = vld [vmem:[%s13152_s0 + $0xb0] sm:$0xff]  ;;  %vm2735_vm0 = vcmp.lt.s32.totalorder %v8468_v5, %v2479_v38  ;;  %v7647_v38 = vsel %vm2738_vm15, 1.0, %v13174_v22 }
  0xb3   :  { %v4948_v16 = vrot.slane %v4947_v23, 4  ;;  %v1660_v13 = vpop.f32.mrf.mxu3  ;;  %v4945_v30 = vrot.slane %v4944_v1, 1  ;;  %v9906_v47 = vadd.f32 %v9438_v55, %v1468_v2  ;;  %v1087_v9 = vpop.f32.mrf.mxu0  ;;  %v231_v39 = vld [vmem:[%s13152_s0 + $0x6b0] sm:$0xff]  ;;  %vm2736_vm2 = vcmp.lt.s32.totalorder %v8468_v5, %v2480_v8 }
  0xb4   :  { %v7644_v29 = vsel %vm2735_vm0, 1.0, %v13174_v22  ;;  %v9917_v2 = vadd.f32 %v9438_v55, %v1660_v13  ;;  %v7645_v52 = vsel %vm2736_vm2, 1.0, %v13174_v22  ;;  %v2477_v8 = vperm.slane %v2237_v21, 0  ;;  %v1279_v4 = vpop.f32.mrf.mxu1 }
  0xb5   :  { %v4949_v51 = vmax.f32 %v4947_v23, %v4948_v16  ;;  %v8108_v16 = vpack.i.bf16 %v7647_v38, %v7646_v14  ;;  %v8103_v40 = vpack.i.bf16 %v7645_v52, %v7644_v29  ;;  %v1088_v26 = vadd.f32 %v9438_v55, %v1087_v9  ;;  %v168_v38 = vld [vmem:[%s13152_s0 + $0x4b8] sm:$0xff] }
  0xb6   :  { %v7945_v53 = vpop.permute.xlu2 %7944  ;;  %7282 = vmatmul.msk.f32.gmra.mxu0 %vm279_vm1, %v39_v46  ;;  %v4946_v46 = vmax.f32 %v4944_v1, %v4945_v30  ;;  %v9925_v13 = vadd.f32 %v9438_v55, %v1279_v4  ;;  %vm2733_vm4 = vcmp.lt.s32.totalorder %v8468_v5, %v2477_v8  ;;  %v7643_v1 = vsel %vm2734_vm5, 1.0, %v13174_v22  ;;  %v232_v4 = vld [vmem:[%s13152_s0 + $0x6b8] sm:$0xff] }
  0xb7   :  { %v4950_v23 = vrot.slane %v4949_v51, 2  ;;  %7346 = vmatmul.msk.f32.gmra.mxu1 %vm279_vm1, %v103_v0  ;;  %7410 = vmatmul.msk.f32.gmra.mxu2 %vm279_vm1, %v167_v57  ;;  %v7947_v14 = vunpack.i.h.bf16 %v7945_v53  ;;  %v1843_v52 = vmax.f32 %v1088_v26, 0.0  ;;  %v7946_v29 = vunpack.i.l.bf16 %v7945_v53 }
  0xb8   :  { %7474 = vmatmul.msk.f32.gmra.mxu3 %vm279_vm1, %v231_v39  ;;  %8109 = vperm.xlu2 %7802, %v8108_v16   ;;  %v7642_v0 = vsel %vm2733_vm4, 1.0, %v13174_v22  ;;  %v13284_v9 = vmax.f32 %v9499_v15, 0.0  ;;  %v13285_v26 = vmax.f32 %v9570_v59, 0.0  ;;  %v104_v39 = vld [vmem:[%s13152_s0 + $0x2b8] sm:$0xff]  ;;  %v9957_v59 = vld [vmem:[%s13153_s1 + $0x88] sm:$0xff]  ;;  %v2244_v15 = vrot.slane %v9830_v48, 6 }
  0xb9   :  { %v4951_v54 = vmax.f32 %v4949_v51, %v4950_v23  ;;  %8104 = vperm.xlu1 %7791, %v8103_v40   ;;  %v40_v51 = vld [vmem:[%s13152_s0 + $0xb8] sm:$0xff]  ;;  %v8098_v30 = vpack.i.bf16 %v7643_v1, %v7642_v0  ;;  %v13283_v40 = vunpack.i.l.bf16 %v9508_v6  ;;  %v9949_v23 = vsel %vm6966_vm14, %v4946_v46, %v9872_v27  ;;  %v9969_v0 = vpop.permute.xlu0 %7889 }
  0xba   :  { %v4719_v7 = vmul.f32 %v7946_v29, %v13284_v9  ;;  %v4720_v53 = vmul.f32 %v7947_v14, %v13285_v26  ;;  %v9967_v29 = vpop.permute.xlu1 %7894  ;;  %13287 = vst [vmem:[#allocation17_spill] sm:$0xff] %v9969_v0  ;;  %vm6972_vm4 = vcmask 1047559  }
  0xbb   :  { %v4952_v20 = vrot.slane %v4951_v54, 1  ;;  %v4661_v57 = vmul.f32 %v13283_v40, %v1843_v52  ;;  %8099 = vperm.xlu0 %7780, %v8098_v30   ;;  %13286 = vst [vmem:[#allocation16_spill] sm:$0xff] %v9967_v29  ;;  %v1090_v29 = vpop.f32.mrf.mxu0 }
  0xbc   :  { %v5360_v46 = vsel %vm4911_vm7, %v4719_v7, -inf  ;;  %v5367_v52 = vsel %vm4911_vm7, %v4720_v53, -inf  ;;  %v2246_v7 = vrot.slane %v9957_v59, 1 }
  0xbd   :  { %v9962_v14 = vmax.f32 %v4951_v54, %v4952_v20  ;;  %v4954_v27 = vsel %vm4911_vm7, %v4661_v57, -inf  ;;  %v5361_v40 = vrot.slane %v5360_v46, 4  ;;  %v5368_v9 = vrot.slane %v5367_v52, 4  ;;  %v1471_v54 = vpop.f32.mrf.mxu2  ;;  %v1663_v20 = vpop.f32.mrf.mxu3 }
  0xbe   :  { %7283 = vmatmul.msk.f32.gmra.mxu0 %vm279_vm1, %v40_v51  ;;  %v4955_v1 = vrot.slane %v4954_v27, 4  ;;  %v2487_v51 = vperm.slane %v9957_v59, 0  ;;  %v2488_v30 = vperm.slane %v2246_v7, 0 }
  0xbf   :  { %7347 = vmatmul.msk.f32.gmra.mxu1 %vm279_vm1, %v104_v39  ;;  %7411 = vmatmul.msk.f32.gmra.mxu2 %vm279_vm1, %v168_v38  ;;  %v5362_v21 = vmax.f32 %v5360_v46, %v5361_v40  ;;  %v5369_v26 = vmax.f32 %v5367_v52, %v5368_v9  ;;  %v9982_v39 = vadd.f32 %v9438_v55, %v1471_v54  ;;  %v2245_v46 = vrot.slane %v9830_v48, 7  ;;  %v105_v40 = vld [vmem:[%s13152_s0 + $0x2c0] sm:$0xff] }
  0xc0   :  { %7475 = vmatmul.msk.f32.gmra.mxu3 %vm279_vm1, %v232_v4  ;;  %v4956_v53 = vmax.f32 %v4954_v27, %v4955_v1  ;;  %v9985_v38 = vadd.f32 %v9438_v55, %v1663_v20  ;;  %vm2743_vm11 = vcmp.lt.s32.totalorder %v8468_v5, %v2487_v51  ;;  %v41_v27 = vld [vmem:[%s13152_s0 + $0xc0] sm:$0xff]  ;;  %vm2744_vm12 = vcmp.lt.s32.totalorder %v8468_v5, %v2488_v30 }
  0xc1   :  { %v5363_v16 = vrot.slane %v5362_v21, 2  ;;  %v5370_v8 = vrot.slane %v5369_v26, 2  ;;  %v7652_v4 = vsel %vm2743_vm11, 1.0, %v13174_v22  ;;  %v2485_v52 = vperm.slane %v2244_v15, 0  ;;  %v169_v9 = vld [vmem:[%s13152_s0 + $0x4c0] sm:$0xff] }
  0xc2   :  { %13288 = vst [vmem:[#allocation18_spill] sm:$0xff] %v9985_v38  ;;  %v4957_v57 = vrot.slane %v4956_v53, 2  ;;  %v2242_v1 = vrot.slane %v9830_v48, 4  ;;  %v7653_v51 = vsel %vm2744_vm12, 1.0, %v13174_v22  ;;  %v233_v15 = vld [vmem:[%s13152_s0 + $0x6c0] sm:$0xff]  ;;  %v2486_v12 = vperm.slane %v2245_v46, 0  ;;  %v1282_v46 = vpop.f32.mrf.mxu1 }
  0xc3   :  { %v5364_v20 = vmax.f32 %v5362_v21, %v5363_v16  ;;  %v5371_v7 = vmax.f32 %v5369_v26, %v5370_v8  ;;  %v8123_v30 = vpack.i.bf16 %v7653_v51, %v7652_v4  ;;  %vm2741_vm13 = vcmp.lt.s32.totalorder %v8468_v5, %v2485_v52 }
  0xc4   :  { %v4958_v54 = vmax.f32 %v4956_v53, %v4957_v57  ;;  %v7650_v21 = vsel %vm2741_vm13, 1.0, %v13174_v22  ;;  %vm2742_vm15 = vcmp.lt.s32.totalorder %v8468_v5, %v2486_v12  ;;  %v2483_v16 = vperm.slane %v2242_v1, 0 }
  0xc5   :  { %v5365_v28 = vrot.slane %v5364_v20, 1  ;;  %v5372_v57 = vrot.slane %v5371_v7, 1  ;;  %8124 = vperm.xlu2 %7802, %v8123_v30   ;;  %v2484_v8 = vperm.slane %v2243_v11, 0  ;;  %v1091_v26 = vadd.f32 %v9438_v55, %v1090_v29  ;;  %v10031_v30 = vpop.permute.xlu1 %7909 }
  0xc6   :  { %7284 = vmatmul.msk.f32.gmra.mxu0 %vm279_vm1, %v41_v27  ;;  %v4959_v36 = vrot.slane %v4958_v54, 1  ;;  %v7651_v27 = vsel %vm2742_vm15, 1.0, %v13174_v22  ;;  %vm2739_vm0 = vcmp.lt.s32.totalorder %v8468_v5, %v2483_v16  ;;  %v6969_v12 = vsel %vm6968_vm8, %v9962_v14, %v9949_v23  ;;  %13290 = vst [vmem:[#allocation19_spill] sm:$0xff] %v10031_v30  ;;  %v170_v16 = vld [vmem:[%s13152_s0 + $0x4c8] sm:$0xff] }
  0xc7   :  { %7348 = vmatmul.msk.f32.gmra.mxu1 %vm279_vm1, %v105_v40  ;;  %7412 = vmatmul.msk.f32.gmra.mxu2 %vm279_vm1, %v169_v9  ;;  %v5366_v53 = vmax.f32 %v5364_v20, %v5365_v28  ;;  %v5373_v4 = vmax.f32 %v5371_v7, %v5372_v57  ;;  %v8118_v52 = vpack.i.bf16 %v7651_v27, %v7650_v21  ;;  %v1844_v40 = vmax.f32 %v1091_v26, 0.0  ;;  %v7960_v9 = vpop.permute.xlu2 %7959  ;;  %v10033_v57 = vpop.permute.xlu0 %7904  ;;  %v42_v21 = vld [vmem:[%s13152_s0 + $0xc8] sm:$0xff] }
  0xc8   :  { %7476 = vmatmul.msk.f32.gmra.mxu3 %vm279_vm1, %v233_v15  ;;  %v4960_v48 = vmax.f32 %v4958_v54, %v4959_v36  ;;  %vm2740_vm2 = vcmp.lt.s32.totalorder %v8468_v5, %v2484_v8  ;;  %v7648_v36 = vsel %vm2739_vm0, 1.0, %v13174_v22  ;;  %v13289_v54 = vunpack.i.h.bf16 %v9508_v6  ;;  %13291 = vst [vmem:[#allocation20_spill] sm:$0xff] %v10033_v57  ;;  %v106_v6 = vld [vmem:[%s13152_s0 + $0x2c8] sm:$0xff] }
  0xc9   :  { %v7649_v28 = vsel %vm2740_vm2, 1.0, %v13174_v22  ;;  %8119 = vperm.xlu1 %7791, %v8118_v52   ;;  %v1283_v7 = vadd.f32 %v9438_v55, %v1282_v46  ;;  %v7962_v14 = vunpack.i.h.bf16 %v7960_v9  ;;  %v7961_v15 = vunpack.i.l.bf16 %v7960_v9  ;;  %v1474_v46 = vpop.f32.mrf.mxu2  ;;  %v1666_v52 = vpop.f32.mrf.mxu3 }
  0xca   :  { %v8113_v1 = vpack.i.bf16 %v7649_v28, %v7648_v36  ;;  %v4662_v20 = vmul.f32 %v13289_v54, %v1844_v40  ;;  %v10028_v51 = vsel %vm6970_vm9, %v4960_v48, %v6969_v12  ;;  %v10045_v8 = vsel %vm6960_vm3, %v5373_v4, %v5366_v53  ;;  %v234_v40 = vld [vmem:[%s13152_s0 + $0x6c8] sm:$0xff] }
  0xcb   :  { %v1908_v48 = vmax.f32 %v1283_v7, 0.0  ;;  %v13292_v12 = vmax.f32 %v9925_v13, 0.0  ;;  %v2252_v54 = vrot.slane %v9957_v59, 7  ;;  %v2250_v53 = vrot.slane %v9957_v59, 5 }
  0xcc   :  { %8114 = vperm.xlu0 %7780, %v8113_v1   ;;  %v4961_v26 = vsel %vm4911_vm7, %v4662_v20, -inf  ;;  %v2251_v1 = vrot.slane %v9957_v59, 6  ;;  %v2249_v20 = vrot.slane %v9957_v59, 4 }
  0xcd   :  { %v4962_v9 = vrot.slane %v4961_v26, 4  ;;  %v4725_v36 = vmul.f32 %v7961_v15, %v13292_v12  ;;  %v4726_v28 = vmul.f32 %v7962_v14, %v1908_v48  ;;  %v10065_v15 = vadd.f32 %v9438_v55, %v1474_v46 }
  0xce   :  { %7285 = vmatmul.msk.f32.gmra.mxu0 %vm279_vm1, %v42_v21  ;;  %v10068_v21 = vadd.f32 %v9438_v55, %v1666_v52  ;;  %v2494_v48 = vperm.slane %v2252_v54, 0  ;;  %v2491_v4 = vperm.slane %v2249_v20, 0  ;;  %v2492_v54 = vperm.slane %v2250_v53, 0 }
  0xcf   :  { %7349 = vmatmul.msk.f32.gmra.mxu1 %vm279_vm1, %v106_v6  ;;  %7413 = vmatmul.msk.f32.gmra.mxu2 %vm279_vm1, %v170_v16  ;;  %v4963_v13 = vmax.f32 %v4961_v26, %v4962_v9  ;;  %v5402_v7 = vsel %vm4911_vm7, %v4725_v36, -inf  ;;  %v5409_v14 = vsel %vm4911_vm7, %v4726_v28, -inf  ;;  %v2493_v16 = vperm.slane %v2251_v1, 0  ;;  %v1093_v36 = vpop.f32.mrf.mxu0 }
  0xd0   :  { %7477 = vmatmul.msk.f32.gmra.mxu3 %vm279_vm1, %v234_v40  ;;  %13293 = vst [vmem:[#allocation21_spill] sm:$0xff] %v10068_v21  ;;  %v5403_v6 = vrot.slane %v5402_v7, 4  ;;  %v5410_v27 = vrot.slane %v5409_v14, 4  ;;  %vm2750_vm11 = vcmp.lt.s32.totalorder %v8468_v5, %v2494_v48  ;;  %v2247_v26 = vrot.slane %v9957_v59, 2 }
  0xd1   :  { %v4964_v12 = vrot.slane %v4963_v13, 2  ;;  %vm2749_vm5 = vcmp.lt.s32.totalorder %v8468_v5, %v2493_v16  ;;  %v7659_v9 = vsel %vm2750_vm11, 1.0, %v13174_v22  ;;  %vm2747_vm12 = vcmp.lt.s32.totalorder %v8468_v5, %v2491_v4 }
  0xd2   :  { %v5404_v40 = vmax.f32 %v5402_v7, %v5403_v6  ;;  %v5411_v55 = vmax.f32 %v5409_v14, %v5410_v27  ;;  %v7658_v52 = vsel %vm2749_vm5, 1.0, %v13174_v22  ;;  %v7656_v6 = vsel %vm2747_vm12, 1.0, %v13174_v22 }
  0xd3   :  { %v4965_v46 = vmax.f32 %v4963_v13, %v4964_v12  ;;  %v8138_v1 = vpack.i.bf16 %v7659_v9, %v7658_v52  ;;  %v2248_v16 = vrot.slane %v9957_v59, 3  ;;  %vm2748_vm13 = vcmp.lt.s32.totalorder %v8468_v5, %v2492_v54  ;;  %v10084_v13 = vld [vmem:[%s13154_s3] ss:$0 sm:$0xff]  ;;  %v43_v59 = vld [vmem:[%s13152_s0 + $0xd0] sm:$0xff] }
  0xd4   :  { %v5405_v28 = vrot.slane %v5404_v40, 2  ;;  %v5412_v7 = vrot.slane %v5411_v55, 2  ;;  %v2489_v27 = vperm.slane %v2247_v26, 0  ;;  %v1094_v53 = vadd.f32 %v10084_v13, %v1093_v36  ;;  %v171_v26 = vld [vmem:[%s13152_s0 + $0x4d0] sm:$0xff] }
  0xd5   :  { %v4966_v20 = vrot.slane %v4965_v46, 1  ;;  %8139 = vperm.xlu2 %7802, %v8138_v1   ;;  %v7657_v12 = vsel %vm2748_vm13, 1.0, %v13174_v22  ;;  %v2490_v52 = vperm.slane %v2248_v16, 0 }
  0xd6   :  { %v5406_v48 = vmax.f32 %v5404_v40, %v5405_v28  ;;  %v5413_v4 = vmax.f32 %v5411_v55, %v5412_v7  ;;  %v107_v40 = vld [vmem:[%s13152_s0 + $0x2d0] sm:$0xff]  ;;  %v8133_v28 = vpack.i.bf16 %v7657_v12, %v7656_v6  ;;  %vm2745_vm15 = vcmp.lt.s32.totalorder %v8468_v5, %v2489_v27  ;;  %7286 = vmatmul.msk.f32.gmra.mxu0 %vm279_vm1, %v43_v59  ;;  %v10124_v59 = vpop.permute.xlu2 %7974 }
  0xd7   :  { %v4967_v14 = vmax.f32 %v4965_v46, %v4966_v20  ;;  %v1845_v46 = vmax.f32 %v1094_v53, 0.0  ;;  %7350 = vmatmul.msk.f32.gmra.mxu1 %vm279_vm1, %v107_v40  ;;  %v235_v55 = vld [vmem:[%s13152_s0 + $0x6d0] sm:$0xff]  ;;  %vm2746_vm0 = vcmp.lt.s32.totalorder %v8468_v5, %v2490_v52  ;;  %v7654_v54 = vsel %vm2745_vm15, 1.0, %v13174_v22  ;;  %v1285_v20 = vpop.f32.mrf.mxu1  ;;  %7414 = vmatmul.msk.f32.gmra.mxu2 %vm279_vm1, %v171_v26 }
  0xd8   :  { %v5407_v9 = vrot.slane %v5406_v48, 1  ;;  %v5414_v1 = vrot.slane %v5413_v4, 1  ;;  %7478 = vmatmul.msk.f32.gmra.mxu3 %vm279_vm1, %v235_v55  ;;  %8134 = vperm.xlu1 %7791, %v8133_v28   ;;  %v13294_v6 = vunpack.i.l.bf16 %v9149_v58  ;;  %v10118_v27 = vadd.f32 %v10084_v13, %v1285_v20  ;;  %v10129_v40 = vld [vmem:[%s13153_s1 + $0x90] sm:$0xff]  ;;  %v1477_v55 = vpop.f32.mrf.mxu2 }
  0xd9   :  { %v6973_v36 = vsel %vm6972_vm4, %v4967_v14, %v10028_v51  ;;  %v7655_v51 = vsel %vm2746_vm0, 1.0, %v13174_v22  ;;  %v2257_v7 = vrot.slane %v10129_v40, 5  ;;  %v2254_v11 = vrot.slane %v10129_v40, 2 }
  0xda   :  { %7223 = vst.msk [vmem:[%s13155_s4] sm:$0xff] %vm4911_vm7, %v6973_v36  ;;  %v4663_v16 = vmul.f32 %v13294_v6, %v1845_v46  ;;  %v10120_v53 = vmax.f32 %v5406_v48, %v5407_v9  ;;  %v8128_v52 = vpack.i.bf16 %v7655_v51, %v7654_v54  ;;  %v10131_v26 = vmax.f32 %v5413_v4, %v5414_v1  ;;  %v10136_v9 = vpop.permute.xlu1 %7924  ;;  %v10141_v6 = vpop.permute.xlu0 %7919 }
  0xdb   :  { %13295 = vst [vmem:[#allocation22_spill] sm:$0xff] %v10136_v9  ;;  %v1669_v4 = vpop.f32.mrf.mxu3  ;;  %v2255_v23 = vrot.slane %v10129_v40, 3  ;;  %v2253_v20 = vrot.slane %v10129_v40, 1  ;;  %v1096_v51 = vpop.f32.mrf.mxu0  ;;  %v2500_v1 = vperm.slane %v2257_v7, 0  ;;  %v2497_v46 = vperm.slane %v2254_v11, 0 }
  0xdc   :  { %v4968_v28 = vsel %vm4911_vm7, %v4663_v16, -inf  ;;  %8129 = vperm.xlu0 %7780, %v8128_v52   ;;  %13296 = vst [vmem:[#allocation23_spill] sm:$0xff] %v10141_v6  ;;  %v2256_v16 = vrot.slane %v10129_v40, 4  ;;  %v10148_v52 = vadd.f32 %v10084_v13, %v1477_v55  ;;  %v10153_v14 = vadd.f32 %v10084_v13, %v1669_v4 }
  0xdd   :  { %v4969_v36 = vrot.slane %v4968_v28, 4  ;;  %v2498_v54 = vperm.slane %v2255_v23, 0  ;;  %v2495_v22 = vperm.slane %v10129_v40, 0  ;;  %v2496_v9 = vperm.slane %v2253_v20, 0 }
  0xde   :  { %13297 = vst [vmem:[#allocation24_spill] sm:$0xff] %v10153_v14  ;;  %v2499_v29 = vperm.slane %v2256_v16, 0  ;;  %vm2756_vm5 = vcmp.lt.s32.totalorder %v8468_v5, %v2500_v1  ;;  %vm2753_vm11 = vcmp.lt.s32.totalorder %v8468_v5, %v2497_v46 }
  0xdf   :  { %v4970_v12 = vmax.f32 %v4968_v28, %v4969_v36  ;;  %v1097_v28 = vadd.f32 %v10084_v13, %v1096_v51  ;;  %v13298_v36 = vmov 0.0   ;;  %vm2754_vm12 = vcmp.lt.s32.totalorder %v8468_v5, %v2498_v54 }
  0xe0   :  { %vm2755_vm2 = vcmp.lt.s32.totalorder %v8468_v5, %v2499_v29  ;;  %v7665_v16 = vsel %vm2756_vm5, 1.0, %v13298_v36  ;;  %v7662_v23 = vsel %vm2753_vm11, 1.0, %v13298_v36  ;;  %v7663_v7 = vsel %vm2754_vm12, 1.0, %v13298_v36  ;;  %v1480_v0 = vpop.f32.mrf.mxu2 }
  0xe1   :  { %v4971_v48 = vrot.slane %v4970_v12, 2  ;;  %v7664_v4 = vsel %vm2755_vm2, 1.0, %v13298_v36  ;;  %vm2751_vm13 = vcmp.lt.s32.totalorder %v8468_v5, %v2495_v22  ;;  %v8148_v20 = vpack.i.bf16 %v7663_v7, %v7662_v23  ;;  %v10180_v22 = vld [vmem:[%s13153_s1 + $0x98] sm:$0xff] }
  0xe2   :  { %v8153_v11 = vpack.i.bf16 %v7665_v16, %v7664_v4  ;;  %vm2752_vm15 = vcmp.lt.s32.totalorder %v8468_v5, %v2496_v9  ;;  %v7660_v46 = vsel %vm2751_vm13, 1.0, %v13298_v36  ;;  %v1846_v54 = vmax.f32 %v1097_v28, 0.0  ;;  %v10173_v4 = vpop.permute.xlu2 %7989  ;;  %v10175_v16 = vpop.permute.xlu1 %7939 }
  0xe3   :  { %v4972_v55 = vmax.f32 %v4970_v12, %v4971_v48  ;;  %v1288_v12 = vpop.f32.mrf.mxu1  ;;  %v7661_v51 = vsel %vm2752_vm15, 1.0, %v13298_v36  ;;  %13299 = vst [vmem:[#allocation25_spill] sm:$0xff] %v10175_v16  ;;  %8149 = vperm.xlu1 %7791, %v8148_v20   ;;  %v10185_v7 = vpop.permute.xlu0 %7934  ;;  %v13301_v48 = vunpack.i.h.bf16 %v9149_v58  ;;  %v2262_v58 = vrot.slane %v10180_v22, 3 }
  0xe4   :  { %8154 = vperm.xlu2 %7802, %v8153_v11   ;;  %v10171_v1 = vadd.f32 %v10084_v13, %v1288_v12  ;;  %v8143_v11 = vpack.i.bf16 %v7661_v51, %v7660_v46  ;;  %13300 = vst [vmem:[#allocation26_spill] sm:$0xff] %v10185_v7  ;;  %v1672_v21 = vpop.f32.mrf.mxu3  ;;  %v2261_v51 = vrot.slane %v10180_v22, 2  ;;  %v10202_v57 = vadd.f32 %v10084_v13, %v1480_v0  ;;  %v1099_v16 = vpop.f32.mrf.mxu0 }
  0xe5   :  { %v4973_v29 = vrot.slane %v4972_v55, 1  ;;  %v4664_v6 = vmul.f32 %v13301_v48, %v1846_v54  ;;  %v2503_v48 = vperm.slane %v10180_v22, 0  ;;  %v2506_v28 = vperm.slane %v2262_v58, 0 }
  0xe6   :  { %8144 = vperm.xlu0 %7780, %v8143_v11   ;;  %v10205_v11 = vadd.f32 %v10084_v13, %v1672_v21  ;;  %v2505_v20 = vperm.slane %v2261_v51, 0  ;;  %v2259_v23 = vrot.slane %v10129_v40, 7  ;;  %v44_v51 = vld [vmem:[%s13152_s0 + $0xd8] sm:$0xff]  ;;  %v2266_v56 = vrot.slane %v10180_v22, 7 }
  0xe7   :  { %v10187_v12 = vmax.f32 %v4972_v55, %v4973_v29  ;;  %v4975_v55 = vsel %vm4911_vm7, %v4664_v6, -inf  ;;  %v2260_v29 = vrot.slane %v10180_v22, 1  ;;  %vm2759_vm0 = vcmp.lt.s32.totalorder %v8468_v5, %v2503_v48  ;;  %7287 = vmatmul.msk.f32.gmra.mxu0 %vm279_vm1, %v44_v51 }
  0xe8   :  { %v4976_v54 = vrot.slane %v4975_v55, 4  ;;  %13302 = vst [vmem:[#allocation27_spill] sm:$0xff] %v10205_v11  ;;  %v2258_v6 = vrot.slane %v10129_v40, 6  ;;  %vm2761_vm2 = vcmp.lt.s32.totalorder %v8468_v5, %v2505_v20  ;;  %v7668_v9 = vsel %vm2759_vm0, 1.0, %v13298_v36  ;;  %v108_v20 = vld [vmem:[%s13152_s0 + $0x2d8] sm:$0xff]  ;;  %v1483_v7 = vpop.f32.mrf.mxu2 }
  0xe9   :  { %v2504_v46 = vperm.slane %v2260_v29, 0  ;;  %vm2762_vm5 = vcmp.lt.s32.totalorder %v8468_v5, %v2506_v28  ;;  %v7670_v0 = vsel %vm2761_vm2, 1.0, %v13298_v36  ;;  %v172_v40 = vld [vmem:[%s13152_s0 + $0x4d8] sm:$0xff]  ;;  %v2502_v29 = vperm.slane %v2259_v23, 0  ;;  %7351 = vmatmul.msk.f32.gmra.mxu1 %vm279_vm1, %v108_v20 }
  0xea   :  { %v4977_v30 = vmax.f32 %v4975_v55, %v4976_v54  ;;  %v2501_v21 = vperm.slane %v2258_v6, 0  ;;  %v7671_v28 = vsel %vm2762_vm5, 1.0, %v13298_v36  ;;  %v1100_v6 = vadd.f32 %v10084_v13, %v1099_v16  ;;  %v7955_v14 = vpop.permute.xlu1 %7954  ;;  %7415 = vmatmul.msk.f32.gmra.mxu2 %vm279_vm1, %v172_v40 }
  0xeb   :  { %vm2760_vm11 = vcmp.lt.s32.totalorder %v8468_v5, %v2504_v46  ;;  %v236_v46 = vld [vmem:[%s13152_s0 + $0x6d8] sm:$0xff]  ;;  %v8168_v48 = vpack.i.bf16 %v7671_v28, %v7670_v0  ;;  %v1291_v38 = vpop.f32.mrf.mxu1  ;;  %vm2758_vm13 = vcmp.lt.s32.totalorder %v8468_v5, %v2502_v29  ;;  %v7950_v20 = vpop.permute.xlu0 %7949  ;;  %v7957_v28 = vunpack.i.h.bf16 %v7955_v14 }
  0xec   :  { %v4978_v55 = vrot.slane %v4977_v30, 2  ;;  %v7669_v58 = vsel %vm2760_vm11, 1.0, %v13298_v36  ;;  %vm2757_vm12 = vcmp.lt.s32.totalorder %v8468_v5, %v2501_v21  ;;  %v10237_v51 = vadd.f32 %v10084_v13, %v1291_v38  ;;  %7479 = vmatmul.msk.f32.gmra.mxu3 %vm279_vm1, %v236_v46  ;;  %v10246_v29 = vpop.permute.xlu2 %8004 }
  0xed   :  { %v8163_v54 = vpack.i.bf16 %v7669_v58, %v7668_v9  ;;  %v7666_v23 = vsel %vm2757_vm12, 1.0, %v13298_v36  ;;  %8169 = vperm.xlu2 %7802, %v8168_v48   ;;  %v7667_v16 = vsel %vm2758_vm13, 1.0, %v13298_v36  ;;  %v1847_v21 = vmax.f32 %v1100_v6, 0.0 }
  0xee   :  { %v4979_v35 = vmax.f32 %v4977_v30, %v4978_v55  ;;  %v8158_v55 = vpack.i.bf16 %v7667_v16, %v7666_v23  ;;  %v13303_v38 = vunpack.i.l.bf16 %v9244_v31  ;;  %v7956_v46 = vunpack.i.l.bf16 %v7955_v14 }
  0xef   :  { %8164 = vperm.xlu1 %7791, %v8163_v54   ;;  %v7952_v44 = vunpack.i.h.bf16 %v7950_v20  ;;  %v7951_v9 = vunpack.i.l.bf16 %v7950_v20  ;;  %v13304_v40 = vmax.f32 %v9847_v43, 0.0  ;;  %v13306_v14 = vmax.f32 %v9649_v50, 0.0  ;;  %v1675_v43 = vpop.f32.mrf.mxu3 }
  0xf0   :  { %v4980_v30 = vrot.slane %v4979_v35, 1  ;;  %v4665_v58 = vmul.f32 %v13303_v38, %v1847_v21  ;;  %8159 = vperm.xlu0 %7780, %v8158_v55   ;;  %v13305_v21 = vmax.f32 %v9789_v63, 0.0  ;;  %v13307_v20 = vmax.f32 %v9719_v33, 0.0 }
  0xf1   :  { %v4724_v23 = vmul.f32 %v7957_v28, %v13304_v40  ;;  %v4721_v0 = vmul.f32 %v7951_v9, %v13306_v14  ;;  %v10262_v6 = vadd.f32 %v10084_v13, %v1483_v7  ;;  %v10267_v40 = vld [vmem:[%s13153_s1 + $0xa0] sm:$0xff]  ;;  %v10273_v7 = vadd.f32 %v10084_v13, %v1675_v43 }
  0xf2   :  { %v4982_v16 = vsel %vm4911_vm7, %v4665_v58, -inf  ;;  %v4723_v38 = vmul.f32 %v7956_v46, %v13305_v21  ;;  %v4722_v55 = vmul.f32 %v7952_v44, %v13307_v20  ;;  %v4981_v11 = vmax.f32 %v4979_v35, %v4980_v30 }
  0xf3   :  { %v4983_v48 = vrot.slane %v4982_v16, 4  ;;  %v5395_v54 = vsel %vm4911_vm7, %v4724_v23, -inf  ;;  %v5374_v9 = vsel %vm4911_vm7, %v4721_v0, -inf  ;;  %13308 = vst [vmem:[#allocation28_spill] sm:$0xff] %v10273_v7  ;;  %v2267_v46 = vrot.slane %v10267_v40, 1 }
  0xf4   :  { %v5388_v63 = vsel %vm4911_vm7, %v4723_v38, -inf  ;;  %v5396_v50 = vrot.slane %v5395_v54, 4  ;;  %v5381_v44 = vsel %vm4911_vm7, %v4722_v55, -inf  ;;  %v5375_v30 = vrot.slane %v5374_v9, 4 }
  0xf5   :  { %v4984_v35 = vmax.f32 %v4982_v16, %v4983_v48  ;;  %v5389_v33 = vrot.slane %v5388_v63, 4  ;;  %v5382_v28 = vrot.slane %v5381_v44, 4  ;;  %v2511_v23 = vperm.slane %v10267_v40, 0 }
  0xf6   :  { %v5397_v58 = vmax.f32 %v5395_v54, %v5396_v50  ;;  %v5376_v38 = vmax.f32 %v5374_v9, %v5375_v30  ;;  %v2512_v0 = vperm.slane %v2267_v46, 0  ;;  %v2265_v48 = vrot.slane %v10180_v22, 6 }
  0xf7   :  { %v4985_v21 = vrot.slane %v4984_v35, 2  ;;  %v5390_v14 = vmax.f32 %v5388_v63, %v5389_v33  ;;  %v5383_v20 = vmax.f32 %v5381_v44, %v5382_v28  ;;  %vm2767_vm15 = vcmp.lt.s32.totalorder %v8468_v5, %v2511_v23 }
  0xf8   :  { %v5398_v45 = vrot.slane %v5397_v58, 2  ;;  %v5377_v54 = vrot.slane %v5376_v38, 2  ;;  %vm2768_vm0 = vcmp.lt.s32.totalorder %v8468_v5, %v2512_v0  ;;  %v7676_v62 = vsel %vm2767_vm15, 1.0, %v13298_v36 }
  0xf9   :  { %v4986_v16 = vmax.f32 %v4984_v35, %v4985_v21  ;;  %v5391_v55 = vrot.slane %v5390_v14, 2  ;;  %v5384_v50 = vrot.slane %v5383_v20, 2  ;;  %v6974_v30 = vsel %vm6960_vm3, %v4981_v11, %v10187_v12 }
  0xfa   :  { %v5399_v43 = vmax.f32 %v5397_v58, %v5398_v45  ;;  %v5378_v44 = vmax.f32 %v5376_v38, %v5377_v54  ;;  %v7677_v28 = vsel %vm2768_vm0, 1.0, %v13298_v36  ;;  %v2509_v35 = vperm.slane %v2265_v48, 0  ;;  %v1294_v38 = vpop.f32.mrf.mxu1  ;;  %v173_v48 = vld [vmem:[%s13152_s0 + $0x4e0] sm:$0xff] }
  0xfb   :  { %v4987_v63 = vrot.slane %v4986_v16, 1  ;;  %v5392_v9 = vmax.f32 %v5390_v14, %v5391_v55  ;;  %v5385_v33 = vmax.f32 %v5383_v20, %v5384_v50  ;;  %v2510_v46 = vperm.slane %v2266_v56, 0  ;;  %v1102_v14 = vpop.f32.mrf.mxu0  ;;  %v45_v56 = vld [vmem:[%s13152_s0 + $0xe0] sm:$0xff]  ;;  %7416 = vmatmul.msk.f32.gmra.mxu2 %vm279_vm1, %v173_v48 }
  0xfc   :  { %v5379_v45 = vrot.slane %v5378_v44, 1  ;;  %v5400_v0 = vrot.slane %v5399_v43, 1  ;;  %v8183_v25 = vpack.i.bf16 %v7677_v28, %v7676_v62  ;;  %vm2765_vm2 = vcmp.lt.s32.totalorder %v8468_v5, %v2509_v35  ;;  %v109_v62 = vld [vmem:[%s13152_s0 + $0x2e0] sm:$0xff]  ;;  %7288 = vmatmul.msk.f32.gmra.mxu0 %vm279_vm1, %v45_v56  ;;  %v7970_v28 = vpop.permute.xlu1 %7969 }
  0xfd   :  { %v4988_v23 = vmax.f32 %v4986_v16, %v4987_v63  ;;  %v5393_v21 = vrot.slane %v5392_v9, 1  ;;  %v5386_v58 = vrot.slane %v5385_v33, 1  ;;  %vm2766_vm5 = vcmp.lt.s32.totalorder %v8468_v5, %v2510_v46  ;;  %7352 = vmatmul.msk.f32.gmra.mxu1 %vm279_vm1, %v109_v62 }
  0xfe   :  { %v5380_v11 = vmax.f32 %v5378_v44, %v5379_v45  ;;  %8184 = vperm.xlu2 %7802, %v8183_v25   ;;  %v7674_v16 = vsel %vm2765_vm2, 1.0, %v13298_v36  ;;  %v7675_v54 = vsel %vm2766_vm5, 1.0, %v13298_v36  ;;  %v2263_v50 = vrot.slane %v10180_v22, 4 }
  0xff   :  { %v10288_v20 = vsel %vm6962_vm6, %v4988_v23, %v6974_v30  ;;  %v5394_v12 = vmax.f32 %v5392_v9, %v5393_v21  ;;  %v5387_v55 = vmax.f32 %v5385_v33, %v5386_v58  ;;  %v2264_v63 = vrot.slane %v10180_v22, 5  ;;  %v237_v9 = vld [vmem:[%s13152_s0 + $0x6e0] sm:$0xff] }
 0x100   :  { %v7024_v44 = vsel %vm6962_vm6, %v5380_v11, %v10045_v8  ;;  %v8178_v33 = vpack.i.bf16 %v7675_v54, %v7674_v16  ;;  %v1103_v25 = vadd.f32 %v10084_v13, %v1102_v14  ;;  %v1295_v30 = vadd.f32 %v10084_v13, %v1294_v38  ;;  %7480 = vmatmul.msk.f32.gmra.mxu3 %vm279_vm1, %v237_v9 }
 0x101   :  { %v5401_v35 = vmax.f32 %v5399_v43, %v5400_v0  ;;  %v7025_v22 = vsel %vm6964_vm10, %v5387_v55, %v7024_v44  ;;  %v2507_v46 = vperm.slane %v2263_v50, 0  ;;  %v2508_v23 = vperm.slane %v2264_v63, 0  ;;  %v7965_v0 = vpop.permute.xlu0 %7964  ;;  %v10334_v63 = vpop.permute.xlu2 %8019 }
 0x102   :  { %v7026_v21 = vsel %vm6966_vm14, %v5394_v12, %v7025_v22  ;;  %8179 = vperm.xlu1 %7791, %v8178_v33   ;;  %v1848_v45 = vmax.f32 %v1103_v25, 0.0  ;;  %v1912_v58 = vmax.f32 %v1295_v30, 0.0  ;;  %v7972_v43 = vunpack.i.h.bf16 %v7970_v28  ;;  %13310 = vst [vmem:[#allocation29_spill] sm:$0xff] %v10334_v63  ;;  %v1486_v44 = vpop.f32.mrf.mxu2 }
 0x103   :  { %v7027_v14 = vsel %vm6968_vm8, %v5401_v35, %v7026_v21  ;;  %vm2763_vm11 = vcmp.lt.s32.totalorder %v8468_v5, %v2507_v46  ;;  %vm2764_vm12 = vcmp.lt.s32.totalorder %v8468_v5, %v2508_v23  ;;  %v13309_v55 = vunpack.i.h.bf16 %v9244_v31 }
 0x104   :  { %v7028_v38 = vsel %vm6970_vm9, %v10120_v53, %v7027_v14  ;;  %v7672_v11 = vsel %vm2763_vm11, 1.0, %v13298_v36  ;;  %v7673_v12 = vsel %vm2764_vm12, 1.0, %v13298_v36  ;;  %v7971_v16 = vunpack.i.l.bf16 %v7970_v28 }
 0x105   :  { %v4666_v56 = vmul.f32 %v13309_v55, %v1848_v45  ;;  %v7029_v62 = vsel %vm6972_vm4, %v10131_v26, %v7028_v38  ;;  %v8173_v48 = vpack.i.bf16 %v7673_v12, %v7672_v11  ;;  %v4730_v54 = vmul.f32 %v7972_v43, %v1912_v58  ;;  %v174_v55 = vld [vmem:[%s13152_s0 + $0x4e8] sm:$0xff] }
 0x106   :  { %7231 = vst.msk [vmem:[%s13155_s4 + $0x40] sm:$0xff] %vm4911_vm7, %v7029_v62  ;;  %v7967_v9 = vunpack.i.h.bf16 %v7965_v0  ;;  %v7966_v31 = vunpack.i.l.bf16 %v7965_v0  ;;  %v13311_v25 = vmax.f32 %v10237_v51, 0.0  ;;  %v13312_v46 = vmax.f32 %v10118_v27, 0.0  ;;  %v46_v27 = vld [vmem:[%s13152_s0 + $0xe8] sm:$0xff]  ;;  %7417 = vmatmul.msk.f32.gmra.mxu2 %vm279_vm1, %v174_v55 }
 0x107   :  { %v4989_v50 = vsel %vm4911_vm7, %v4666_v56, -inf  ;;  %8174 = vperm.xlu0 %7780, %v8173_v48   ;;  %v5437_v28 = vsel %vm4911_vm7, %v4730_v54, -inf  ;;  %v13313_v21 = vmax.f32 %v10171_v1, 0.0  ;;  %v10347_v43 = vadd.f32 %v10084_v13, %v1486_v44  ;;  %v110_v1 = vld [vmem:[%s13152_s0 + $0x2e8] sm:$0xff]  ;;  %7289 = vmatmul.msk.f32.gmra.mxu0 %vm279_vm1, %v46_v27 }
 0x108   :  { %v4990_v33 = vrot.slane %v4989_v50, 4  ;;  %v4729_v30 = vmul.f32 %v7971_v16, %v13311_v25  ;;  %v5438_v22 = vrot.slane %v5437_v28, 4  ;;  %v4727_v23 = vmul.f32 %v7966_v31, %v13312_v46  ;;  %7353 = vmatmul.msk.f32.gmra.mxu1 %vm279_vm1, %v110_v1  ;;  %v238_v54 = vld [vmem:[%s13152_s0 + $0x6e8] sm:$0xff] }
 0x109   :  { %v4728_v45 = vmul.f32 %v7967_v9, %v13313_v21  ;;  %v2272_v51 = vrot.slane %v10267_v40, 6  ;;  %v2273_v16 = vrot.slane %v10267_v40, 7  ;;  %v2270_v44 = vrot.slane %v10267_v40, 4  ;;  %7481 = vmatmul.msk.f32.gmra.mxu3 %vm279_vm1, %v238_v54 }
 0x10a   :  { %v4991_v58 = vmax.f32 %v4989_v50, %v4990_v33  ;;  %v5430_v14 = vsel %vm4911_vm7, %v4729_v30, -inf  ;;  %v5439_v38 = vmax.f32 %v5437_v28, %v5438_v22  ;;  %v5416_v11 = vsel %vm4911_vm7, %v4727_v23, -inf  ;;  %v1678_v28 = vpop.f32.mrf.mxu3 }
 0x10b   :  { %v5431_v0 = vrot.slane %v5430_v14, 4  ;;  %v5423_v12 = vsel %vm4911_vm7, %v4728_v45, -inf  ;;  %v5417_v62 = vrot.slane %v5416_v11, 4  ;;  %v2517_v31 = vperm.slane %v2272_v51, 0 }
 0x10c   :  { %v4992_v56 = vrot.slane %v4991_v58, 2  ;;  %v5424_v48 = vrot.slane %v5423_v12, 4  ;;  %v5440_v9 = vrot.slane %v5439_v38, 2  ;;  %v2518_v22 = vperm.slane %v2273_v16, 0 }
 0x10d   :  { %v5432_v50 = vmax.f32 %v5430_v14, %v5431_v0  ;;  %v5418_v25 = vmax.f32 %v5416_v11, %v5417_v62  ;;  %vm2773_vm13 = vcmp.lt.s32.totalorder %v8468_v5, %v2517_v31  ;;  %v2271_v21 = vrot.slane %v10267_v40, 5 }
 0x10e   :  { %v4993_v33 = vmax.f32 %v4991_v58, %v4992_v56  ;;  %v5425_v30 = vmax.f32 %v5423_v12, %v5424_v48  ;;  %v5441_v23 = vmax.f32 %v5439_v38, %v5440_v9  ;;  %vm2774_vm15 = vcmp.lt.s32.totalorder %v8468_v5, %v2518_v22 }
 0x10f   :  { %v5433_v46 = vrot.slane %v5432_v50, 2  ;;  %v5419_v14 = vrot.slane %v5418_v25, 2  ;;  %v10374_v27 = vadd.f32 %v10084_v13, %v1678_v28  ;;  %v7682_v58 = vsel %vm2773_vm13, 1.0, %v13298_v36  ;;  %v1105_v28 = vpop.f32.mrf.mxu0 }
 0x110   :  { %v4994_v45 = vrot.slane %v4993_v33, 1  ;;  %v5426_v51 = vrot.slane %v5425_v30, 2  ;;  %v7683_v11 = vsel %vm2774_vm15, 1.0, %v13298_v36  ;;  %v5442_v62 = vrot.slane %v5441_v23, 1 }
 0x111   :  { %v5434_v0 = vmax.f32 %v5432_v50, %v5433_v46  ;;  %13314 = vst [vmem:[#allocation30_spill] sm:$0xff] %v10374_v27  ;;  %v5420_v1 = vmax.f32 %v5418_v25, %v5419_v14  ;;  %v8198_v55 = vpack.i.bf16 %v7683_v11, %v7682_v58  ;;  %v2515_v48 = vperm.slane %v2270_v44, 0  ;;  %v1297_v25 = vpop.f32.mrf.mxu1 }
 0x112   :  { %v4995_v12 = vmax.f32 %v4993_v33, %v4994_v45  ;;  %v5427_v38 = vmax.f32 %v5425_v30, %v5426_v51  ;;  %v2516_v16 = vperm.slane %v2271_v21, 0  ;;  %v2268_v31 = vrot.slane %v10267_v40, 2 }
 0x113   :  { %v5435_v56 = vrot.slane %v5434_v0, 1  ;;  %v5421_v50 = vrot.slane %v5420_v1, 1  ;;  %8199 = vperm.xlu2 %7802, %v8198_v55   ;;  %vm2771_vm0 = vcmp.lt.s32.totalorder %v8468_v5, %v2515_v48  ;;  %v2269_v33 = vrot.slane %v10267_v40, 3 }
 0x114   :  { %v10380_v54 = vsel %vm6964_vm10, %v4995_v12, %v10288_v20  ;;  %v5428_v9 = vrot.slane %v5427_v38, 1  ;;  %vm2772_vm2 = vcmp.lt.s32.totalorder %v8468_v5, %v2516_v16  ;;  %v7680_v46 = vsel %vm2771_vm0, 1.0, %v13298_v36  ;;  %v10398_v16 = vpop.permute.xlu2 %8034 }
 0x115   :  { %v5436_v22 = vmax.f32 %v5434_v0, %v5435_v56  ;;  %v5422_v44 = vmax.f32 %v5420_v1, %v5421_v50  ;;  %v7681_v20 = vsel %vm2772_vm2, 1.0, %v13298_v36  ;;  %v2513_v45 = vperm.slane %v2268_v31, 0  ;;  %13315 = vst [vmem:[#allocation31_spill] sm:$0xff] %v10398_v16  ;;  %v10403_v50 = vld [vmem:[%s13153_s1 + $0xa8] sm:$0xff] }
 0x116   :  { %v5429_v30 = vmax.f32 %v5427_v38, %v5428_v9  ;;  %v8193_v21 = vpack.i.bf16 %v7681_v20, %v7680_v46  ;;  %v2514_v14 = vperm.slane %v2269_v33, 0  ;;  %v1106_v51 = vadd.f32 %v10084_v13, %v1105_v28  ;;  %v1489_v33 = vpop.f32.mrf.mxu2 }
 0x117   :  { %v1298_v40 = vadd.f32 %v10084_v13, %v1297_v25  ;;  %vm2769_vm5 = vcmp.lt.s32.totalorder %v8468_v5, %v2513_v45  ;;  %v5443_v38 = vmax.f32 %v5441_v23, %v5442_v62  ;;  %v13316_v31 = vunpack.i.l.bf16 %v9598_v19  ;;  %v10409_v62 = vpop.permute.xlu1 %7984  ;;  %v47_v25 = vld [vmem:[%s13152_s0 + $0xf0] sm:$0xff] }
 0x118   :  { %v7030_v0 = vsel %vm6960_vm3, %v5429_v30, %v5422_v44  ;;  %8194 = vperm.xlu1 %7791, %v8193_v21   ;;  %vm2770_vm11 = vcmp.lt.s32.totalorder %v8468_v5, %v2514_v14  ;;  %v1849_v1 = vmax.f32 %v1106_v51, 0.0  ;;  %v7678_v55 = vsel %vm2769_vm5, 1.0, %v13298_v36  ;;  %v111_v44 = vld [vmem:[%s13152_s0 + $0x2f0] sm:$0xff]  ;;  %v10427_v51 = vpop.permute.xlu0 %7979  ;;  %7290 = vmatmul.msk.f32.gmra.mxu0 %vm279_vm1, %v47_v25 }
 0x119   :  { %v7031_v12 = vsel %vm6962_vm6, %v5436_v22, %v7030_v0  ;;  %v7679_v56 = vsel %vm2770_vm11, 1.0, %v13298_v36  ;;  %v1913_v48 = vmax.f32 %v1298_v40, 0.0  ;;  %v175_v30 = vld [vmem:[%s13152_s0 + $0x4f0] sm:$0xff]  ;;  %v13317_v46 = vunpack.i.l.bf16 %v10124_v59  ;;  %v1681_v0 = vpop.f32.mrf.mxu3  ;;  %7354 = vmatmul.msk.f32.gmra.mxu1 %vm279_vm1, %v111_v44 }
 0x11a   :  { %v8188_v9 = vpack.i.bf16 %v7679_v56, %v7678_v55  ;;  %v4667_v28 = vmul.f32 %v13316_v31, %v1849_v1  ;;  %v10423_v21 = vsel %vm6964_vm10, %v5443_v38, %v7031_v12  ;;  %v239_v40 = vld [vmem:[%s13152_s0 + $0x6f0] sm:$0xff]  ;;  %v2277_v38 = vrot.slane %v10403_v50, 4  ;;  %7418 = vmatmul.msk.f32.gmra.mxu2 %vm279_vm1, %v175_v30 }
 0x11b   :  { %v4731_v20 = vmul.f32 %v13317_v46, %v1913_v48  ;;  %v2278_v55 = vrot.slane %v10403_v50, 5  ;;  %v10441_v31 = vadd.f32 %v10084_v13, %v1489_v33  ;;  %v2275_v25 = vrot.slane %v10403_v50, 2  ;;  %7482 = vmatmul.msk.f32.gmra.mxu3 %vm279_vm1, %v239_v40 }
 0x11c   :  { %8189 = vperm.xlu0 %7780, %v8188_v9   ;;  %v4996_v1 = vsel %vm4911_vm7, %v4667_v28, -inf  ;;  %v10446_v28 = vadd.f32 %v10084_v13, %v1681_v0  ;;  %v2523_v44 = vperm.slane %v2277_v38, 0  ;;  %v2276_v23 = vrot.slane %v10403_v50, 3  ;;  %v10468_v11 = vpop.permute.xlu2 %8049 }
 0x11d   :  { %v4997_v56 = vrot.slane %v4996_v1, 4  ;;  %v5444_v48 = vsel %vm4911_vm7, %v4731_v20, -inf  ;;  %v2524_v46 = vperm.slane %v2278_v55, 0  ;;  %v2521_v30 = vperm.slane %v2275_v25, 0  ;;  %v1108_v25 = vpop.f32.mrf.mxu0  ;;  %13319 = vst [vmem:[#allocation33_spill] sm:$0xff] %v10468_v11 }
 0x11e   :  { %v5445_v9 = vrot.slane %v5444_v48, 4  ;;  %13318 = vst [vmem:[#allocation32_spill] sm:$0xff] %v10446_v28  ;;  %v2274_v26 = vrot.slane %v10403_v50, 1  ;;  %vm2779_vm12 = vcmp.lt.s32.totalorder %v8468_v5, %v2523_v44  ;;  %v2519_v33 = vperm.slane %v10403_v50, 0 }
 0x11f   :  { %v4998_v22 = vmax.f32 %v4996_v1, %v4997_v56  ;;  %vm2780_vm13 = vcmp.lt.s32.totalorder %v8468_v5, %v2524_v46  ;;  %v7688_v35 = vsel %vm2779_vm12, 1.0, %v13298_v36  ;;  %v2522_v38 = vperm.slane %v2276_v23, 0 }
 0x120   :  { %v5446_v20 = vmax.f32 %v5444_v48, %v5445_v9  ;;  %v7689_v0 = vsel %vm2780_vm13, 1.0, %v13298_v36  ;;  %vm2777_vm15 = vcmp.lt.s32.totalorder %v8468_v5, %v2521_v30  ;;  %v2520_v56 = vperm.slane %v2274_v26, 0  ;;  %v1300_v9 = vpop.f32.mrf.mxu1  ;;  %v10487_v58 = vpop.permute.xlu0 %7994 }
 0x121   :  { %v4999_v40 = vrot.slane %v4998_v22, 2  ;;  %v8213_v1 = vpack.i.bf16 %v7689_v0, %v7688_v35  ;;  %vm2778_vm0 = vcmp.lt.s32.totalorder %v8468_v5, %v2522_v38  ;;  %v7686_v48 = vsel %vm2777_vm15, 1.0, %v13298_v36 }
 0x122   :  { %v5447_v55 = vrot.slane %v5446_v20, 2  ;;  %vm2775_vm2 = vcmp.lt.s32.totalorder %v8468_v5, %v2519_v33  ;;  %v7687_v46 = vsel %vm2778_vm0, 1.0, %v13298_v36  ;;  %vm2776_vm5 = vcmp.lt.s32.totalorder %v8468_v5, %v2520_v56 }
 0x123   :  { %v5000_v53 = vmax.f32 %v4998_v22, %v4999_v40  ;;  %8214 = vperm.xlu2 %7802, %v8213_v1   ;;  %v7684_v35 = vsel %vm2775_vm2, 1.0, %v13298_v36  ;;  %v8208_v30 = vpack.i.bf16 %v7687_v46, %v7686_v48  ;;  %v7685_v26 = vsel %vm2776_vm5, 1.0, %v13298_v36  ;;  %v10470_v48 = vpop.permute.xlu1 %7999 }
 0x124   :  { %v5448_v44 = vmax.f32 %v5446_v20, %v5447_v55  ;;  %v1109_v22 = vadd.f32 %v10084_v13, %v1108_v25  ;;  %v8203_v38 = vpack.i.bf16 %v7685_v26, %v7684_v35  ;;  %v1301_v33 = vadd.f32 %v10084_v13, %v1300_v9  ;;  %v10475_v25 = vld [vmem:[%s13153_s1 + $0xb0] sm:$0xff]  ;;  %v112_v9 = vld [vmem:[%s13152_s0 + $0x2f8] sm:$0xff] }
 0x125   :  { %v5001_v23 = vrot.slane %v5000_v53, 1  ;;  %8209 = vperm.xlu1 %7791, %v8208_v30   ;;  %7355 = vmatmul.msk.f32.gmra.mxu1 %vm279_vm1, %v112_v9  ;;  %v2279_v45 = vrot.slane %v10403_v50, 6 }
 0x126   :  { %v5449_v40 = vrot.slane %v5448_v44, 1  ;;  %v1850_v56 = vmax.f32 %v1109_v22, 0.0  ;;  %8204 = vperm.xlu0 %7780, %v8203_v38   ;;  %v1914_v46 = vmax.f32 %v1301_v33, 0.0  ;;  %v13320_v22 = vunpack.i.h.bf16 %v9598_v19  ;;  %v1684_v38 = vpop.f32.mrf.mxu3  ;;  %v48_v33 = vld [vmem:[%s13152_s0 + $0xf8] sm:$0xff] }
 0x127   :  { %v5002_v20 = vmax.f32 %v5000_v53, %v5001_v23  ;;  %v1492_v23 = vpop.f32.mrf.mxu2  ;;  %v13321_v19 = vunpack.i.h.bf16 %v10124_v59  ;;  %7291 = vmatmul.msk.f32.gmra.mxu0 %vm279_vm1, %v48_v33  ;;  %v2283_v59 = vrot.slane %v10475_v25, 3 }
 0x128   :  { %v5450_v26 = vmax.f32 %v5448_v44, %v5449_v40  ;;  %v4668_v1 = vmul.f32 %v13320_v22, %v1850_v56  ;;  %v2282_v56 = vrot.slane %v10475_v25, 2  ;;  %v240_v22 = vld [vmem:[%s13152_s0 + $0x6f8] sm:$0xff]  ;;  %v10510_v35 = vadd.f32 %v10084_v13, %v1492_v23 }
 0x129   :  { %v10482_v30 = vsel %vm6966_vm14, %v5002_v20, %v10380_v54  ;;  %v176_v54 = vld [vmem:[%s13152_s0 + $0x4f8] sm:$0xff]  ;;  %v4732_v44 = vmul.f32 %v13321_v19, %v1914_v46  ;;  %v2281_v46 = vrot.slane %v10475_v25, 1  ;;  %7483 = vmatmul.msk.f32.gmra.mxu3 %vm279_vm1, %v240_v22  ;;  %v10518_v19 = vadd.f32 %v10084_v13, %v1684_v38  ;;  %v1111_v38 = vpop.f32.mrf.mxu0 }
 0x12a   :  { %v5003_v53 = vsel %vm4911_vm7, %v4668_v1, -inf  ;;  %7419 = vmatmul.msk.f32.gmra.mxu2 %vm279_vm1, %v176_v54  ;;  %v2529_v55 = vperm.slane %v2282_v56, 0  ;;  %v2530_v1 = vperm.slane %v2283_v59, 0  ;;  %v2527_v23 = vperm.slane %v10475_v25, 0 }
 0x12b   :  { %v5004_v33 = vrot.slane %v5003_v53, 4  ;;  %v5451_v9 = vsel %vm4911_vm7, %v4732_v44, -inf  ;;  %13322 = vst [vmem:[#allocation34_spill] sm:$0xff] %v10518_v19  ;;  %v2528_v40 = vperm.slane %v2281_v46, 0  ;;  %v2280_v54 = vrot.slane %v10403_v50, 7 }
 0x12c   :  { %v5452_v8 = vrot.slane %v5451_v9, 4  ;;  %vm2785_vm11 = vcmp.lt.s32.totalorder %v8468_v5, %v2529_v55  ;;  %vm2786_vm12 = vcmp.lt.s32.totalorder %v8468_v5, %v2530_v1  ;;  %vm2783_vm13 = vcmp.lt.s32.totalorder %v8468_v5, %v2527_v23  ;;  %v1303_v55 = vpop.f32.mrf.mxu1 }
 0x12d   :  { %v5005_v20 = vmax.f32 %v5003_v53, %v5004_v33  ;;  %v7694_v44 = vsel %vm2785_vm11, 1.0, %v13298_v36  ;;  %v7695_v59 = vsel %vm2786_vm12, 1.0, %v13298_v36  ;;  %vm2784_vm15 = vcmp.lt.s32.totalorder %v8468_v5, %v2528_v40 }
 0x12e   :  { %v5453_v22 = vmax.f32 %v5451_v9, %v5452_v8  ;;  %v7692_v53 = vsel %vm2783_vm13, 1.0, %v13298_v36  ;;  %v8228_v33 = vpack.i.bf16 %v7695_v59, %v7694_v44  ;;  %v7693_v50 = vsel %vm2784_vm15, 1.0, %v13298_v36 }
 0x12f   :  { %v5006_v56 = vrot.slane %v5005_v20, 2  ;;  %v2525_v8 = vperm.slane %v2279_v45, 0  ;;  %v8223_v1 = vpack.i.bf16 %v7693_v50, %v7692_v53  ;;  %v2526_v14 = vperm.slane %v2280_v54, 0  ;;  %v10545_v53 = vpop.permute.xlu2 %8064 }
 0x130   :  { %v5454_v46 = vrot.slane %v5453_v22, 2  ;;  %v1112_v12 = vadd.f32 %v10084_v13, %v1111_v38  ;;  %v10534_v23 = vsel %vm6966_vm14, %v5450_v26, %v10423_v21  ;;  %8229 = vperm.xlu2 %7802, %v8228_v33   ;;  %v1304_v40 = vadd.f32 %v10084_v13, %v1303_v55  ;;  %13324 = vst [vmem:[#allocation35_spill] sm:$0xff] %v10545_v53  ;;  %v10547_v55 = vpop.permute.xlu1 %8014 }
 0x131   :  { %v5007_v9 = vmax.f32 %v5005_v20, %v5006_v56  ;;  %vm2781_vm0 = vcmp.lt.s32.totalorder %v8468_v5, %v2525_v8  ;;  %8224 = vperm.xlu1 %7791, %v8223_v1   ;;  %vm2782_vm2 = vcmp.lt.s32.totalorder %v8468_v5, %v2526_v14  ;;  %v13323_v59 = vunpack.i.l.bf16 %v9592_v60  ;;  %v10552_v14 = vld [vmem:[%s13153_s1 + $0xb8] sm:$0xff]  ;;  %v1495_v8 = vpop.f32.mrf.mxu2  ;;  %v113_v1 = vld [vmem:[%s13152_s0 + $0x300] sm:$0xff] }
 0x132   :  { %v5455_v0 = vmax.f32 %v5453_v22, %v5454_v46  ;;  %v7690_v45 = vsel %vm2781_vm0, 1.0, %v13298_v36  ;;  %v1851_v20 = vmax.f32 %v1112_v12, 0.0  ;;  %v7691_v38 = vsel %vm2782_vm2, 1.0, %v13298_v36  ;;  %7356 = vmatmul.msk.f32.gmra.mxu1 %vm279_vm1, %v113_v1 }
 0x133   :  { %v5008_v11 = vrot.slane %v5007_v9, 1  ;;  %v1915_v21 = vmax.f32 %v1304_v40, 0.0  ;;  %v8218_v56 = vpack.i.bf16 %v7691_v38, %v7690_v45  ;;  %v13325_v12 = vunpack.i.l.bf16 %v10427_v51  ;;  %v177_v40 = vld [vmem:[%s13152_s0 + $0x500] sm:$0xff] }
 0x134   :  { %v5456_v54 = vrot.slane %v5455_v0, 1  ;;  %v4669_v13 = vmul.f32 %v13323_v59, %v1851_v20  ;;  %v10574_v59 = vpop.permute.xlu0 %8009  ;;  %7420 = vmatmul.msk.f32.gmra.mxu2 %vm279_vm1, %v177_v40  ;;  %v2286_v40 = vrot.slane %v10475_v25, 6  ;;  %v2287_v50 = vrot.slane %v10475_v25, 7 }
 0x135   :  { %v5009_v26 = vmax.f32 %v5007_v9, %v5008_v11  ;;  %v4733_v46 = vmul.f32 %v13325_v12, %v1915_v21  ;;  %v49_v9 = vld [vmem:[%s13152_s0 + $0x100] sm:$0xff]  ;;  %8219 = vperm.xlu0 %7780, %v8218_v56   ;;  %v1687_v12 = vpop.f32.mrf.mxu3 }
 0x136   :  { %v5457_v20 = vmax.f32 %v5455_v0, %v5456_v54  ;;  %v5010_v38 = vsel %vm4911_vm7, %v4669_v13, -inf  ;;  %7292 = vmatmul.msk.f32.gmra.mxu0 %vm279_vm1, %v49_v9  ;;  %v241_v11 = vld [vmem:[%s13152_s0 + $0x700] sm:$0xff]  ;;  %v2288_v13 = vrot.slane %v10552_v14, 1  ;;  %v2533_v53 = vperm.slane %v2286_v40, 0 }
 0x137   :  { %v10570_v45 = vsel %vm6968_vm8, %v5009_v26, %v10482_v30  ;;  %v5011_v33 = vrot.slane %v5010_v38, 4  ;;  %v5458_v22 = vsel %vm4911_vm7, %v4733_v46, -inf  ;;  %v10588_v26 = vld [vmem:[%s13154_s3] ss:$0 sm:$0xff]  ;;  %v2535_v46 = vperm.slane %v10552_v14, 0  ;;  %7484 = vmatmul.msk.f32.gmra.mxu3 %vm279_vm1, %v241_v11 }
 0x138   :  { %v5459_v54 = vrot.slane %v5458_v22, 4  ;;  %v10591_v56 = vadd.f32 %v10588_v26, %v1495_v8  ;;  %v10597_v1 = vadd.f32 %v10588_v26, %v1687_v12  ;;  %v2536_v30 = vperm.slane %v2288_v13, 0 }
 0x139   :  { %v5012_v9 = vmax.f32 %v5010_v38, %v5011_v33  ;;  %vm2791_vm5 = vcmp.lt.s32.totalorder %v8468_v5, %v2535_v46  ;;  %v2284_v8 = vrot.slane %v10475_v25, 4  ;;  %v2534_v16 = vperm.slane %v2287_v50, 0 }
 0x13a   :  { %13326 = vst [vmem:[#allocation36_spill] sm:$0xff] %v10597_v1  ;;  %v5460_v21 = vmax.f32 %v5458_v22, %v5459_v54  ;;  %v7700_v44 = vsel %vm2791_vm5, 1.0, %v13298_v36  ;;  %vm2792_vm11 = vcmp.lt.s32.totalorder %v8468_v5, %v2536_v30  ;;  %v2285_v33 = vrot.slane %v10475_v25, 5  ;;  %v1114_v22 = vpop.f32.mrf.mxu0  ;;  %v1306_v54 = vpop.f32.mrf.mxu1 }
 0x13b   :  { %v5013_v0 = vrot.slane %v5012_v9, 2  ;;  %v2531_v38 = vperm.slane %v2284_v8, 0  ;;  %v7701_v28 = vsel %vm2792_vm11, 1.0, %v13298_v36  ;;  %vm2789_vm12 = vcmp.lt.s32.totalorder %v8468_v5, %v2533_v53 }
 0x13c   :  { %v5461_v11 = vrot.slane %v5460_v21, 2  ;;  %vm2790_vm13 = vcmp.lt.s32.totalorder %v8468_v5, %v2534_v16  ;;  %v8243_v46 = vpack.i.bf16 %v7701_v28, %v7700_v44  ;;  %v7698_v40 = vsel %vm2789_vm12, 1.0, %v13298_v36 }
 0x13d   :  { %v5014_v12 = vmax.f32 %v5012_v9, %v5013_v0  ;;  %v7699_v50 = vsel %vm2790_vm13, 1.0, %v13298_v36  ;;  %v2532_v63 = vperm.slane %v2285_v33, 0  ;;  %vm2787_vm15 = vcmp.lt.s32.totalorder %v8468_v5, %v2531_v38  ;;  %v10620_v38 = vpop.permute.xlu2 %8079 }
 0x13e   :  { %v5462_v13 = vmax.f32 %v5460_v21, %v5461_v11  ;;  %v8238_v30 = vpack.i.bf16 %v7699_v50, %v7698_v40  ;;  %8244 = vperm.xlu2 %7802, %v8243_v46   ;;  %v7696_v0 = vsel %vm2787_vm15, 1.0, %v13298_v36  ;;  %v1115_v53 = vadd.f32 %v10588_v26, %v1114_v22  ;;  %13327 = vst [vmem:[#allocation37_spill] sm:$0xff] %v10620_v38 }
 0x13f   :  { %v5015_v19 = vrot.slane %v5014_v12, 1  ;;  %v1307_v16 = vadd.f32 %v10588_v26, %v1306_v54  ;;  %v7034_v28 = vsel %vm6968_vm8, %v5457_v20, %v10534_v23  ;;  %vm2788_vm0 = vcmp.lt.s32.totalorder %v8468_v5, %v2532_v63  ;;  %v10628_v20 = vpop.permute.xlu1 %8029 }
 0x140   :  { %v5463_v25 = vrot.slane %v5462_v13, 1  ;;  %8239 = vperm.xlu1 %7791, %v8238_v30   ;;  %v7697_v8 = vsel %vm2788_vm0, 1.0, %v13298_v36  ;;  %v1852_v11 = vmax.f32 %v1115_v53, 0.0  ;;  %13328 = vst [vmem:[#allocation38_spill] sm:$0xff] %v10628_v20  ;;  %v13330_v63 = vunpack.i.h.bf16 %v9592_v60  ;;  %v1498_v30 = vpop.f32.mrf.mxu2  ;;  %v114_v53 = vld [vmem:[%s13152_s0 + $0x308] sm:$0xff] }
 0x141   :  { %v5016_v44 = vmax.f32 %v5014_v12, %v5015_v19  ;;  %v1916_v33 = vmax.f32 %v1307_v16, 0.0  ;;  %v8233_v23 = vpack.i.bf16 %v7697_v8, %v7696_v0  ;;  %v10630_v12 = vpop.permute.xlu0 %8024  ;;  %v13331_v46 = vunpack.i.h.bf16 %v10427_v51  ;;  %v50_v0 = vld [vmem:[%s13152_s0 + $0x108] sm:$0xff]  ;;  %7357 = vmatmul.msk.f32.gmra.mxu1 %vm279_vm1, %v114_v53 }
 0x142   :  { %v5464_v9 = vmax.f32 %v5462_v13, %v5463_v25  ;;  %13329 = vst [vmem:[#allocation39_spill] sm:$0xff] %v10630_v12  ;;  %v4670_v13 = vmul.f32 %v13330_v63, %v1852_v11  ;;  %v1690_v25 = vpop.f32.mrf.mxu3  ;;  %v178_v60 = vld [vmem:[%s13152_s0 + $0x508] sm:$0xff]  ;;  %v2293_v8 = vrot.slane %v10552_v14, 6  ;;  %7293 = vmatmul.msk.f32.gmra.mxu0 %vm279_vm1, %v50_v0  ;;  %v10664_v0 = vadd.f32 %v10588_v26, %v1498_v30 }
 0x143   :  { %v10624_v22 = vsel %vm6970_vm9, %v5016_v44, %v10570_v45  ;;  %v4734_v40 = vmul.f32 %v13331_v46, %v1916_v33  ;;  %8234 = vperm.xlu0 %7780, %v8233_v23   ;;  %v242_v11 = vld [vmem:[%s13152_s0 + $0x708] sm:$0xff]  ;;  %7421 = vmatmul.msk.f32.gmra.mxu2 %vm279_vm1, %v178_v60  ;;  %v10667_v19 = vadd.f32 %v10588_v26, %v1690_v25  ;;  %v2292_v50 = vrot.slane %v10552_v14, 5 }
 0x144   :  { %v10648_v51 = vsel %vm6970_vm9, %v5464_v9, %v7034_v28  ;;  %v5017_v33 = vsel %vm4911_vm7, %v4670_v13, -inf  ;;  %v2294_v28 = vrot.slane %v10552_v14, 7  ;;  %v2291_v9 = vrot.slane %v10552_v14, 4  ;;  %7485 = vmatmul.msk.f32.gmra.mxu3 %vm279_vm1, %v242_v11 }
 0x145   :  { %v5465_v63 = vsel %vm4911_vm7, %v4734_v40, -inf  ;;  %v5018_v23 = vrot.slane %v5017_v33, 4  ;;  %13332 = vst [vmem:[#allocation40_spill] sm:$0xff] %v10667_v19  ;;  %v2541_v13 = vperm.slane %v2293_v8, 0  ;;  %v2289_v53 = vrot.slane %v10552_v14, 2 }
 0x146   :  { %v5466_v46 = vrot.slane %v5465_v63, 4  ;;  %v2542_v40 = vperm.slane %v2294_v28, 0  ;;  %v2539_v45 = vperm.slane %v2291_v9, 0  ;;  %v2290_v60 = vrot.slane %v10552_v14, 3  ;;  %v1117_v9 = vpop.f32.mrf.mxu0 }
 0x147   :  { %v5019_v16 = vmax.f32 %v5017_v33, %v5018_v23  ;;  %vm2797_vm2 = vcmp.lt.s32.totalorder %v8468_v5, %v2541_v13  ;;  %v2540_v30 = vperm.slane %v2292_v50, 0  ;;  %v1309_v33 = vpop.f32.mrf.mxu1  ;;  %v2537_v23 = vperm.slane %v2289_v53, 0 }
 0x148   :  { %v5467_v54 = vmax.f32 %v5465_v63, %v5466_v46  ;;  %vm2798_vm5 = vcmp.lt.s32.totalorder %v8468_v5, %v2542_v40  ;;  %vm2795_vm11 = vcmp.lt.s32.totalorder %v8468_v5, %v2539_v45  ;;  %v7706_v8 = vsel %vm2797_vm2, 1.0, %v13298_v36 }
 0x149   :  { %v5020_v25 = vrot.slane %v5019_v16, 2  ;;  %v7707_v28 = vsel %vm2798_vm5, 1.0, %v13298_v36  ;;  %vm2796_vm12 = vcmp.lt.s32.totalorder %v8468_v5, %v2540_v30  ;;  %v7704_v14 = vsel %vm2795_vm11, 1.0, %v13298_v36 }
 0x14a   :  { %v5468_v11 = vrot.slane %v5467_v54, 2  ;;  %v8258_v63 = vpack.i.bf16 %v7707_v28, %v7706_v8  ;;  %v7705_v50 = vsel %vm2796_vm12, 1.0, %v13298_v36  ;;  %v2538_v40 = vperm.slane %v2290_v60, 0 }
 0x14b   :  { %v5021_v46 = vmax.f32 %v5019_v16, %v5020_v25  ;;  %v8253_v45 = vpack.i.bf16 %v7705_v50, %v7704_v14  ;;  %vm2793_vm13 = vcmp.lt.s32.totalorder %v8468_v5, %v2537_v23  ;;  %v1118_v44 = vadd.f32 %v10588_v26, %v1117_v9  ;;  %v10697_v16 = vpop.permute.xlu1 %8044 }
 0x14c   :  { %v5469_v13 = vmax.f32 %v5467_v54, %v5468_v11  ;;  %8259 = vperm.xlu2 %7802, %v8258_v63   ;;  %v1310_v21 = vadd.f32 %v10588_v26, %v1309_v33  ;;  %vm2794_vm15 = vcmp.lt.s32.totalorder %v8468_v5, %v2538_v40  ;;  %v7702_v30 = vsel %vm2793_vm13, 1.0, %v13298_v36  ;;  %v10689_v63 = vpop.permute.xlu2 %8094  ;;  %13336 = vst [vmem:[#allocation42_spill] sm:$0xff] %v10697_v16 }
 0x14d   :  { %v5022_v38 = vrot.slane %v5021_v46, 1  ;;  %8254 = vperm.xlu1 %7791, %v8253_v45   ;;  %v7703_v54 = vsel %vm2794_vm15, 1.0, %v13298_v36  ;;  %v1853_v53 = vmax.f32 %v1118_v44, 0.0  ;;  %13333 = vst [vmem:[#allocation41_spill] sm:$0xff] %v10689_v63  ;;  %v13334_v14 = vunpack.i.l.bf16 %v9311_v61 }
 0x14e   :  { %v5470_v8 = vrot.slane %v5469_v13, 1  ;;  %v1917_v60 = vmax.f32 %v1310_v21, 0.0  ;;  %v8248_v9 = vpack.i.bf16 %v7703_v54, %v7702_v30  ;;  %v13335_v50 = vunpack.i.l.bf16 %v10409_v62  ;;  %v10699_v21 = vpop.permute.xlu0 %8039  ;;  %v1501_v30 = vpop.f32.mrf.mxu2 }
 0x14f   :  { %v5023_v25 = vmax.f32 %v5021_v46, %v5022_v38  ;;  %v4671_v23 = vmul.f32 %v13334_v14, %v1853_v53  ;;  %13337 = vst [vmem:[#allocation43_spill] sm:$0xff] %v10699_v21  ;;  %v10704_v38 = vld [vmem:[%s13153_s1 + $0xc0] sm:$0xff]  ;;  %v1693_v54 = vpop.f32.mrf.mxu3 }
 0x150   :  { %v5471_v11 = vmax.f32 %v5469_v13, %v5470_v8  ;;  %v4735_v40 = vmul.f32 %v13335_v50, %v1917_v60  ;;  %8249 = vperm.xlu0 %7780, %v8248_v9   ;;  %v2298_v9 = vrot.slane %v10704_v38, 4  ;;  %v2299_v14 = vrot.slane %v10704_v38, 5 }
 0x151   :  { %v6980_v44 = vsel %vm6972_vm4, %v5023_v25, %v10624_v22  ;;  %v5024_v53 = vsel %vm4911_vm7, %v4671_v23, -inf  ;;  %v10727_v50 = vadd.f32 %v10588_v26, %v1501_v30  ;;  %v10730_v23 = vadd.f32 %v10588_v26, %v1693_v54  ;;  %v51_v30 = vld [vmem:[%s13152_s0 + $0x110] sm:$0xff] }
 0x152   :  { %v7036_v46 = vsel %vm6972_vm4, %v5471_v11, %v10648_v51  ;;  %7224 = vst.msk [vmem:[%s13155_s4 + $0x8] sm:$0xff] %vm4911_vm7, %v6980_v44  ;;  %v5472_v60 = vsel %vm4911_vm7, %v4735_v40, -inf  ;;  %v5025_v25 = vrot.slane %v5024_v53, 4  ;;  %v2296_v40 = vrot.slane %v10704_v38, 2  ;;  %v115_v54 = vld [vmem:[%s13152_s0 + $0x310] sm:$0xff]  ;;  %7294 = vmatmul.msk.f32.gmra.mxu0 %vm279_vm1, %v51_v30 }
 0x153   :  { %7232 = vst.msk [vmem:[%s13155_s4 + $0x48] sm:$0xff] %vm4911_vm7, %v7036_v46  ;;  %v5473_v11 = vrot.slane %v5472_v60, 4  ;;  %v2297_v44 = vrot.slane %v10704_v38, 3  ;;  %v2547_v8 = vperm.slane %v2298_v9, 0  ;;  %v2548_v46 = vperm.slane %v2299_v14, 0  ;;  %7358 = vmatmul.msk.f32.gmra.mxu1 %vm279_vm1, %v115_v54  ;;  %v10779_v21 = vpop.permute.xlu1 %8059 }
 0x154   :  { %13338 = vst [vmem:[#allocation44_spill] sm:$0xff] %v10730_v23  ;;  %v5026_v45 = vmax.f32 %v5024_v53, %v5025_v25  ;;  %v2545_v22 = vperm.slane %v2296_v40, 0  ;;  %v2295_v33 = vrot.slane %v10704_v38, 1  ;;  %v2543_v28 = vperm.slane %v10704_v38, 0  ;;  %v1120_v53 = vpop.f32.mrf.mxu0  ;;  %v243_v25 = vld [vmem:[%s13152_s0 + $0x710] sm:$0xff]  ;;  %v8110_v30 = vpop.permute.xlu2 %8109 }
 0x155   :  { %v5474_v13 = vmax.f32 %v5472_v60, %v5473_v11  ;;  %v2546_v51 = vperm.slane %v2297_v44, 0  ;;  %vm2803_vm0 = vcmp.lt.s32.totalorder %v8468_v5, %v2547_v8  ;;  %vm2804_vm2 = vcmp.lt.s32.totalorder %v8468_v5, %v2548_v46  ;;  %v179_v60 = vld [vmem:[%s13152_s0 + $0x510] sm:$0xff]  ;;  %7486 = vmatmul.msk.f32.gmra.mxu3 %vm279_vm1, %v243_v25  ;;  %v1312_v46 = vpop.f32.mrf.mxu1  ;;  %13342 = vst [vmem:[#allocation45_spill] sm:$0xff] %v10779_v21 }
 0x156   :  { %v5027_v63 = vrot.slane %v5026_v45, 2  ;;  %v7712_v11 = vsel %vm2803_vm0, 1.0, %v13298_v36  ;;  %v7713_v9 = vsel %vm2804_vm2, 1.0, %v13298_v36  ;;  %vm2801_vm5 = vcmp.lt.s32.totalorder %v8468_v5, %v2545_v22  ;;  %7422 = vmatmul.msk.f32.gmra.mxu2 %vm279_vm1, %v179_v60 }
 0x157   :  { %v5475_v16 = vrot.slane %v5474_v13, 2  ;;  %vm2802_vm11 = vcmp.lt.s32.totalorder %v8468_v5, %v2546_v51  ;;  %v8273_v40 = vpack.i.bf16 %v7713_v9, %v7712_v11  ;;  %v7710_v44 = vsel %vm2801_vm5, 1.0, %v13298_v36 }
 0x158   :  { %v5028_v8 = vmax.f32 %v5026_v45, %v5027_v63  ;;  %v7711_v54 = vsel %vm2802_vm11, 1.0, %v13298_v36  ;;  %v2544_v20 = vperm.slane %v2295_v33, 0  ;;  %vm2799_vm12 = vcmp.lt.s32.totalorder %v8468_v5, %v2543_v28 }
 0x159   :  { %v5476_v14 = vmax.f32 %v5474_v13, %v5475_v16  ;;  %v1121_v22 = vadd.f32 %v10588_v26, %v1120_v53  ;;  %8274 = vperm.xlu2 %7802, %v8273_v40   ;;  %v8268_v60 = vpack.i.bf16 %v7711_v54, %v7710_v44  ;;  %v7708_v25 = vsel %vm2799_vm12, 1.0, %v13298_v36 }
 0x15a   :  { %v5029_v1 = vrot.slane %v5028_v8, 1  ;;  %vm2800_vm13 = vcmp.lt.s32.totalorder %v8468_v5, %v2544_v20  ;;  %v1313_v63 = vadd.f32 %v10588_v26, %v1312_v46  ;;  %v8112_v45 = vunpack.i.h.bf16 %v8110_v30 }
 0x15b   :  { %v5477_v51 = vrot.slane %v5476_v14, 1  ;;  %v1854_v16 = vmax.f32 %v1121_v22, 0.0  ;;  %8269 = vperm.xlu1 %7791, %v8268_v60   ;;  %v7709_v28 = vsel %vm2800_vm13, 1.0, %v13298_v36  ;;  %v8111_v53 = vunpack.i.l.bf16 %v8110_v30 }
 0x15c   :  { %v8263_v11 = vpack.i.bf16 %v7709_v28, %v7708_v25  ;;  %v13339_v9 = vunpack.i.h.bf16 %v9311_v61  ;;  %v1918_v44 = vmax.f32 %v1313_v63, 0.0  ;;  %v13340_v54 = vmax.f32 %v9770_v41, 0.0  ;;  %v10784_v61 = vld [vmem:[%s13153_s1 + $0xc8] sm:$0xff] }
 0x15d   :  { %v10772_v22 = vmax.f32 %v5028_v8, %v5029_v1  ;;  %v10774_v46 = vmax.f32 %v5476_v14, %v5477_v51  ;;  %v13341_v33 = vmax.f32 %v9698_v37, 0.0  ;;  %v13343_v1 = vunpack.i.h.bf16 %v10409_v62  ;;  %v1504_v51 = vpop.f32.mrf.mxu2 }
 0x15e   :  { %v4672_v40 = vmul.f32 %v13339_v9, %v1854_v16  ;;  %v4786_v20 = vmul.f32 %v8112_v45, %v13340_v54  ;;  %8264 = vperm.xlu0 %7780, %v8263_v11   ;;  %v10793_v45 = vpop.permute.xlu0 %8054  ;;  %v2303_v11 = vrot.slane %v10784_v61, 2  ;;  %v10799_v54 = vadd.f32 %v10588_v26, %v1504_v51 }
 0x15f   :  { %v4785_v60 = vmul.f32 %v8111_v53, %v13341_v33  ;;  %v4736_v8 = vmul.f32 %v13343_v1, %v1918_v44  ;;  %13344 = vst [vmem:[#allocation46_spill] sm:$0xff] %v10793_v45  ;;  %v1696_v33 = vpop.f32.mrf.mxu3  ;;  %v2304_v1 = vrot.slane %v10784_v61, 3  ;;  %v2302_v62 = vrot.slane %v10784_v61, 1 }
 0x160   :  { %v5031_v41 = vsel %vm4911_vm7, %v4672_v40, -inf  ;;  %v5829_v14 = vsel %vm4911_vm7, %v4786_v20, -inf  ;;  %v2553_v30 = vperm.slane %v2303_v11, 0 }
 0x161   :  { %v5032_v37 = vrot.slane %v5031_v41, 4  ;;  %v5822_v25 = vsel %vm4911_vm7, %v4785_v60, -inf  ;;  %v5830_v16 = vrot.slane %v5829_v14, 4  ;;  %v5479_v28 = vsel %vm4911_vm7, %v4736_v8, -inf }
 0x162   :  { %v5823_v53 = vrot.slane %v5822_v25, 4  ;;  %v5480_v40 = vrot.slane %v5479_v28, 4  ;;  %v10802_v60 = vadd.f32 %v10588_v26, %v1696_v33  ;;  %v2554_v19 = vperm.slane %v2304_v1, 0 }
 0x163   :  { %v5033_v9 = vmax.f32 %v5031_v41, %v5032_v37  ;;  %v5831_v44 = vmax.f32 %v5829_v14, %v5830_v16  ;;  %vm2809_vm15 = vcmp.lt.s32.totalorder %v8468_v5, %v2553_v30  ;;  %v2551_v41 = vperm.slane %v10784_v61, 0  ;;  %v52_v30 = vld [vmem:[%s13152_s0 + $0x118] sm:$0xff] }
 0x164   :  { %v5824_v20 = vmax.f32 %v5822_v25, %v5823_v53  ;;  %v5481_v8 = vmax.f32 %v5479_v28, %v5480_v40  ;;  %v7718_v25 = vsel %vm2809_vm15, 1.0, %v13298_v36  ;;  %vm2810_vm0 = vcmp.lt.s32.totalorder %v8468_v5, %v2554_v19  ;;  %v180_v19 = vld [vmem:[%s13152_s0 + $0x518] sm:$0xff]  ;;  %7295 = vmatmul.msk.f32.gmra.mxu0 %vm279_vm1, %v52_v30 }
 0x165   :  { %v5034_v63 = vrot.slane %v5033_v9, 2  ;;  %v5832_v13 = vrot.slane %v5831_v44, 2  ;;  %v2552_v33 = vperm.slane %v2302_v62, 0  ;;  %vm2807_vm2 = vcmp.lt.s32.totalorder %v8468_v5, %v2551_v41  ;;  %7423 = vmatmul.msk.f32.gmra.mxu2 %vm279_vm1, %v180_v19 }
 0x166   :  { %v5825_v21 = vrot.slane %v5824_v20, 2  ;;  %v5482_v51 = vrot.slane %v5481_v8, 2  ;;  %v7719_v40 = vsel %vm2810_vm0, 1.0, %v13298_v36  ;;  %v7716_v62 = vsel %vm2807_vm2, 1.0, %v13298_v36 }
 0x167   :  { %v5035_v14 = vmax.f32 %v5033_v9, %v5034_v63  ;;  %v5833_v37 = vmax.f32 %v5831_v44, %v5832_v13  ;;  %v116_v13 = vld [vmem:[%s13152_s0 + $0x318] sm:$0xff]  ;;  %v8288_v63 = vpack.i.bf16 %v7719_v40, %v7718_v25  ;;  %vm2808_vm5 = vcmp.lt.s32.totalorder %v8468_v5, %v2552_v33  ;;  %v1123_v9 = vpop.f32.mrf.mxu0  ;;  %v1315_v44 = vpop.f32.mrf.mxu1 }
 0x168   :  { %v5826_v16 = vmax.f32 %v5824_v20, %v5825_v21  ;;  %v5483_v53 = vmax.f32 %v5481_v8, %v5482_v51  ;;  %7359 = vmatmul.msk.f32.gmra.mxu1 %vm279_vm1, %v116_v13  ;;  %v244_v20 = vld [vmem:[%s13152_s0 + $0x718] sm:$0xff]  ;;  %v7717_v51 = vsel %vm2808_vm5, 1.0, %v13298_v36  ;;  %v8125_v25 = vpop.permute.xlu2 %8124  ;;  %v2300_v30 = vrot.slane %v10704_v38, 6 }
 0x169   :  { %v5036_v28 = vrot.slane %v5035_v14, 1  ;;  %v5834_v11 = vrot.slane %v5833_v37, 1  ;;  %7487 = vmatmul.msk.f32.gmra.mxu3 %vm279_vm1, %v244_v20  ;;  %8289 = vperm.xlu2 %7802, %v8288_v63   ;;  %v8283_v40 = vpack.i.bf16 %v7717_v51, %v7716_v62  ;;  %v2301_v13 = vrot.slane %v10704_v38, 7 }
 0x16a   :  { %v5484_v1 = vrot.slane %v5483_v53, 1  ;;  %v5827_v8 = vrot.slane %v5826_v16, 1  ;;  %v1124_v41 = vadd.f32 %v10588_v26, %v1123_v9  ;;  %v1316_v12 = vadd.f32 %v10588_v26, %v1315_v44 }
 0x16b   :  { %v5037_v21 = vmax.f32 %v5035_v14, %v5036_v28  ;;  %v10836_v45 = vmax.f32 %v5833_v37, %v5834_v11  ;;  %8284 = vperm.xlu1 %7791, %v8283_v40   ;;  %v2549_v23 = vperm.slane %v2300_v30, 0  ;;  %v2550_v19 = vperm.slane %v2301_v13, 0  ;;  %v10867_v40 = vld [vmem:[%s13153_s1 + $0xd0] sm:$0xff] }
 0x16c   :  { %v8127_v7 = vunpack.i.h.bf16 %v8125_v25  ;;  %v8126_v20 = vunpack.i.l.bf16 %v8125_v25  ;;  %v5485_v27 = vmax.f32 %v5483_v53, %v5484_v1  ;;  %v10840_v33 = vmax.f32 %v5826_v16, %v5827_v8  ;;  %v10862_v25 = vpop.permute.xlu1 %8074 }
 0x16d   :  { %v1855_v63 = vmax.f32 %v1124_v41, 0.0  ;;  %v1919_v62 = vmax.f32 %v1316_v12, 0.0  ;;  %vm2805_vm11 = vcmp.lt.s32.totalorder %v8468_v5, %v2549_v23  ;;  %vm2806_vm12 = vcmp.lt.s32.totalorder %v8468_v5, %v2550_v19  ;;  %13349 = vst [vmem:[#allocation47_spill] sm:$0xff] %v10862_v25  ;;  %v10874_v19 = vpop.permute.xlu0 %8069 }
 0x16e   :  { %v13345_v38 = vmax.f32 %v10148_v52, 0.0  ;;  %v13346_v37 = vmax.f32 %v10202_v57, 0.0  ;;  %v7714_v11 = vsel %vm2805_vm11, 1.0, %v13298_v36  ;;  %v7715_v9 = vsel %vm2806_vm12, 1.0, %v13298_v36 }
 0x16f   :  { %v13347_v53 = vunpack.i.l.bf16 %v9680_v10  ;;  %v13348_v44 = vunpack.i.l.bf16 %v10173_v4  ;;  %v10856_v23 = vsel %vm6960_vm3, %v5037_v21, %v10772_v22  ;;  %v8278_v1 = vpack.i.bf16 %v7715_v9, %v7714_v11 }
 0x170   :  { %v4791_v14 = vmul.f32 %v8126_v20, %v13345_v38  ;;  %v4792_v28 = vmul.f32 %v8127_v7, %v13346_v37  ;;  %v10871_v22 = vsel %vm6960_vm3, %v5485_v27, %v10774_v46  ;;  %v1507_v20 = vpop.f32.mrf.mxu2  ;;  %v2309_v11 = vrot.slane %v10867_v40, 1 }
 0x171   :  { %v4673_v16 = vmul.f32 %v13347_v53, %v1855_v63  ;;  %v4737_v12 = vmul.f32 %v13348_v44, %v1919_v62  ;;  %8279 = vperm.xlu0 %7780, %v8278_v1   ;;  %v2559_v27 = vperm.slane %v10867_v40, 0 }
 0x172   :  { %v5864_v52 = vsel %vm4911_vm7, %v4791_v14, -inf  ;;  %v5871_v57 = vsel %vm4911_vm7, %v4792_v28, -inf  ;;  %v2560_v1 = vperm.slane %v2309_v11, 0 }
 0x173   :  { %v5038_v7 = vsel %vm4911_vm7, %v4673_v16, -inf  ;;  %v5486_v8 = vsel %vm4911_vm7, %v4737_v12, -inf  ;;  %v5865_v41 = vrot.slane %v5864_v52, 4  ;;  %v5872_v51 = vrot.slane %v5871_v57, 4 }
 0x174   :  { %v5039_v21 = vrot.slane %v5038_v7, 4  ;;  %v5487_v30 = vrot.slane %v5486_v8, 4  ;;  %v10882_v16 = vadd.f32 %v10588_v26, %v1507_v20  ;;  %vm2815_vm13 = vcmp.lt.s32.totalorder %v8468_v5, %v2559_v27 }
 0x175   :  { %v5866_v63 = vmax.f32 %v5864_v52, %v5865_v41  ;;  %v5873_v62 = vmax.f32 %v5871_v57, %v5872_v51  ;;  %vm2816_vm15 = vcmp.lt.s32.totalorder %v8468_v5, %v2560_v1  ;;  %v245_v1 = vld [vmem:[%s13152_s0 + $0x720] sm:$0xff] }
 0x176   :  { %v5040_v37 = vmax.f32 %v5038_v7, %v5039_v21  ;;  %v5488_v28 = vmax.f32 %v5486_v8, %v5487_v30  ;;  %v7724_v7 = vsel %vm2815_vm13, 1.0, %v13298_v36  ;;  %v2307_v8 = vrot.slane %v10784_v61, 6  ;;  %v1699_v21 = vpop.f32.mrf.mxu3  ;;  %7488 = vmatmul.msk.f32.gmra.mxu3 %vm279_vm1, %v245_v1 }
 0x177   :  { %v5867_v46 = vrot.slane %v5866_v63, 2  ;;  %v5874_v9 = vrot.slane %v5873_v62, 2  ;;  %v2308_v30 = vrot.slane %v10784_v61, 7  ;;  %v7725_v38 = vsel %vm2816_vm15, 1.0, %v13298_v36 }
 0x178   :  { %v5041_v44 = vrot.slane %v5040_v37, 2  ;;  %v5489_v12 = vrot.slane %v5488_v28, 2  ;;  %v2557_v11 = vperm.slane %v2307_v8, 0 }
 0x179   :  { %v5868_v52 = vmax.f32 %v5866_v63, %v5867_v46  ;;  %v5875_v57 = vmax.f32 %v5873_v62, %v5874_v9  ;;  %v8303_v63 = vpack.i.bf16 %v7725_v38, %v7724_v7  ;;  %v2558_v62 = vperm.slane %v2308_v30, 0  ;;  %v53_v46 = vld [vmem:[%s13152_s0 + $0x120] sm:$0xff]  ;;  %v8140_v30 = vpop.permute.xlu2 %8139 }
 0x17a   :  { %v5042_v41 = vmax.f32 %v5040_v37, %v5041_v44  ;;  %v5490_v51 = vmax.f32 %v5488_v28, %v5489_v12  ;;  %v117_v37 = vld [vmem:[%s13152_s0 + $0x320] sm:$0xff]  ;;  %v10900_v44 = vadd.f32 %v10588_v26, %v1699_v21  ;;  %vm2813_vm0 = vcmp.lt.s32.totalorder %v8468_v5, %v2557_v11  ;;  %v1126_v12 = vpop.f32.mrf.mxu0  ;;  %7296 = vmatmul.msk.f32.gmra.mxu0 %vm279_vm1, %v53_v46  ;;  %v1318_v21 = vpop.f32.mrf.mxu1 }
 0x17b   :  { %v5869_v20 = vrot.slane %v5868_v52, 1  ;;  %v5876_v13 = vrot.slane %v5875_v57, 1  ;;  %v181_v28 = vld [vmem:[%s13152_s0 + $0x520] sm:$0xff]  ;;  %v2305_v38 = vrot.slane %v10784_v61, 4  ;;  %7360 = vmatmul.msk.f32.gmra.mxu1 %vm279_vm1, %v117_v37  ;;  %8304 = vperm.xlu2 %7802, %v8303_v63   ;;  %vm2814_vm2 = vcmp.lt.s32.totalorder %v8468_v5, %v2558_v62 }
 0x17c   :  { %v5043_v14 = vrot.slane %v5042_v41, 1  ;;  %v5491_v27 = vrot.slane %v5490_v51, 1  ;;  %7424 = vmatmul.msk.f32.gmra.mxu2 %vm279_vm1, %v181_v28  ;;  %v7723_v11 = vsel %vm2814_vm2, 1.0, %v13298_v36  ;;  %v2306_v46 = vrot.slane %v10784_v61, 5 }
 0x17d   :  { %v5870_v9 = vmax.f32 %v5868_v52, %v5869_v20  ;;  %v7722_v52 = vsel %vm2813_vm0, 1.0, %v13298_v36  ;;  %v5877_v20 = vmax.f32 %v5875_v57, %v5876_v13  ;;  %v2555_v37 = vperm.slane %v2305_v38, 0 }
 0x17e   :  { %v5044_v7 = vmax.f32 %v5042_v41, %v5043_v14  ;;  %v5492_v8 = vmax.f32 %v5490_v51, %v5491_v27  ;;  %v8298_v51 = vpack.i.bf16 %v7723_v11, %v7722_v52  ;;  %v1127_v27 = vadd.f32 %v10588_v26, %v1126_v12  ;;  %v1702_v53 = vpop.f32.mrf.mxu3 }
 0x17f   :  { %v2556_v63 = vperm.slane %v2306_v46, 0  ;;  %vm2811_vm5 = vcmp.lt.s32.totalorder %v8468_v5, %v2555_v37  ;;  %v1319_v13 = vadd.f32 %v10588_v26, %v1318_v21  ;;  %v8142_v61 = vunpack.i.h.bf16 %v8140_v30 }
 0x180   :  { %v10917_v14 = vsel %vm6962_vm6, %v5044_v7, %v10856_v23  ;;  %v10921_v41 = vsel %vm6962_vm6, %v5492_v8, %v10871_v22  ;;  %8299 = vperm.xlu1 %7791, %v8298_v51   ;;  %v7720_v62 = vsel %vm2811_vm5, 1.0, %v13298_v36  ;;  %v1856_v23 = vmax.f32 %v1127_v27, 0.0 }
 0x181   :  { %v8141_v28 = vunpack.i.l.bf16 %v8140_v30  ;;  %vm2812_vm11 = vcmp.lt.s32.totalorder %v8468_v5, %v2556_v63  ;;  %v1920_v22 = vmax.f32 %v1319_v13, 0.0  ;;  %v13350_v12 = vmax.f32 %v10664_v0, 0.0  ;;  %v10940_v30 = vpop.permute.xlu1 %8089 }
 0x182   :  { %v10933_v7 = vsel %vm6960_vm3, %v5877_v20, %v5870_v9  ;;  %v7721_v8 = vsel %vm2812_vm11, 1.0, %v13298_v36  ;;  %v13351_v52 = vunpack.i.h.bf16 %v9680_v10  ;;  %v13352_v11 = vmax.f32 %v10591_v56, 0.0  ;;  %13353 = vst [vmem:[#allocation48_spill] sm:$0xff] %v10940_v30  ;;  %v1510_v56 = vpop.f32.mrf.mxu2 }
 0x183   :  { %v4798_v1 = vmul.f32 %v8142_v61, %v13350_v12  ;;  %v8293_v37 = vpack.i.bf16 %v7721_v8, %v7720_v62  ;;  %v13354_v51 = vunpack.i.h.bf16 %v10173_v4  ;;  %v10949_v61 = vpop.permute.xlu0 %8084  ;;  %v2314_v8 = vrot.slane %v10867_v40, 6 }
 0x184   :  { %v4674_v21 = vmul.f32 %v13351_v52, %v1856_v23  ;;  %v4797_v46 = vmul.f32 %v8141_v28, %v13352_v11  ;;  %13355 = vst [vmem:[#allocation49_spill] sm:$0xff] %v10949_v61  ;;  %v10956_v11 = vadd.f32 %v10588_v26, %v1510_v56 }
 0x185   :  { %v4738_v27 = vmul.f32 %v13354_v51, %v1920_v22  ;;  %v5913_v0 = vsel %vm4911_vm7, %v4798_v1, -inf  ;;  %8294 = vperm.xlu0 %7780, %v8293_v37   ;;  %v2565_v63 = vperm.slane %v2314_v8, 0 }
 0x186   :  { %v5045_v9 = vsel %vm4911_vm7, %v4674_v21, -inf  ;;  %v5906_v20 = vsel %vm4911_vm7, %v4797_v46, -inf  ;;  %v5914_v13 = vrot.slane %v5913_v0, 4  ;;  %v2315_v46 = vrot.slane %v10867_v40, 7 }
 0x187   :  { %v5046_v23 = vrot.slane %v5045_v9, 4  ;;  %v5493_v62 = vsel %vm4911_vm7, %v4738_v27, -inf  ;;  %v5907_v4 = vrot.slane %v5906_v20, 4  ;;  %v2312_v27 = vrot.slane %v10867_v40, 4 }
 0x188   :  { %v5494_v22 = vrot.slane %v5493_v62, 4  ;;  %v5915_v12 = vmax.f32 %v5913_v0, %v5914_v13  ;;  %v2566_v0 = vperm.slane %v2315_v46, 0  ;;  %v2313_v13 = vrot.slane %v10867_v40, 5 }
 0x189   :  { %v5047_v52 = vmax.f32 %v5045_v9, %v5046_v23  ;;  %v5908_v21 = vmax.f32 %v5906_v20, %v5907_v4  ;;  %vm2821_vm12 = vcmp.lt.s32.totalorder %v8468_v5, %v2565_v63  ;;  %v2563_v9 = vperm.slane %v2312_v27, 0  ;;  %v1129_v63 = vpop.f32.mrf.mxu0 }
 0x18a   :  { %v5495_v37 = vmax.f32 %v5493_v62, %v5494_v22  ;;  %v5916_v51 = vrot.slane %v5915_v12, 2  ;;  %vm2822_vm13 = vcmp.lt.s32.totalorder %v8468_v5, %v2566_v0  ;;  %v7730_v23 = vsel %vm2821_vm12, 1.0, %v13298_v36 }
 0x18b   :  { %v5048_v10 = vrot.slane %v5047_v52, 2  ;;  %v5909_v28 = vrot.slane %v5908_v21, 2  ;;  %v10965_v4 = vadd.f32 %v10588_v26, %v1702_v53  ;;  %v7731_v22 = vsel %vm2822_vm13, 1.0, %v13298_v36  ;;  %v182_v53 = vld [vmem:[%s13152_s0 + $0x528] sm:$0xff] }
 0x18c   :  { %v5496_v1 = vrot.slane %v5495_v37, 2  ;;  %v5917_v38 = vmax.f32 %v5915_v12, %v5916_v51  ;;  %v2564_v8 = vperm.slane %v2313_v13, 0  ;;  %v8318_v12 = vpack.i.bf16 %v7731_v22, %v7730_v23  ;;  %v246_v51 = vld [vmem:[%s13152_s0 + $0x728] sm:$0xff]  ;;  %7425 = vmatmul.msk.f32.gmra.mxu2 %vm279_vm1, %v182_v53 }
 0x18d   :  { %v5049_v20 = vmax.f32 %v5047_v52, %v5048_v10  ;;  %v5910_v56 = vmax.f32 %v5908_v21, %v5909_v28  ;;  %vm2819_vm15 = vcmp.lt.s32.totalorder %v8468_v5, %v2563_v9  ;;  %v54_v10 = vld [vmem:[%s13152_s0 + $0x128] sm:$0xff]  ;;  %v2310_v9 = vrot.slane %v10867_v40, 2  ;;  %7489 = vmatmul.msk.f32.gmra.mxu3 %vm279_vm1, %v246_v51  ;;  %v1513_v51 = vpop.f32.mrf.mxu2 }
 0x18e   :  { %v5497_v62 = vmax.f32 %v5495_v37, %v5496_v1  ;;  %v118_v28 = vld [vmem:[%s13152_s0 + $0x328] sm:$0xff]  ;;  %v5918_v52 = vrot.slane %v5917_v38, 1  ;;  %vm2820_vm0 = vcmp.lt.s32.totalorder %v8468_v5, %v2564_v8  ;;  %v7728_v21 = vsel %vm2819_vm15, 1.0, %v13298_v36  ;;  %v1321_v37 = vpop.f32.mrf.mxu1  ;;  %7297 = vmatmul.msk.f32.gmra.mxu0 %vm279_vm1, %v54_v10  ;;  %8319 = vperm.xlu2 %7802, %v8318_v12  }
 0x18f   :  { %v5050_v46 = vrot.slane %v5049_v20, 1  ;;  %7361 = vmatmul.msk.f32.gmra.mxu1 %vm279_vm1, %v118_v28  ;;  %v5911_v0 = vrot.slane %v5910_v56, 1  ;;  %v7729_v13 = vsel %vm2820_vm0, 1.0, %v13298_v36  ;;  %v2311_v8 = vrot.slane %v10867_v40, 3  ;;  %v8105_v28 = vpop.permute.xlu1 %8104 }
 0x190   :  { %v5498_v1 = vrot.slane %v5497_v62, 1  ;;  %v8313_v22 = vpack.i.bf16 %v7729_v13, %v7728_v21  ;;  %v1130_v10 = vadd.f32 %v10588_v26, %v1129_v63  ;;  %v2561_v12 = vperm.slane %v2310_v9, 0 }
 0x191   :  { %v5051_v27 = vmax.f32 %v5049_v20, %v5050_v46  ;;  %v1322_v57 = vadd.f32 %v10588_v26, %v1321_v37  ;;  %v11002_v53 = vmax.f32 %v5917_v38, %v5918_v52  ;;  %v2562_v40 = vperm.slane %v2311_v8, 0 }
 0x192   :  { %v5499_v23 = vmax.f32 %v5497_v62, %v5498_v1  ;;  %8314 = vperm.xlu1 %7791, %v8313_v22   ;;  %v1857_v63 = vmax.f32 %v1130_v10, 0.0  ;;  %vm2817_vm2 = vcmp.lt.s32.totalorder %v8468_v5, %v2561_v12  ;;  %v8107_v21 = vunpack.i.h.bf16 %v8105_v28 }
 0x193   :  { %v10994_v20 = vsel %vm6964_vm10, %v5051_v27, %v10917_v14  ;;  %v1921_v1 = vmax.f32 %v1322_v57, 0.0  ;;  %v8106_v14 = vunpack.i.l.bf16 %v8105_v28  ;;  %v11005_v27 = vmax.f32 %v5910_v56, %v5911_v0 }
 0x194   :  { %v11000_v62 = vsel %vm6964_vm10, %v5499_v23, %v10921_v41  ;;  %vm2818_vm5 = vcmp.lt.s32.totalorder %v8468_v5, %v2562_v40  ;;  %v7726_v37 = vsel %vm2817_vm2, 1.0, %v13298_v36  ;;  %v13356_v41 = vunpack.i.l.bf16 %v9666_v49  ;;  %v11014_v23 = vpop.permute.xlu2 %8154  ;;  %v11026_v40 = vld [vmem:[%s13153_s1 + $0xd8] sm:$0xff] }
 0x195   :  { %v7727_v38 = vsel %vm2818_vm5, 1.0, %v13298_v36  ;;  %v13357_v52 = vunpack.i.l.bf16 %v10487_v58  ;;  %v13358_v57 = vmax.f32 %v9545_v3, 0.0  ;;  %v13359_v56 = vmax.f32 %v9628_v24, 0.0 }
 0x196   :  { %v4675_v13 = vmul.f32 %v13356_v41, %v1857_v63  ;;  %v8308_v8 = vpack.i.bf16 %v7727_v38, %v7726_v37  ;;  %v8156_v28 = vunpack.i.l.bf16 %v11014_v23  ;;  %v1514_v12 = vadd.f32 %v10588_v26, %v1513_v51 }
 0x197   :  { %v4739_v9 = vmul.f32 %v13357_v52, %v1921_v1  ;;  %v4783_v22 = vmul.f32 %v8106_v14, %v13358_v57  ;;  %v4784_v0 = vmul.f32 %v8107_v21, %v13359_v56  ;;  %v2319_v51 = vrot.slane %v11026_v40, 4 }
 0x198   :  { %v5052_v10 = vsel %vm4911_vm7, %v4675_v13, -inf  ;;  %8309 = vperm.xlu0 %7780, %v8308_v8   ;;  %v1985_v41 = vmax.f32 %v1514_v12, 0.0  ;;  %v2320_v38 = vrot.slane %v11026_v40, 5 }
 0x199   :  { %v5053_v63 = vrot.slane %v5052_v10, 4  ;;  %v5500_v1 = vsel %vm4911_vm7, %v4739_v9, -inf  ;;  %v5808_v3 = vsel %vm4911_vm7, %v4783_v22, -inf  ;;  %v5815_v24 = vsel %vm4911_vm7, %v4784_v0, -inf  ;;  %v11034_v9 = vpop.permute.xlu0 %8099 }
 0x19a   :  { %v5501_v21 = vrot.slane %v5500_v1, 4  ;;  %v5809_v14 = vrot.slane %v5808_v3, 4  ;;  %v5816_v37 = vrot.slane %v5815_v24, 4  ;;  %13360 = vst [vmem:[#allocation50_spill] sm:$0xff] %v11034_v9  ;;  %v4803_v22 = vmul.f32 %v8156_v28, %v1985_v41 }
 0x19b   :  { %v5054_v13 = vmax.f32 %v5052_v10, %v5053_v63  ;;  %v2571_v8 = vperm.slane %v2319_v51, 0  ;;  %v2572_v30 = vperm.slane %v2320_v38, 0  ;;  %v2317_v41 = vrot.slane %v11026_v40, 2 }
 0x19c   :  { %v5502_v52 = vmax.f32 %v5500_v1, %v5501_v21  ;;  %v5810_v57 = vmax.f32 %v5808_v3, %v5809_v14  ;;  %v5817_v56 = vmax.f32 %v5815_v24, %v5816_v37  ;;  %v5948_v63 = vsel %vm4911_vm7, %v4803_v22, -inf }
 0x19d   :  { %v5055_v46 = vrot.slane %v5054_v13, 2  ;;  %v5949_v25 = vrot.slane %v5948_v63, 4  ;;  %vm2827_vm11 = vcmp.lt.s32.totalorder %v8468_v5, %v2571_v8  ;;  %vm2828_vm12 = vcmp.lt.s32.totalorder %v8468_v5, %v2572_v30 }
 0x19e   :  { %v5503_v61 = vrot.slane %v5502_v52, 2  ;;  %v5811_v12 = vrot.slane %v5810_v57, 2  ;;  %v5818_v10 = vrot.slane %v5817_v56, 2  ;;  %v7736_v28 = vsel %vm2827_vm11, 1.0, %v13298_v36 }
 0x19f   :  { %v5056_v26 = vmax.f32 %v5054_v13, %v5055_v46  ;;  %v5950_v14 = vmax.f32 %v5948_v63, %v5949_v25  ;;  %v7737_v37 = vsel %vm2828_vm12, 1.0, %v13298_v36  ;;  %v2318_v8 = vrot.slane %v11026_v40, 3 }
 0x1a0   :  { %v5504_v1 = vmax.f32 %v5502_v52, %v5503_v61  ;;  %v5812_v3 = vmax.f32 %v5810_v57, %v5811_v12  ;;  %v5819_v24 = vmax.f32 %v5817_v56, %v5818_v10  ;;  %v8333_v46 = vpack.i.bf16 %v7737_v37, %v7736_v28  ;;  %v1705_v56 = vpop.f32.mrf.mxu3  ;;  %v1324_v28 = vpop.f32.mrf.mxu1 }
 0x1a1   :  { %v5057_v21 = vrot.slane %v5056_v26, 1  ;;  %v5951_v0 = vrot.slane %v5950_v14, 2  ;;  %v2569_v30 = vperm.slane %v2317_v41, 0  ;;  %v2316_v25 = vrot.slane %v11026_v40, 1 }
 0x1a2   :  { %v5505_v51 = vrot.slane %v5504_v1, 1  ;;  %v5813_v38 = vrot.slane %v5812_v3, 1  ;;  %v5820_v22 = vrot.slane %v5819_v24, 1  ;;  %8334 = vperm.xlu2 %7802, %v8333_v46   ;;  %v2570_v63 = vperm.slane %v2318_v8, 0  ;;  %v55_v8 = vld [vmem:[%s13152_s0 + $0x130] sm:$0xff] }
 0x1a3   :  { %v5058_v13 = vmax.f32 %v5056_v26, %v5057_v21  ;;  %v5952_v10 = vmax.f32 %v5950_v14, %v5951_v0  ;;  %vm2825_vm13 = vcmp.lt.s32.totalorder %v8468_v5, %v2569_v30  ;;  %v1132_v26 = vpop.f32.mrf.mxu0  ;;  %v11062_v0 = vld [vmem:[%s13154_s3] ss:$0 sm:$0xff]  ;;  %v119_v30 = vld [vmem:[%s13152_s0 + $0x330] sm:$0xff]  ;;  %7298 = vmatmul.msk.f32.gmra.mxu0 %vm279_vm1, %v55_v8 }
 0x1a4   :  { %v5506_v61 = vmax.f32 %v5504_v1, %v5505_v51  ;;  %v5814_v52 = vmax.f32 %v5812_v3, %v5813_v38  ;;  %v5821_v57 = vmax.f32 %v5819_v24, %v5820_v22  ;;  %v7734_v3 = vsel %vm2825_vm13, 1.0, %v13298_v36  ;;  %7362 = vmatmul.msk.f32.gmra.mxu1 %vm279_vm1, %v119_v30 }
 0x1a5   :  { %v11047_v12 = vsel %vm6966_vm14, %v5058_v13, %v10994_v20  ;;  %v2567_v24 = vperm.slane %v11026_v40, 0  ;;  %v11065_v14 = vadd.f32 %v11062_v0, %v1705_v56  ;;  %vm2826_vm15 = vcmp.lt.s32.totalorder %v8468_v5, %v2570_v63  ;;  %v8115_v13 = vpop.permute.xlu0 %8114  ;;  %v1516_v63 = vpop.f32.mrf.mxu2 }
 0x1a6   :  { %v11052_v21 = vsel %vm6966_vm14, %v5506_v61, %v11000_v62  ;;  %v7079_v1 = vsel %vm6960_vm3, %v5821_v57, %v5814_v52  ;;  %v2568_v62 = vperm.slane %v2316_v25, 0  ;;  %v7735_v37 = vsel %vm2826_vm15, 1.0, %v13298_v36  ;;  %v183_v61 = vld [vmem:[%s13152_s0 + $0x530] sm:$0xff] }
 0x1a7   :  { %v7080_v20 = vsel %vm6962_vm6, %v10840_v33, %v7079_v1  ;;  %vm2823_vm0 = vcmp.lt.s32.totalorder %v8468_v5, %v2567_v24  ;;  %v1133_v41 = vadd.f32 %v11062_v0, %v1132_v26  ;;  %v1325_v51 = vadd.f32 %v11062_v0, %v1324_v28  ;;  %v8120_v33 = vpop.permute.xlu1 %8119  ;;  %v247_v26 = vld [vmem:[%s13152_s0 + $0x730] sm:$0xff]  ;;  %7426 = vmatmul.msk.f32.gmra.mxu2 %vm279_vm1, %v183_v61 }
 0x1a8   :  { %v5953_v38 = vrot.slane %v5952_v10, 1  ;;  %v8328_v22 = vpack.i.bf16 %v7735_v37, %v7734_v3  ;;  %vm2824_vm2 = vcmp.lt.s32.totalorder %v8468_v5, %v2568_v62  ;;  %v7732_v46 = vsel %vm2823_vm0, 1.0, %v13298_v36  ;;  %7490 = vmatmul.msk.f32.gmra.mxu3 %vm279_vm1, %v247_v26 }
 0x1a9   :  { %v7733_v57 = vsel %vm2824_vm2, 1.0, %v13298_v36  ;;  %v1858_v56 = vmax.f32 %v1133_v41, 0.0  ;;  %v1922_v25 = vmax.f32 %v1325_v51, 0.0  ;;  %v8122_v3 = vunpack.i.h.bf16 %v8120_v33 }
 0x1aa   :  { %8329 = vperm.xlu1 %7791, %v8328_v22   ;;  %v8323_v1 = vpack.i.bf16 %v7733_v57, %v7732_v46  ;;  %v8121_v24 = vunpack.i.l.bf16 %v8120_v33  ;;  %v13361_v62 = vunpack.i.h.bf16 %v9666_v49  ;;  %v13362_v41 = vunpack.i.h.bf16 %v10487_v58 }
 0x1ab   :  { %v8117_v8 = vunpack.i.h.bf16 %v8115_v13  ;;  %v8116_v30 = vunpack.i.l.bf16 %v8115_v13  ;;  %v11097_v52 = vmax.f32 %v5952_v10, %v5953_v38  ;;  %v13363_v22 = vmax.f32 %v9982_v39, 0.0 }
 0x1ac   :  { %v4676_v37 = vmul.f32 %v13361_v62, %v1858_v56  ;;  %v4740_v51 = vmul.f32 %v13362_v41, %v1922_v25  ;;  %8324 = vperm.xlu0 %7780, %v8323_v1   ;;  %v13364_v33 = vmax.f32 %v10065_v15, 0.0  ;;  %v1517_v61 = vadd.f32 %v11062_v0, %v1516_v63 }
 0x1ad   :  { %v4789_v46 = vmul.f32 %v8121_v24, %v13363_v22  ;;  %v13365_v56 = vmax.f32 %v9837_v32, 0.0  ;;  %v13366_v25 = vmax.f32 %v9906_v47, 0.0 }
 0x1ae   :  { %v4790_v57 = vmul.f32 %v8122_v3, %v13364_v33  ;;  %v5059_v49 = vsel %vm4911_vm7, %v4676_v37, -inf  ;;  %v5507_v58 = vsel %vm4911_vm7, %v4740_v51, -inf  ;;  %v1708_v51 = vpop.f32.mrf.mxu3  ;;  %v1986_v22 = vmax.f32 %v1517_v61, 0.0 }
 0x1af   :  { %v4787_v13 = vmul.f32 %v8116_v30, %v13365_v56  ;;  %v4788_v10 = vmul.f32 %v8117_v8, %v13366_v25  ;;  %v5060_v38 = vrot.slane %v5059_v49, 4  ;;  %v5508_v26 = vrot.slane %v5507_v58, 4 }
 0x1b0   :  { %v5850_v39 = vsel %vm4911_vm7, %v4789_v46, -inf  ;;  %v5857_v1 = vsel %vm4911_vm7, %v4790_v57, -inf  ;;  %v7081_v8 = vsel %vm6964_vm10, %v10836_v45, %v7080_v20  ;;  %v13367_v25 = vunpack.i.h.bf16 %v11014_v23 }
 0x1b1   :  { %v5851_v15 = vrot.slane %v5850_v39, 4  ;;  %v5858_v3 = vrot.slane %v5857_v1, 4  ;;  %v5836_v63 = vsel %vm4911_vm7, %v4787_v13, -inf  ;;  %v5843_v24 = vsel %vm4911_vm7, %v4788_v10, -inf  ;;  %v11119_v13 = vld [vmem:[%s13153_s1 + $0xe0] sm:$0xff] }
 0x1b2   :  { %v5061_v62 = vmax.f32 %v5059_v49, %v5060_v38  ;;  %v5509_v37 = vmax.f32 %v5507_v58, %v5508_v26  ;;  %v5837_v41 = vrot.slane %v5836_v63, 4  ;;  %v5844_v32 = vrot.slane %v5843_v24, 4 }
 0x1b3   :  { %v5852_v30 = vmax.f32 %v5850_v39, %v5851_v15  ;;  %v5859_v47 = vmax.f32 %v5857_v1, %v5858_v3  ;;  %v4804_v10 = vmul.f32 %v13367_v25, %v1986_v22  ;;  %v11124_v38 = vadd.f32 %v11062_v0, %v1708_v51 }
 0x1b4   :  { %v5062_v46 = vrot.slane %v5061_v62, 2  ;;  %v5510_v33 = vrot.slane %v5509_v37, 2  ;;  %v5838_v57 = vmax.f32 %v5836_v63, %v5837_v41  ;;  %v5845_v56 = vmax.f32 %v5843_v24, %v5844_v32 }
 0x1b5   :  { %v5853_v49 = vrot.slane %v5852_v30, 2  ;;  %v5860_v58 = vrot.slane %v5859_v47, 2  ;;  %v5955_v15 = vsel %vm4911_vm7, %v4804_v10, -inf  ;;  %v2324_v3 = vrot.slane %v11119_v13, 2 }
 0x1b6   :  { %v5063_v26 = vmax.f32 %v5061_v62, %v5062_v46  ;;  %v5511_v45 = vmax.f32 %v5509_v37, %v5510_v33  ;;  %v5839_v20 = vrot.slane %v5838_v57, 2  ;;  %v5846_v61 = vrot.slane %v5845_v56, 2 }
 0x1b7   :  { %v5854_v39 = vmax.f32 %v5852_v30, %v5853_v49  ;;  %v5861_v1 = vmax.f32 %v5859_v47, %v5860_v58  ;;  %v5956_v22 = vrot.slane %v5955_v15, 4  ;;  %v2325_v51 = vrot.slane %v11119_v13, 3 }
 0x1b8   :  { %v5064_v63 = vrot.slane %v5063_v26, 1  ;;  %v5512_v24 = vrot.slane %v5511_v45, 1  ;;  %v5840_v41 = vmax.f32 %v5838_v57, %v5839_v20  ;;  %v5847_v32 = vmax.f32 %v5845_v56, %v5846_v61  ;;  %v11137_v20 = vpop.permute.xlu2 %8169 }
 0x1b9   :  { %v5855_v28 = vrot.slane %v5854_v39, 1  ;;  %v5862_v23 = vrot.slane %v5861_v1, 1  ;;  %v5957_v47 = vmax.f32 %v5955_v15, %v5956_v22  ;;  %v2577_v49 = vperm.slane %v2324_v3, 0 }
 0x1ba   :  { %v5065_v25 = vmax.f32 %v5063_v26, %v5064_v63  ;;  %v5513_v62 = vmax.f32 %v5511_v45, %v5512_v24  ;;  %v5841_v37 = vrot.slane %v5840_v41, 1  ;;  %v5848_v46 = vrot.slane %v5847_v32, 1 }
 0x1bb   :  { %v5856_v33 = vmax.f32 %v5854_v39, %v5855_v28  ;;  %v5863_v30 = vmax.f32 %v5861_v1, %v5862_v23  ;;  %v5958_v26 = vrot.slane %v5957_v47, 2  ;;  %v2578_v45 = vperm.slane %v2325_v51, 0 }
 0x1bc   :  { %v11131_v58 = vsel %vm6968_vm8, %v5065_v25, %v11047_v12  ;;  %v11135_v57 = vsel %vm6968_vm8, %v5513_v62, %v11052_v21  ;;  %v5842_v56 = vmax.f32 %v5840_v41, %v5841_v37  ;;  %v5849_v10 = vmax.f32 %v5847_v32, %v5848_v46  ;;  %v1135_v41 = vpop.f32.mrf.mxu0  ;;  %v1327_v32 = vpop.f32.mrf.mxu1  ;;  %v56_v46 = vld [vmem:[%s13152_s0 + $0x138] sm:$0xff] }
 0x1bd   :  { %vm2833_vm5 = vcmp.lt.s32.totalorder %v8468_v5, %v2577_v49  ;;  %v2323_v28 = vrot.slane %v11119_v13, 1  ;;  %v2575_v12 = vperm.slane %v11119_v13, 0  ;;  %v2321_v1 = vrot.slane %v11026_v40, 6  ;;  %7299 = vmatmul.msk.f32.gmra.mxu0 %vm279_vm1, %v56_v46 }
 0x1be   :  { %v7082_v61 = vsel %vm6966_vm14, %v5842_v56, %v7081_v8  ;;  %v7742_v39 = vsel %vm2833_vm5, 1.0, %v13298_v36  ;;  %v5959_v15 = vmax.f32 %v5957_v47, %v5958_v26  ;;  %vm2834_vm11 = vcmp.lt.s32.totalorder %v8468_v5, %v2578_v45  ;;  %v8135_v56 = vpop.permute.xlu1 %8134  ;;  %v120_v26 = vld [vmem:[%s13152_s0 + $0x338] sm:$0xff] }
 0x1bf   :  { %v7083_v21 = vsel %vm6968_vm8, %v5849_v10, %v7082_v61  ;;  %v2576_v3 = vperm.slane %v2323_v28, 0  ;;  %v7743_v24 = vsel %vm2834_vm11, 1.0, %v13298_v36  ;;  %vm2831_vm12 = vcmp.lt.s32.totalorder %v8468_v5, %v2575_v12  ;;  %v8130_v10 = vpop.permute.xlu0 %8129  ;;  %v184_v45 = vld [vmem:[%s13152_s0 + $0x538] sm:$0xff]  ;;  %7363 = vmatmul.msk.f32.gmra.mxu1 %vm279_vm1, %v120_v26 }
 0x1c0   :  { %v7084_v63 = vsel %vm6970_vm9, %v5856_v33, %v7083_v21  ;;  %v2322_v8 = vrot.slane %v11026_v40, 7  ;;  %v8172_v23 = vunpack.i.h.bf16 %v11137_v20  ;;  %v8348_v51 = vpack.i.bf16 %v7743_v24, %v7742_v39  ;;  %v248_v28 = vld [vmem:[%s13152_s0 + $0x738] sm:$0xff]  ;;  %7427 = vmatmul.msk.f32.gmra.mxu2 %vm279_vm1, %v184_v45 }
 0x1c1   :  { %v7085_v22 = vsel %vm6972_vm4, %v5863_v30, %v7084_v63  ;;  %vm2832_vm13 = vcmp.lt.s32.totalorder %v8468_v5, %v2576_v3  ;;  %v7740_v25 = vsel %vm2831_vm12, 1.0, %v13298_v36  ;;  %v2573_v37 = vperm.slane %v2321_v1, 0  ;;  %7491 = vmatmul.msk.f32.gmra.mxu3 %vm279_vm1, %v248_v28 }
 0x1c2   :  { %7239 = vst.msk [vmem:[%s13155_s4 + $0x80] sm:$0xff] %vm4911_vm7, %v7085_v22  ;;  %v7741_v62 = vsel %vm2832_vm13, 1.0, %v13298_v36  ;;  %v2574_v40 = vperm.slane %v2322_v8, 0  ;;  %v5960_v33 = vrot.slane %v5959_v15, 1  ;;  %8349 = vperm.xlu2 %7802, %v8348_v51   ;;  %v1136_v47 = vadd.f32 %v11062_v0, %v1135_v41 }
 0x1c3   :  { %v8343_v30 = vpack.i.bf16 %v7741_v62, %v7740_v25  ;;  %v1328_v49 = vadd.f32 %v11062_v0, %v1327_v32  ;;  %v8171_v61 = vunpack.i.l.bf16 %v11137_v20  ;;  %vm2829_vm15 = vcmp.lt.s32.totalorder %v8468_v5, %v2573_v37  ;;  %v11190_v37 = vpop.permute.xlu2 %8184 }
 0x1c4   :  { %vm2830_vm0 = vcmp.lt.s32.totalorder %v8468_v5, %v2574_v40  ;;  %v7738_v12 = vsel %vm2829_vm15, 1.0, %v13298_v36  ;;  %v1859_v21 = vmax.f32 %v1136_v47, 0.0  ;;  %v8137_v24 = vunpack.i.h.bf16 %v8135_v56 }
 0x1c5   :  { %8344 = vperm.xlu1 %7791, %v8343_v30   ;;  %v7739_v1 = vsel %vm2830_vm0, 1.0, %v13298_v36  ;;  %v1923_v3 = vmax.f32 %v1328_v49, 0.0  ;;  %v8136_v8 = vunpack.i.l.bf16 %v8135_v56  ;;  %v8132_v41 = vunpack.i.h.bf16 %v8130_v10 }
 0x1c6   :  { %v8338_v63 = vpack.i.bf16 %v7739_v1, %v7738_v12  ;;  %v11184_v32 = vmax.f32 %v5959_v15, %v5960_v33  ;;  %v13368_v22 = vunpack.i.l.bf16 %v9414_v18  ;;  %v13369_v25 = vunpack.i.l.bf16 %v10470_v48 }
 0x1c7   :  { %v8131_v40 = vunpack.i.l.bf16 %v8130_v10  ;;  %v13370_v30 = vmax.f32 %v10441_v31, 0.0  ;;  %v13371_v49 = vmax.f32 %v10510_v35, 0.0  ;;  %v13372_v15 = vmax.f32 %v10347_v43, 0.0  ;;  %v1519_v35 = vpop.f32.mrf.mxu2  ;;  %v11209_v43 = vld [vmem:[%s13153_s1 + $0xe8] sm:$0xff] }
 0x1c8   :  { %v4677_v51 = vmul.f32 %v13368_v22, %v1859_v21  ;;  %v4741_v62 = vmul.f32 %v13369_v25, %v1923_v3  ;;  %8339 = vperm.xlu0 %7780, %v8338_v63   ;;  %v13373_v10 = vmax.f32 %v10262_v6, 0.0 }
 0x1c9   :  { %v4795_v47 = vmul.f32 %v8136_v8, %v13370_v30  ;;  %v4796_v56 = vmul.f32 %v8137_v24, %v13371_v49  ;;  %v4794_v33 = vmul.f32 %v8132_v41, %v13372_v15  ;;  %v11214_v30 = vadd.f32 %v11062_v0, %v1519_v35 }
 0x1ca   :  { %v5066_v26 = vsel %vm4911_vm7, %v4677_v51, -inf  ;;  %v5514_v45 = vsel %vm4911_vm7, %v4741_v62, -inf  ;;  %v4793_v12 = vmul.f32 %v8131_v40, %v13373_v10 }
 0x1cb   :  { %v5067_v1 = vrot.slane %v5066_v26, 4  ;;  %v5515_v21 = vrot.slane %v5514_v45, 4  ;;  %v5892_v31 = vsel %vm4911_vm7, %v4795_v47, -inf  ;;  %v5899_v3 = vsel %vm4911_vm7, %v4796_v56, -inf }
 0x1cc   :  { %v5893_v63 = vrot.slane %v5892_v31, 4  ;;  %v5900_v24 = vrot.slane %v5899_v3, 4  ;;  %v5878_v8 = vsel %vm4911_vm7, %v4793_v12, -inf  ;;  %v5885_v41 = vsel %vm4911_vm7, %v4794_v33, -inf }
 0x1cd   :  { %v5068_v6 = vmax.f32 %v5066_v26, %v5067_v1  ;;  %v5516_v22 = vmax.f32 %v5514_v45, %v5515_v21  ;;  %v5879_v51 = vrot.slane %v5878_v8, 4  ;;  %v5886_v25 = vrot.slane %v5885_v41, 4 }
 0x1ce   :  { %v5894_v62 = vmax.f32 %v5892_v31, %v5893_v63  ;;  %v5901_v40 = vmax.f32 %v5899_v3, %v5900_v24  ;;  %v2330_v47 = vrot.slane %v11209_v43, 1  ;;  %v2583_v12 = vperm.slane %v11209_v43, 0 }
 0x1cf   :  { %v5069_v49 = vrot.slane %v5068_v6, 2  ;;  %v5517_v56 = vrot.slane %v5516_v22, 2  ;;  %v5880_v15 = vmax.f32 %v5878_v8, %v5879_v51  ;;  %v5887_v10 = vmax.f32 %v5885_v41, %v5886_v25  ;;  %v1711_v41 = vpop.f32.mrf.mxu3 }
 0x1d0   :  { %v5895_v39 = vrot.slane %v5894_v62, 2  ;;  %v5902_v46 = vrot.slane %v5901_v40, 2  ;;  %v2584_v33 = vperm.slane %v2330_v47, 0  ;;  %vm2839_vm2 = vcmp.lt.s32.totalorder %v8468_v5, %v2583_v12 }
 0x1d1   :  { %v5070_v26 = vmax.f32 %v5068_v6, %v5069_v49  ;;  %v5518_v45 = vmax.f32 %v5516_v22, %v5517_v56  ;;  %v5881_v1 = vrot.slane %v5880_v15, 2  ;;  %v5888_v21 = vrot.slane %v5887_v10, 2 }
 0x1d2   :  { %v5896_v31 = vmax.f32 %v5894_v62, %v5895_v39  ;;  %v5903_v3 = vmax.f32 %v5901_v40, %v5902_v46  ;;  %vm2840_vm5 = vcmp.lt.s32.totalorder %v8468_v5, %v2584_v33  ;;  %v7748_v28 = vsel %vm2839_vm2, 1.0, %v13298_v36 }
 0x1d3   :  { %v5071_v35 = vrot.slane %v5070_v26, 1  ;;  %v5519_v63 = vrot.slane %v5518_v45, 1  ;;  %v5882_v24 = vmax.f32 %v5880_v15, %v5881_v1  ;;  %v5889_v8 = vmax.f32 %v5887_v10, %v5888_v21  ;;  %v1138_v15 = vpop.f32.mrf.mxu0  ;;  %v1330_v10 = vpop.f32.mrf.mxu1 }
 0x1d4   :  { %v5897_v51 = vrot.slane %v5896_v31, 1  ;;  %v5904_v25 = vrot.slane %v5903_v3, 1  ;;  %v7749_v6 = vsel %vm2840_vm5, 1.0, %v13298_v36  ;;  %v11223_v62 = vadd.f32 %v11062_v0, %v1711_v41 }
 0x1d5   :  { %v5072_v22 = vmax.f32 %v5070_v26, %v5071_v35  ;;  %v5520_v47 = vmax.f32 %v5518_v45, %v5519_v63  ;;  %v5883_v49 = vrot.slane %v5882_v24, 1  ;;  %v5890_v39 = vrot.slane %v5889_v8, 1 }
 0x1d6   :  { %v5898_v46 = vmax.f32 %v5896_v31, %v5897_v51  ;;  %v8363_v40 = vpack.i.bf16 %v7749_v6, %v7748_v28  ;;  %v2328_v56 = vrot.slane %v11119_v13, 6  ;;  %v2329_v1 = vrot.slane %v11119_v13, 7 }
 0x1d7   :  { %v11228_v12 = vsel %vm6970_vm9, %v5072_v22, %v11131_v58  ;;  %v11232_v33 = vsel %vm6970_vm9, %v5520_v47, %v11135_v57  ;;  %v5884_v26 = vmax.f32 %v5882_v24, %v5883_v49  ;;  %v5891_v45 = vmax.f32 %v5889_v8, %v5890_v39  ;;  %v8150_v39 = vpop.permute.xlu1 %8149 }
 0x1d8   :  { %8364 = vperm.xlu2 %7802, %v8363_v40   ;;  %v2581_v21 = vperm.slane %v2328_v56, 0  ;;  %v2326_v28 = vrot.slane %v11119_v13, 4  ;;  %v2327_v31 = vrot.slane %v11119_v13, 5  ;;  %v5905_v35 = vmax.f32 %v5903_v3, %v5904_v25  ;;  %v121_v3 = vld [vmem:[%s13152_s0 + $0x340] sm:$0xff] }
 0x1d9   :  { %v7087_v63 = vsel %vm6962_vm6, %v5884_v26, %v10933_v7  ;;  %v1139_v58 = vadd.f32 %v11062_v0, %v1138_v15  ;;  %v1331_v41 = vadd.f32 %v11062_v0, %v1330_v10  ;;  %v2582_v24 = vperm.slane %v2329_v1, 0  ;;  %v57_v7 = vld [vmem:[%s13152_s0 + $0x140] sm:$0xff]  ;;  %7364 = vmatmul.msk.f32.gmra.mxu1 %vm279_vm1, %v121_v3  ;;  %v8145_v10 = vpop.permute.xlu0 %8144 }
 0x1da   :  { %v7088_v57 = vsel %vm6964_vm10, %v5891_v45, %v7087_v63  ;;  %vm2837_vm11 = vcmp.lt.s32.totalorder %v8468_v5, %v2581_v21  ;;  %v2579_v8 = vperm.slane %v2326_v28, 0  ;;  %v2580_v22 = vperm.slane %v2327_v31, 0  ;;  %v185_v25 = vld [vmem:[%s13152_s0 + $0x540] sm:$0xff]  ;;  %7300 = vmatmul.msk.f32.gmra.mxu0 %vm279_vm1, %v57_v7  ;;  %v1522_v28 = vpop.f32.mrf.mxu2 }
 0x1db   :  { %v7089_v51 = vsel %vm6966_vm14, %v5898_v46, %v7088_v57  ;;  %v7746_v6 = vsel %vm2837_vm11, 1.0, %v13298_v36  ;;  %v1860_v13 = vmax.f32 %v1139_v58, 0.0  ;;  %vm2838_vm12 = vcmp.lt.s32.totalorder %v8468_v5, %v2582_v24  ;;  %v249_v46 = vld [vmem:[%s13152_s0 + $0x740] sm:$0xff]  ;;  %7428 = vmatmul.msk.f32.gmra.mxu2 %vm279_vm1, %v185_v25  ;;  %v11282_v57 = vpop.permute.xlu2 %8199 }
 0x1dc   :  { %v7090_v47 = vsel %vm6968_vm8, %v5905_v35, %v7089_v51  ;;  %vm2835_vm13 = vcmp.lt.s32.totalorder %v8468_v5, %v2579_v8  ;;  %v1924_v49 = vmax.f32 %v1331_v41, 0.0  ;;  %v7747_v56 = vsel %vm2838_vm12, 1.0, %v13298_v36  ;;  %7492 = vmatmul.msk.f32.gmra.mxu3 %vm279_vm1, %v249_v46 }
 0x1dd   :  { %v7091_v40 = vsel %vm6970_vm9, %v11005_v27, %v7090_v47  ;;  %vm2836_vm15 = vcmp.lt.s32.totalorder %v8468_v5, %v2580_v22  ;;  %v7744_v15 = vsel %vm2835_vm13, 1.0, %v13298_v36  ;;  %v8358_v45 = vpack.i.bf16 %v7747_v56, %v7746_v6 }
 0x1de   :  { %v7092_v26 = vsel %vm6972_vm4, %v11002_v53, %v7091_v40  ;;  %v7745_v1 = vsel %vm2836_vm15, 1.0, %v13298_v36  ;;  %v13374_v21 = vunpack.i.h.bf16 %v9414_v18  ;;  %v1987_v31 = vmax.f32 %v11214_v30, 0.0 }
 0x1df   :  { %7240 = vst.msk [vmem:[%s13155_s4 + $0x88] sm:$0xff] %vm4911_vm7, %v7092_v26  ;;  %v8353_v35 = vpack.i.bf16 %v7745_v1, %v7744_v15  ;;  %v13375_v63 = vunpack.i.h.bf16 %v10470_v48  ;;  %v8152_v41 = vunpack.i.h.bf16 %v8150_v39  ;;  %8359 = vperm.xlu1 %7791, %v8358_v45   ;;  %v8151_v18 = vunpack.i.l.bf16 %v8150_v39 }
 0x1e0   :  { %v4678_v27 = vmul.f32 %v13374_v21, %v1860_v13  ;;  %v8147_v24 = vunpack.i.h.bf16 %v8145_v10  ;;  %v8146_v8 = vunpack.i.l.bf16 %v8145_v10  ;;  %v13376_v22 = vmax.f32 %v10956_v11, 0.0 }
 0x1e1   :  { %v4742_v58 = vmul.f32 %v13375_v63, %v1924_v49  ;;  %8354 = vperm.xlu0 %7780, %v8353_v35   ;;  %v11288_v7 = vadd.f32 %v11062_v0, %v1522_v28  ;;  %v13377_v3 = vmax.f32 %v10882_v16, 0.0  ;;  %v13378_v47 = vmax.f32 %v10727_v50, 0.0 }
 0x1e2   :  { %v5073_v53 = vsel %vm4911_vm7, %v4678_v27, -inf  ;;  %v4802_v13 = vmul.f32 %v8152_v41, %v13376_v22  ;;  %v13379_v39 = vmax.f32 %v10799_v54, 0.0 }
 0x1e3   :  { %v5074_v51 = vrot.slane %v5073_v53, 4  ;;  %v5521_v6 = vsel %vm4911_vm7, %v4742_v58, -inf  ;;  %v4801_v25 = vmul.f32 %v8151_v18, %v13377_v3  ;;  %v4799_v49 = vmul.f32 %v8146_v8, %v13378_v47 }
 0x1e4   :  { %v5522_v48 = vrot.slane %v5521_v6, 4  ;;  %v4800_v46 = vmul.f32 %v8147_v24, %v13379_v39  ;;  %v5941_v11 = vsel %vm4911_vm7, %v4802_v13, -inf  ;;  %v1988_v63 = vmax.f32 %v11288_v7, 0.0 }
 0x1e5   :  { %v5075_v56 = vmax.f32 %v5073_v53, %v5074_v51  ;;  %v5934_v26 = vsel %vm4911_vm7, %v4801_v25, -inf  ;;  %v5942_v45 = vrot.slane %v5941_v11, 4  ;;  %v5920_v16 = vsel %vm4911_vm7, %v4799_v49, -inf }
 0x1e6   :  { %v5523_v10 = vmax.f32 %v5521_v6, %v5522_v48  ;;  %v5935_v21 = vrot.slane %v5934_v26, 4  ;;  %v5921_v50 = vrot.slane %v5920_v16, 4  ;;  %v5927_v27 = vsel %vm4911_vm7, %v4800_v46, -inf }
 0x1e7   :  { %v5076_v1 = vrot.slane %v5075_v56, 2  ;;  %v5943_v28 = vmax.f32 %v5941_v11, %v5942_v45  ;;  %v5928_v35 = vrot.slane %v5927_v27, 4  ;;  %v2335_v18 = vrot.slane %v11209_v43, 6 }
 0x1e8   :  { %v5524_v54 = vrot.slane %v5523_v10, 2  ;;  %v5936_v41 = vmax.f32 %v5934_v26, %v5935_v21  ;;  %v5922_v53 = vmax.f32 %v5920_v16, %v5921_v50  ;;  %v2336_v6 = vrot.slane %v11209_v43, 7  ;;  %v1714_v50 = vpop.f32.mrf.mxu3 }
 0x1e9   :  { %v5077_v58 = vmax.f32 %v5075_v56, %v5076_v1  ;;  %v5944_v8 = vrot.slane %v5943_v28, 2  ;;  %v5929_v51 = vmax.f32 %v5927_v27, %v5928_v35  ;;  %v2589_v3 = vperm.slane %v2335_v18, 0  ;;  %v122_v18 = vld [vmem:[%s13152_s0 + $0x348] sm:$0xff] }
 0x1ea   :  { %v5525_v24 = vmax.f32 %v5523_v10, %v5524_v54  ;;  %v5937_v13 = vrot.slane %v5936_v41, 2  ;;  %v5923_v48 = vrot.slane %v5922_v53, 2  ;;  %v2590_v39 = vperm.slane %v2336_v6, 0  ;;  %7365 = vmatmul.msk.f32.gmra.mxu1 %vm279_vm1, %v122_v18 }
 0x1eb   :  { %v5078_v22 = vrot.slane %v5077_v58, 1  ;;  %v5945_v47 = vmax.f32 %v5943_v28, %v5944_v8  ;;  %v5930_v49 = vrot.slane %v5929_v51, 2  ;;  %vm2845_vm0 = vcmp.lt.s32.totalorder %v8468_v5, %v2589_v3 }
 0x1ec   :  { %v5526_v25 = vrot.slane %v5525_v24, 1  ;;  %v5938_v11 = vmax.f32 %v5936_v41, %v5937_v13  ;;  %v5924_v56 = vmax.f32 %v5922_v53, %v5923_v48  ;;  %vm2846_vm2 = vcmp.lt.s32.totalorder %v8468_v5, %v2590_v39  ;;  %v1141_v41 = vpop.f32.mrf.mxu0  ;;  %v58_v53 = vld [vmem:[%s13152_s0 + $0x148] sm:$0xff] }
 0x1ed   :  { %v5079_v46 = vmax.f32 %v5077_v58, %v5078_v22  ;;  %v5946_v45 = vrot.slane %v5945_v47, 1  ;;  %v5931_v10 = vmax.f32 %v5929_v51, %v5930_v49  ;;  %v7754_v27 = vsel %vm2845_vm0, 1.0, %v13298_v36  ;;  %7301 = vmatmul.msk.f32.gmra.mxu0 %vm279_vm1, %v58_v53  ;;  %v250_v22 = vld [vmem:[%s13152_s0 + $0x748] sm:$0xff] }
 0x1ee   :  { %v5527_v26 = vmax.f32 %v5525_v24, %v5526_v25  ;;  %v5939_v1 = vrot.slane %v5938_v11, 1  ;;  %v5925_v21 = vrot.slane %v5924_v56, 1  ;;  %v7755_v58 = vsel %vm2846_vm2, 1.0, %v13298_v36  ;;  %v186_v24 = vld [vmem:[%s13152_s0 + $0x548] sm:$0xff]  ;;  %7493 = vmatmul.msk.f32.gmra.mxu3 %vm279_vm1, %v250_v22 }
 0x1ef   :  { %v6987_v16 = vsel %vm6972_vm4, %v5079_v46, %v11228_v12  ;;  %v5932_v35 = vrot.slane %v5931_v10, 1  ;;  %v1333_v12 = vpop.f32.mrf.mxu1  ;;  %v8378_v51 = vpack.i.bf16 %v7755_v58, %v7754_v27  ;;  %v2333_v6 = vrot.slane %v11209_v43, 4  ;;  %7429 = vmatmul.msk.f32.gmra.mxu2 %vm279_vm1, %v186_v24 }
 0x1f0   :  { %7225 = vst.msk [vmem:[%s13155_s4 + $0x10] sm:$0xff] %vm4911_vm7, %v6987_v16  ;;  %v7043_v54 = vsel %vm6972_vm4, %v5527_v26, %v11232_v33  ;;  %v5940_v33 = vmax.f32 %v5938_v11, %v5939_v1  ;;  %v5926_v8 = vmax.f32 %v5924_v56, %v5925_v21  ;;  %v2334_v48 = vrot.slane %v11209_v43, 5 }
 0x1f1   :  { %7233 = vst.msk [vmem:[%s13155_s4 + $0x50] sm:$0xff] %vm4911_vm7, %v7043_v54  ;;  %v5933_v13 = vmax.f32 %v5931_v10, %v5932_v35  ;;  %v2331_v3 = vrot.slane %v11209_v43, 2  ;;  %v2332_v25 = vrot.slane %v11209_v43, 3  ;;  %v11342_v49 = vadd.f32 %v11062_v0, %v1714_v50  ;;  %8379 = vperm.xlu2 %7802, %v8378_v51   ;;  %v11353_v54 = vpop.permute.xlu2 %8214  ;;  %v1525_v51 = vpop.f32.mrf.mxu2 }
 0x1f2   :  { %v2587_v39 = vperm.slane %v2333_v6, 0  ;;  %v1142_v46 = vadd.f32 %v11062_v0, %v1141_v41  ;;  %v1334_v11 = vadd.f32 %v11062_v0, %v1333_v12  ;;  %v2588_v26 = vperm.slane %v2334_v48, 0  ;;  %v8160_v41 = vpop.permute.xlu0 %8159 }
 0x1f3   :  { %v7093_v56 = vsel %vm6960_vm3, %v5933_v13, %v5926_v8  ;;  %v2585_v10 = vperm.slane %v2331_v3, 0  ;;  %v2586_v43 = vperm.slane %v2332_v25, 0  ;;  %v5947_v16 = vmax.f32 %v5945_v47, %v5946_v45  ;;  %v11364_v8 = vpop.permute.xlu1 %8164 }
 0x1f4   :  { %vm2843_vm5 = vcmp.lt.s32.totalorder %v8468_v5, %v2587_v39  ;;  %v1861_v1 = vmax.f32 %v1142_v46, 0.0  ;;  %v1925_v21 = vmax.f32 %v1334_v11, 0.0  ;;  %v7094_v50 = vsel %vm6962_vm6, %v5940_v33, %v7093_v56  ;;  %v11373_v11 = vld [vmem:[%s13153_s1 + $0xf0] sm:$0xff] }
 0x1f5   :  { %vm2844_vm11 = vcmp.lt.s32.totalorder %v8468_v5, %v2588_v26  ;;  %v7752_v27 = vsel %vm2843_vm5, 1.0, %v13298_v36  ;;  %vm2841_vm12 = vcmp.lt.s32.totalorder %v8468_v5, %v2585_v10  ;;  %vm2842_vm13 = vcmp.lt.s32.totalorder %v8468_v5, %v2586_v43 }
 0x1f6   :  { %v7753_v35 = vsel %vm2844_vm11, 1.0, %v13298_v36  ;;  %v7750_v47 = vsel %vm2841_vm12, 1.0, %v13298_v36  ;;  %v13380_v45 = vunpack.i.l.bf16 %v9740_v34  ;;  %v7751_v18 = vsel %vm2842_vm13, 1.0, %v13298_v36 }
 0x1f7   :  { %v8373_v53 = vpack.i.bf16 %v7753_v35, %v7752_v27  ;;  %v13381_v24 = vunpack.i.l.bf16 %v10246_v29  ;;  %v7095_v6 = vsel %vm6964_vm10, %v5947_v16, %v7094_v50  ;;  %v8368_v22 = vpack.i.bf16 %v7751_v18, %v7750_v47 }
 0x1f8   :  { %v4679_v58 = vmul.f32 %v13380_v45, %v1861_v1  ;;  %v8162_v39 = vunpack.i.h.bf16 %v8160_v41  ;;  %v8161_v46 = vunpack.i.l.bf16 %v8160_v41  ;;  %v8167_v10 = vunpack.i.h.bf16 %v11364_v8  ;;  %v1717_v45 = vpop.f32.mrf.mxu3 }
 0x1f9   :  { %v4743_v33 = vmul.f32 %v13381_v24, %v1925_v21  ;;  %8374 = vperm.xlu1 %7791, %v8373_v53   ;;  %8369 = vperm.xlu0 %7780, %v8368_v22   ;;  %v1526_v43 = vadd.f32 %v11062_v0, %v1525_v51  ;;  %v8166_v1 = vunpack.i.l.bf16 %v11364_v8  ;;  %v7096_v35 = vsel %vm6966_vm14, %v11097_v52, %v7095_v6 }
 0x1fa   :  { %v5080_v13 = vsel %vm4911_vm7, %v4679_v58, -inf  ;;  %v4805_v21 = vmul.f32 %v8161_v46, %v1987_v31  ;;  %v4806_v50 = vmul.f32 %v8162_v39, %v1988_v63  ;;  %v2340_v58 = vrot.slane %v11373_v11, 4  ;;  %v59_v39 = vld [vmem:[%s13152_s0 + $0x150] sm:$0xff] }
 0x1fb   :  { %v5081_v3 = vrot.slane %v5080_v13, 4  ;;  %v5528_v25 = vsel %vm4911_vm7, %v4743_v33, -inf  ;;  %v1989_v47 = vmax.f32 %v1526_v43, 0.0  ;;  %v2341_v24 = vrot.slane %v11373_v11, 5  ;;  %v123_v46 = vld [vmem:[%s13152_s0 + $0x350] sm:$0xff]  ;;  %7302 = vmatmul.msk.f32.gmra.mxu0 %vm279_vm1, %v59_v39 }
 0x1fc   :  { %v5529_v56 = vrot.slane %v5528_v25, 4  ;;  %v5962_v53 = vsel %vm4911_vm7, %v4805_v21, -inf  ;;  %v5969_v18 = vsel %vm4911_vm7, %v4806_v50, -inf  ;;  %v11392_v51 = vadd.f32 %v11062_v0, %v1717_v45  ;;  %7366 = vmatmul.msk.f32.gmra.mxu1 %vm279_vm1, %v123_v46 }
 0x1fd   :  { %v5082_v16 = vmax.f32 %v5080_v13, %v5081_v3  ;;  %v5963_v31 = vrot.slane %v5962_v53, 4  ;;  %v5970_v33 = vrot.slane %v5969_v18, 4  ;;  %v4807_v7 = vmul.f32 %v8166_v1, %v1989_v47  ;;  %v251_v1 = vld [vmem:[%s13152_s0 + $0x750] sm:$0xff] }
 0x1fe   :  { %v5530_v27 = vmax.f32 %v5528_v25, %v5529_v56  ;;  %v2595_v52 = vperm.slane %v2340_v58, 0  ;;  %v2596_v6 = vperm.slane %v2341_v24, 0  ;;  %v187_v56 = vld [vmem:[%s13152_s0 + $0x550] sm:$0xff]  ;;  %7494 = vmatmul.msk.f32.gmra.mxu3 %vm279_vm1, %v251_v1 }
 0x1ff   :  { %v5083_v41 = vrot.slane %v5082_v16, 2  ;;  %v5964_v13 = vmax.f32 %v5962_v53, %v5963_v31  ;;  %v5971_v3 = vmax.f32 %v5969_v18, %v5970_v33  ;;  %v5976_v25 = vsel %vm4911_vm7, %v4807_v7, -inf  ;;  %7430 = vmatmul.msk.f32.gmra.mxu2 %vm279_vm1, %v187_v56  ;;  %v1144_v18 = vpop.f32.mrf.mxu0 }
 0x200   :  { %v5531_v30 = vrot.slane %v5530_v27, 2  ;;  %v5977_v43 = vrot.slane %v5976_v25, 4  ;;  %vm2851_vm15 = vcmp.lt.s32.totalorder %v8468_v5, %v2595_v52  ;;  %vm2852_vm0 = vcmp.lt.s32.totalorder %v8468_v5, %v2596_v6 }
 0x201   :  { %v11389_v63 = vmax.f32 %v5082_v16, %v5083_v41  ;;  %v2338_v16 = vrot.slane %v11373_v11, 2  ;;  %v5965_v21 = vrot.slane %v5964_v13, 2  ;;  %v5972_v50 = vrot.slane %v5971_v3, 2 }
 0x202   :  { %v11394_v22 = vmax.f32 %v5530_v27, %v5531_v30  ;;  %v7097_v27 = vsel %vm6968_vm8, %v11184_v32, %v7096_v35  ;;  %v7760_v47 = vsel %vm2851_vm15, 1.0, %v13298_v36  ;;  %v5978_v58 = vmax.f32 %v5976_v25, %v5977_v43 }
 0x203   :  { %v5085_v45 = vrot.slane %v11389_v63, 1  ;;  %v7761_v41 = vsel %vm2852_vm0, 1.0, %v13298_v36  ;;  %v2339_v53 = vrot.slane %v11373_v11, 3  ;;  %v5966_v30 = vmax.f32 %v5964_v13, %v5965_v21  ;;  %v1336_v21 = vpop.f32.mrf.mxu1 }
 0x204   :  { %v5533_v24 = vrot.slane %v11394_v22, 1  ;;  %v5973_v31 = vmax.f32 %v5971_v3, %v5972_v50  ;;  %v8393_v33 = vpack.i.bf16 %v7761_v41, %v7760_v47  ;;  %v5979_v32 = vrot.slane %v5978_v58, 2 }
 0x205   :  { %v2593_v35 = vperm.slane %v2338_v16, 0  ;;  %v2594_v7 = vperm.slane %v2339_v53, 0  ;;  %v2337_v52 = vrot.slane %v11373_v11, 1  ;;  %v5967_v6 = vrot.slane %v5966_v30, 1 }
 0x206   :  { %v5974_v39 = vrot.slane %v5973_v31, 1  ;;  %8394 = vperm.xlu2 %7802, %v8393_v33   ;;  %v2591_v25 = vperm.slane %v11373_v11, 0  ;;  %v1145_v46 = vadd.f32 %v11062_v0, %v1144_v18  ;;  %v5980_v56 = vmax.f32 %v5978_v58, %v5979_v32 }
 0x207   :  { %vm2849_vm2 = vcmp.lt.s32.totalorder %v8468_v5, %v2593_v35  ;;  %vm2850_vm5 = vcmp.lt.s32.totalorder %v8468_v5, %v2594_v7  ;;  %v2592_v13 = vperm.slane %v2337_v52, 0  ;;  %v5968_v3 = vmax.f32 %v5966_v30, %v5967_v6  ;;  %v11435_v30 = vpop.permute.xlu2 %8229  ;;  %v1528_v52 = vpop.f32.mrf.mxu2 }
 0x208   :  { %v5975_v43 = vmax.f32 %v5973_v31, %v5974_v39  ;;  %v7758_v16 = vsel %vm2849_vm2, 1.0, %v13298_v36  ;;  %v7759_v1 = vsel %vm2850_vm5, 1.0, %v13298_v36  ;;  %v5981_v50 = vrot.slane %v5980_v56, 1  ;;  %13382 = vst [vmem:[#allocation51_spill] sm:$0xff] %v11435_v30  ;;  %v11437_v31 = vpop.permute.xlu1 %8179  ;;  %v1147_v8 = vpop.f32.mrf.mxu0 }
 0x209   :  { %v8388_v47 = vpack.i.bf16 %v7759_v1, %v7758_v16  ;;  %vm2847_vm11 = vcmp.lt.s32.totalorder %v8468_v5, %v2591_v25  ;;  %vm2848_vm12 = vcmp.lt.s32.totalorder %v8468_v5, %v2592_v13  ;;  %v7098_v58 = vsel %vm6970_vm9, %v5968_v3, %v7097_v27  ;;  %v11445_v27 = vld [vmem:[%s13153_s1 + $0xf8] sm:$0xff] }
 0x20a   :  { %v7756_v41 = vsel %vm2847_vm11, 1.0, %v13298_v36  ;;  %v7757_v53 = vsel %vm2848_vm12, 1.0, %v13298_v36  ;;  %v1862_v18 = vmax.f32 %v1145_v46, 0.0  ;;  %v7099_v33 = vsel %vm6972_vm4, %v5975_v43, %v7098_v58 }
 0x20b   :  { %8389 = vperm.xlu1 %7791, %v8388_v47   ;;  %v8383_v35 = vpack.i.bf16 %v7757_v53, %v7756_v41  ;;  %v1337_v7 = vadd.f32 %v11062_v0, %v1336_v21  ;;  %v11448_v6 = vmax.f32 %v11389_v63, %v5085_v45  ;;  %v11451_v39 = vmax.f32 %v11394_v22, %v5533_v24  ;;  %v1720_v22 = vpop.f32.mrf.mxu3  ;;  %v124_v21 = vld [vmem:[%s13152_s0 + $0x358] sm:$0xff] }
 0x20c   :  { %7241 = vst.msk [vmem:[%s13155_s4 + $0x90] sm:$0xff] %vm4911_vm7, %v7099_v33  ;;  %v11457_v25 = vmax.f32 %v5980_v56, %v5981_v50  ;;  %v13383_v46 = vunpack.i.h.bf16 %v9740_v34  ;;  %v1529_v1 = vadd.f32 %v11062_v0, %v1528_v52  ;;  %v2347_v56 = vrot.slane %v11445_v27, 4  ;;  %v60_v34 = vld [vmem:[%s13152_s0 + $0x158] sm:$0xff]  ;;  %7367 = vmatmul.msk.f32.gmra.mxu1 %vm279_vm1, %v124_v21 }
 0x20d   :  { %8384 = vperm.xlu0 %7780, %v8383_v35   ;;  %v1926_v3 = vmax.f32 %v1337_v7, 0.0  ;;  %v188_v50 = vld [vmem:[%s13152_s0 + $0x558] sm:$0xff]  ;;  %v13384_v58 = vunpack.i.h.bf16 %v10246_v29  ;;  %v2348_v53 = vrot.slane %v11445_v27, 5  ;;  %7303 = vmatmul.msk.f32.gmra.mxu0 %vm279_vm1, %v60_v34  ;;  %v11487_v7 = vadd.f32 %v11062_v0, %v1720_v22 }
 0x20e   :  { %v4680_v13 = vmul.f32 %v13383_v46, %v1862_v18  ;;  %v2345_v18 = vrot.slane %v11445_v27, 2  ;;  %v252_v33 = vld [vmem:[%s13152_s0 + $0x758] sm:$0xff]  ;;  %v1990_v35 = vmax.f32 %v1529_v1, 0.0  ;;  %v2603_v52 = vperm.slane %v2347_v56, 0  ;;  %7431 = vmatmul.msk.f32.gmra.mxu2 %vm279_vm1, %v188_v50  ;;  %v11496_v1 = vpop.permute.xlu0 %8174 }
 0x20f   :  { %v4744_v41 = vmul.f32 %v13384_v58, %v1926_v3  ;;  %v2346_v29 = vrot.slane %v11445_v27, 3  ;;  %7495 = vmatmul.msk.f32.gmra.mxu3 %vm279_vm1, %v252_v33  ;;  %v2604_v3 = vperm.slane %v2348_v53, 0  ;;  %v1339_v33 = vpop.f32.mrf.mxu1  ;;  %v1531_v26 = vpop.f32.mrf.mxu2 }
 0x210   :  { %v5087_v24 = vsel %vm4911_vm7, %v4680_v13, -inf  ;;  %v2601_v34 = vperm.slane %v2345_v18, 0  ;;  %v4808_v58 = vmul.f32 %v8167_v10, %v1990_v35  ;;  %vm2859_vm13 = vcmp.lt.s32.totalorder %v8468_v5, %v2603_v52 }
 0x211   :  { %v5088_v47 = vrot.slane %v5087_v24, 4  ;;  %v5535_v13 = vsel %vm4911_vm7, %v4744_v41, -inf  ;;  %v2602_v0 = vperm.slane %v2346_v29, 0  ;;  %vm2860_vm15 = vcmp.lt.s32.totalorder %v8468_v5, %v2604_v3 }
 0x212   :  { %v5536_v21 = vrot.slane %v5535_v13, 4  ;;  %v7768_v56 = vsel %vm2859_vm13, 1.0, %v13298_v36  ;;  %vm2857_vm0 = vcmp.lt.s32.totalorder %v8468_v5, %v2601_v34  ;;  %v5983_v50 = vsel %vm4911_vm7, %v4808_v58, -inf }
 0x213   :  { %v5089_v46 = vmax.f32 %v5087_v24, %v5088_v47  ;;  %v7769_v47 = vsel %vm2860_vm15, 1.0, %v13298_v36  ;;  %vm2858_vm2 = vcmp.lt.s32.totalorder %v8468_v5, %v2602_v0  ;;  %v5984_v41 = vrot.slane %v5983_v50, 4 }
 0x214   :  { %v5537_v24 = vmax.f32 %v5535_v13, %v5536_v21  ;;  %v8408_v53 = vpack.i.bf16 %v7769_v47, %v7768_v56  ;;  %v7766_v18 = vsel %vm2857_vm0, 1.0, %v13298_v36  ;;  %v7767_v52 = vsel %vm2858_vm2, 1.0, %v13298_v36  ;;  %v11516_v47 = vpop.permute.xlu2 %8244 }
 0x215   :  { %v5090_v22 = vrot.slane %v5089_v46, 2  ;;  %v2344_v29 = vrot.slane %v11445_v27, 1  ;;  %v2599_v13 = vperm.slane %v11445_v27, 0  ;;  %v5985_v34 = vmax.f32 %v5983_v50, %v5984_v41  ;;  %13385 = vst [vmem:[#allocation52_spill] sm:$0xff] %v11516_v47 }
 0x216   :  { %v5538_v35 = vrot.slane %v5537_v24, 2  ;;  %8409 = vperm.xlu2 %7802, %v8408_v53   ;;  %v8403_v21 = vpack.i.bf16 %v7767_v52, %v7766_v18  ;;  %v8177_v18 = vunpack.i.h.bf16 %v11496_v1 }
 0x217   :  { %v5091_v10 = vmax.f32 %v5089_v46, %v5090_v22  ;;  %v11511_v46 = vld [vmem:[%s13154_s3] ss:$0 sm:$0xff]  ;;  %v2600_v22 = vperm.slane %v2344_v29, 0  ;;  %vm2855_vm5 = vcmp.lt.s32.totalorder %v8468_v5, %v2599_v13  ;;  %v5986_v63 = vrot.slane %v5985_v34, 2 }
 0x218   :  { %v1148_v58 = vadd.f32 %v11511_v46, %v1147_v8  ;;  %v5539_v0 = vmax.f32 %v5537_v24, %v5538_v35  ;;  %v1340_v56 = vadd.f32 %v11511_v46, %v1339_v33  ;;  %8404 = vperm.xlu1 %7791, %v8403_v21   ;;  %v7764_v50 = vsel %vm2855_vm5, 1.0, %v13298_v36  ;;  %v61_v24 = vld [vmem:[%s13152_s0 + $0x160] sm:$0xff]  ;;  %v11534_v21 = vpop.permute.xlu1 %8194 }
 0x219   :  { %v5092_v3 = vrot.slane %v5091_v10, 1  ;;  %vm2856_vm11 = vcmp.lt.s32.totalorder %v8468_v5, %v2600_v22  ;;  %v125_v33 = vld [vmem:[%s13152_s0 + $0x360] sm:$0xff]  ;;  %v8176_v35 = vunpack.i.l.bf16 %v11496_v1  ;;  %v5987_v52 = vmax.f32 %v5985_v34, %v5986_v63  ;;  %7304 = vmatmul.msk.f32.gmra.mxu0 %vm279_vm1, %v61_v24 }
 0x21a   :  { %v1863_v41 = vmax.f32 %v1148_v58, 0.0  ;;  %v5540_v53 = vrot.slane %v5539_v0, 1  ;;  %v1927_v8 = vmax.f32 %v1340_v56, 0.0  ;;  %v7765_v29 = vsel %vm2856_vm11, 1.0, %v13298_v36  ;;  %7368 = vmatmul.msk.f32.gmra.mxu1 %vm279_vm1, %v125_v33  ;;  %v253_v58 = vld [vmem:[%s13152_s0 + $0x760] sm:$0xff]  ;;  %v1342_v56 = vpop.f32.mrf.mxu1 }
 0x21b   :  { %v5093_v43 = vmax.f32 %v5091_v10, %v5092_v3  ;;  %v189_v10 = vld [vmem:[%s13152_s0 + $0x560] sm:$0xff]  ;;  %v13386_v13 = vunpack.i.l.bf16 %v9735_v17  ;;  %v8398_v48 = vpack.i.bf16 %v7765_v29, %v7764_v50  ;;  %v13387_v63 = vunpack.i.l.bf16 %v10574_v59  ;;  %7496 = vmatmul.msk.f32.gmra.mxu3 %vm279_vm1, %v253_v58  ;;  %v1723_v58 = vpop.f32.mrf.mxu3 }
 0x21c   :  { %v5541_v22 = vmax.f32 %v5539_v0, %v5540_v53  ;;  %7432 = vmatmul.msk.f32.gmra.mxu2 %vm279_vm1, %v189_v10  ;;  %v5988_v24 = vrot.slane %v5987_v52, 1  ;;  %v11552_v53 = vpop.permute.xlu0 %8189  ;;  %v2343_v0 = vrot.slane %v11373_v11, 7  ;;  %v2342_v10 = vrot.slane %v11373_v11, 6 }
 0x21d   :  { %v4681_v3 = vmul.f32 %v13386_v13, %v1863_v41  ;;  %v4745_v34 = vmul.f32 %v13387_v63, %v1927_v8  ;;  %v11548_v41 = vsel %vm6960_vm3, %v5093_v43, %v11448_v6  ;;  %8399 = vperm.xlu0 %7780, %v8398_v48   ;;  %v11568_v32 = vadd.f32 %v11511_v46, %v1723_v58 }
 0x21e   :  { %v11559_v13 = vsel %vm6960_vm3, %v5541_v22, %v11451_v39  ;;  %v5989_v29 = vmax.f32 %v5987_v52, %v5988_v24  ;;  %v1150_v39 = vpop.f32.mrf.mxu0  ;;  %v2598_v43 = vperm.slane %v2343_v0, 0  ;;  %v2349_v52 = vrot.slane %v11445_v27, 6 }
 0x21f   :  { %v5094_v33 = vsel %vm4911_vm7, %v4681_v3, -inf  ;;  %v5542_v8 = vsel %vm4911_vm7, %v4745_v34, -inf  ;;  %v1532_v3 = vadd.f32 %v11511_v46, %v1531_v26  ;;  %v2350_v34 = vrot.slane %v11445_v27, 7  ;;  %v62_v27 = vld [vmem:[%s13152_s0 + $0x168] sm:$0xff] }
 0x220   :  { %v5095_v50 = vrot.slane %v5094_v33, 4  ;;  %v5543_v6 = vrot.slane %v5542_v8, 4  ;;  %v2597_v24 = vperm.slane %v2342_v10, 0  ;;  %vm2854_vm12 = vcmp.lt.s32.totalorder %v8468_v5, %v2598_v43  ;;  %v126_v10 = vld [vmem:[%s13152_s0 + $0x368] sm:$0xff] }
 0x221   :  { %v1991_v28 = vmax.f32 %v1532_v3, 0.0  ;;  %v2606_v26 = vperm.slane %v2350_v34, 0  ;;  %v1151_v11 = vadd.f32 %v11511_v46, %v1150_v39  ;;  %v7763_v3 = vsel %vm2854_vm12, 1.0, %v13298_v36  ;;  %7305 = vmatmul.msk.f32.gmra.mxu0 %vm279_vm1, %v62_v27  ;;  %v254_v39 = vld [vmem:[%s13152_s0 + $0x768] sm:$0xff] }
 0x222   :  { %v5096_v63 = vmax.f32 %v5094_v33, %v5095_v50  ;;  %v5544_v15 = vmax.f32 %v5542_v8, %v5543_v6  ;;  %v11570_v33 = vpop.permute.xlu2 %8259  ;;  %vm2853_vm15 = vcmp.lt.s32.totalorder %v8468_v5, %v2597_v24  ;;  %7369 = vmatmul.msk.f32.gmra.mxu1 %vm279_vm1, %v126_v10  ;;  %v13389_v24 = vunpack.i.h.bf16 %v9735_v17 }
 0x223   :  { %13388 = vst [vmem:[#allocation53_spill] sm:$0xff] %v11570_v33  ;;  %v4809_v48 = vmul.f32 %v8171_v61, %v1991_v28  ;;  %vm2862_vm13 = vcmp.lt.s32.totalorder %v8468_v5, %v2606_v26  ;;  %v2605_v28 = vperm.slane %v2349_v52, 0  ;;  %7497 = vmatmul.msk.f32.gmra.mxu3 %vm279_vm1, %v254_v39 }
 0x224   :  { %v5097_v22 = vrot.slane %v5096_v63, 2  ;;  %v5545_v50 = vrot.slane %v5544_v15, 2  ;;  %v7771_v58 = vsel %vm2862_vm13, 1.0, %v13298_v36  ;;  %v11627_v39 = vpop.permute.xlu0 %8204 }
 0x225   :  { %v5990_v0 = vsel %vm4911_vm7, %v4809_v48, -inf  ;;  %v8418_v61 = vpack.i.bf16 %v7771_v58, %v7763_v3  ;;  %v1343_v48 = vadd.f32 %v11511_v46, %v1342_v56  ;;  %vm2861_vm0 = vcmp.lt.s32.totalorder %v8468_v5, %v2605_v28  ;;  %v11609_v58 = vpop.permute.xlu1 %8209 }
 0x226   :  { %v5098_v8 = vmax.f32 %v5096_v63, %v5097_v22  ;;  %v5546_v6 = vmax.f32 %v5544_v15, %v5545_v50  ;;  %v5991_v45 = vrot.slane %v5990_v0, 4  ;;  %v190_v15 = vld [vmem:[%s13152_s0 + $0x568] sm:$0xff]  ;;  %v1864_v63 = vmax.f32 %v1151_v11, 0.0  ;;  %v1153_v28 = vpop.f32.mrf.mxu0 }
 0x227   :  { %8419 = vperm.xlu1 %7791, %v8418_v61   ;;  %v7762_v50 = vsel %vm2853_vm15, 1.0, %v13298_v36  ;;  %7433 = vmatmul.msk.f32.gmra.mxu2 %vm279_vm1, %v190_v15  ;;  %v7770_v56 = vsel %vm2861_vm0, 1.0, %v13298_v36  ;;  %v1928_v3 = vmax.f32 %v1343_v48, 0.0  ;;  %v11613_v36 = vsel %vm6960_vm3, %v5989_v29, %v11457_v25 }
 0x228   :  { %v5099_v34 = vrot.slane %v5098_v8, 1  ;;  %v5547_v43 = vrot.slane %v5546_v6, 1  ;;  %v5992_v26 = vmax.f32 %v5990_v0, %v5991_v45  ;;  %v4682_v11 = vmul.f32 %v13389_v24, %v1864_v63  ;;  %v1345_v63 = vpop.f32.mrf.mxu1  ;;  %v13394_v45 = vld [vmem:[#allocation12_spill] sm:$0xff] }
 0x229   :  { %v8413_v0 = vpack.i.bf16 %v7770_v56, %v7762_v50  ;;  %v13395_v20 = vmax.f32 %v13394_v45, 0.0 }
 0x22a   :  { %v5100_v22 = vmax.f32 %v5098_v8, %v5099_v34  ;;  %v5548_v52 = vmax.f32 %v5546_v6, %v5547_v43  ;;  %v5993_v5 = vrot.slane %v5992_v26, 2  ;;  %v1534_v34 = vpop.f32.mrf.mxu2  ;;  %v5101_v6 = vsel %vm4911_vm7, %v4682_v11, -inf  ;;  %v8275_v25 = vpop.permute.xlu2 %8274 }
 0x22b   :  { %8414 = vperm.xlu0 %7780, %v8413_v0   ;;  %v5102_v15 = vrot.slane %v5101_v6, 4  ;;  %v1154_v11 = vadd.f32 %v11511_v46, %v1153_v28  ;;  %v13391_v28 = vmax.f32 %v9917_v2, 0.0  ;;  %v63_v2 = vld [vmem:[%s13152_s0 + $0x170] sm:$0xff] }
 0x22c   :  { %v11606_v8 = vsel %vm6962_vm6, %v5100_v22, %v11548_v41  ;;  %v11617_v17 = vsel %vm6962_vm6, %v5548_v52, %v11559_v13  ;;  %v13390_v41 = vunpack.i.h.bf16 %v10574_v59  ;;  %v5994_v27 = vmax.f32 %v5992_v26, %v5993_v5  ;;  %v1726_v22 = vpop.f32.mrf.mxu3  ;;  %7306 = vmatmul.msk.f32.gmra.mxu0 %vm279_vm1, %v63_v2 }
 0x22d   :  { %v1535_v59 = vadd.f32 %v11511_v46, %v1534_v34  ;;  %v5103_v50 = vmax.f32 %v5101_v6, %v5102_v15  ;;  %v8277_v5 = vunpack.i.h.bf16 %v8275_v25  ;;  %v11635_v43 = vadd.f32 %v11511_v46, %v1726_v22 }
 0x22e   :  { %v4746_v61 = vmul.f32 %v13390_v41, %v1928_v3  ;;  %v5995_v26 = vrot.slane %v5994_v27, 1  ;;  %v1346_v3 = vadd.f32 %v11511_v46, %v1345_v63  ;;  %v1865_v6 = vmax.f32 %v1154_v11, 0.0 }
 0x22f   :  { %v1992_v24 = vmax.f32 %v1535_v59, 0.0  ;;  %v5104_v0 = vrot.slane %v5103_v50, 2  ;;  %v8276_v13 = vunpack.i.l.bf16 %v8275_v25  ;;  %v4852_v63 = vmul.f32 %v8277_v5, %v13391_v28  ;;  %v255_v5 = vld [vmem:[%s13152_s0 + $0x770] sm:$0xff] }
 0x230   :  { %v5549_v29 = vsel %vm4911_vm7, %v4746_v61, -inf  ;;  %v1929_v15 = vmax.f32 %v1346_v3, 0.0  ;;  %v5996_v48 = vmax.f32 %v5994_v27, %v5995_v26  ;;  %v13393_v22 = vunpack.i.l.bf16 %v10547_v55  ;;  %v127_v26 = vld [vmem:[%s13152_s0 + $0x370] sm:$0xff]  ;;  %7498 = vmatmul.msk.f32.gmra.mxu3 %vm279_vm1, %v255_v5 }
 0x231   :  { %v5550_v52 = vrot.slane %v5549_v29, 4  ;;  %v4810_v34 = vmul.f32 %v8172_v23, %v1992_v24  ;;  %v5105_v59 = vmax.f32 %v5103_v50, %v5104_v0  ;;  %v4851_v23 = vmul.f32 %v8276_v13, %v13395_v20  ;;  %v191_v50 = vld [vmem:[%s13152_s0 + $0x570] sm:$0xff]  ;;  %7370 = vmatmul.msk.f32.gmra.mxu1 %vm279_vm1, %v127_v26 }
 0x232   :  { %v4747_v61 = vmul.f32 %v13393_v22, %v1929_v15  ;;  %v6291_v27 = vsel %vm4911_vm7, %v4852_v63, -inf  ;;  %7434 = vmatmul.msk.f32.gmra.mxu2 %vm279_vm1, %v191_v50  ;;  %v1537_v2 = vpop.f32.mrf.mxu2  ;;  %v7101_v50 = vsel %vm6962_vm6, %v5996_v48, %v11613_v36 }
 0x233   :  { %v5551_v41 = vmax.f32 %v5549_v29, %v5550_v52  ;;  %v5997_v10 = vsel %vm4911_vm7, %v4810_v34, -inf  ;;  %v13392_v29 = vunpack.i.l.bf16 %v9506_v42  ;;  %v5106_v24 = vrot.slane %v5105_v59, 1 }
 0x234   :  { %v5998_v25 = vrot.slane %v5997_v10, 4  ;;  %v5556_v13 = vsel %vm4911_vm7, %v4747_v61, -inf  ;;  %v6292_v3 = vrot.slane %v6291_v27, 4  ;;  %v1729_v26 = vpop.f32.mrf.mxu3  ;;  %v8290_v61 = vpop.permute.xlu2 %8289 }
 0x235   :  { %v5552_v56 = vrot.slane %v5551_v41, 2  ;;  %v4683_v52 = vmul.f32 %v13392_v29, %v1865_v6  ;;  %v5107_v0 = vmax.f32 %v5105_v59, %v5106_v24  ;;  %v5557_v15 = vrot.slane %v5556_v13, 4 }
 0x236   :  { %v5999_v34 = vmax.f32 %v5997_v10, %v5998_v25  ;;  %v6293_v63 = vmax.f32 %v6291_v27, %v6292_v3 }
 0x237   :  { %v5553_v11 = vmax.f32 %v5551_v41, %v5552_v56  ;;  %v5108_v45 = vsel %vm4911_vm7, %v4683_v52, -inf  ;;  %v6284_v56 = vsel %vm4911_vm7, %v4851_v23, -inf  ;;  %v6990_v29 = vsel %vm6964_vm10, %v5107_v0, %v11606_v8  ;;  %v11671_v23 = vpop.permute.xlu1 %8224 }
 0x238   :  { %v5109_v6 = vrot.slane %v5108_v45, 4  ;;  %v6285_v28 = vrot.slane %v6284_v56, 4  ;;  %v6000_v22 = vrot.slane %v5999_v34, 2  ;;  %v5558_v59 = vmax.f32 %v5556_v13, %v5557_v15 }
 0x239   :  { %v5554_v41 = vrot.slane %v5553_v11, 1  ;;  %v6294_v25 = vrot.slane %v6293_v63, 2  ;;  %v1538_v15 = vadd.f32 %v11511_v46, %v1537_v2 }
 0x23a   :  { %v5110_v20 = vmax.f32 %v5108_v45, %v5109_v6  ;;  %v6286_v24 = vmax.f32 %v6284_v56, %v6285_v28  ;;  %v6001_v3 = vmax.f32 %v5999_v34, %v6000_v22  ;;  %v5559_v5 = vrot.slane %v5558_v59, 2  ;;  %v11679_v6 = vpop.permute.xlu0 %8219 }
 0x23b   :  { %v5555_v52 = vmax.f32 %v5553_v11, %v5554_v41  ;;  %v1156_v11 = vpop.f32.mrf.mxu0  ;;  %v6295_v0 = vmax.f32 %v6293_v63, %v6294_v25  ;;  %v11683_v28 = vadd.f32 %v11511_v46, %v1729_v26  ;;  %v1993_v41 = vmax.f32 %v1538_v15, 0.0 }
 0x23c   :  { %v5111_v8 = vrot.slane %v5110_v20, 2  ;;  %v6287_v45 = vrot.slane %v6286_v24, 2  ;;  %v6002_v13 = vrot.slane %v6001_v3, 1  ;;  %v5560_v36 = vmax.f32 %v5558_v59, %v5559_v5  ;;  %v1732_v40 = vpop.f32.mrf.mxu3 }
 0x23d   :  { %v7046_v27 = vsel %vm6964_vm10, %v5555_v52, %v11617_v17  ;;  %v1157_v34 = vadd.f32 %v11511_v46, %v1156_v11  ;;  %v1348_v52 = vpop.f32.mrf.mxu1  ;;  %v6296_v2 = vrot.slane %v6295_v0, 1  ;;  %v4811_v59 = vmul.f32 %v8176_v35, %v1993_v41 }
 0x23e   :  { %v5112_v56 = vmax.f32 %v5110_v20, %v5111_v8  ;;  %v6288_v48 = vmax.f32 %v6286_v24, %v6287_v45  ;;  %v6003_v20 = vmax.f32 %v6001_v3, %v6002_v13  ;;  %v5561_v8 = vrot.slane %v5560_v36, 1 }
 0x23f   :  { %v1866_v10 = vmax.f32 %v1157_v34, 0.0  ;;  %v1349_v11 = vadd.f32 %v11511_v46, %v1348_v52  ;;  %v13396_v17 = vunpack.i.h.bf16 %v9506_v42  ;;  %v8292_v25 = vunpack.i.h.bf16 %v8290_v61  ;;  %v13397_v52 = vld [vmem:[#allocation30_spill] sm:$0xff] }
 0x240   :  { %v5113_v22 = vrot.slane %v5112_v56, 1  ;;  %v5562_v5 = vmax.f32 %v5560_v36, %v5561_v8  ;;  %v6289_v45 = vrot.slane %v6288_v48, 1  ;;  %v6004_v3 = vsel %vm4911_vm7, %v4811_v59, -inf }
 0x241   :  { %v4684_v63 = vmul.f32 %v13396_v17, %v1866_v10  ;;  %v1930_v13 = vmax.f32 %v1349_v11, 0.0  ;;  %v6005_v35 = vrot.slane %v6004_v3, 4  ;;  %v13398_v36 = vmax.f32 %v13397_v52, 0.0  ;;  %v13400_v17 = vld [vmem:[#allocation28_spill] sm:$0xff]  ;;  %v11711_v11 = vpop.permute.xlu1 %8239 }
 0x242   :  { %v5114_v26 = vmax.f32 %v5112_v56, %v5113_v22  ;;  %v8291_v56 = vunpack.i.l.bf16 %v8290_v61  ;;  %v11700_v34 = vsel %vm6966_vm14, %v5562_v5, %v7046_v27  ;;  %v11705_v8 = vmax.f32 %v6295_v0, %v6296_v2  ;;  %13402 = vst [vmem:[#allocation12_spill] sm:$0xff] %v11711_v11 }
 0x243   :  { %v5115_v41 = vsel %vm4911_vm7, %v4684_v63, -inf  ;;  %v4858_v22 = vmul.f32 %v8292_v25, %v13398_v36  ;;  %v13399_v10 = vunpack.i.h.bf16 %v10547_v55  ;;  %v11714_v61 = vsel %vm6964_vm10, %v6003_v20, %v7101_v50  ;;  %v1540_v25 = vpop.f32.mrf.mxu2  ;;  %v1159_v52 = vpop.f32.mrf.mxu0 }
 0x244   :  { %v11696_v15 = vsel %vm6966_vm14, %v5114_v26, %v6990_v29  ;;  %v5116_v42 = vrot.slane %v5115_v41, 4  ;;  %v13401_v26 = vmax.f32 %v13400_v17, 0.0  ;;  %v11716_v27 = vmax.f32 %v6288_v48, %v6289_v45  ;;  %v11722_v50 = vpop.permute.xlu0 %8234 }
 0x245   :  { %v4748_v29 = vmul.f32 %v13399_v10, %v1930_v13  ;;  %v6006_v63 = vmax.f32 %v6004_v3, %v6005_v35  ;;  %v6333_v5 = vsel %vm4911_vm7, %v4858_v22, -inf  ;;  %13403 = vst [vmem:[#allocation30_spill] sm:$0xff] %v11722_v50  ;;  %v1541_v3 = vadd.f32 %v11511_v46, %v1540_v25  ;;  %v64_v35 = vld [vmem:[%s13152_s0 + $0x178] sm:$0xff]  ;;  %v13420_v50 = vld [vmem:[#allocation6_spill] sm:$0xff] }
 0x246   :  { %v4857_v59 = vmul.f32 %v8291_v56, %v13401_v26  ;;  %v5117_v0 = vmax.f32 %v5115_v41, %v5116_v42  ;;  %v6334_v13 = vrot.slane %v6333_v5, 4  ;;  %v128_v41 = vld [vmem:[%s13152_s0 + $0x378] sm:$0xff]  ;;  %7307 = vmatmul.msk.f32.gmra.mxu0 %vm279_vm1, %v64_v35  ;;  %v11748_v35 = vadd.f32 %v11511_v46, %v1732_v40 }
 0x247   :  { %v5563_v2 = vsel %vm4911_vm7, %v4748_v29, -inf  ;;  %v6007_v36 = vrot.slane %v6006_v63, 2  ;;  %v192_v22 = vld [vmem:[%s13152_s0 + $0x578] sm:$0xff]  ;;  %v1994_v24 = vmax.f32 %v1541_v3, 0.0  ;;  %7371 = vmatmul.msk.f32.gmra.mxu1 %vm279_vm1, %v128_v41  ;;  %v13404_v41 = vld [vmem:[#allocation11_spill] sm:$0xff] }
 0x248   :  { %v6326_v55 = vsel %vm4911_vm7, %v4857_v59, -inf  ;;  %v5564_v56 = vrot.slane %v5563_v2, 4  ;;  %v5118_v48 = vrot.slane %v5117_v0, 2  ;;  %v6335_v20 = vmax.f32 %v6333_v5, %v6334_v13  ;;  %v1351_v5 = vpop.f32.mrf.mxu1  ;;  %v256_v25 = vld [vmem:[%s13152_s0 + $0x778] sm:$0xff]  ;;  %7435 = vmatmul.msk.f32.gmra.mxu2 %vm279_vm1, %v192_v22 }
 0x249   :  { %v6327_v10 = vrot.slane %v6326_v55, 4  ;;  %v6008_v42 = vmax.f32 %v6006_v63, %v6007_v36  ;;  %v1160_v59 = vadd.f32 %v11511_v46, %v1159_v52  ;;  %7499 = vmatmul.msk.f32.gmra.mxu3 %vm279_vm1, %v256_v25  ;;  %v13405_v22 = vunpack.i.l.bf16 %v13404_v41 }
 0x24a   :  { %v5565_v29 = vmax.f32 %v5563_v2, %v5564_v56  ;;  %v5119_v13 = vmax.f32 %v5117_v0, %v5118_v48  ;;  %v6336_v17 = vrot.slane %v6335_v20, 2  ;;  %v4812_v0 = vmul.f32 %v8177_v18, %v1994_v24  ;;  %v8305_v24 = vpop.permute.xlu2 %8304 }
 0x24b   :  { %v6328_v26 = vmax.f32 %v6326_v55, %v6327_v10  ;;  %v6009_v63 = vrot.slane %v6008_v42, 1  ;;  %v1867_v52 = vmax.f32 %v1160_v59, 0.0  ;;  %v1352_v10 = vadd.f32 %v11511_v46, %v1351_v5 }
 0x24c   :  { %v5566_v2 = vrot.slane %v5565_v29, 2  ;;  %v5120_v36 = vrot.slane %v5119_v13, 1  ;;  %v6337_v56 = vmax.f32 %v6335_v20, %v6336_v17  ;;  %v6011_v59 = vsel %vm4911_vm7, %v4812_v0, -inf }
 0x24d   :  { %v6329_v55 = vrot.slane %v6328_v26, 2  ;;  %v4685_v45 = vmul.f32 %v13405_v22, %v1867_v52  ;;  %v6010_v12 = vmax.f32 %v6008_v42, %v6009_v63  ;;  %v1931_v25 = vmax.f32 %v1352_v10, 0.0 }
 0x24e   :  { %v5567_v48 = vmax.f32 %v5565_v29, %v5566_v2  ;;  %v5121_v16 = vmax.f32 %v5119_v13, %v5120_v36  ;;  %v6338_v17 = vrot.slane %v6337_v56, 1  ;;  %v6012_v18 = vrot.slane %v6011_v59, 4 }
 0x24f   :  { %v6330_v3 = vmax.f32 %v6328_v26, %v6329_v55  ;;  %v5122_v40 = vsel %vm4911_vm7, %v4685_v45, -inf  ;;  %v13406_v26 = vld [vmem:[#allocation29_spill] sm:$0xff]  ;;  %v11762_v52 = vsel %vm6966_vm14, %v6010_v12, %v11714_v61  ;;  %v8307_v0 = vunpack.i.h.bf16 %v8305_v24  ;;  %v13410_v12 = vld [vmem:[#allocation44_spill] sm:$0xff] }
 0x250   :  { %v5568_v33 = vrot.slane %v5567_v48, 1  ;;  %v6992_v20 = vsel %vm6968_vm8, %v5121_v16, %v11696_v15  ;;  %v13407_v5 = vunpack.i.l.bf16 %v13406_v26  ;;  %v6013_v13 = vmax.f32 %v6011_v59, %v6012_v18  ;;  %v11765_v16 = vpop.permute.xlu1 %8254  ;;  %v1543_v59 = vpop.f32.mrf.mxu2 }
 0x251   :  { %v6331_v29 = vrot.slane %v6330_v3, 1  ;;  %v5123_v55 = vrot.slane %v5122_v40, 4  ;;  %v8306_v10 = vunpack.i.l.bf16 %v8305_v24  ;;  %13408 = vst [vmem:[#allocation28_spill] sm:$0xff] %v11765_v16  ;;  %v11773_v18 = vmax.f32 %v6337_v56, %v6338_v17 }
 0x252   :  { %v4749_v2 = vmul.f32 %v13407_v5, %v1931_v25  ;;  %v5569_v42 = vmax.f32 %v5567_v48, %v5568_v33  ;;  %v6014_v45 = vrot.slane %v6013_v13, 2  ;;  %v11769_v48 = vpop.permute.xlu0 %8249  ;;  %v13411_v61 = vmax.f32 %v13410_v12, 0.0 }
 0x253   :  { %v5124_v22 = vmax.f32 %v5122_v40, %v5123_v55  ;;  %13409 = vst [vmem:[#allocation11_spill] sm:$0xff] %v11769_v48  ;;  %v11771_v25 = vmax.f32 %v6330_v3, %v6331_v29  ;;  %v13412_v24 = vmax.f32 %v10802_v60, 0.0  ;;  %v1544_v17 = vadd.f32 %v11511_v46, %v1543_v59  ;;  %v1735_v29 = vpop.f32.mrf.mxu3 }
 0x254   :  { %v5570_v36 = vsel %vm4911_vm7, %v4749_v2, -inf  ;;  %v7048_v15 = vsel %vm6968_vm8, %v5569_v42, %v11700_v34  ;;  %v4863_v5 = vmul.f32 %v8306_v10, %v13411_v61  ;;  %v1162_v42 = vpop.f32.mrf.mxu0  ;;  %v6015_v10 = vmax.f32 %v6013_v13, %v6014_v45  ;;  %v1354_v61 = vpop.f32.mrf.mxu1 }
 0x255   :  { %v5571_v33 = vrot.slane %v5570_v36, 4  ;;  %v4864_v2 = vmul.f32 %v8307_v0, %v13412_v24  ;;  %v5125_v1 = vrot.slane %v5124_v22, 2  ;;  %v1995_v24 = vmax.f32 %v1544_v17, 0.0  ;;  %v8320_v17 = vpop.permute.xlu2 %8319 }
 0x256   :  { %v6368_v55 = vsel %vm4911_vm7, %v4863_v5, -inf  ;;  %v1163_v34 = vadd.f32 %v11511_v46, %v1162_v42  ;;  %v13413_v59 = vunpack.i.l.bf16 %v11437_v31  ;;  %v1355_v45 = vadd.f32 %v11511_v46, %v1354_v61 }
 0x257   :  { %v5572_v63 = vmax.f32 %v5570_v36, %v5571_v33  ;;  %v6375_v3 = vsel %vm4911_vm7, %v4864_v2, -inf  ;;  %v5126_v12 = vmax.f32 %v5124_v22, %v5125_v1  ;;  %v6369_v0 = vrot.slane %v6368_v55, 4 }
 0x258   :  { %v6376_v36 = vrot.slane %v6375_v3, 4  ;;  %v11788_v2 = vadd.f32 %v11511_v46, %v1735_v29  ;;  %v4813_v13 = vmul.f32 %v13413_v59, %v1995_v24  ;;  %v1868_v1 = vmax.f32 %v1163_v34, 0.0 }
 0x259   :  { %v5573_v60 = vrot.slane %v5572_v63, 2  ;;  %v5127_v40 = vrot.slane %v5126_v12, 1  ;;  %v6370_v9 = vmax.f32 %v6368_v55, %v6369_v0  ;;  %v6016_v22 = vrot.slane %v6015_v10, 1 }
 0x25a   :  { %v6377_v56 = vmax.f32 %v6375_v3, %v6376_v36  ;;  %v6018_v42 = vsel %vm4911_vm7, %v4813_v13, -inf  ;;  %v1932_v29 = vmax.f32 %v1355_v45, 0.0  ;;  %v8322_v24 = vunpack.i.h.bf16 %v8320_v17  ;;  %v8270_v45 = vpop.permute.xlu1 %8269 }
 0x25b   :  { %v5574_v5 = vmax.f32 %v5572_v63, %v5573_v60  ;;  %v5128_v16 = vmax.f32 %v5126_v12, %v5127_v40  ;;  %v6371_v33 = vrot.slane %v6370_v9, 2  ;;  %v13414_v63 = vunpack.i.h.bf16 %v13404_v41 }
 0x25c   :  { %v6378_v48 = vrot.slane %v6377_v56, 2  ;;  %v6019_v34 = vrot.slane %v6018_v42, 4  ;;  %v13415_v40 = vunpack.i.h.bf16 %v13406_v26  ;;  %v65_v26 = vld [vmem:[%s13152_s0 + $0x180] sm:$0xff] }
 0x25d   :  { %v5575_v47 = vrot.slane %v5574_v5, 1  ;;  %v4686_v55 = vmul.f32 %v13414_v63, %v1868_v1  ;;  %v11797_v3 = vsel %vm6970_vm9, %v5128_v16, %v6992_v20  ;;  %v6372_v0 = vmax.f32 %v6370_v9, %v6371_v33  ;;  %7308 = vmatmul.msk.f32.gmra.mxu0 %vm279_vm1, %v65_v26 }
 0x25e   :  { %v6379_v36 = vmax.f32 %v6377_v56, %v6378_v48  ;;  %v4750_v12 = vmul.f32 %v13415_v40, %v1932_v29  ;;  %v6020_v13 = vmax.f32 %v6018_v42, %v6019_v34  ;;  %v8321_v9 = vunpack.i.l.bf16 %v8320_v17  ;;  %v193_v56 = vld [vmem:[%s13152_s0 + $0x580] sm:$0xff] }
 0x25f   :  { %v5576_v60 = vmax.f32 %v5574_v5, %v5575_v47  ;;  %v5129_v61 = vsel %vm4911_vm7, %v4686_v55, -inf  ;;  %v6373_v20 = vrot.slane %v6372_v0, 1  ;;  %v13416_v16 = vmax.f32 %v11342_v49, 0.0  ;;  %v257_v49 = vld [vmem:[%s13152_s0 + $0x780] sm:$0xff]  ;;  %7436 = vmatmul.msk.f32.gmra.mxu2 %vm279_vm1, %v193_v56 }
 0x260   :  { %v5130_v1 = vrot.slane %v5129_v61, 4  ;;  %v5577_v47 = vsel %vm4911_vm7, %v4750_v12, -inf  ;;  %v6017_v33 = vmax.f32 %v6015_v10, %v6016_v22  ;;  %v6021_v5 = vrot.slane %v6020_v13, 2  ;;  %7500 = vmatmul.msk.f32.gmra.mxu3 %vm279_vm1, %v257_v49 }
 0x261   :  { %v11803_v59 = vsel %vm6970_vm9, %v5576_v60, %v7048_v15  ;;  %v4870_v48 = vmul.f32 %v8322_v24, %v13416_v16  ;;  %v129_v15 = vld [vmem:[%s13152_s0 + $0x380] sm:$0xff]  ;;  %v5578_v63 = vrot.slane %v5577_v47, 4  ;;  %v6380_v17 = vrot.slane %v6379_v36, 1  ;;  %v13418_v16 = vld [vmem:[#allocation8_spill] sm:$0xff] }
 0x262   :  { %v5131_v42 = vmax.f32 %v5129_v61, %v5130_v1  ;;  %7372 = vmatmul.msk.f32.gmra.mxu1 %vm279_vm1, %v129_v15  ;;  %v13417_v55 = vmax.f32 %v11223_v62, 0.0  ;;  %v8272_v34 = vunpack.i.h.bf16 %v8270_v45  ;;  %v6022_v10 = vmax.f32 %v6020_v13, %v6021_v5  ;;  %v8265_v62 = vpop.permute.xlu0 %8264 }
 0x263   :  { %v6417_v60 = vsel %vm4911_vm7, %v4870_v48, -inf  ;;  %v5579_v61 = vmax.f32 %v5577_v47, %v5578_v63  ;;  %v6374_v12 = vmax.f32 %v6372_v0, %v6373_v20  ;;  %v8271_v1 = vunpack.i.l.bf16 %v8270_v45 }
 0x264   :  { %v4869_v29 = vmul.f32 %v8321_v9, %v13417_v55  ;;  %v5132_v22 = vrot.slane %v5131_v42, 2  ;;  %v6418_v40 = vrot.slane %v6417_v60, 4  ;;  %v13419_v26 = vmax.f32 %v13418_v16, 0.0 }
 0x265   :  { %v6023_v9 = vrot.slane %v6022_v10, 1  ;;  %v5580_v48 = vrot.slane %v5579_v61, 2  ;;  %v6381_v11 = vmax.f32 %v6379_v36, %v6380_v17  ;;  %v13421_v49 = vmax.f32 %v13420_v50, 0.0  ;;  %v13422_v50 = vld [vmem:[#allocation2_spill] sm:$0xff] }
 0x266   :  { %v6410_v24 = vsel %vm4911_vm7, %v4869_v29, -inf  ;;  %v4850_v15 = vmul.f32 %v8272_v34, %v13419_v26  ;;  %v5133_v55 = vmax.f32 %v5131_v42, %v5132_v22  ;;  %v6419_v56 = vmax.f32 %v6417_v60, %v6418_v40 }
 0x267   :  { %v6411_v41 = vrot.slane %v6410_v24, 4  ;;  %v4849_v13 = vmul.f32 %v8271_v1, %v13421_v49  ;;  %v5581_v0 = vmax.f32 %v5579_v61, %v5580_v48  ;;  %v8267_v63 = vunpack.i.h.bf16 %v8265_v62 }
 0x268   :  { %v6277_v47 = vsel %vm4911_vm7, %v4850_v15, -inf  ;;  %v5134_v5 = vrot.slane %v5133_v55, 1  ;;  %v6420_v45 = vrot.slane %v6419_v56, 2  ;;  %v8266_v16 = vunpack.i.l.bf16 %v8265_v62  ;;  %v13424_v15 = vld [vmem:[#allocation4_spill] sm:$0xff] }
 0x269   :  { %v6412_v20 = vmax.f32 %v6410_v24, %v6411_v41  ;;  %v6270_v29 = vsel %vm4911_vm7, %v4849_v13, -inf  ;;  %v6278_v34 = vrot.slane %v6277_v47, 4  ;;  %v6024_v26 = vmax.f32 %v6022_v10, %v6023_v9 }
 0x26a   :  { %v5135_v42 = vmax.f32 %v5133_v55, %v5134_v5  ;;  %v5582_v22 = vrot.slane %v5581_v0, 1  ;;  %v6421_v36 = vmax.f32 %v6419_v56, %v6420_v45  ;;  %v6271_v17 = vrot.slane %v6270_v29, 4  ;;  %v1546_v56 = vpop.f32.mrf.mxu2  ;;  %v1165_v5 = vpop.f32.mrf.mxu0 }
 0x26b   :  { %v6413_v30 = vrot.slane %v6412_v20, 2  ;;  %v6279_v60 = vmax.f32 %v6277_v47, %v6278_v34  ;;  %v13423_v40 = vmax.f32 %v13422_v50, 0.0  ;;  %v13425_v48 = vmax.f32 %v13424_v15, 0.0  ;;  %v8335_v50 = vpop.permute.xlu2 %8334  ;;  %v130_v15 = vld [vmem:[%s13152_s0 + $0x388] sm:$0xff] }
 0x26c   :  { %v6994_v61 = vsel %vm6972_vm4, %v5135_v42, %v11797_v3  ;;  %v5583_v41 = vmax.f32 %v5581_v0, %v5582_v22  ;;  %v6422_v10 = vrot.slane %v6421_v36, 1  ;;  %v6272_v62 = vmax.f32 %v6270_v29, %v6271_v17  ;;  %v1357_v29 = vpop.f32.mrf.mxu1  ;;  %7373 = vmatmul.msk.f32.gmra.mxu1 %vm279_vm1, %v130_v15 }
 0x26d   :  { %v4847_v1 = vmul.f32 %v8266_v16, %v13423_v40  ;;  %v6414_v24 = vmax.f32 %v6412_v20, %v6413_v30  ;;  %v4848_v49 = vmul.f32 %v8267_v63, %v13425_v48  ;;  %7226 = vst.msk [vmem:[%s13155_s4 + $0x18] sm:$0xff] %vm4911_vm7, %v6994_v61  ;;  %v6280_v9 = vrot.slane %v6279_v60, 2  ;;  %v194_v48 = vld [vmem:[%s13152_s0 + $0x588] sm:$0xff] }
 0x26e   :  { %v7104_v13 = vsel %vm6968_vm8, %v6017_v33, %v11762_v52  ;;  %v7050_v30 = vsel %vm6972_vm4, %v5583_v41, %v11803_v59  ;;  %v6273_v20 = vrot.slane %v6272_v62, 2  ;;  %v11858_v52 = vsel %vm6960_vm3, %v6381_v11, %v6374_v12  ;;  %7437 = vmatmul.msk.f32.gmra.mxu2 %vm279_vm1, %v194_v48 }
 0x26f   :  { %v6256_v55 = vsel %vm4911_vm7, %v4847_v1, -inf  ;;  %v6263_v47 = vsel %vm4911_vm7, %v4848_v49, -inf  ;;  %7234 = vst.msk [vmem:[%s13155_s4 + $0x58] sm:$0xff] %vm4911_vm7, %v7050_v30  ;;  %v6415_v0 = vrot.slane %v6414_v24, 1  ;;  %v11855_v63 = vmax.f32 %v6279_v60, %v6280_v9  ;;  %v258_v9 = vld [vmem:[%s13152_s0 + $0x788] sm:$0xff] }
 0x270   :  { %v6257_v3 = vrot.slane %v6256_v55, 4  ;;  %v6264_v45 = vrot.slane %v6263_v47, 4  ;;  %v11861_v59 = vsel %vm6970_vm9, %v6024_v26, %v7104_v13  ;;  %v1547_v34 = vadd.f32 %v11511_v46, %v1546_v56  ;;  %v13427_v13 = vld [vmem:[#allocation10_spill] sm:$0xff]  ;;  %7501 = vmatmul.msk.f32.gmra.mxu3 %vm279_vm1, %v258_v9 }
 0x271   :  { %v11864_v16 = vmax.f32 %v6421_v36, %v6422_v10  ;;  %v6274_v42 = vmax.f32 %v6272_v62, %v6273_v20  ;;  %v1166_v17 = vadd.f32 %v11511_v46, %v1165_v5  ;;  %v6282_v60 = vrot.slane %v11855_v63, 1  ;;  %v66_v36 = vld [vmem:[%s13152_s0 + $0x188] sm:$0xff] }
 0x272   :  { %v6258_v33 = vmax.f32 %v6256_v55, %v6257_v3  ;;  %v6265_v22 = vmax.f32 %v6263_v47, %v6264_v45  ;;  %v1996_v1 = vmax.f32 %v1547_v34, 0.0  ;;  %v1358_v11 = vadd.f32 %v11511_v46, %v1357_v29  ;;  %7309 = vmatmul.msk.f32.gmra.mxu0 %vm279_vm1, %v66_v36 }
 0x273   :  { %v11869_v12 = vmax.f32 %v6414_v24, %v6415_v0  ;;  %v6275_v26 = vrot.slane %v6274_v42, 1  ;;  %v1869_v41 = vmax.f32 %v1166_v17, 0.0  ;;  %v13426_v46 = vunpack.i.h.bf16 %v11437_v31  ;;  %v13429_v0 = vld [vmem:[#allocation39_spill] sm:$0xff] }
 0x274   :  { %v6259_v40 = vrot.slane %v6258_v33, 2  ;;  %v6266_v61 = vrot.slane %v6265_v22, 2  ;;  %v1933_v10 = vmax.f32 %v1358_v11, 0.0  ;;  %v8337_v62 = vunpack.i.h.bf16 %v8335_v50 }
 0x275   :  { %v4814_v24 = vmul.f32 %v13426_v46, %v1996_v1  ;;  %v6276_v55 = vmax.f32 %v6274_v42, %v6275_v26  ;;  %v13428_v30 = vunpack.i.l.bf16 %v13427_v13  ;;  %v8336_v47 = vunpack.i.l.bf16 %v8335_v50 }
 0x276   :  { %v6260_v49 = vmax.f32 %v6258_v33, %v6259_v40  ;;  %v6267_v56 = vmax.f32 %v6265_v22, %v6266_v61  ;;  %v13430_v20 = vunpack.i.l.bf16 %v13429_v0  ;;  %v13431_v29 = vmax.f32 %v11748_v35, 0.0  ;;  %v8285_v40 = vpop.permute.xlu1 %8284 }
 0x277   :  { %v4687_v3 = vmul.f32 %v13428_v30, %v1869_v41  ;;  %v6025_v5 = vsel %vm4911_vm7, %v4814_v24, -inf  ;;  %v13432_v17 = vmax.f32 %v11683_v28, 0.0  ;;  %v8286_v30 = vunpack.i.l.bf16 %v8285_v40 }
 0x278   :  { %v6261_v31 = vrot.slane %v6260_v49, 1  ;;  %v4751_v45 = vmul.f32 %v13430_v20, %v1933_v10  ;;  %v4876_v33 = vmul.f32 %v8337_v62, %v13431_v29  ;;  %v6268_v34 = vrot.slane %v6267_v56, 1  ;;  %v8280_v20 = vpop.permute.xlu0 %8279 }
 0x279   :  { %v6026_v42 = vrot.slane %v6025_v5, 4  ;;  %v5136_v22 = vsel %vm4911_vm7, %v4687_v3, -inf  ;;  %v4875_v50 = vmul.f32 %v8336_v47, %v13432_v17  ;;  %v8287_v10 = vunpack.i.h.bf16 %v8285_v40 }
 0x27a   :  { %v6262_v1 = vmax.f32 %v6260_v49, %v6261_v31  ;;  %v5137_v11 = vrot.slane %v5136_v22, 4  ;;  %v5584_v26 = vsel %vm4911_vm7, %v4751_v45, -inf  ;;  %v6459_v61 = vsel %vm4911_vm7, %v4876_v33, -inf  ;;  %v1738_v45 = vpop.f32.mrf.mxu3  ;;  %v13433_v33 = vld [vmem:[#allocation24_spill] sm:$0xff] }
 0x27b   :  { %v6269_v41 = vmax.f32 %v6267_v56, %v6268_v34  ;;  %v6027_v36 = vmax.f32 %v6025_v5, %v6026_v42  ;;  %v5585_v15 = vrot.slane %v5584_v26, 4  ;;  %v6452_v35 = vsel %vm4911_vm7, %v4875_v50, -inf }
 0x27c   :  { %v5138_v48 = vmax.f32 %v5136_v22, %v5137_v11  ;;  %v6453_v46 = vrot.slane %v6452_v35, 4  ;;  %v6460_v24 = vrot.slane %v6459_v61, 4  ;;  %v6283_v56 = vmax.f32 %v11855_v63, %v6282_v60 }
 0x27d   :  { %v7135_v62 = vsel %vm6960_vm3, %v6269_v41, %v6262_v1  ;;  %v6028_v28 = vrot.slane %v6027_v36, 2  ;;  %v5586_v9 = vmax.f32 %v5584_v26, %v5585_v15  ;;  %v13434_v34 = vmax.f32 %v13433_v33, 0.0  ;;  %v13435_v1 = vld [vmem:[#allocation27_spill] sm:$0xff] }
 0x27e   :  { %v7136_v49 = vsel %vm6962_vm6, %v6276_v55, %v7135_v62  ;;  %v5139_v3 = vrot.slane %v5138_v48, 2  ;;  %v6454_v47 = vmax.f32 %v6452_v35, %v6453_v46  ;;  %v6461_v31 = vmax.f32 %v6459_v61, %v6460_v24 }
 0x27f   :  { %v6029_v5 = vmax.f32 %v6027_v36, %v6028_v28  ;;  %v5587_v29 = vrot.slane %v5586_v9, 2  ;;  %v4855_v42 = vmul.f32 %v8286_v30, %v13434_v34  ;;  %v13436_v11 = vmax.f32 %v13435_v1, 0.0 }
 0x280   :  { %v5140_v22 = vmax.f32 %v5138_v48, %v5139_v3  ;;  %v6455_v17 = vrot.slane %v6454_v47, 2  ;;  %v6462_v50 = vrot.slane %v6461_v31, 2  ;;  %v8282_v61 = vunpack.i.h.bf16 %v8280_v20  ;;  %v11914_v48 = vld [vmem:[%s13154_s3] ss:$0 sm:$0xff]  ;;  %v1549_v3 = vpop.f32.mrf.mxu2 }
 0x281   :  { %v4856_v40 = vmul.f32 %v8287_v10, %v13436_v11  ;;  %v6030_v26 = vrot.slane %v6029_v5, 1  ;;  %v5588_v55 = vmax.f32 %v5586_v9, %v5587_v29  ;;  %v6312_v41 = vsel %vm4911_vm7, %v4855_v42, -inf  ;;  %v13437_v29 = vld [vmem:[#allocation18_spill] sm:$0xff] }
 0x282   :  { %v5141_v15 = vrot.slane %v5140_v22, 1  ;;  %v6456_v35 = vmax.f32 %v6454_v47, %v6455_v17  ;;  %v6463_v63 = vmax.f32 %v6461_v31, %v6462_v50  ;;  %v6313_v60 = vrot.slane %v6312_v41, 4  ;;  %v13439_v17 = vld [vmem:[#allocation21_spill] sm:$0xff] }
 0x283   :  { %v6031_v36 = vmax.f32 %v6029_v5, %v6030_v26  ;;  %v5589_v46 = vrot.slane %v5588_v55, 1  ;;  %v6319_v24 = vsel %vm4911_vm7, %v4856_v40, -inf  ;;  %v8281_v62 = vunpack.i.l.bf16 %v8280_v20  ;;  %v1168_v40 = vpop.f32.mrf.mxu0  ;;  %v1360_v26 = vpop.f32.mrf.mxu1 }
 0x284   :  { %v11917_v10 = vadd.f32 %v11914_v48, %v1738_v45  ;;  %v6457_v28 = vrot.slane %v6456_v35, 1  ;;  %v6464_v9 = vrot.slane %v6463_v63, 1  ;;  %v6314_v30 = vmax.f32 %v6312_v41, %v6313_v60 }
 0x285   :  { %v7137_v47 = vsel %vm6964_vm10, %v6283_v56, %v7136_v49  ;;  %v7106_v31 = vsel %vm6972_vm4, %v6031_v36, %v11861_v59  ;;  %v6320_v5 = vrot.slane %v6319_v24, 4  ;;  %v13438_v20 = vmax.f32 %v13437_v29, 0.0 }
 0x286   :  { %7242 = vst.msk [vmem:[%s13155_s4 + $0x98] sm:$0xff] %vm4911_vm7, %v7106_v31  ;;  %v11928_v45 = vmax.f32 %v5140_v22, %v5141_v15  ;;  %v11930_v34 = vmax.f32 %v5588_v55, %v5589_v46  ;;  %v6315_v42 = vrot.slane %v6314_v30, 2  ;;  %v13440_v50 = vmax.f32 %v13439_v17, 0.0  ;;  %v1741_v46 = vpop.f32.mrf.mxu3 }
 0x287   :  { %v4853_v33 = vmul.f32 %v8281_v62, %v13438_v20  ;;  %v11934_v56 = vmax.f32 %v6456_v35, %v6457_v28  ;;  %v6321_v59 = vmax.f32 %v6319_v24, %v6320_v5  ;;  %v1550_v11 = vadd.f32 %v11914_v48, %v1549_v3  ;;  %v67_v24 = vld [vmem:[%s13152_s0 + $0x190] sm:$0xff] }
 0x288   :  { %v4854_v49 = vmul.f32 %v8282_v61, %v13440_v50  ;;  %v11938_v41 = vmax.f32 %v6463_v63, %v6464_v9  ;;  %v6316_v60 = vmax.f32 %v6314_v30, %v6315_v42  ;;  %v7138_v61 = vsel %vm6966_vm14, %v11716_v27, %v7137_v47  ;;  %v131_v63 = vld [vmem:[%s13152_s0 + $0x390] sm:$0xff]  ;;  %7310 = vmatmul.msk.f32.gmra.mxu0 %vm279_vm1, %v67_v24 }
 0x289   :  { %v6298_v1 = vsel %vm4911_vm7, %v4853_v33, -inf  ;;  %v6322_v15 = vrot.slane %v6321_v59, 2  ;;  %v1997_v35 = vmax.f32 %v1550_v11, 0.0  ;;  %v195_v62 = vld [vmem:[%s13152_s0 + $0x590] sm:$0xff]  ;;  %v1169_v30 = vadd.f32 %v11914_v48, %v1168_v40  ;;  %7374 = vmatmul.msk.f32.gmra.mxu1 %vm279_vm1, %v131_v63 }
 0x28a   :  { %v6299_v22 = vrot.slane %v6298_v1, 4  ;;  %v6305_v55 = vsel %vm4911_vm7, %v4854_v49, -inf  ;;  %v6317_v28 = vrot.slane %v6316_v60, 1  ;;  %v1361_v27 = vadd.f32 %v11914_v48, %v1360_v26  ;;  %v259_v3 = vld [vmem:[%s13152_s0 + $0x790] sm:$0xff]  ;;  %7438 = vmatmul.msk.f32.gmra.mxu2 %vm279_vm1, %v195_v62  ;;  %v8300_v49 = vpop.permute.xlu1 %8299 }
 0x28b   :  { %v6306_v36 = vrot.slane %v6305_v55, 4  ;;  %v6323_v31 = vmax.f32 %v6321_v59, %v6322_v15  ;;  %v13441_v29 = vunpack.i.l.bf16 %v11190_v37  ;;  %7502 = vmatmul.msk.f32.gmra.mxu3 %vm279_vm1, %v259_v3  ;;  %v11965_v42 = vadd.f32 %v11914_v48, %v1741_v46 }
 0x28c   :  { %v6300_v9 = vmax.f32 %v6298_v1, %v6299_v22  ;;  %v1870_v17 = vmax.f32 %v1169_v30, 0.0  ;;  %v1934_v50 = vmax.f32 %v1361_v27, 0.0  ;;  %v6318_v1 = vmax.f32 %v6316_v60, %v6317_v28 }
 0x28d   :  { %v6307_v5 = vmax.f32 %v6305_v55, %v6306_v36  ;;  %v4815_v20 = vmul.f32 %v13441_v29, %v1997_v35  ;;  %v6324_v11 = vrot.slane %v6323_v31, 1  ;;  %v13442_v55 = vunpack.i.h.bf16 %v13427_v13 }
 0x28e   :  { %v6301_v33 = vrot.slane %v6300_v9, 2  ;;  %v13443_v36 = vunpack.i.h.bf16 %v13429_v0  ;;  %v7139_v46 = vsel %vm6968_vm8, %v11705_v8, %v7138_v61  ;;  %v8302_v62 = vunpack.i.h.bf16 %v8300_v49 }
 0x28f   :  { %v6308_v40 = vrot.slane %v6307_v5, 2  ;;  %v6032_v59 = vsel %vm4911_vm7, %v4815_v20, -inf  ;;  %v4688_v15 = vmul.f32 %v13442_v55, %v1870_v17  ;;  %v6325_v24 = vmax.f32 %v6323_v31, %v6324_v11  ;;  %v8295_v20 = vpop.permute.xlu0 %8294  ;;  %v13444_v11 = vld [vmem:[#allocation40_spill] sm:$0xff] }
 0x290   :  { %v6302_v26 = vmax.f32 %v6300_v9, %v6301_v33  ;;  %v6033_v22 = vrot.slane %v6032_v59, 4  ;;  %v4752_v35 = vmul.f32 %v13443_v36, %v1934_v50  ;;  %v8301_v33 = vunpack.i.l.bf16 %v8300_v49  ;;  %v11978_v50 = vpop.permute.xlu2 %8349 }
 0x291   :  { %v6309_v63 = vmax.f32 %v6307_v5, %v6308_v40  ;;  %v5143_v28 = vsel %vm4911_vm7, %v4688_v15, -inf  ;;  %v7142_v0 = vsel %vm6960_vm3, %v6325_v24, %v6318_v1  ;;  %v13445_v40 = vmax.f32 %v13444_v11, 0.0  ;;  %v13446_v15 = vld [vmem:[#allocation36_spill] sm:$0xff] }
 0x292   :  { %v6303_v30 = vrot.slane %v6302_v26, 1  ;;  %v6034_v60 = vmax.f32 %v6032_v59, %v6033_v22  ;;  %v5591_v27 = vsel %vm4911_vm7, %v4752_v35, -inf  ;;  %v5144_v13 = vrot.slane %v5143_v28, 4  ;;  %v13450_v11 = vld [vmem:[#allocation32_spill] sm:$0xff] }
 0x293   :  { %v6310_v9 = vrot.slane %v6309_v63, 1  ;;  %v5592_v29 = vrot.slane %v5591_v27, 4  ;;  %v4862_v59 = vmul.f32 %v8302_v62, %v13445_v40  ;;  %v13447_v36 = vmax.f32 %v13446_v15, 0.0 }
 0x294   :  { %v6304_v31 = vmax.f32 %v6302_v26, %v6303_v30  ;;  %v6035_v5 = vrot.slane %v6034_v60, 2  ;;  %v5145_v8 = vmax.f32 %v5143_v28, %v5144_v13  ;;  %v8297_v47 = vunpack.i.h.bf16 %v8295_v20 }
 0x295   :  { %v6311_v17 = vmax.f32 %v6309_v63, %v6310_v9  ;;  %v5593_v61 = vmax.f32 %v5591_v27, %v5592_v29  ;;  %v4861_v35 = vmul.f32 %v8301_v33, %v13447_v36  ;;  %v6361_v49 = vsel %vm4911_vm7, %v4862_v59, -inf  ;;  %v13448_v9 = vld [vmem:[#allocation34_spill] sm:$0xff] }
 0x296   :  { %v7140_v22 = vsel %vm6970_vm9, %v6304_v31, %v7139_v46  ;;  %v6036_v55 = vmax.f32 %v6034_v60, %v6035_v5  ;;  %v5146_v26 = vrot.slane %v5145_v8, 2  ;;  %v8352_v63 = vunpack.i.h.bf16 %v11978_v50  ;;  %v1552_v31 = vpop.f32.mrf.mxu2 }
 0x297   :  { %v7141_v1 = vsel %vm6972_vm4, %v6311_v17, %v7140_v22  ;;  %v5594_v24 = vrot.slane %v5593_v61, 2  ;;  %v6354_v46 = vsel %vm4911_vm7, %v4861_v35, -inf  ;;  %v6362_v62 = vrot.slane %v6361_v49, 4 }
 0x298   :  { %7247 = vst.msk [vmem:[%s13155_s4 + $0xc0] sm:$0xff] %vm4911_vm7, %v7141_v1  ;;  %v8296_v30 = vunpack.i.l.bf16 %v8295_v20  ;;  %v5147_v60 = vmax.f32 %v5145_v8, %v5146_v26  ;;  %v6355_v27 = vrot.slane %v6354_v46, 4  ;;  %v13449_v13 = vmax.f32 %v13448_v9, 0.0 }
 0x299   :  { %v5595_v28 = vmax.f32 %v5593_v61, %v5594_v24  ;;  %v7143_v5 = vsel %vm6962_vm6, %v11771_v25, %v7142_v0  ;;  %v6037_v33 = vrot.slane %v6036_v55, 1  ;;  %v6363_v17 = vmax.f32 %v6361_v49, %v6362_v62  ;;  %v1744_v24 = vpop.f32.mrf.mxu3 }
 0x29a   :  { %v4860_v29 = vmul.f32 %v8297_v47, %v13449_v13  ;;  %v13451_v40 = vmax.f32 %v13450_v11, 0.0  ;;  %v5148_v22 = vrot.slane %v5147_v60, 1  ;;  %v6356_v36 = vmax.f32 %v6354_v46, %v6355_v27  ;;  %v1171_v13 = vpop.f32.mrf.mxu0  ;;  %v1363_v46 = vpop.f32.mrf.mxu1 }
 0x29b   :  { %v5596_v15 = vrot.slane %v5595_v28, 1  ;;  %v6364_v8 = vrot.slane %v6363_v17, 2  ;;  %v1553_v47 = vadd.f32 %v11914_v48, %v1552_v31  ;;  %v8351_v26 = vunpack.i.l.bf16 %v11978_v50 }
 0x29c   :  { %v4859_v59 = vmul.f32 %v8296_v30, %v13451_v40  ;;  %v6347_v20 = vsel %vm4911_vm7, %v4860_v29, -inf  ;;  %v5149_v1 = vmax.f32 %v5147_v60, %v5148_v22  ;;  %v6357_v25 = vrot.slane %v6356_v36, 2 }
 0x29d   :  { %v6348_v35 = vrot.slane %v6347_v20, 4  ;;  %v5597_v49 = vmax.f32 %v5595_v28, %v5596_v15  ;;  %v6365_v62 = vmax.f32 %v6363_v17, %v6364_v8  ;;  %v1998_v9 = vmax.f32 %v1553_v47, 0.0 }
 0x29e   :  { %v6340_v61 = vsel %vm4911_vm7, %v4859_v59, -inf  ;;  %v12003_v27 = vmax.f32 %v6036_v55, %v6037_v33  ;;  %v6358_v29 = vmax.f32 %v6356_v36, %v6357_v25  ;;  %v7144_v40 = vsel %vm6964_vm10, %v11773_v18, %v7143_v5  ;;  %v8315_v33 = vpop.permute.xlu1 %8314  ;;  %v68_v36 = vld [vmem:[%s13152_s0 + $0x198] sm:$0xff] }
 0x29f   :  { %v6341_v0 = vrot.slane %v6340_v61, 4  ;;  %v6349_v30 = vmax.f32 %v6347_v20, %v6348_v35  ;;  %v6366_v31 = vrot.slane %v6365_v62, 1  ;;  %v13452_v59 = vunpack.i.h.bf16 %v11190_v37  ;;  %v132_v18 = vld [vmem:[%s13152_s0 + $0x398] sm:$0xff]  ;;  %7311 = vmatmul.msk.f32.gmra.mxu0 %vm279_vm1, %v68_v36 }
 0x2a0   :  { %v12010_v3 = vadd.f32 %v11914_v48, %v1744_v24  ;;  %v6359_v28 = vrot.slane %v6358_v29, 1  ;;  %v1172_v15 = vadd.f32 %v11914_v48, %v1171_v13  ;;  %v1364_v55 = vadd.f32 %v11914_v48, %v1363_v46  ;;  %v196_v37 = vld [vmem:[%s13152_s0 + $0x598] sm:$0xff]  ;;  %7375 = vmatmul.msk.f32.gmra.mxu1 %vm279_vm1, %v132_v18  ;;  %v13453_v46 = vld [vmem:[#allocation3_spill] sm:$0xff] }
 0x2a1   :  { %v6342_v11 = vmax.f32 %v6340_v61, %v6341_v0  ;;  %v6350_v60 = vrot.slane %v6349_v30, 2  ;;  %v4816_v22 = vmul.f32 %v13452_v59, %v1998_v9  ;;  %v12025_v5 = vsel %vm6960_vm3, %v5149_v1, %v11928_v45  ;;  %v260_v35 = vld [vmem:[%s13152_s0 + $0x798] sm:$0xff]  ;;  %v8310_v1 = vpop.permute.xlu0 %8309  ;;  %7439 = vmatmul.msk.f32.gmra.mxu2 %vm279_vm1, %v196_v37 }
 0x2a2   :  { %v12029_v20 = vsel %vm6960_vm3, %v5597_v49, %v11930_v34  ;;  %v6367_v47 = vmax.f32 %v6365_v62, %v6366_v31  ;;  %v1871_v45 = vmax.f32 %v1172_v15, 0.0  ;;  %7503 = vmatmul.msk.f32.gmra.mxu3 %vm279_vm1, %v260_v35  ;;  %v6360_v34 = vmax.f32 %v6358_v29, %v6359_v28  ;;  %v13455_v62 = vld [vmem:[#allocation38_spill] sm:$0xff] }
 0x2a3   :  { %v6343_v17 = vrot.slane %v6342_v11, 2  ;;  %v6351_v8 = vmax.f32 %v6349_v30, %v6350_v60  ;;  %v6039_v61 = vsel %vm4911_vm7, %v4816_v22, -inf  ;;  %v1935_v49 = vmax.f32 %v1364_v55, 0.0 }
 0x2a4   :  { %v6040_v0 = vrot.slane %v6039_v61, 4  ;;  %v8317_v30 = vunpack.i.h.bf16 %v8315_v33  ;;  %v13454_v60 = vunpack.i.l.bf16 %v13453_v46  ;;  %v8316_v22 = vunpack.i.l.bf16 %v8315_v33 }
 0x2a5   :  { %v6344_v25 = vmax.f32 %v6342_v11, %v6343_v17  ;;  %v6352_v24 = vrot.slane %v6351_v8, 1  ;;  %v13456_v11 = vunpack.i.l.bf16 %v13455_v62  ;;  %v13457_v17 = vmax.f32 %v11124_v38, 0.0 }
 0x2a6   :  { %v6041_v13 = vmax.f32 %v6039_v61, %v6040_v0  ;;  %v4689_v59 = vmul.f32 %v13454_v60, %v1871_v45  ;;  %v8312_v18 = vunpack.i.h.bf16 %v8310_v1  ;;  %v13458_v28 = vmax.f32 %v11065_v14, 0.0 }
 0x2a7   :  { %v6345_v9 = vrot.slane %v6344_v25, 1  ;;  %v6353_v36 = vmax.f32 %v6351_v8, %v6352_v24  ;;  %v4753_v31 = vmul.f32 %v13456_v11, %v1935_v49  ;;  %v4868_v15 = vmul.f32 %v8317_v30, %v13457_v17 }
 0x2a8   :  { %v6042_v35 = vrot.slane %v6041_v13, 2  ;;  %v5150_v29 = vsel %vm4911_vm7, %v4689_v59, -inf  ;;  %v4867_v55 = vmul.f32 %v8316_v22, %v13458_v28  ;;  %v8311_v8 = vunpack.i.l.bf16 %v8310_v1 }
 0x2a9   :  { %v6346_v37 = vmax.f32 %v6344_v25, %v6345_v9  ;;  %v5151_v61 = vrot.slane %v5150_v29, 4  ;;  %v5598_v0 = vsel %vm4911_vm7, %v4753_v31, -inf  ;;  %v6403_v33 = vsel %vm4911_vm7, %v4868_v15, -inf }
 0x2aa   :  { %v6043_v24 = vmax.f32 %v6041_v13, %v6042_v35  ;;  %v5599_v49 = vrot.slane %v5598_v0, 4  ;;  %v6396_v38 = vsel %vm4911_vm7, %v4867_v55, -inf  ;;  %v6404_v60 = vrot.slane %v6403_v33, 4 }
 0x2ab   :  { %v7145_v45 = vsel %vm6966_vm14, %v6346_v37, %v7144_v40  ;;  %v5152_v30 = vmax.f32 %v5150_v29, %v5151_v61  ;;  %v6397_v9 = vrot.slane %v6396_v38, 4  ;;  %v13459_v11 = vmax.f32 %v10900_v44, 0.0  ;;  %v12057_v40 = vpop.permute.xlu2 %8364  ;;  %v1555_v37 = vpop.f32.mrf.mxu2 }
 0x2ac   :  { %v7146_v25 = vsel %vm6968_vm8, %v6353_v36, %v7145_v45  ;;  %v6044_v59 = vrot.slane %v6043_v24, 1  ;;  %v5600_v22 = vmax.f32 %v5598_v0, %v5599_v49  ;;  %v6405_v15 = vmax.f32 %v6403_v33, %v6404_v60  ;;  %v1747_v0 = vpop.f32.mrf.mxu3 }
 0x2ad   :  { %v7147_v14 = vsel %vm6970_vm9, %v6360_v34, %v7146_v25  ;;  %v4865_v31 = vmul.f32 %v8311_v8, %v13459_v11  ;;  %v5153_v17 = vrot.slane %v5152_v30, 2  ;;  %v6398_v13 = vmax.f32 %v6396_v38, %v6397_v9 }
 0x2ae   :  { %v7148_v1 = vsel %vm6972_vm4, %v6367_v47, %v7147_v14  ;;  %v2062_v34 = vmax.f32 %v12010_v3, 0.0  ;;  %v5601_v36 = vrot.slane %v5600_v22, 2  ;;  %v13460_v35 = vmax.f32 %v10965_v4, 0.0 }
 0x2af   :  { %7248 = vst.msk [vmem:[%s13155_s4 + $0xc8] sm:$0xff] %vm4911_vm7, %v7148_v1  ;;  %v6382_v29 = vsel %vm4911_vm7, %v4865_v31, -inf  ;;  %v5154_v47 = vmax.f32 %v5152_v30, %v5153_v17  ;;  %v6399_v28 = vrot.slane %v6398_v13, 2  ;;  %v6406_v55 = vrot.slane %v6405_v15, 2 }
 0x2b0   :  { %v4866_v44 = vmul.f32 %v8312_v18, %v13460_v35  ;;  %v6383_v61 = vrot.slane %v6382_v29, 4  ;;  %v5602_v33 = vmax.f32 %v5600_v22, %v5601_v36  ;;  %v1556_v49 = vadd.f32 %v11914_v48, %v1555_v37  ;;  %v1174_v37 = vpop.f32.mrf.mxu0 }
 0x2b1   :  { %v6045_v38 = vmax.f32 %v6043_v24, %v6044_v59  ;;  %v5155_v25 = vrot.slane %v5154_v47, 1  ;;  %v6400_v9 = vmax.f32 %v6398_v13, %v6399_v28  ;;  %v1748_v30 = vadd.f32 %v11914_v48, %v1747_v0  ;;  %v1366_v24 = vpop.f32.mrf.mxu1 }
 0x2b2   :  { %v6389_v45 = vsel %vm4911_vm7, %v4866_v44, -inf  ;;  %v6384_v60 = vmax.f32 %v6382_v29, %v6383_v61  ;;  %v5603_v4 = vrot.slane %v5602_v33, 1  ;;  %v1999_v14 = vmax.f32 %v1556_v49, 0.0  ;;  %v69_v49 = vld [vmem:[%s13152_s0 + $0x1a0] sm:$0xff] }
 0x2b3   :  { %v6390_v18 = vrot.slane %v6389_v45, 4  ;;  %v5156_v11 = vmax.f32 %v5154_v47, %v5155_v25  ;;  %v6401_v31 = vrot.slane %v6400_v9, 1  ;;  %v6407_v1 = vmax.f32 %v6405_v15, %v6406_v55  ;;  %7312 = vmatmul.msk.f32.gmra.mxu0 %vm279_vm1, %v69_v49 }
 0x2b4   :  { %v6385_v17 = vrot.slane %v6384_v60, 2  ;;  %v5604_v22 = vmax.f32 %v5602_v33, %v5603_v4  ;;  %v13461_v35 = vunpack.i.l.bf16 %v11552_v53  ;;  %v2063_v8 = vmax.f32 %v1748_v30, 0.0  ;;  %v261_v4 = vld [vmem:[%s13152_s0 + $0x7a0] sm:$0xff] }
 0x2b5   :  { %v6391_v36 = vmax.f32 %v6389_v45, %v6390_v18  ;;  %v12075_v59 = vsel %vm6960_vm3, %v6045_v38, %v12003_v27  ;;  %v12079_v13 = vsel %vm6962_vm6, %v5156_v11, %v12025_v5  ;;  %v8366_v29 = vunpack.i.l.bf16 %v12057_v40  ;;  %v8330_v45 = vpop.permute.xlu1 %8329  ;;  %v197_v38 = vld [vmem:[%s13152_s0 + $0x5a0] sm:$0xff]  ;;  %7504 = vmatmul.msk.f32.gmra.mxu3 %vm279_vm1, %v261_v4 }
 0x2b6   :  { %v4817_v44 = vmul.f32 %v13461_v35, %v1999_v14  ;;  %v6386_v15 = vmax.f32 %v6384_v60, %v6385_v17  ;;  %v12084_v47 = vsel %vm6962_vm6, %v5604_v22, %v12029_v20  ;;  %v4881_v61 = vmul.f32 %v8351_v26, %v2063_v8  ;;  %v133_v20 = vld [vmem:[%s13152_s0 + $0x3a0] sm:$0xff]  ;;  %7440 = vmatmul.msk.f32.gmra.mxu2 %vm279_vm1, %v197_v38 }
 0x2b7   :  { %v6392_v28 = vrot.slane %v6391_v36, 2  ;;  %v1175_v33 = vadd.f32 %v11914_v48, %v1174_v37  ;;  %v1367_v5 = vadd.f32 %v11914_v48, %v1366_v24  ;;  %v6402_v26 = vmax.f32 %v6400_v9, %v6401_v31  ;;  %7376 = vmatmul.msk.f32.gmra.mxu1 %vm279_vm1, %v133_v20 }
 0x2b8   :  { %v6046_v55 = vsel %vm4911_vm7, %v4817_v44, -inf  ;;  %v6387_v0 = vrot.slane %v6386_v15, 1  ;;  %v6408_v8 = vrot.slane %v6407_v1, 1  ;;  %v6494_v60 = vsel %vm4911_vm7, %v4881_v61, -inf }
 0x2b9   :  { %v6047_v27 = vrot.slane %v6046_v55, 4  ;;  %v6393_v25 = vmax.f32 %v6391_v36, %v6392_v28  ;;  %v6495_v30 = vrot.slane %v6494_v60, 4  ;;  %v1872_v11 = vmax.f32 %v1175_v33, 0.0 }
 0x2ba   :  { %v6388_v18 = vmax.f32 %v6386_v15, %v6387_v0  ;;  %v1936_v31 = vmax.f32 %v1367_v5, 0.0  ;;  %v8332_v17 = vunpack.i.h.bf16 %v8330_v45  ;;  %v8331_v22 = vunpack.i.l.bf16 %v8330_v45  ;;  %v8325_v5 = vpop.permute.xlu0 %8324 }
 0x2bb   :  { %v6048_v14 = vmax.f32 %v6046_v55, %v6047_v27  ;;  %v6394_v9 = vrot.slane %v6393_v25, 1  ;;  %v6496_v44 = vmax.f32 %v6494_v60, %v6495_v30  ;;  %v13462_v37 = vunpack.i.h.bf16 %v13453_v46  ;;  %v12121_v60 = vpop.permute.xlu2 %8379 }
 0x2bc   :  { %v7150_v36 = vsel %vm6962_vm6, %v6388_v18, %v11858_v52  ;;  %v13463_v28 = vunpack.i.h.bf16 %v13455_v62  ;;  %v13464_v61 = vmax.f32 %v11568_v32, 0.0  ;;  %v13465_v27 = vmax.f32 %v11635_v43, 0.0 }
 0x2bd   :  { %v6049_v35 = vrot.slane %v6048_v14, 2  ;;  %v4690_v24 = vmul.f32 %v13462_v37, %v1872_v11  ;;  %v6395_v15 = vmax.f32 %v6393_v25, %v6394_v9  ;;  %v6409_v45 = vmax.f32 %v6407_v1, %v6408_v8  ;;  %v1558_v37 = vpop.f32.mrf.mxu2 }
 0x2be   :  { %v4754_v55 = vmul.f32 %v13463_v28, %v1936_v31  ;;  %v4873_v0 = vmul.f32 %v8331_v22, %v13464_v61  ;;  %v4874_v33 = vmul.f32 %v8332_v17, %v13465_v27  ;;  %v6497_v20 = vrot.slane %v6496_v44, 2 }
 0x2bf   :  { %v6050_v49 = vmax.f32 %v6048_v14, %v6049_v35  ;;  %v5157_v52 = vsel %vm4911_vm7, %v4690_v24, -inf  ;;  %v7151_v38 = vsel %vm6964_vm10, %v6395_v15, %v7150_v36  ;;  %v8327_v18 = vunpack.i.h.bf16 %v8325_v5  ;;  %v1750_v24 = vpop.f32.mrf.mxu3 }
 0x2c0   :  { %v5158_v46 = vrot.slane %v5157_v52, 4  ;;  %v5605_v25 = vsel %vm4911_vm7, %v4754_v55, -inf  ;;  %v6438_v62 = vsel %vm4911_vm7, %v4873_v0, -inf  ;;  %v7152_v32 = vsel %vm6966_vm14, %v6402_v26, %v7151_v38 }
 0x2c1   :  { %v6051_v4 = vrot.slane %v6050_v49, 1  ;;  %v5606_v43 = vrot.slane %v5605_v25, 4  ;;  %v7153_v1 = vsel %vm6968_vm8, %v6409_v45, %v7152_v32  ;;  %v6439_v14 = vrot.slane %v6438_v62, 4 }
 0x2c2   :  { %v5159_v8 = vmax.f32 %v5157_v52, %v5158_v46  ;;  %v6445_v30 = vsel %vm4911_vm7, %v4874_v33, -inf  ;;  %v7154_v11 = vsel %vm6970_vm9, %v11869_v12, %v7153_v1  ;;  %v8382_v17 = vunpack.i.h.bf16 %v12121_v60 }
 0x2c3   :  { %v6052_v9 = vmax.f32 %v6050_v49, %v6051_v4  ;;  %v5607_v31 = vmax.f32 %v5605_v25, %v5606_v43  ;;  %v7155_v22 = vsel %vm6972_vm4, %v11864_v16, %v7154_v11  ;;  %v6440_v36 = vmax.f32 %v6438_v62, %v6439_v14  ;;  %v262_v62 = vld [vmem:[%s13152_s0 + $0x7a8] sm:$0xff] }
 0x2c4   :  { %v5160_v26 = vrot.slane %v5159_v8, 2  ;;  %v6446_v35 = vrot.slane %v6445_v30, 4  ;;  %7249 = vst.msk [vmem:[%s13155_s4 + $0xd0] sm:$0xff] %vm4911_vm7, %v7155_v22  ;;  %v6498_v15 = vmax.f32 %v6496_v44, %v6497_v20  ;;  %v8326_v55 = vunpack.i.l.bf16 %v8325_v5  ;;  %v134_v44 = vld [vmem:[%s13152_s0 + $0x3a8] sm:$0xff]  ;;  %7505 = vmatmul.msk.f32.gmra.mxu3 %vm279_vm1, %v262_v62 }
 0x2c5   :  { %v12138_v12 = vsel %vm6962_vm6, %v6052_v9, %v12075_v59  ;;  %v5608_v28 = vrot.slane %v5607_v31, 2  ;;  %v6441_v0 = vrot.slane %v6440_v36, 2  ;;  %v13466_v27 = vmax.f32 %v11487_v7, 0.0  ;;  %v70_v59 = vld [vmem:[%s13152_s0 + $0x1a8] sm:$0xff]  ;;  %7377 = vmatmul.msk.f32.gmra.mxu1 %vm279_vm1, %v134_v44 }
 0x2c6   :  { %v5161_v61 = vmax.f32 %v5159_v8, %v5160_v26  ;;  %v6447_v16 = vmax.f32 %v6445_v30, %v6446_v35  ;;  %v13467_v49 = vmax.f32 %v11392_v51, 0.0  ;;  %v1559_v38 = vadd.f32 %v11914_v48, %v1558_v37  ;;  %v198_v7 = vld [vmem:[%s13152_s0 + $0x5a8] sm:$0xff]  ;;  %7313 = vmatmul.msk.f32.gmra.mxu0 %vm279_vm1, %v70_v59 }
 0x2c7   :  { %v4872_v33 = vmul.f32 %v8327_v18, %v13466_v27  ;;  %v5609_v45 = vmax.f32 %v5607_v31, %v5608_v28  ;;  %v1751_v46 = vadd.f32 %v11914_v48, %v1750_v24  ;;  %v6442_v20 = vmax.f32 %v6440_v36, %v6441_v0  ;;  %7441 = vmatmul.msk.f32.gmra.mxu2 %vm279_vm1, %v198_v7  ;;  %v1177_v36 = vpop.f32.mrf.mxu0 }
 0x2c8   :  { %v4871_v52 = vmul.f32 %v8326_v55, %v13467_v49  ;;  %v5162_v5 = vrot.slane %v5161_v61, 1  ;;  %v6448_v51 = vrot.slane %v6447_v16, 2  ;;  %v2000_v18 = vmax.f32 %v1559_v38, 0.0  ;;  %v1369_v55 = vpop.f32.mrf.mxu1  ;;  %v8345_v49 = vpop.permute.xlu1 %8344 }
 0x2c9   :  { %v6431_v25 = vsel %vm4911_vm7, %v4872_v33, -inf  ;;  %v5610_v32 = vrot.slane %v5609_v45, 1  ;;  %v6499_v1 = vrot.slane %v6498_v15, 1  ;;  %v13468_v31 = vunpack.i.h.bf16 %v11552_v53 }
 0x2ca   :  { %v6424_v4 = vsel %vm4911_vm7, %v4871_v52, -inf  ;;  %v6432_v43 = vrot.slane %v6431_v25, 4  ;;  %v5163_v8 = vmax.f32 %v5161_v61, %v5162_v5  ;;  %v6449_v14 = vmax.f32 %v6447_v16, %v6448_v51 }
 0x2cb   :  { %v6425_v30 = vrot.slane %v6424_v4, 4  ;;  %v5611_v11 = vmax.f32 %v5609_v45, %v5610_v32  ;;  %v4818_v22 = vmul.f32 %v13468_v31, %v2000_v18  ;;  %v2064_v26 = vmax.f32 %v1751_v46, 0.0 }
 0x2cc   :  { %v6433_v9 = vmax.f32 %v6431_v25, %v6432_v43  ;;  %v12168_v35 = vsel %vm6964_vm10, %v5163_v8, %v12079_v13  ;;  %v8381_v37 = vunpack.i.l.bf16 %v12121_v60  ;;  %v6443_v24 = vrot.slane %v6442_v20, 1  ;;  %v13471_v8 = vld [vmem:[#allocation31_spill] sm:$0xff] }
 0x2cd   :  { %v6426_v28 = vmax.f32 %v6424_v4, %v6425_v30  ;;  %v12173_v61 = vsel %vm6964_vm10, %v5611_v11, %v12084_v47  ;;  %v6053_v16 = vsel %vm4911_vm7, %v4818_v22, -inf  ;;  %v4882_v53 = vmul.f32 %v8352_v63, %v2064_v26  ;;  %v13469_v4 = vld [vmem:[#allocation15_spill] sm:$0xff] }
 0x2ce   :  { %v6434_v0 = vrot.slane %v6433_v9, 2  ;;  %v12178_v27 = vmax.f32 %v6498_v15, %v6499_v1  ;;  %v6054_v13 = vrot.slane %v6053_v16, 4  ;;  %v1178_v45 = vadd.f32 %v11914_v48, %v1177_v36 }
 0x2cf   :  { %v6427_v33 = vrot.slane %v6426_v28, 2  ;;  %v6450_v52 = vrot.slane %v6449_v14, 1  ;;  %v6501_v46 = vsel %vm4911_vm7, %v4882_v53, -inf  ;;  %v1370_v47 = vadd.f32 %v11914_v48, %v1369_v55 }
 0x2d0   :  { %v6435_v38 = vmax.f32 %v6433_v9, %v6434_v0  ;;  %v6055_v44 = vmax.f32 %v6053_v16, %v6054_v13  ;;  %v6502_v7 = vrot.slane %v6501_v46, 4  ;;  %v1873_v5 = vmax.f32 %v1178_v45, 0.0 }
 0x2d1   :  { %v6428_v59 = vmax.f32 %v6426_v28, %v6427_v33  ;;  %v6444_v51 = vmax.f32 %v6442_v20, %v6443_v24  ;;  %v1937_v63 = vmax.f32 %v1370_v47, 0.0  ;;  %v8347_v15 = vunpack.i.h.bf16 %v8345_v49  ;;  %v12190_v24 = vpop.permute.xlu2 %8394  ;;  %v199_v47 = vld [vmem:[%s13152_s0 + $0x5b0] sm:$0xff] }
 0x2d2   :  { %v6436_v50 = vrot.slane %v6435_v38, 1  ;;  %v6056_v62 = vrot.slane %v6055_v44, 2  ;;  %v6503_v32 = vmax.f32 %v6501_v46, %v6502_v7  ;;  %v13470_v43 = vunpack.i.l.bf16 %v13469_v4  ;;  %v71_v46 = vld [vmem:[%s13152_s0 + $0x1b0] sm:$0xff]  ;;  %7442 = vmatmul.msk.f32.gmra.mxu2 %vm279_vm1, %v199_v47 }
 0x2d3   :  { %v6429_v25 = vrot.slane %v6428_v59, 1  ;;  %v13472_v30 = vunpack.i.l.bf16 %v13471_v8  ;;  %v8346_v9 = vunpack.i.l.bf16 %v8345_v49  ;;  %v4880_v31 = vmul.f32 %v8347_v15, %v2062_v34  ;;  %7314 = vmatmul.msk.f32.gmra.mxu0 %vm279_vm1, %v71_v46 }
 0x2d4   :  { %v4691_v18 = vmul.f32 %v13470_v43, %v1873_v5  ;;  %v6437_v1 = vmax.f32 %v6435_v38, %v6436_v50  ;;  %v6451_v22 = vmax.f32 %v6449_v14, %v6450_v52  ;;  %v6057_v20 = vmax.f32 %v6055_v44, %v6056_v62  ;;  %v8340_v14 = vpop.permute.xlu0 %8339  ;;  %v263_v50 = vld [vmem:[%s13152_s0 + $0x7b0] sm:$0xff]  ;;  %v1561_v43 = vpop.f32.mrf.mxu2 }
 0x2d5   :  { %v4755_v11 = vmul.f32 %v13472_v30, %v1937_v63  ;;  %v6430_v26 = vmax.f32 %v6428_v59, %v6429_v25  ;;  %v13473_v0 = vmax.f32 %v11965_v42, 0.0  ;;  %v6487_v53 = vsel %vm4911_vm7, %v4880_v31, -inf  ;;  %v135_v42 = vld [vmem:[%s13152_s0 + $0x3b0] sm:$0xff]  ;;  %7506 = vmatmul.msk.f32.gmra.mxu3 %vm279_vm1, %v263_v50 }
 0x2d6   :  { %v5164_v36 = vsel %vm4911_vm7, %v4691_v18, -inf  ;;  %v6058_v13 = vrot.slane %v6057_v20, 1  ;;  %v6504_v3 = vrot.slane %v6503_v32, 2  ;;  %v8397_v49 = vunpack.i.h.bf16 %v12190_v24  ;;  %7378 = vmatmul.msk.f32.gmra.mxu1 %vm279_vm1, %v135_v42 }
 0x2d7   :  { %v5165_v28 = vrot.slane %v5164_v36, 4  ;;  %v5612_v55 = vsel %vm4911_vm7, %v4755_v11, -inf  ;;  %v4879_v16 = vmul.f32 %v8346_v9, %v13473_v0  ;;  %v7156_v33 = vsel %vm6960_vm3, %v6437_v1, %v6430_v26 }
 0x2d8   :  { %v5613_v34 = vrot.slane %v5612_v55, 4  ;;  %v6488_v38 = vrot.slane %v6487_v53, 4  ;;  %v7157_v59 = vsel %vm6962_vm6, %v6444_v51, %v7156_v33  ;;  %v6059_v44 = vmax.f32 %v6057_v20, %v6058_v13 }
 0x2d9   :  { %v5166_v45 = vmax.f32 %v5164_v36, %v5165_v28  ;;  %v6480_v52 = vsel %vm4911_vm7, %v4879_v16, -inf  ;;  %v8396_v5 = vunpack.i.l.bf16 %v12190_v24  ;;  %v8342_v62 = vunpack.i.h.bf16 %v8340_v14 }
 0x2da   :  { %v5614_v7 = vmax.f32 %v5612_v55, %v5613_v34  ;;  %v6481_v15 = vrot.slane %v6480_v52, 4  ;;  %v6489_v25 = vmax.f32 %v6487_v53, %v6488_v38  ;;  %v12219_v51 = vsel %vm6964_vm10, %v6059_v44, %v12138_v12  ;;  %v1372_v44 = vpop.f32.mrf.mxu1 }
 0x2db   :  { %v5167_v63 = vrot.slane %v5166_v45, 2  ;;  %v6505_v18 = vmax.f32 %v6503_v32, %v6504_v3  ;;  %v8341_v30 = vunpack.i.l.bf16 %v8340_v14  ;;  %v13474_v26 = vmax.f32 %v11917_v10, 0.0  ;;  %v1753_v10 = vpop.f32.mrf.mxu3 }
 0x2dc   :  { %v5615_v1 = vrot.slane %v5614_v7, 2  ;;  %v6482_v9 = vmax.f32 %v6480_v52, %v6481_v15  ;;  %v6490_v31 = vrot.slane %v6489_v25, 2  ;;  %v7158_v36 = vsel %vm6964_vm10, %v6451_v22, %v7157_v59  ;;  %v1180_v59 = vpop.f32.mrf.mxu0 }
 0x2dd   :  { %v5168_v11 = vmax.f32 %v5166_v45, %v5167_v63  ;;  %v4878_v20 = vmul.f32 %v8342_v62, %v13474_v26  ;;  %v13475_v55 = vmax.f32 %v11788_v2, 0.0  ;;  %v1562_v16 = vadd.f32 %v11914_v48, %v1561_v43 }
 0x2de   :  { %v5616_v28 = vmax.f32 %v5614_v7, %v5615_v1  ;;  %v6483_v12 = vrot.slane %v6482_v9, 2  ;;  %v6491_v33 = vmax.f32 %v6489_v25, %v6490_v31  ;;  %v6506_v13 = vrot.slane %v6505_v18, 1 }
 0x2df   :  { %v4877_v0 = vmul.f32 %v8341_v30, %v13475_v55  ;;  %v5169_v53 = vrot.slane %v5168_v11, 1  ;;  %v6473_v32 = vsel %vm4911_vm7, %v4878_v20, -inf  ;;  %v7159_v42 = vsel %vm6966_vm14, %v11934_v56, %v7158_v36  ;;  %v72_v30 = vld [vmem:[%s13152_s0 + $0x1b8] sm:$0xff]  ;;  %v12253_v20 = vpop.permute.xlu2 %8409 }
 0x2e0   :  { %v5617_v3 = vrot.slane %v5616_v28, 1  ;;  %v6474_v14 = vrot.slane %v6473_v32, 4  ;;  %v6484_v52 = vmax.f32 %v6482_v9, %v6483_v12  ;;  %v6492_v22 = vrot.slane %v6491_v33, 1  ;;  %7315 = vmatmul.msk.f32.gmra.mxu0 %vm279_vm1, %v72_v30  ;;  %v264_v36 = vld [vmem:[%s13152_s0 + $0x7b8] sm:$0xff] }
 0x2e1   :  { %v6466_v34 = vsel %vm4911_vm7, %v4877_v0, -inf  ;;  %v5170_v45 = vmax.f32 %v5168_v11, %v5169_v53  ;;  %v2001_v47 = vmax.f32 %v1562_v16, 0.0  ;;  %v13476_v43 = vunpack.i.l.bf16 %v11534_v21  ;;  %v200_v11 = vld [vmem:[%s13152_s0 + $0x5b8] sm:$0xff]  ;;  %7507 = vmatmul.msk.f32.gmra.mxu3 %vm279_vm1, %v264_v36 }
 0x2e2   :  { %v6467_v38 = vrot.slane %v6466_v34, 4  ;;  %v5618_v46 = vmax.f32 %v5616_v28, %v5617_v3  ;;  %v6475_v2 = vmax.f32 %v6473_v32, %v6474_v14  ;;  %v6485_v50 = vrot.slane %v6484_v52, 1  ;;  %7443 = vmatmul.msk.f32.gmra.mxu2 %vm279_vm1, %v200_v11  ;;  %v12268_v3 = vpop.permute.xlu1 %8359 }
 0x2e3   :  { %v12233_v7 = vsel %vm6966_vm14, %v5170_v45, %v12168_v35  ;;  %v6493_v63 = vmax.f32 %v6491_v33, %v6492_v22  ;;  %v4819_v1 = vmul.f32 %v13476_v43, %v2001_v47  ;;  %v1754_v56 = vadd.f32 %v11914_v48, %v1753_v10  ;;  %v136_v35 = vld [vmem:[%s13152_s0 + $0x3b8] sm:$0xff] }
 0x2e4   :  { %v6468_v15 = vmax.f32 %v6466_v34, %v6467_v38  ;;  %v12237_v25 = vsel %vm6966_vm14, %v5618_v46, %v12173_v61  ;;  %v6476_v62 = vrot.slane %v6475_v2, 2  ;;  %v6486_v61 = vmax.f32 %v6484_v52, %v6485_v50  ;;  %7379 = vmatmul.msk.f32.gmra.mxu1 %vm279_vm1, %v136_v35  ;;  %v8355_v34 = vpop.permute.xlu0 %8354  ;;  %v1564_v46 = vpop.f32.mrf.mxu2 }
 0x2e5   :  { %v1181_v31 = vadd.f32 %v11914_v48, %v1180_v59  ;;  %v1373_v26 = vadd.f32 %v11914_v48, %v1372_v44  ;;  %v12260_v28 = vmax.f32 %v6505_v18, %v6506_v13  ;;  %v7160_v0 = vsel %vm6968_vm8, %v11938_v41, %v7159_v42  ;;  %v1756_v50 = vpop.f32.mrf.mxu3 }
 0x2e6   :  { %v6469_v9 = vrot.slane %v6468_v15, 2  ;;  %v6477_v55 = vmax.f32 %v6475_v2, %v6476_v62  ;;  %v6060_v16 = vsel %vm4911_vm7, %v4819_v1, -inf  ;;  %v7163_v53 = vsel %vm6960_vm3, %v6493_v63, %v6486_v61  ;;  %v1183_v61 = vpop.f32.mrf.mxu0 }
 0x2e7   :  { %v6061_v33 = vrot.slane %v6060_v16, 4  ;;  %v1874_v32 = vmax.f32 %v1181_v31, 0.0  ;;  %v2065_v13 = vmax.f32 %v1754_v56, 0.0  ;;  %v1938_v14 = vmax.f32 %v1373_v26, 0.0 }
 0x2e8   :  { %v6470_v12 = vmax.f32 %v6468_v15, %v6469_v9  ;;  %v6478_v18 = vrot.slane %v6477_v55, 1  ;;  %v12273_v41 = vsel %vm6962_vm6, %v12178_v27, %v7163_v53  ;;  %v13477_v22 = vunpack.i.h.bf16 %v13469_v4  ;;  %v1375_v9 = vpop.f32.mrf.mxu1 }
 0x2e9   :  { %v6062_v52 = vmax.f32 %v6060_v16, %v6061_v33  ;;  %v13478_v42 = vunpack.i.h.bf16 %v13471_v8  ;;  %v8362_v59 = vunpack.i.h.bf16 %v12268_v3  ;;  %v8356_v44 = vunpack.i.l.bf16 %v8355_v34 }
 0x2ea   :  { %v6471_v45 = vrot.slane %v6470_v12, 1  ;;  %v4692_v38 = vmul.f32 %v13477_v22, %v1874_v32  ;;  %v6479_v2 = vmax.f32 %v6477_v55, %v6478_v18  ;;  %v8357_v27 = vunpack.i.h.bf16 %v8355_v34 }
 0x2eb   :  { %v4756_v47 = vmul.f32 %v13478_v42, %v1938_v14  ;;  %v6063_v15 = vrot.slane %v6062_v52, 2  ;;  %v4883_v56 = vmul.f32 %v8356_v44, %v2065_v13  ;;  %v1565_v4 = vadd.f32 %v11914_v48, %v1564_v46  ;;  %v137_v46 = vld [vmem:[%s13152_s0 + $0x3c0] sm:$0xff] }
 0x2ec   :  { %v6472_v63 = vmax.f32 %v6470_v12, %v6471_v45  ;;  %v5171_v62 = vsel %vm4911_vm7, %v4692_v38, -inf  ;;  %v1757_v11 = vadd.f32 %v11914_v48, %v1756_v50  ;;  %v13479_v32 = vunpack.i.h.bf16 %v11534_v21  ;;  %v73_v38 = vld [vmem:[%s13152_s0 + $0x1c0] sm:$0xff]  ;;  %7380 = vmatmul.msk.f32.gmra.mxu1 %vm279_vm1, %v137_v46 }
 0x2ed   :  { %v5172_v43 = vrot.slane %v5171_v62, 4  ;;  %v5619_v1 = vsel %vm4911_vm7, %v4756_v47, -inf  ;;  %v6064_v35 = vmax.f32 %v6062_v52, %v6063_v15  ;;  %v6508_v36 = vsel %vm4911_vm7, %v4883_v56, -inf  ;;  %v201_v21 = vld [vmem:[%s13152_s0 + $0x5c0] sm:$0xff]  ;;  %7316 = vmatmul.msk.f32.gmra.mxu0 %vm279_vm1, %v73_v38 }
 0x2ee   :  { %v7161_v30 = vsel %vm6970_vm9, %v6472_v63, %v7160_v0  ;;  %v5620_v8 = vrot.slane %v5619_v1, 4  ;;  %v2002_v55 = vmax.f32 %v1565_v4, 0.0  ;;  %v6509_v0 = vrot.slane %v6508_v36, 4  ;;  %v265_v44 = vld [vmem:[%s13152_s0 + $0x7c0] sm:$0xff]  ;;  %7444 = vmatmul.msk.f32.gmra.mxu2 %vm279_vm1, %v201_v21  ;;  %v1759_v21 = vpop.f32.mrf.mxu3 }
 0x2ef   :  { %v7162_v31 = vsel %vm6972_vm4, %v6479_v2, %v7161_v30  ;;  %v5173_v26 = vmax.f32 %v5171_v62, %v5172_v43  ;;  %v6065_v16 = vrot.slane %v6064_v35, 1  ;;  %v2066_v12 = vmax.f32 %v1757_v11, 0.0  ;;  %7508 = vmatmul.msk.f32.gmra.mxu3 %vm279_vm1, %v265_v44  ;;  %v13482_v30 = vld [vmem:[#allocation43_spill] sm:$0xff] }
 0x2f0   :  { %7250 = vst.msk [vmem:[%s13155_s4 + $0xd8] sm:$0xff] %vm4911_vm7, %v7162_v31  ;;  %v5621_v53 = vmax.f32 %v5619_v1, %v5620_v8  ;;  %v4820_v34 = vmul.f32 %v13479_v32, %v2002_v55  ;;  %v1184_v18 = vadd.f32 %v11914_v48, %v1183_v61  ;;  %v1376_v13 = vadd.f32 %v11914_v48, %v1375_v9  ;;  %v13480_v1 = vld [vmem:[#allocation14_spill] sm:$0xff] }
 0x2f1   :  { %v5174_v33 = vrot.slane %v5173_v26, 2  ;;  %v6066_v14 = vmax.f32 %v6064_v35, %v6065_v16  ;;  %v6510_v52 = vmax.f32 %v6508_v36, %v6509_v0  ;;  %v4884_v22 = vmul.f32 %v8357_v27, %v2066_v12  ;;  %v12324_v16 = vpop.permute.xlu1 %8374 }
 0x2f2   :  { %v5622_v45 = vrot.slane %v5621_v53, 2  ;;  %v6067_v42 = vsel %vm4911_vm7, %v4820_v34, -inf  ;;  %v1875_v48 = vmax.f32 %v1184_v18, 0.0  ;;  %v1939_v47 = vmax.f32 %v1376_v13, 0.0 }
 0x2f3   :  { %v5175_v2 = vmax.f32 %v5173_v26, %v5174_v33  ;;  %v12312_v50 = vsel %vm6966_vm14, %v6066_v14, %v12219_v51  ;;  %v6511_v15 = vrot.slane %v6510_v52, 2  ;;  %v6068_v62 = vrot.slane %v6067_v42, 4  ;;  %v12333_v14 = vpop.permute.xlu0 %8369 }
 0x2f4   :  { %v5623_v63 = vmax.f32 %v5621_v53, %v5622_v45  ;;  %v6515_v43 = vsel %vm4911_vm7, %v4884_v22, -inf  ;;  %v13481_v56 = vunpack.i.l.bf16 %v13480_v1  ;;  %v13483_v35 = vunpack.i.l.bf16 %v13482_v30  ;;  %v1567_v45 = vpop.f32.mrf.mxu2 }
 0x2f5   :  { %v5176_v27 = vrot.slane %v5175_v2, 1  ;;  %v6512_v61 = vmax.f32 %v6510_v52, %v6511_v15  ;;  %v6069_v51 = vmax.f32 %v6067_v42, %v6068_v62  ;;  %v6516_v9 = vrot.slane %v6515_v43, 4 }
 0x2f6   :  { %v4693_v4 = vmul.f32 %v13481_v56, %v1875_v48  ;;  %v4757_v8 = vmul.f32 %v13483_v35, %v1939_v47  ;;  %v5624_v11 = vrot.slane %v5623_v63, 1  ;;  %v8361_v26 = vunpack.i.l.bf16 %v12268_v3  ;;  %v138_v35 = vld [vmem:[%s13152_s0 + $0x3c8] sm:$0xff]  ;;  %v76_v3 = vld [vmem:[%s13152_s0 + $0x1d8] sm:$0xff] }
 0x2f7   :  { %v5177_v31 = vmax.f32 %v5175_v2, %v5176_v27  ;;  %v6513_v0 = vrot.slane %v6512_v61, 1  ;;  %v6070_v12 = vrot.slane %v6069_v51, 2  ;;  %v6517_v33 = vmax.f32 %v6515_v43, %v6516_v9  ;;  %v1186_v2 = vpop.f32.mrf.mxu0  ;;  %7381 = vmatmul.msk.f32.gmra.mxu1 %vm279_vm1, %v138_v35  ;;  %v1762_v35 = vpop.f32.mrf.mxu3 }
 0x2f8   :  { %v5178_v36 = vsel %vm4911_vm7, %v4693_v4, -inf  ;;  %v5626_v55 = vsel %vm4911_vm7, %v4757_v8, -inf  ;;  %v5625_v53 = vmax.f32 %v5623_v63, %v5624_v11  ;;  %v7165_v34 = vsel %vm6964_vm10, %v12260_v28, %v12273_v41  ;;  %v1378_v28 = vpop.f32.mrf.mxu1  ;;  %v74_v4 = vld [vmem:[%s13152_s0 + $0x1c8] sm:$0xff] }
 0x2f9   :  { %v12328_v32 = vsel %vm6968_vm8, %v5177_v31, %v12233_v7  ;;  %v5179_v18 = vrot.slane %v5178_v36, 4  ;;  %v5627_v13 = vrot.slane %v5626_v55, 4  ;;  %v6071_v22 = vmax.f32 %v6069_v51, %v6070_v12  ;;  %v202_v8 = vld [vmem:[%s13152_s0 + $0x5c8] sm:$0xff]  ;;  %7317 = vmatmul.msk.f32.gmra.mxu0 %vm279_vm1, %v74_v4 }
 0x2fa   :  { %v7055_v52 = vsel %vm6968_vm8, %v5625_v53, %v12237_v25  ;;  %v6518_v38 = vrot.slane %v6517_v33, 2  ;;  %v8377_v46 = vunpack.i.h.bf16 %v12324_v16  ;;  %v6514_v7 = vmax.f32 %v6512_v61, %v6513_v0  ;;  %v12343_v25 = vld [vmem:[%s13154_s3] ss:$0 sm:$0xff]  ;;  %v266_v31 = vld [vmem:[%s13152_s0 + $0x7c8] sm:$0xff]  ;;  %7445 = vmatmul.msk.f32.gmra.mxu2 %vm279_vm1, %v202_v8 }
 0x2fb   :  { %v5180_v42 = vmax.f32 %v5178_v36, %v5179_v18  ;;  %v5628_v48 = vmax.f32 %v5626_v55, %v5627_v13  ;;  %v8376_v47 = vunpack.i.l.bf16 %v12324_v16  ;;  %v6072_v41 = vrot.slane %v6071_v22, 1  ;;  %7509 = vmatmul.msk.f32.gmra.mxu3 %vm279_vm1, %v266_v31  ;;  %v75_v31 = vld [vmem:[%s13152_s0 + $0x1d0] sm:$0xff] }
 0x2fc   :  { %v6519_v44 = vmax.f32 %v6517_v33, %v6518_v38  ;;  %v8372_v63 = vunpack.i.h.bf16 %v12333_v14  ;;  %v1568_v15 = vadd.f32 %v12343_v25, %v1567_v45  ;;  %v1760_v43 = vadd.f32 %v12343_v25, %v1759_v21  ;;  %v1570_v4 = vpop.f32.mrf.mxu2 }
 0x2fd   :  { %v5181_v62 = vrot.slane %v5180_v42, 2  ;;  %v5629_v27 = vrot.slane %v5628_v48, 2  ;;  %v1187_v56 = vadd.f32 %v12343_v25, %v1186_v2  ;;  %v6073_v11 = vmax.f32 %v6071_v22, %v6072_v41 }
 0x2fe   :  { %v6520_v61 = vrot.slane %v6519_v44, 1  ;;  %v2003_v51 = vmax.f32 %v1568_v15, 0.0  ;;  %v1379_v9 = vadd.f32 %v12343_v25, %v1378_v28  ;;  %v2067_v53 = vmax.f32 %v1760_v43, 0.0 }
 0x2ff   :  { %v5182_v36 = vmax.f32 %v5180_v42, %v5181_v62  ;;  %v5630_v55 = vmax.f32 %v5628_v48, %v5629_v27  ;;  %v1876_v0 = vmax.f32 %v1187_v56, 0.0  ;;  %v12367_v12 = vsel %vm6968_vm8, %v6073_v11, %v12312_v50  ;;  %v12379_v56 = vpop.permute.xlu1 %8389 }
 0x300   :  { %v6521_v33 = vmax.f32 %v6519_v44, %v6520_v61  ;;  %v13484_v18 = vunpack.i.l.bf16 %v11282_v57  ;;  %v1940_v45 = vmax.f32 %v1379_v9, 0.0  ;;  %v4885_v21 = vmul.f32 %v8361_v26, %v2067_v53  ;;  %v1381_v9 = vpop.f32.mrf.mxu1 }
 0x301   :  { %v5183_v22 = vrot.slane %v5182_v36, 1  ;;  %v5631_v38 = vrot.slane %v5630_v55, 1  ;;  %v13485_v2 = vunpack.i.h.bf16 %v13480_v1  ;;  %v7166_v48 = vsel %vm6966_vm14, %v6514_v7, %v7165_v34  ;;  %7318 = vmatmul.msk.f32.gmra.mxu0 %vm279_vm1, %v75_v31 }
 0x302   :  { %v4821_v13 = vmul.f32 %v13484_v18, %v2003_v51  ;;  %v8371_v28 = vunpack.i.l.bf16 %v12333_v14  ;;  %v13486_v50 = vunpack.i.h.bf16 %v13482_v30  ;;  %v6522_v43 = vsel %vm4911_vm7, %v4885_v21, -inf  ;;  %v1189_v51 = vpop.f32.mrf.mxu0  ;;  %v267_v18 = vld [vmem:[%s13152_s0 + $0x7d0] sm:$0xff]  ;;  %v144_v14 = vld [vmem:[%s13152_s0 + $0x3f8] sm:$0xff] }
 0x303   :  { %v4694_v42 = vmul.f32 %v13485_v2, %v1876_v0  ;;  %v5184_v44 = vmax.f32 %v5182_v36, %v5183_v22  ;;  %v5632_v62 = vmax.f32 %v5630_v55, %v5631_v38  ;;  %v12382_v26 = vsel %vm6968_vm8, %v6521_v33, %v7166_v48  ;;  %v139_v36 = vld [vmem:[%s13152_s0 + $0x3d0] sm:$0xff]  ;;  %v12404_v33 = vpop.permute.xlu0 %8384  ;;  %7510 = vmatmul.msk.f32.gmra.mxu3 %vm279_vm1, %v267_v18 }
 0x304   :  { %v6074_v41 = vsel %vm4911_vm7, %v4821_v13, -inf  ;;  %v4758_v15 = vmul.f32 %v13486_v50, %v1940_v45  ;;  %v6523_v1 = vrot.slane %v6522_v43, 4  ;;  %v8391_v0 = vunpack.i.l.bf16 %v12379_v56  ;;  %7382 = vmatmul.msk.f32.gmra.mxu1 %vm279_vm1, %v139_v36  ;;  %v13488_v36 = vld [vmem:[#allocation5_spill] sm:$0xff] }
 0x305   :  { %v6075_v27 = vrot.slane %v6074_v41, 4  ;;  %v5185_v34 = vsel %vm4911_vm7, %v4694_v42, -inf  ;;  %v12388_v30 = vsel %vm6970_vm9, %v5184_v44, %v12328_v32  ;;  %v12391_v8 = vsel %vm6970_vm9, %v5632_v62, %v7055_v52  ;;  %v203_v32 = vld [vmem:[%s13152_s0 + $0x5d0] sm:$0xff] }
 0x306   :  { %v5633_v7 = vsel %vm4911_vm7, %v4758_v15, -inf  ;;  %v5186_v61 = vrot.slane %v5185_v34, 4  ;;  %v6524_v55 = vmax.f32 %v6522_v43, %v6523_v1  ;;  %v8392_v52 = vunpack.i.h.bf16 %v12379_v56  ;;  %7446 = vmatmul.msk.f32.gmra.mxu2 %vm279_vm1, %v203_v32  ;;  %v13490_v32 = vld [vmem:[#allocation42_spill] sm:$0xff] }
 0x307   :  { %v6076_v11 = vmax.f32 %v6074_v41, %v6075_v27  ;;  %v5634_v53 = vrot.slane %v5633_v7, 4  ;;  %v1571_v22 = vadd.f32 %v12343_v25, %v1570_v4  ;;  %v1763_v38 = vadd.f32 %v12343_v25, %v1762_v35 }
 0x308   :  { %v5187_v45 = vmax.f32 %v5185_v34, %v5186_v61  ;;  %v6525_v21 = vrot.slane %v6524_v55, 2  ;;  %v1190_v42 = vadd.f32 %v12343_v25, %v1189_v51  ;;  %v1382_v48 = vadd.f32 %v12343_v25, %v1381_v9 }
 0x309   :  { %v6077_v13 = vrot.slane %v6076_v11, 2  ;;  %v5635_v2 = vmax.f32 %v5633_v7, %v5634_v53  ;;  %v2004_v15 = vmax.f32 %v1571_v22, 0.0  ;;  %v2068_v44 = vmax.f32 %v1763_v38, 0.0  ;;  %7319 = vmatmul.msk.f32.gmra.mxu0 %vm279_vm1, %v76_v3 }
 0x30a   :  { %v5188_v50 = vrot.slane %v5187_v45, 2  ;;  %v6526_v62 = vmax.f32 %v6524_v55, %v6525_v21  ;;  %v1877_v43 = vmax.f32 %v1190_v42, 0.0  ;;  %v1941_v1 = vmax.f32 %v1382_v48, 0.0 }
 0x30b   :  { %v6078_v41 = vmax.f32 %v6076_v11, %v6077_v13  ;;  %v5636_v27 = vrot.slane %v5635_v2, 2  ;;  %v13487_v35 = vunpack.i.h.bf16 %v11282_v57  ;;  %v4886_v7 = vmul.f32 %v8362_v59, %v2068_v44  ;;  %v140_v59 = vld [vmem:[%s13152_s0 + $0x3d8] sm:$0xff] }
 0x30c   :  { %v5189_v4 = vmax.f32 %v5187_v45, %v5188_v50  ;;  %v6527_v31 = vrot.slane %v6526_v62, 1  ;;  %v13489_v9 = vunpack.i.l.bf16 %v13488_v36  ;;  %v13491_v53 = vunpack.i.l.bf16 %v13490_v32  ;;  %7383 = vmatmul.msk.f32.gmra.mxu1 %vm279_vm1, %v140_v59  ;;  %v268_v44 = vld [vmem:[%s13152_s0 + $0x7d8] sm:$0xff] }
 0x30d   :  { %v6079_v34 = vrot.slane %v6078_v41, 1  ;;  %v4822_v61 = vmul.f32 %v13487_v35, %v2004_v15  ;;  %v5637_v51 = vmax.f32 %v5635_v2, %v5636_v27  ;;  %v6529_v45 = vsel %vm4911_vm7, %v4886_v7, -inf  ;;  %v204_v2 = vld [vmem:[%s13152_s0 + $0x5d8] sm:$0xff]  ;;  %7511 = vmatmul.msk.f32.gmra.mxu3 %vm279_vm1, %v268_v44 }
 0x30e   :  { %v4695_v11 = vmul.f32 %v13489_v9, %v1877_v43  ;;  %v4759_v18 = vmul.f32 %v13491_v53, %v1941_v1  ;;  %v5190_v13 = vrot.slane %v5189_v4, 1  ;;  %v6528_v38 = vmax.f32 %v6526_v62, %v6527_v31  ;;  %7447 = vmatmul.msk.f32.gmra.mxu2 %vm279_vm1, %v204_v2  ;;  %v1573_v31 = vpop.f32.mrf.mxu2  ;;  %v1765_v9 = vpop.f32.mrf.mxu3 }
 0x30f   :  { %v6080_v55 = vmax.f32 %v6078_v41, %v6079_v34  ;;  %v6081_v22 = vsel %vm4911_vm7, %v4822_v61, -inf  ;;  %v5638_v57 = vrot.slane %v5637_v51, 1  ;;  %v6530_v42 = vrot.slane %v6529_v45, 4  ;;  %v12450_v34 = vpop.permute.xlu0 %8399 }
 0x310   :  { %v6082_v21 = vrot.slane %v6081_v22, 4  ;;  %v5191_v41 = vmax.f32 %v5189_v4, %v5190_v13  ;;  %v5192_v50 = vsel %vm4911_vm7, %v4695_v11, -inf  ;;  %v5640_v15 = vsel %vm4911_vm7, %v4759_v18, -inf  ;;  %v1192_v18 = vpop.f32.mrf.mxu0 }
 0x311   :  { %v12438_v48 = vsel %vm6970_vm9, %v6080_v55, %v12367_v12  ;;  %v5639_v62 = vmax.f32 %v5637_v51, %v5638_v57  ;;  %v8387_v27 = vunpack.i.h.bf16 %v12404_v33  ;;  %v6531_v1 = vmax.f32 %v6529_v45, %v6530_v42  ;;  %v12448_v12 = vpop.permute.xlu1 %8404  ;;  %v1384_v55 = vpop.f32.mrf.mxu1 }
 0x312   :  { %v6083_v43 = vmax.f32 %v6081_v22, %v6082_v21  ;;  %v7001_v4 = vsel %vm6972_vm4, %v5191_v41, %v12388_v30  ;;  %v8386_v35 = vunpack.i.l.bf16 %v12404_v33  ;;  %v5193_v61 = vrot.slane %v5192_v50, 4 }
 0x313   :  { %v5641_v7 = vrot.slane %v5640_v15, 4  ;;  %v7168_v51 = vsel %vm6970_vm9, %v6528_v38, %v12382_v26  ;;  %7227 = vst.msk [vmem:[%s13155_s4 + $0x20] sm:$0xff] %vm4911_vm7, %v7001_v4  ;;  %v7057_v11 = vsel %vm6972_vm4, %v5639_v62, %v12391_v8  ;;  %v6532_v53 = vrot.slane %v6531_v1, 2 }
 0x314   :  { %v6084_v30 = vrot.slane %v6083_v43, 2  ;;  %7235 = vst.msk [vmem:[%s13155_s4 + $0x60] sm:$0xff] %vm4911_vm7, %v7057_v11  ;;  %v5194_v13 = vmax.f32 %v5192_v50, %v5193_v61  ;;  %v1574_v21 = vadd.f32 %v12343_v25, %v1573_v31  ;;  %v1766_v8 = vadd.f32 %v12343_v25, %v1765_v9  ;;  %v205_v31 = vld [vmem:[%s13152_s0 + $0x5e0] sm:$0xff] }
 0x315   :  { %v5642_v22 = vmax.f32 %v5640_v15, %v5641_v7  ;;  %v6533_v57 = vmax.f32 %v6531_v1, %v6532_v53  ;;  %v1193_v59 = vadd.f32 %v12343_v25, %v1192_v18  ;;  %v1385_v2 = vadd.f32 %v12343_v25, %v1384_v55  ;;  %v141_v1 = vld [vmem:[%s13152_s0 + $0x3e0] sm:$0xff] }
 0x316   :  { %v6085_v38 = vmax.f32 %v6083_v43, %v6084_v30  ;;  %v5195_v42 = vrot.slane %v5194_v13, 2  ;;  %v2005_v50 = vmax.f32 %v1574_v21, 0.0  ;;  %v2069_v15 = vmax.f32 %v1766_v8, 0.0  ;;  %v77_v43 = vld [vmem:[%s13152_s0 + $0x1e0] sm:$0xff]  ;;  %7384 = vmatmul.msk.f32.gmra.mxu1 %vm279_vm1, %v141_v1  ;;  %7448 = vmatmul.msk.f32.gmra.mxu2 %vm279_vm1, %v205_v31 }
 0x317   :  { %v5643_v3 = vrot.slane %v5642_v22, 2  ;;  %v6534_v44 = vrot.slane %v6533_v57, 1  ;;  %v1878_v61 = vmax.f32 %v1193_v59, 0.0  ;;  %v1942_v7 = vmax.f32 %v1385_v2, 0.0  ;;  %7320 = vmatmul.msk.f32.gmra.mxu0 %vm279_vm1, %v77_v43  ;;  %v269_v55 = vld [vmem:[%s13152_s0 + $0x7e0] sm:$0xff] }
 0x318   :  { %v6086_v41 = vrot.slane %v6085_v38, 1  ;;  %v5196_v62 = vmax.f32 %v5194_v13, %v5195_v42  ;;  %v13492_v30 = vunpack.i.l.bf16 %v11627_v39  ;;  %v4887_v18 = vmul.f32 %v8366_v29, %v2069_v15  ;;  %7512 = vmatmul.msk.f32.gmra.mxu3 %vm279_vm1, %v269_v55 }
 0x319   :  { %v5644_v4 = vmax.f32 %v5642_v22, %v5643_v3  ;;  %v6535_v11 = vmax.f32 %v6533_v57, %v6534_v44  ;;  %v13493_v21 = vunpack.i.h.bf16 %v13488_v36  ;;  %v12503_v2 = vpop.permute.xlu1 %8419  ;;  %v12505_v36 = vpop.permute.xlu0 %8414  ;;  %v13495_v10 = vunpack.i.h.bf16 %v11627_v39  ;;  %v206_v39 = vld [vmem:[%s13152_s0 + $0x5e8] sm:$0xff] }
 0x31a   :  { %v6087_v9 = vmax.f32 %v6085_v38, %v6086_v41  ;;  %v4823_v53 = vmul.f32 %v13492_v30, %v2005_v50  ;;  %v5197_v13 = vrot.slane %v5196_v62, 1  ;;  %v13494_v38 = vunpack.i.h.bf16 %v13490_v32  ;;  %v1576_v44 = vpop.f32.mrf.mxu2  ;;  %v1768_v50 = vpop.f32.mrf.mxu3 }
 0x31b   :  { %v5645_v22 = vrot.slane %v5644_v4, 1  ;;  %v4696_v8 = vmul.f32 %v13493_v21, %v1878_v61  ;;  %v7169_v42 = vsel %vm6972_vm4, %v6535_v11, %v7168_v51  ;;  %v6536_v59 = vsel %vm4911_vm7, %v4887_v18, -inf  ;;  %v1195_v30 = vpop.f32.mrf.mxu0 }
 0x31c   :  { %v4760_v57 = vmul.f32 %v13494_v38, %v1942_v7  ;;  %v7113_v29 = vsel %vm6972_vm4, %v6087_v9, %v12438_v48  ;;  %v6088_v3 = vsel %vm4911_vm7, %v4823_v53, -inf  ;;  %v6537_v41 = vrot.slane %v6536_v59, 4  ;;  %7251 = vst.msk [vmem:[%s13155_s4 + $0xe0] sm:$0xff] %vm4911_vm7, %v7169_v42  ;;  %v1387_v53 = vpop.f32.mrf.mxu1 }
 0x31d   :  { %7243 = vst.msk [vmem:[%s13155_s4 + $0xa0] sm:$0xff] %vm4911_vm7, %v7113_v29  ;;  %v6089_v51 = vrot.slane %v6088_v3, 4  ;;  %v12518_v15 = vmax.f32 %v5196_v62, %v5197_v13  ;;  %v12520_v61 = vmax.f32 %v5644_v4, %v5645_v22  ;;  %v5199_v7 = vsel %vm4911_vm7, %v4696_v8, -inf }
 0x31e   :  { %v5647_v43 = vsel %vm4911_vm7, %v4760_v57, -inf  ;;  %v6538_v31 = vmax.f32 %v6536_v59, %v6537_v41  ;;  %v5200_v9 = vrot.slane %v5199_v7, 4  ;;  %v8421_v18 = vunpack.i.l.bf16 %v12503_v2  ;;  %7449 = vmatmul.msk.f32.gmra.mxu2 %vm279_vm1, %v206_v39 }
 0x31f   :  { %v6090_v1 = vmax.f32 %v6088_v3, %v6089_v51  ;;  %v5648_v11 = vrot.slane %v5647_v43, 4  ;;  %v8416_v55 = vunpack.i.l.bf16 %v12505_v36  ;;  %v1577_v21 = vadd.f32 %v12343_v25, %v1576_v44 }
 0x320   :  { %v1769_v62 = vadd.f32 %v12343_v25, %v1768_v50  ;;  %v6539_v13 = vrot.slane %v6538_v31, 2  ;;  %v5201_v22 = vmax.f32 %v5199_v7, %v5200_v9  ;;  %v1196_v29 = vadd.f32 %v12343_v25, %v1195_v30  ;;  %v78_v30 = vld [vmem:[%s13152_s0 + $0x1e8] sm:$0xff] }
 0x321   :  { %v6091_v4 = vrot.slane %v6090_v1, 2  ;;  %v5649_v8 = vmax.f32 %v5647_v43, %v5648_v11  ;;  %v2006_v38 = vmax.f32 %v1577_v21, 0.0  ;;  %v1388_v42 = vadd.f32 %v12343_v25, %v1387_v53  ;;  %7321 = vmatmul.msk.f32.gmra.mxu0 %vm279_vm1, %v78_v30 }
 0x322   :  { %v2070_v57 = vmax.f32 %v1769_v62, 0.0  ;;  %v6540_v59 = vmax.f32 %v6538_v31, %v6539_v13  ;;  %v5202_v51 = vrot.slane %v5201_v22, 2  ;;  %v13496_v44 = vunpack.i.h.bf16 %v12057_v40  ;;  %v13497_v31 = vld [vmem:[#allocation17_spill] sm:$0xff] }
 0x323   :  { %v6092_v3 = vmax.f32 %v6090_v1, %v6091_v4  ;;  %v5650_v41 = vrot.slane %v5649_v8, 2  ;;  %v4824_v26 = vmul.f32 %v13495_v10, %v2006_v38  ;;  %v1879_v45 = vmax.f32 %v1196_v29, 0.0  ;;  %v142_v1 = vld [vmem:[%s13152_s0 + $0x3e8] sm:$0xff]  ;;  %v13499_v62 = vld [vmem:[#allocation33_spill] sm:$0xff]  ;;  %v1579_v29 = vpop.f32.mrf.mxu2 }
 0x324   :  { %v4888_v50 = vmul.f32 %v13496_v44, %v2070_v57  ;;  %v1943_v32 = vmax.f32 %v1388_v42, 0.0  ;;  %v6541_v43 = vrot.slane %v6540_v59, 1  ;;  %v5203_v9 = vmax.f32 %v5201_v22, %v5202_v51  ;;  %7385 = vmatmul.msk.f32.gmra.mxu1 %vm279_vm1, %v142_v1  ;;  %v270_v22 = vld [vmem:[%s13152_s0 + $0x7e8] sm:$0xff]  ;;  %v1771_v42 = vpop.f32.mrf.mxu3  ;;  %v1390_v39 = vpop.f32.mrf.mxu1 }
 0x325   :  { %v6093_v7 = vrot.slane %v6092_v3, 1  ;;  %v5651_v11 = vmax.f32 %v5649_v8, %v5650_v41  ;;  %v6095_v40 = vsel %vm4911_vm7, %v4824_v26, -inf  ;;  %v13498_v53 = vunpack.i.l.bf16 %v13497_v31  ;;  %7513 = vmatmul.msk.f32.gmra.mxu3 %vm279_vm1, %v270_v22 }
 0x326   :  { %v6543_v10 = vsel %vm4911_vm7, %v4888_v50, -inf  ;;  %v13500_v4 = vunpack.i.l.bf16 %v13499_v62  ;;  %v12556_v38 = vmax.f32 %v6540_v59, %v6541_v43  ;;  %v5204_v26 = vrot.slane %v5203_v9, 1 }
 0x327   :  { %v4697_v21 = vmul.f32 %v13498_v53, %v1879_v45  ;;  %v12554_v8 = vmax.f32 %v6092_v3, %v6093_v7  ;;  %v5652_v57 = vrot.slane %v5651_v11, 1  ;;  %v6096_v45 = vrot.slane %v6095_v40, 4  ;;  %v1198_v53 = vpop.f32.mrf.mxu0 }
 0x328   :  { %v4761_v13 = vmul.f32 %v13500_v4, %v1943_v32  ;;  %v6544_v32 = vrot.slane %v6543_v10, 4  ;;  %v5205_v44 = vmax.f32 %v5203_v9, %v5204_v26  ;;  %v1580_v30 = vadd.f32 %v12343_v25, %v1579_v29 }
 0x329   :  { %v5206_v51 = vsel %vm4911_vm7, %v4697_v21, -inf  ;;  %v5653_v50 = vmax.f32 %v5651_v11, %v5652_v57  ;;  %v6097_v59 = vmax.f32 %v6095_v40, %v6096_v45  ;;  %v1772_v1 = vadd.f32 %v12343_v25, %v1771_v42 }
 0x32a   :  { %v5654_v41 = vsel %vm4911_vm7, %v4761_v13, -inf  ;;  %v5207_v3 = vrot.slane %v5206_v51, 4  ;;  %v6545_v43 = vmax.f32 %v6543_v10, %v6544_v32  ;;  %v7002_v4 = vsel %vm6960_vm3, %v5205_v44, %v12518_v15 }
 0x32b   :  { %v5655_v7 = vrot.slane %v5654_v41, 4  ;;  %v7058_v21 = vsel %vm6960_vm3, %v5653_v50, %v12520_v61  ;;  %v6098_v9 = vrot.slane %v6097_v59, 2  ;;  %v2007_v26 = vmax.f32 %v1580_v30, 0.0 }
 0x32c   :  { %v5208_v22 = vmax.f32 %v5206_v51, %v5207_v3  ;;  %v6546_v11 = vrot.slane %v6545_v43, 2  ;;  %v2071_v57 = vmax.f32 %v1772_v1, 0.0  ;;  %v1199_v29 = vadd.f32 %v12343_v25, %v1198_v53 }
 0x32d   :  { %v5656_v13 = vmax.f32 %v5654_v41, %v5655_v7  ;;  %v1391_v42 = vadd.f32 %v12343_v25, %v1390_v39  ;;  %v6099_v45 = vmax.f32 %v6097_v59, %v6098_v9  ;;  %v13501_v48 = vunpack.i.l.bf16 %v11609_v58  ;;  %v79_v59 = vld [vmem:[%s13152_s0 + $0x1f0] sm:$0xff] }
 0x32e   :  { %v5209_v40 = vrot.slane %v5208_v22, 2  ;;  %v6547_v32 = vmax.f32 %v6545_v43, %v6546_v11  ;;  %v4889_v61 = vmul.f32 %v8371_v28, %v2071_v57  ;;  %v1880_v44 = vmax.f32 %v1199_v29, 0.0  ;;  %7322 = vmatmul.msk.f32.gmra.mxu0 %vm279_vm1, %v79_v59  ;;  %v1582_v59 = vpop.f32.mrf.mxu2 }
 0x32f   :  { %v5657_v10 = vrot.slane %v5656_v13, 2  ;;  %v4825_v15 = vmul.f32 %v13501_v48, %v2007_v26  ;;  %v1944_v50 = vmax.f32 %v1391_v42, 0.0  ;;  %v6100_v3 = vrot.slane %v6099_v45, 1  ;;  %v143_v48 = vld [vmem:[%s13152_s0 + $0x3f0] sm:$0xff] }
 0x330   :  { %v5210_v51 = vmax.f32 %v5208_v22, %v5209_v40  ;;  %v6548_v7 = vrot.slane %v6547_v32, 1  ;;  %v6550_v1 = vsel %vm4911_vm7, %v4889_v61, -inf  ;;  %7386 = vmatmul.msk.f32.gmra.mxu1 %vm279_vm1, %v143_v48  ;;  %v207_v22 = vld [vmem:[%s13152_s0 + $0x5f0] sm:$0xff]  ;;  %v13502_v26 = vunpack.i.h.bf16 %v13497_v31  ;;  %v1774_v48 = vpop.f32.mrf.mxu3 }
 0x331   :  { %v5658_v41 = vmax.f32 %v5656_v13, %v5657_v10  ;;  %v6102_v30 = vsel %vm4911_vm7, %v4825_v15, -inf  ;;  %v6551_v39 = vrot.slane %v6550_v1, 4  ;;  %v271_v13 = vld [vmem:[%s13152_s0 + $0x7f0] sm:$0xff]  ;;  %v6101_v9 = vmax.f32 %v6099_v45, %v6100_v3  ;;  %7450 = vmatmul.msk.f32.gmra.mxu2 %vm279_vm1, %v207_v22 }
 0x332   :  { %v5211_v43 = vrot.slane %v5210_v51, 1  ;;  %v6103_v53 = vrot.slane %v6102_v30, 4  ;;  %v6549_v11 = vmax.f32 %v6547_v32, %v6548_v7  ;;  %v4698_v57 = vmul.f32 %v13502_v26, %v1880_v44  ;;  %7514 = vmatmul.msk.f32.gmra.mxu3 %vm279_vm1, %v271_v13  ;;  %v1201_v44 = vpop.f32.mrf.mxu0 }
 0x333   :  { %v5659_v28 = vrot.slane %v5658_v41, 1  ;;  %v13503_v40 = vunpack.i.h.bf16 %v13499_v62  ;;  %v6552_v61 = vmax.f32 %v6550_v1, %v6551_v39  ;;  %v7114_v45 = vsel %vm6960_vm3, %v6101_v9, %v12554_v8 }
 0x334   :  { %v5212_v29 = vmax.f32 %v5210_v51, %v5211_v43  ;;  %v6104_v15 = vmax.f32 %v6102_v30, %v6103_v53  ;;  %v7170_v31 = vsel %vm6960_vm3, %v6549_v11, %v12556_v38  ;;  %v5213_v32 = vsel %vm4911_vm7, %v4698_v57, -inf }
 0x335   :  { %v4762_v10 = vmul.f32 %v13503_v40, %v1944_v50  ;;  %v5660_v42 = vmax.f32 %v5658_v41, %v5659_v28  ;;  %v1393_v50 = vpop.f32.mrf.mxu1  ;;  %v6553_v7 = vrot.slane %v6552_v61, 2  ;;  %v5214_v30 = vrot.slane %v5213_v32, 4 }
 0x336   :  { %v12603_v51 = vsel %vm6962_vm6, %v5212_v29, %v7002_v4  ;;  %v6105_v3 = vrot.slane %v6104_v15, 2  ;;  %v1583_v8 = vadd.f32 %v12343_v25, %v1582_v59  ;;  %v1775_v38 = vadd.f32 %v12343_v25, %v1774_v48  ;;  %v13505_v48 = vld [vmem:[#allocation16_spill] sm:$0xff] }
 0x337   :  { %v5661_v62 = vsel %vm4911_vm7, %v4762_v10, -inf  ;;  %v12606_v41 = vsel %vm6962_vm6, %v5660_v42, %v7058_v21  ;;  %v6554_v28 = vmax.f32 %v6552_v61, %v6553_v7  ;;  %v1202_v53 = vadd.f32 %v12343_v25, %v1201_v44 }
 0x338   :  { %v5662_v1 = vrot.slane %v5661_v62, 4  ;;  %v6106_v43 = vmax.f32 %v6104_v15, %v6105_v3  ;;  %v1394_v39 = vadd.f32 %v12343_v25, %v1393_v50  ;;  %v5215_v22 = vmax.f32 %v5213_v32, %v5214_v30  ;;  %7387 = vmatmul.msk.f32.gmra.mxu1 %vm279_vm1, %v144_v14 }
 0x339   :  { %v2008_v13 = vmax.f32 %v1583_v8, 0.0  ;;  %v2072_v9 = vmax.f32 %v1775_v38, 0.0  ;;  %v6555_v11 = vrot.slane %v6554_v28, 1  ;;  %v1881_v26 = vmax.f32 %v1202_v53, 0.0 }
 0x33a   :  { %v5663_v4 = vmax.f32 %v5661_v62, %v5662_v1  ;;  %v6107_v21 = vrot.slane %v6106_v43, 1  ;;  %v1945_v57 = vmax.f32 %v1394_v39, 0.0  ;;  %v5216_v40 = vrot.slane %v5215_v22, 2  ;;  %v13507_v62 = vld [vmem:[#allocation46_spill] sm:$0xff]  ;;  %v1585_v39 = vpop.f32.mrf.mxu2 }
 0x33b   :  { %v13504_v29 = vunpack.i.h.bf16 %v11609_v58  ;;  %v4890_v15 = vmul.f32 %v8372_v63, %v2072_v9  ;;  %v6556_v59 = vmax.f32 %v6554_v28, %v6555_v11  ;;  %v13506_v44 = vunpack.i.l.bf16 %v13505_v48  ;;  %v80_v58 = vld [vmem:[%s13152_s0 + $0x1f8] sm:$0xff] }
 0x33c   :  { %v5664_v10 = vrot.slane %v5663_v4, 2  ;;  %v6108_v61 = vmax.f32 %v6106_v43, %v6107_v21  ;;  %v13508_v50 = vunpack.i.l.bf16 %v13507_v62  ;;  %v5217_v7 = vmax.f32 %v5215_v22, %v5216_v40  ;;  %v208_v63 = vld [vmem:[%s13152_s0 + $0x5f8] sm:$0xff]  ;;  %v1777_v22 = vpop.f32.mrf.mxu3  ;;  %7323 = vmatmul.msk.f32.gmra.mxu0 %vm279_vm1, %v80_v58 }
 0x33d   :  { %v4826_v42 = vmul.f32 %v13504_v29, %v2008_v13  ;;  %v4699_v32 = vmul.f32 %v13506_v44, %v1881_v26  ;;  %v6557_v8 = vsel %vm4911_vm7, %v4890_v15, -inf  ;;  %v7171_v43 = vsel %vm6962_vm6, %v6556_v59, %v7170_v31  ;;  %7451 = vmatmul.msk.f32.gmra.mxu2 %vm279_vm1, %v208_v63  ;;  %v1204_v15 = vpop.f32.mrf.mxu0 }
 0x33e   :  { %v4763_v3 = vmul.f32 %v13508_v50, %v1945_v57  ;;  %v5665_v30 = vmax.f32 %v5663_v4, %v5664_v10  ;;  %v7115_v38 = vsel %vm6962_vm6, %v6108_v61, %v7114_v45  ;;  %v6558_v53 = vrot.slane %v6557_v8, 4  ;;  %v272_v4 = vld [vmem:[%s13152_s0 + $0x7f8] sm:$0xff]  ;;  %v1396_v61 = vpop.f32.mrf.mxu1 }
 0x33f   :  { %v6109_v1 = vsel %vm4911_vm7, %v4826_v42, -inf  ;;  %v5218_v13 = vrot.slane %v5217_v7, 1  ;;  %v5220_v21 = vsel %vm4911_vm7, %v4699_v32, -inf  ;;  %7515 = vmatmul.msk.f32.gmra.mxu3 %vm279_vm1, %v272_v4  ;;  %v1586_v29 = vadd.f32 %v12343_v25, %v1585_v39 }
 0x340   :  { %v6110_v28 = vrot.slane %v6109_v1, 4  ;;  %v5666_v9 = vrot.slane %v5665_v30, 1  ;;  %v5668_v45 = vsel %vm4911_vm7, %v4763_v3, -inf  ;;  %v6559_v11 = vmax.f32 %v6557_v8, %v6558_v53 }
 0x341   :  { %v5221_v26 = vrot.slane %v5220_v21, 4  ;;  %v5669_v57 = vrot.slane %v5668_v45, 4  ;;  %v5219_v40 = vmax.f32 %v5217_v7, %v5218_v13  ;;  %v1778_v42 = vadd.f32 %v12343_v25, %v1777_v22 }
 0x342   :  { %v6111_v31 = vmax.f32 %v6109_v1, %v6110_v28  ;;  %v5667_v10 = vmax.f32 %v5665_v30, %v5666_v9  ;;  %v6560_v44 = vrot.slane %v6559_v11, 2  ;;  %v2009_v8 = vmax.f32 %v1586_v29, 0.0 }
 0x343   :  { %v5222_v32 = vmax.f32 %v5220_v21, %v5221_v26  ;;  %v5670_v50 = vmax.f32 %v5668_v45, %v5669_v57  ;;  %v7004_v3 = vsel %vm6964_vm10, %v5219_v40, %v12603_v51  ;;  %v2073_v58 = vmax.f32 %v1778_v42, 0.0 }
 0x344   :  { %v6112_v59 = vrot.slane %v6111_v31, 2  ;;  %v7060_v1 = vsel %vm6964_vm10, %v5667_v10, %v12606_v41  ;;  %v6561_v30 = vmax.f32 %v6559_v11, %v6560_v44  ;;  %v13509_v28 = vunpack.i.l.bf16 %v11353_v54 }
 0x345   :  { %v5223_v14 = vrot.slane %v5222_v32, 2  ;;  %v5671_v63 = vrot.slane %v5670_v50, 2  ;;  %v4891_v39 = vmul.f32 %v8376_v47, %v2073_v58  ;;  %v1205_v22 = vadd.f32 %v12343_v25, %v1204_v15  ;;  %v1588_v58 = vpop.f32.mrf.mxu2 }
 0x346   :  { %v6113_v7 = vmax.f32 %v6111_v31, %v6112_v59  ;;  %v4827_v53 = vmul.f32 %v13509_v28, %v2009_v8  ;;  %v1397_v4 = vadd.f32 %v12343_v25, %v1396_v61  ;;  %v6562_v13 = vrot.slane %v6561_v30, 1 }
 0x347   :  { %v5224_v9 = vmax.f32 %v5222_v32, %v5223_v14  ;;  %v5672_v41 = vmax.f32 %v5670_v50, %v5671_v63  ;;  %v6564_v45 = vsel %vm4911_vm7, %v4891_v39, -inf  ;;  %v1882_v31 = vmax.f32 %v1205_v22, 0.0  ;;  %v1780_v14 = vpop.f32.mrf.mxu3 }
 0x348   :  { %v6114_v51 = vrot.slane %v6113_v7, 1  ;;  %v6116_v21 = vsel %vm4911_vm7, %v4827_v53, -inf  ;;  %v1946_v11 = vmax.f32 %v1397_v4, 0.0  ;;  %v6563_v57 = vmax.f32 %v6561_v30, %v6562_v13  ;;  %v1207_v53 = vpop.f32.mrf.mxu0 }
 0x349   :  { %v5225_v40 = vrot.slane %v5224_v9, 1  ;;  %v5673_v10 = vrot.slane %v5672_v41, 1  ;;  %v6117_v29 = vrot.slane %v6116_v21, 4  ;;  %v6565_v47 = vrot.slane %v6564_v45, 4 }
 0x34a   :  { %v6115_v26 = vmax.f32 %v6113_v7, %v6114_v51  ;;  %v13510_v42 = vunpack.i.h.bf16 %v13505_v48  ;;  %v13511_v61 = vunpack.i.h.bf16 %v13507_v62  ;;  %v7172_v32 = vsel %vm6964_vm10, %v6563_v57, %v7171_v43  ;;  %v1399_v48 = vpop.f32.mrf.mxu1 }
 0x34b   :  { %v5226_v50 = vmax.f32 %v5224_v9, %v5225_v40  ;;  %v5674_v8 = vmax.f32 %v5672_v41, %v5673_v10  ;;  %v6118_v7 = vmax.f32 %v6116_v21, %v6117_v29  ;;  %v6566_v30 = vmax.f32 %v6564_v45, %v6565_v47 }
 0x34c   :  { %v4700_v15 = vmul.f32 %v13510_v42, %v1882_v31  ;;  %v4764_v59 = vmul.f32 %v13511_v61, %v1946_v11  ;;  %v7116_v44 = vsel %vm6964_vm10, %v6115_v26, %v7115_v38  ;;  %v1589_v51 = vadd.f32 %v12343_v25, %v1588_v58 }
 0x34d   :  { %v7005_v39 = vsel %vm6966_vm14, %v5226_v50, %v7004_v3  ;;  %v7061_v62 = vsel %vm6966_vm14, %v5674_v8, %v7060_v1  ;;  %v6119_v4 = vrot.slane %v6118_v7, 2  ;;  %v6567_v43 = vrot.slane %v6566_v30, 2  ;;  %v13513_v8 = vld [vmem:[#allocation7_spill] sm:$0xff]  ;;  %v1591_v16 = vpop.f32.mrf.mxu2 }
 0x34e   :  { %v5227_v63 = vsel %vm4911_vm7, %v4700_v15, -inf  ;;  %v5675_v28 = vsel %vm4911_vm7, %v4764_v59, -inf  ;;  %v1781_v13 = vadd.f32 %v12343_v25, %v1780_v14  ;;  %v1208_v21 = vadd.f32 %v12343_v25, %v1207_v53 }
 0x34f   :  { %v5228_v22 = vrot.slane %v5227_v63, 4  ;;  %v5676_v38 = vrot.slane %v5675_v28, 4  ;;  %v1400_v45 = vadd.f32 %v12343_v25, %v1399_v48  ;;  %v6120_v31 = vmax.f32 %v6118_v7, %v6119_v4  ;;  %v13515_v7 = vld [vmem:[#allocation45_spill] sm:$0xff] }
 0x350   :  { %v6568_v11 = vmax.f32 %v6566_v30, %v6567_v43  ;;  %v2010_v26 = vmax.f32 %v1589_v51, 0.0  ;;  %v2074_v3 = vmax.f32 %v1781_v13, 0.0  ;;  %v1883_v40 = vmax.f32 %v1208_v21, 0.0 }
 0x351   :  { %v5229_v9 = vmax.f32 %v5227_v63, %v5228_v22  ;;  %v5677_v41 = vmax.f32 %v5675_v28, %v5676_v38  ;;  %v1947_v10 = vmax.f32 %v1400_v45, 0.0  ;;  %v6121_v29 = vrot.slane %v6120_v31, 1 }
 0x352   :  { %v6569_v47 = vrot.slane %v6568_v11, 1  ;;  %v13512_v42 = vunpack.i.h.bf16 %v11353_v54  ;;  %v4892_v61 = vmul.f32 %v8377_v46, %v2074_v3  ;;  %v13514_v58 = vunpack.i.l.bf16 %v13513_v8  ;;  %v1783_v46 = vpop.f32.mrf.mxu3 }
 0x353   :  { %v5230_v57 = vrot.slane %v5229_v9, 2  ;;  %v5678_v1 = vrot.slane %v5677_v41, 2  ;;  %v13516_v30 = vunpack.i.l.bf16 %v13515_v7  ;;  %v6122_v28 = vmax.f32 %v6120_v31, %v6121_v29 }
 0x354   :  { %v4828_v15 = vmul.f32 %v13512_v42, %v2010_v26  ;;  %v4701_v14 = vmul.f32 %v13514_v58, %v1883_v40  ;;  %v6570_v53 = vmax.f32 %v6568_v11, %v6569_v47  ;;  %v6571_v22 = vsel %vm4911_vm7, %v4892_v61, -inf  ;;  %v1210_v40 = vpop.f32.mrf.mxu0 }
 0x355   :  { %v5231_v59 = vmax.f32 %v5229_v9, %v5230_v57  ;;  %v5679_v50 = vmax.f32 %v5677_v41, %v5678_v1  ;;  %v4765_v63 = vmul.f32 %v13516_v30, %v1947_v10  ;;  %v6572_v43 = vrot.slane %v6571_v22, 4  ;;  %v1402_v10 = vpop.f32.mrf.mxu1 }
 0x356   :  { %v6123_v48 = vsel %vm4911_vm7, %v4828_v15, -inf  ;;  %v7117_v51 = vsel %vm6966_vm14, %v6122_v28, %v7116_v44  ;;  %v7173_v13 = vsel %vm6966_vm14, %v6570_v53, %v7172_v32  ;;  %v5234_v9 = vsel %vm4911_vm7, %v4701_v14, -inf }
 0x357   :  { %v5232_v38 = vrot.slane %v5231_v59, 1  ;;  %v5680_v54 = vrot.slane %v5679_v50, 1  ;;  %v6124_v4 = vrot.slane %v6123_v48, 4  ;;  %v5682_v41 = vsel %vm4911_vm7, %v4765_v63, -inf }
 0x358   :  { %v6573_v11 = vmax.f32 %v6571_v22, %v6572_v43  ;;  %v5235_v26 = vrot.slane %v5234_v9, 4  ;;  %v5683_v3 = vrot.slane %v5682_v41, 4  ;;  %v1592_v57 = vadd.f32 %v12343_v25, %v1591_v16 }
 0x359   :  { %v5233_v21 = vmax.f32 %v5231_v59, %v5232_v38  ;;  %v5681_v45 = vmax.f32 %v5679_v50, %v5680_v54  ;;  %v6125_v31 = vmax.f32 %v6123_v48, %v6124_v4  ;;  %v1784_v1 = vadd.f32 %v12343_v25, %v1783_v46 }
 0x35a   :  { %v6574_v47 = vrot.slane %v6573_v11, 2  ;;  %v5236_v42 = vmax.f32 %v5234_v9, %v5235_v26  ;;  %v5684_v15 = vmax.f32 %v5682_v41, %v5683_v3  ;;  %v2011_v61 = vmax.f32 %v1592_v57, 0.0 }
 0x35b   :  { %v7006_v44 = vsel %vm6968_vm8, %v5233_v21, %v7005_v39  ;;  %v7062_v32 = vsel %vm6968_vm8, %v5681_v45, %v7061_v62  ;;  %v6126_v29 = vrot.slane %v6125_v31, 2  ;;  %v2075_v59 = vmax.f32 %v1784_v1, 0.0 }
 0x35c   :  { %v6575_v58 = vmax.f32 %v6573_v11, %v6574_v47  ;;  %v1211_v14 = vadd.f32 %v12343_v25, %v1210_v40  ;;  %v1403_v30 = vadd.f32 %v12343_v25, %v1402_v10  ;;  %v5237_v63 = vrot.slane %v5236_v42, 2  ;;  %v1594_v47 = vpop.f32.mrf.mxu2 }
 0x35d   :  { %v6127_v50 = vmax.f32 %v6125_v31, %v6126_v29  ;;  %v5685_v28 = vrot.slane %v5684_v15, 2  ;;  %v13517_v53 = vunpack.i.l.bf16 %v11679_v6  ;;  %v4893_v39 = vmul.f32 %v8381_v37, %v2075_v59 }
 0x35e   :  { %v6576_v22 = vrot.slane %v6575_v58, 1  ;;  %v1884_v38 = vmax.f32 %v1211_v14, 0.0  ;;  %v1948_v54 = vmax.f32 %v1403_v30, 0.0  ;;  %v5238_v4 = vmax.f32 %v5236_v42, %v5237_v63  ;;  %v1786_v42 = vpop.f32.mrf.mxu3  ;;  %v1405_v63 = vpop.f32.mrf.mxu1 }
 0x35f   :  { %v4829_v48 = vmul.f32 %v13517_v53, %v2011_v61  ;;  %v6128_v62 = vrot.slane %v6127_v50, 1  ;;  %v5686_v43 = vmax.f32 %v5684_v15, %v5685_v28  ;;  %v6578_v46 = vsel %vm4911_vm7, %v4893_v39, -inf }
 0x360   :  { %v6577_v41 = vmax.f32 %v6575_v58, %v6576_v22  ;;  %v6579_v45 = vrot.slane %v6578_v46, 4  ;;  %v5239_v31 = vrot.slane %v5238_v4, 1  ;;  %v13518_v26 = vunpack.i.h.bf16 %v13513_v8 }
 0x361   :  { %v6130_v16 = vsel %vm4911_vm7, %v4829_v48, -inf  ;;  %v6129_v9 = vmax.f32 %v6127_v50, %v6128_v62  ;;  %v5687_v11 = vrot.slane %v5686_v43, 1  ;;  %v13519_v37 = vunpack.i.h.bf16 %v13515_v7  ;;  %v1213_v7 = vpop.f32.mrf.mxu0 }
 0x362   :  { %v6131_v21 = vrot.slane %v6130_v16, 4  ;;  %v4702_v3 = vmul.f32 %v13518_v26, %v1884_v38  ;;  %v7174_v40 = vsel %vm6968_vm8, %v6577_v41, %v7173_v13  ;;  %v6580_v29 = vmax.f32 %v6578_v46, %v6579_v45 }
 0x363   :  { %v4766_v57 = vmul.f32 %v13519_v37, %v1948_v54  ;;  %v7118_v1 = vsel %vm6968_vm8, %v6129_v9, %v7117_v51  ;;  %v5240_v15 = vmax.f32 %v5238_v4, %v5239_v31  ;;  %v5688_v61 = vmax.f32 %v5686_v43, %v5687_v11 }
 0x364   :  { %v6132_v10 = vmax.f32 %v6130_v16, %v6131_v21  ;;  %v5241_v59 = vsel %vm4911_vm7, %v4702_v3, -inf  ;;  %v6581_v8 = vrot.slane %v6580_v29, 2  ;;  %v1595_v28 = vadd.f32 %v12343_v25, %v1594_v47 }
 0x365   :  { %v5689_v50 = vsel %vm4911_vm7, %v4766_v57, -inf  ;;  %v5242_v14 = vrot.slane %v5241_v59, 4  ;;  %v7007_v51 = vsel %vm6970_vm9, %v5240_v15, %v7006_v44  ;;  %v7063_v13 = vsel %vm6970_vm9, %v5688_v61, %v7062_v32 }
 0x366   :  { %v6133_v58 = vrot.slane %v6132_v10, 2  ;;  %v5690_v30 = vrot.slane %v5689_v50, 4  ;;  %v1787_v53 = vadd.f32 %v12343_v25, %v1786_v42  ;;  %v6582_v39 = vmax.f32 %v6580_v29, %v6581_v8  ;;  %v13523_v42 = vld [vmem:[#allocation35_spill] sm:$0xff] }
 0x367   :  { %v5243_v62 = vmax.f32 %v5241_v59, %v5242_v14  ;;  %v2012_v38 = vmax.f32 %v1595_v28, 0.0  ;;  %v1214_v4 = vadd.f32 %v12343_v25, %v1213_v7  ;;  %v1406_v43 = vadd.f32 %v12343_v25, %v1405_v63 }
 0x368   :  { %v6134_v48 = vmax.f32 %v6132_v10, %v6133_v58  ;;  %v5691_v22 = vmax.f32 %v5689_v50, %v5690_v30  ;;  %v2076_v54 = vmax.f32 %v1787_v53, 0.0  ;;  %v6583_v46 = vrot.slane %v6582_v39, 1  ;;  %v13521_v10 = vld [vmem:[#allocation20_spill] sm:$0xff]  ;;  %v1597_v50 = vpop.f32.mrf.mxu2  ;;  %v1789_v58 = vpop.f32.mrf.mxu3 }
 0x369   :  { %v5244_v9 = vrot.slane %v5243_v62, 2  ;;  %v13520_v32 = vunpack.i.h.bf16 %v11679_v6  ;;  %v1885_v45 = vmax.f32 %v1214_v4, 0.0  ;;  %v1949_v31 = vmax.f32 %v1406_v43, 0.0 }
 0x36a   :  { %v6135_v16 = vrot.slane %v6134_v48, 1  ;;  %v5692_v44 = vrot.slane %v5691_v22, 2  ;;  %v4894_v21 = vmul.f32 %v8382_v17, %v2076_v54  ;;  %v6584_v26 = vmax.f32 %v6582_v39, %v6583_v46  ;;  %v1216_v39 = vpop.f32.mrf.mxu0 }
 0x36b   :  { %v4830_v41 = vmul.f32 %v13520_v32, %v2012_v38  ;;  %v5245_v3 = vmax.f32 %v5243_v62, %v5244_v9  ;;  %v13522_v29 = vunpack.i.l.bf16 %v13521_v10  ;;  %v13524_v15 = vunpack.i.l.bf16 %v13523_v42 }
 0x36c   :  { %v6136_v11 = vmax.f32 %v6134_v48, %v6135_v16  ;;  %v5693_v37 = vmax.f32 %v5691_v22, %v5692_v44  ;;  %v6585_v25 = vsel %vm4911_vm7, %v4894_v21, -inf  ;;  %v12724_v60 = vsel %vm6970_vm9, %v6584_v26, %v7174_v40  ;;  %v12731_v40 = vld [vmem:[%s13154_s3] ss:$0 sm:$0xff] }
 0x36d   :  { %v6137_v57 = vsel %vm4911_vm7, %v4830_v41, -inf  ;;  %v4703_v47 = vmul.f32 %v13522_v29, %v1885_v45  ;;  %v4767_v6 = vmul.f32 %v13524_v15, %v1949_v31  ;;  %v5246_v17 = vrot.slane %v5245_v3, 1 }
 0x36e   :  { %v12721_v61 = vsel %vm6970_vm9, %v6136_v11, %v7118_v1  ;;  %v5694_v59 = vrot.slane %v5693_v37, 1  ;;  %v6138_v8 = vrot.slane %v6137_v57, 4  ;;  %v6586_v14 = vrot.slane %v6585_v25, 4  ;;  %v1408_v1 = vpop.f32.mrf.mxu1 }
 0x36f   :  { %v5248_v30 = vsel %vm4911_vm7, %v4703_v47, -inf  ;;  %v5696_v7 = vsel %vm4911_vm7, %v4767_v6, -inf  ;;  %v5247_v63 = vmax.f32 %v5245_v3, %v5246_v17  ;;  %v1598_v38 = vadd.f32 %v12731_v40, %v1597_v50 }
 0x370   :  { %v5695_v28 = vmax.f32 %v5693_v37, %v5694_v59  ;;  %v5249_v53 = vrot.slane %v5248_v30, 4  ;;  %v5697_v48 = vrot.slane %v5696_v7, 4  ;;  %v6139_v62 = vmax.f32 %v6137_v57, %v6138_v8 }
 0x371   :  { %v6587_v22 = vmax.f32 %v6585_v25, %v6586_v14  ;;  %v1790_v54 = vadd.f32 %v12731_v40, %v1789_v58  ;;  %v7008_v4 = vsel %vm6972_vm4, %v5247_v63, %v7007_v51  ;;  %v2013_v32 = vmax.f32 %v1598_v38, 0.0 }
 0x372   :  { %v7064_v43 = vsel %vm6972_vm4, %v5695_v28, %v7063_v13  ;;  %v5250_v16 = vmax.f32 %v5248_v30, %v5249_v53  ;;  %v5698_v46 = vmax.f32 %v5696_v7, %v5697_v48  ;;  %7228 = vst.msk [vmem:[%s13155_s4 + $0x28] sm:$0xff] %vm4911_vm7, %v7008_v4  ;;  %v6140_v9 = vrot.slane %v6139_v62, 2  ;;  %v1600_v30 = vpop.f32.mrf.mxu2  ;;  %v1792_v7 = vpop.f32.mrf.mxu3 }
 0x373   :  { %v6588_v44 = vrot.slane %v6587_v22, 2  ;;  %v2077_v41 = vmax.f32 %v1790_v54, 0.0  ;;  %7236 = vst.msk [vmem:[%s13155_s4 + $0x68] sm:$0xff] %vm4911_vm7, %v7064_v43  ;;  %v1217_v13 = vadd.f32 %v12731_v40, %v1216_v39  ;;  %v1409_v45 = vadd.f32 %v12731_v40, %v1408_v1  ;;  %v1219_v54 = vpop.f32.mrf.mxu0 }
 0x374   :  { %v5251_v21 = vrot.slane %v5250_v16, 2  ;;  %v5699_v51 = vrot.slane %v5698_v46, 2  ;;  %v6141_v31 = vmax.f32 %v6139_v62, %v6140_v9  ;;  %v13525_v26 = vunpack.i.l.bf16 %v11671_v23 }
 0x375   :  { %v6589_v11 = vmax.f32 %v6587_v22, %v6588_v44  ;;  %v4895_v37 = vmul.f32 %v8386_v35, %v2077_v41  ;;  %v1886_v29 = vmax.f32 %v1217_v13, 0.0  ;;  %v1950_v47 = vmax.f32 %v1409_v45, 0.0 }
 0x376   :  { %v4831_v3 = vmul.f32 %v13525_v26, %v2013_v32  ;;  %v5252_v57 = vmax.f32 %v5250_v16, %v5251_v21  ;;  %v5700_v25 = vmax.f32 %v5698_v46, %v5699_v51  ;;  %v6142_v15 = vrot.slane %v6141_v31, 1  ;;  %v1411_v4 = vpop.f32.mrf.mxu1 }
 0x377   :  { %v6590_v6 = vrot.slane %v6589_v11, 1  ;;  %v6592_v59 = vsel %vm4911_vm7, %v4895_v37, -inf  ;;  %v13526_v35 = vunpack.i.h.bf16 %v13521_v10  ;;  %v13527_v48 = vunpack.i.h.bf16 %v13523_v42 }
 0x378   :  { %v6144_v17 = vsel %vm4911_vm7, %v4831_v3, -inf  ;;  %v5253_v50 = vrot.slane %v5252_v57, 1  ;;  %v5701_v58 = vrot.slane %v5700_v25, 1  ;;  %v6593_v14 = vrot.slane %v6592_v59, 4 }
 0x379   :  { %v6145_v8 = vrot.slane %v6144_v17, 4  ;;  %v6143_v63 = vmax.f32 %v6141_v31, %v6142_v15  ;;  %v6591_v28 = vmax.f32 %v6589_v11, %v6590_v6  ;;  %v4704_v53 = vmul.f32 %v13526_v35, %v1886_v29 }
 0x37a   :  { %v4768_v39 = vmul.f32 %v13527_v48, %v1950_v47  ;;  %v12757_v1 = vmax.f32 %v5252_v57, %v5253_v50  ;;  %v12759_v62 = vmax.f32 %v5700_v25, %v5701_v58  ;;  %v6594_v38 = vmax.f32 %v6592_v59, %v6593_v14  ;;  %v13529_v59 = vld [vmem:[#allocation19_spill] sm:$0xff]  ;;  %v1603_v35 = vpop.f32.mrf.mxu2 }
 0x37b   :  { %v6146_v22 = vmax.f32 %v6144_v17, %v6145_v8  ;;  %v7120_v43 = vsel %vm6972_vm4, %v6143_v63, %v12721_v61  ;;  %v7176_v16 = vsel %vm6972_vm4, %v6591_v28, %v12724_v60  ;;  %v5255_v10 = vsel %vm4911_vm7, %v4704_v53, -inf  ;;  %v1795_v53 = vpop.f32.mrf.mxu3 }
 0x37c   :  { %v5703_v46 = vsel %vm4911_vm7, %v4768_v39, -inf  ;;  %7244 = vst.msk [vmem:[%s13155_s4 + $0xa8] sm:$0xff] %vm4911_vm7, %v7120_v43  ;;  %v6595_v9 = vrot.slane %v6594_v38, 2  ;;  %v5256_v44 = vrot.slane %v5255_v10, 4  ;;  %v1601_v61 = vadd.f32 %v12731_v40, %v1600_v30 }
 0x37d   :  { %v6147_v42 = vrot.slane %v6146_v22, 2  ;;  %v5704_v32 = vrot.slane %v5703_v46, 4  ;;  %7252 = vst.msk [vmem:[%s13155_s4 + $0xe8] sm:$0xff] %vm4911_vm7, %v7176_v16  ;;  %v1793_v60 = vadd.f32 %v12731_v40, %v1792_v7  ;;  %v1220_v41 = vadd.f32 %v12731_v40, %v1219_v54 }
 0x37e   :  { %v1412_v21 = vadd.f32 %v12731_v40, %v1411_v4  ;;  %v6596_v13 = vmax.f32 %v6594_v38, %v6595_v9  ;;  %v5257_v45 = vmax.f32 %v5255_v10, %v5256_v44  ;;  %v2014_v11 = vmax.f32 %v1601_v61, 0.0  ;;  %v1414_v61 = vpop.f32.mrf.mxu1 }
 0x37f   :  { %v6148_v51 = vmax.f32 %v6146_v22, %v6147_v42  ;;  %v5705_v31 = vmax.f32 %v5703_v46, %v5704_v32  ;;  %v2078_v26 = vmax.f32 %v1793_v60, 0.0  ;;  %v1887_v3 = vmax.f32 %v1220_v41, 0.0  ;;  %v1222_v32 = vpop.f32.mrf.mxu0 }
 0x380   :  { %v1951_v37 = vmax.f32 %v1412_v21, 0.0  ;;  %v6597_v25 = vrot.slane %v6596_v13, 1  ;;  %v5258_v29 = vrot.slane %v5257_v45, 2  ;;  %v13528_v15 = vunpack.i.h.bf16 %v11671_v23 }
 0x381   :  { %v6149_v57 = vrot.slane %v6148_v51, 1  ;;  %v5706_v47 = vrot.slane %v5705_v31, 2  ;;  %v4896_v17 = vmul.f32 %v8387_v27, %v2078_v26  ;;  %v13530_v50 = vunpack.i.l.bf16 %v13529_v59 }
 0x382   :  { %v4832_v6 = vmul.f32 %v13528_v15, %v2014_v11  ;;  %v13531_v8 = vunpack.i.l.bf16 %v10874_v19  ;;  %v12789_v7 = vmax.f32 %v6596_v13, %v6597_v25  ;;  %v5259_v63 = vmax.f32 %v5257_v45, %v5258_v29 }
 0x383   :  { %v4705_v58 = vmul.f32 %v13530_v50, %v1887_v3  ;;  %v12787_v30 = vmax.f32 %v6148_v51, %v6149_v57  ;;  %v5707_v28 = vmax.f32 %v5705_v31, %v5706_v47  ;;  %v6599_v48 = vsel %vm4911_vm7, %v4896_v17, -inf }
 0x384   :  { %v4769_v14 = vmul.f32 %v13531_v8, %v1951_v37  ;;  %v6151_v23 = vsel %vm4911_vm7, %v4832_v6, -inf  ;;  %v5260_v39 = vrot.slane %v5259_v63, 1  ;;  %v6600_v54 = vrot.slane %v6599_v48, 4  ;;  %v13532_v37 = vld [vmem:[#allocation51_spill] sm:$0xff] }
 0x385   :  { %v5262_v33 = vsel %vm4911_vm7, %v4705_v58, -inf  ;;  %v5708_v22 = vrot.slane %v5707_v28, 1  ;;  %v6152_v38 = vrot.slane %v6151_v23, 4  ;;  %v1604_v16 = vadd.f32 %v12731_v40, %v1603_v35 }
 0x386   :  { %v5710_v27 = vsel %vm4911_vm7, %v4769_v14, -inf  ;;  %v5263_v4 = vrot.slane %v5262_v33, 4  ;;  %v1796_v10 = vadd.f32 %v12731_v40, %v1795_v53  ;;  %v5261_v46 = vmax.f32 %v5259_v63, %v5260_v39 }
 0x387   :  { %v5711_v43 = vrot.slane %v5710_v27, 4  ;;  %v5709_v42 = vmax.f32 %v5707_v28, %v5708_v22  ;;  %v6153_v9 = vmax.f32 %v6151_v23, %v6152_v38  ;;  %v6601_v44 = vmax.f32 %v6599_v48, %v6600_v54  ;;  %v1606_v22 = vpop.f32.mrf.mxu2  ;;  %v1798_v38 = vpop.f32.mrf.mxu3 }
 0x388   :  { %v5264_v60 = vmax.f32 %v5262_v33, %v5263_v4  ;;  %v2015_v21 = vmax.f32 %v1604_v16, 0.0  ;;  %v2079_v51 = vmax.f32 %v1796_v10, 0.0  ;;  %v7009_v13 = vsel %vm6960_vm3, %v5261_v46, %v12757_v1 }
 0x389   :  { %v5712_v41 = vmax.f32 %v5710_v27, %v5711_v43  ;;  %v7065_v45 = vsel %vm6960_vm3, %v5709_v42, %v12759_v62  ;;  %v6154_v31 = vrot.slane %v6153_v9, 2  ;;  %v6602_v11 = vrot.slane %v6601_v44, 2 }
 0x38a   :  { %v5265_v26 = vrot.slane %v5264_v60, 2  ;;  %v13533_v57 = vunpack.i.l.bf16 %v13532_v37  ;;  %v4897_v29 = vmul.f32 %v8391_v0, %v2079_v51  ;;  %v1223_v6 = vadd.f32 %v12731_v40, %v1222_v32 }
 0x38b   :  { %v5713_v3 = vrot.slane %v5712_v41, 2  ;;  %v6155_v47 = vmax.f32 %v6153_v9, %v6154_v31  ;;  %v6603_v15 = vmax.f32 %v6601_v44, %v6602_v11  ;;  %v1415_v17 = vadd.f32 %v12731_v40, %v1414_v61  ;;  %v1225_v61 = vpop.f32.mrf.mxu0 }
 0x38c   :  { %v4833_v25 = vmul.f32 %v13533_v57, %v2015_v21  ;;  %v5266_v1 = vmax.f32 %v5264_v60, %v5265_v26  ;;  %v6606_v58 = vsel %vm4911_vm7, %v4897_v29, -inf  ;;  %v1888_v23 = vmax.f32 %v1223_v6, 0.0  ;;  %v1417_v60 = vpop.f32.mrf.mxu1 }
 0x38d   :  { %v5714_v50 = vmax.f32 %v5712_v41, %v5713_v3  ;;  %v6156_v8 = vrot.slane %v6155_v47, 1  ;;  %v6604_v14 = vrot.slane %v6603_v15, 1  ;;  %v6607_v28 = vrot.slane %v6606_v58, 4 }
 0x38e   :  { %v6158_v62 = vsel %vm4911_vm7, %v4833_v25, -inf  ;;  %v5267_v35 = vrot.slane %v5266_v1, 1  ;;  %v1952_v0 = vmax.f32 %v1415_v17, 0.0  ;;  %v13534_v43 = vunpack.i.h.bf16 %v13529_v59 }
 0x38f   :  { %v6159_v63 = vrot.slane %v6158_v62, 4  ;;  %v5715_v53 = vrot.slane %v5714_v50, 1  ;;  %v6157_v48 = vmax.f32 %v6155_v47, %v6156_v8  ;;  %v6605_v33 = vmax.f32 %v6603_v15, %v6604_v14 }
 0x390   :  { %v6608_v39 = vmax.f32 %v6606_v58, %v6607_v28  ;;  %v5268_v54 = vmax.f32 %v5266_v1, %v5267_v35  ;;  %v4706_v16 = vmul.f32 %v13534_v43, %v1888_v23  ;;  %v13535_v10 = vunpack.i.h.bf16 %v10874_v19  ;;  %v13537_v28 = vld [vmem:[#allocation9_spill] sm:$0xff]  ;;  %v13539_v23 = vld [vmem:[#allocation47_spill] sm:$0xff] }
 0x391   :  { %v6160_v27 = vmax.f32 %v6158_v62, %v6159_v63  ;;  %v5716_v4 = vmax.f32 %v5714_v50, %v5715_v53  ;;  %v7121_v42 = vsel %vm6960_vm3, %v6157_v48, %v12787_v30  ;;  %v7177_v9 = vsel %vm6960_vm3, %v6605_v33, %v12789_v7 }
 0x392   :  { %v4770_v46 = vmul.f32 %v13535_v10, %v1952_v0  ;;  %v6609_v32 = vrot.slane %v6608_v39, 2  ;;  %v7010_v41 = vsel %vm6962_vm6, %v5268_v54, %v7009_v13  ;;  %v5269_v59 = vsel %vm4911_vm7, %v4706_v16, -inf }
 0x393   :  { %v6161_v44 = vrot.slane %v6160_v27, 2  ;;  %v7066_v21 = vsel %vm6962_vm6, %v5716_v4, %v7065_v45  ;;  %v5270_v11 = vrot.slane %v5269_v59, 4  ;;  %v1607_v30 = vadd.f32 %v12731_v40, %v1606_v22 }
 0x394   :  { %v5717_v51 = vsel %vm4911_vm7, %v4770_v46, -inf  ;;  %v6610_v31 = vmax.f32 %v6608_v39, %v6609_v32  ;;  %v1799_v7 = vadd.f32 %v12731_v40, %v1798_v38  ;;  %v1226_v3 = vadd.f32 %v12731_v40, %v1225_v61  ;;  %v1609_v38 = vpop.f32.mrf.mxu2 }
 0x395   :  { %v6162_v19 = vmax.f32 %v6160_v27, %v6161_v44  ;;  %v5718_v26 = vrot.slane %v5717_v51, 4  ;;  %v1418_v57 = vadd.f32 %v12731_v40, %v1417_v60  ;;  %v5271_v29 = vmax.f32 %v5269_v59, %v5270_v11 }
 0x396   :  { %v6611_v13 = vrot.slane %v6610_v31, 1  ;;  %v2016_v47 = vmax.f32 %v1607_v30, 0.0  ;;  %v2080_v15 = vmax.f32 %v1799_v7, 0.0  ;;  %v1889_v6 = vmax.f32 %v1226_v3, 0.0 }
 0x397   :  { %v6163_v25 = vrot.slane %v6162_v19, 1  ;;  %v5719_v45 = vmax.f32 %v5717_v51, %v5718_v26  ;;  %v1953_v17 = vmax.f32 %v1418_v57, 0.0  ;;  %v5272_v62 = vrot.slane %v5271_v29, 2 }
 0x398   :  { %v6612_v50 = vmax.f32 %v6610_v31, %v6611_v13  ;;  %v13536_v8 = vunpack.i.h.bf16 %v13532_v37  ;;  %v4898_v63 = vmul.f32 %v8392_v52, %v2080_v15  ;;  %v13538_v35 = vunpack.i.l.bf16 %v13537_v28  ;;  %v1801_v37 = vpop.f32.mrf.mxu3  ;;  %v1420_v31 = vpop.f32.mrf.mxu1 }
 0x399   :  { %v6164_v1 = vmax.f32 %v6162_v19, %v6163_v25  ;;  %v5720_v58 = vrot.slane %v5719_v45, 2  ;;  %v13540_v0 = vunpack.i.l.bf16 %v13539_v23  ;;  %v5273_v39 = vmax.f32 %v5271_v29, %v5272_v62  ;;  %v1228_v19 = vpop.f32.mrf.mxu0 }
 0x39a   :  { %v4834_v14 = vmul.f32 %v13536_v8, %v2016_v47  ;;  %v4707_v53 = vmul.f32 %v13538_v35, %v1889_v6  ;;  %v12837_v27 = vsel %vm6962_vm6, %v6612_v50, %v7177_v9  ;;  %v6613_v56 = vsel %vm4911_vm7, %v4898_v63, -inf  ;;  %v13541_v47 = vld [vmem:[#allocation30_spill] sm:$0xff] }
 0x39b   :  { %v4771_v48 = vmul.f32 %v13540_v0, %v1953_v17  ;;  %v12834_v33 = vsel %vm6962_vm6, %v6164_v1, %v7121_v42  ;;  %v5721_v22 = vmax.f32 %v5719_v45, %v5720_v58  ;;  %v5274_v43 = vrot.slane %v5273_v39, 1 }
 0x39c   :  { %v6165_v54 = vsel %vm4911_vm7, %v4834_v14, -inf  ;;  %v5276_v52 = vsel %vm4911_vm7, %v4707_v53, -inf  ;;  %v6614_v46 = vrot.slane %v6613_v56, 4  ;;  %v1610_v9 = vadd.f32 %v12731_v40, %v1609_v38 }
 0x39d   :  { %v5724_v4 = vsel %vm4911_vm7, %v4771_v48, -inf  ;;  %v5722_v16 = vrot.slane %v5721_v22, 1  ;;  %v6166_v10 = vrot.slane %v6165_v54, 4  ;;  %v5277_v42 = vrot.slane %v5276_v52, 4 }
 0x39e   :  { %v5725_v44 = vrot.slane %v5724_v4, 4  ;;  %v1802_v32 = vadd.f32 %v12731_v40, %v1801_v37  ;;  %v5275_v61 = vmax.f32 %v5273_v39, %v5274_v43  ;;  %v6615_v51 = vmax.f32 %v6613_v56, %v6614_v46 }
 0x39f   :  { %v5723_v60 = vmax.f32 %v5721_v22, %v5722_v16  ;;  %v6167_v59 = vmax.f32 %v6165_v54, %v6166_v10  ;;  %v5278_v11 = vmax.f32 %v5276_v52, %v5277_v42  ;;  %v2017_v30 = vmax.f32 %v1610_v9, 0.0  ;;  %v1612_v52 = vpop.f32.mrf.mxu2 }
 0x3a0   :  { %v5726_v26 = vmax.f32 %v5724_v4, %v5725_v44  ;;  %v2081_v7 = vmax.f32 %v1802_v32, 0.0  ;;  %v7011_v3 = vsel %vm6964_vm10, %v5275_v61, %v7010_v41  ;;  %v6616_v13 = vrot.slane %v6615_v51, 2  ;;  %v1804_v4 = vpop.f32.mrf.mxu3 }
 0x3a1   :  { %v7067_v57 = vsel %vm6964_vm10, %v5723_v60, %v7066_v21  ;;  %v6168_v25 = vrot.slane %v6167_v59, 2  ;;  %v5279_v29 = vrot.slane %v5278_v11, 2  ;;  %v13542_v15 = vunpack.i.l.bf16 %v13541_v47 }
 0x3a2   :  { %v5727_v45 = vrot.slane %v5726_v26, 2  ;;  %v4899_v17 = vmul.f32 %v8396_v5, %v2081_v7  ;;  %v6617_v50 = vmax.f32 %v6615_v51, %v6616_v13  ;;  %v1229_v62 = vadd.f32 %v12731_v40, %v1228_v19  ;;  %v1423_v51 = vpop.f32.mrf.mxu1 }
 0x3a3   :  { %v4835_v6 = vmul.f32 %v13542_v15, %v2017_v30  ;;  %v6169_v1 = vmax.f32 %v6167_v59, %v6168_v25  ;;  %v1421_v58 = vadd.f32 %v12731_v40, %v1420_v31  ;;  %v5280_v8 = vmax.f32 %v5278_v11, %v5279_v29  ;;  %v1231_v59 = vpop.f32.mrf.mxu0 }
 0x3a4   :  { %v5728_v41 = vmax.f32 %v5726_v26, %v5727_v45  ;;  %v6620_v14 = vsel %vm4911_vm7, %v4899_v17, -inf  ;;  %v6618_v35 = vrot.slane %v6617_v50, 1  ;;  %v1890_v22 = vmax.f32 %v1229_v62, 0.0 }
 0x3a5   :  { %v6172_v21 = vsel %vm4911_vm7, %v4835_v6, -inf  ;;  %v6170_v63 = vrot.slane %v6169_v1, 1  ;;  %v6621_v0 = vrot.slane %v6620_v14, 4  ;;  %v5281_v48 = vrot.slane %v5280_v8, 1 }
 0x3a6   :  { %v6173_v53 = vrot.slane %v6172_v21, 4  ;;  %v5729_v39 = vrot.slane %v5728_v41, 1  ;;  %v1954_v5 = vmax.f32 %v1421_v58, 0.0  ;;  %v6619_v37 = vmax.f32 %v6617_v50, %v6618_v35 }
 0x3a7   :  { %v6171_v38 = vmax.f32 %v6169_v1, %v6170_v63  ;;  %v6622_v56 = vmax.f32 %v6620_v14, %v6621_v0  ;;  %v5282_v43 = vmax.f32 %v5280_v8, %v5281_v48  ;;  %v13543_v10 = vunpack.i.h.bf16 %v13537_v28  ;;  %v13546_v63 = vld [vmem:[#allocation23_spill] sm:$0xff]  ;;  %v13548_v0 = vld [vmem:[#allocation37_spill] sm:$0xff] }
 0x3a8   :  { %v6174_v54 = vmax.f32 %v6172_v21, %v6173_v53  ;;  %v5730_v16 = vmax.f32 %v5728_v41, %v5729_v39  ;;  %v13544_v42 = vunpack.i.h.bf16 %v13539_v23  ;;  %v7179_v32 = vsel %vm6964_vm10, %v6619_v37, %v12837_v27 }
 0x3a9   :  { %v4708_v46 = vmul.f32 %v13543_v10, %v1890_v22  ;;  %v7123_v9 = vsel %vm6964_vm10, %v6171_v38, %v12834_v33  ;;  %v6623_v60 = vrot.slane %v6622_v56, 2  ;;  %v7012_v19 = vsel %vm6966_vm14, %v5282_v43, %v7011_v3 }
 0x3aa   :  { %v4772_v44 = vmul.f32 %v13544_v42, %v1954_v5  ;;  %v6175_v61 = vrot.slane %v6174_v54, 2  ;;  %v7068_v31 = vsel %vm6966_vm14, %v5730_v16, %v7067_v57  ;;  %v1613_v33 = vadd.f32 %v12731_v40, %v1612_v52 }
 0x3ab   :  { %v5283_v28 = vsel %vm4911_vm7, %v4708_v46, -inf  ;;  %v6624_v26 = vmax.f32 %v6622_v56, %v6623_v60  ;;  %v1805_v27 = vadd.f32 %v12731_v40, %v1804_v4  ;;  %v1232_v25 = vadd.f32 %v12731_v40, %v1231_v59 }
 0x3ac   :  { %v5731_v11 = vsel %vm4911_vm7, %v4772_v44, -inf  ;;  %v6176_v23 = vmax.f32 %v6174_v54, %v6175_v61  ;;  %v5284_v30 = vrot.slane %v5283_v28, 4  ;;  %v1424_v13 = vadd.f32 %v12731_v40, %v1423_v51  ;;  %v1615_v54 = vpop.f32.mrf.mxu2  ;;  %v1234_v51 = vpop.f32.mrf.mxu0 }
 0x3ad   :  { %v5732_v7 = vrot.slane %v5731_v11, 4  ;;  %v6625_v3 = vrot.slane %v6624_v26, 1  ;;  %v2018_v15 = vmax.f32 %v1613_v33, 0.0  ;;  %v2082_v6 = vmax.f32 %v1805_v27, 0.0 }
 0x3ae   :  { %v6177_v29 = vrot.slane %v6176_v23, 1  ;;  %v5285_v45 = vmax.f32 %v5283_v28, %v5284_v30  ;;  %v1891_v17 = vmax.f32 %v1232_v25, 0.0  ;;  %v1955_v1 = vmax.f32 %v1424_v13, 0.0  ;;  %v1426_v28 = vpop.f32.mrf.mxu1 }
 0x3af   :  { %v5733_v57 = vmax.f32 %v5731_v11, %v5732_v7  ;;  %v6626_v62 = vmax.f32 %v6624_v26, %v6625_v3  ;;  %v13545_v41 = vunpack.i.h.bf16 %v13541_v47  ;;  %v4900_v14 = vmul.f32 %v8397_v49, %v2082_v6  ;;  %v1807_v47 = vpop.f32.mrf.mxu3  ;;  %v13550_v3 = vld [vmem:[#allocation12_spill] sm:$0xff] }
 0x3b0   :  { %v6178_v50 = vmax.f32 %v6176_v23, %v6177_v29  ;;  %v5286_v58 = vrot.slane %v5285_v45, 2  ;;  %v13547_v35 = vunpack.i.l.bf16 %v13546_v63  ;;  %v13549_v48 = vunpack.i.l.bf16 %v13548_v0 }
 0x3b1   :  { %v5734_v8 = vrot.slane %v5733_v57, 2  ;;  %v4836_v21 = vmul.f32 %v13545_v41, %v2018_v15  ;;  %v12883_v5 = vsel %vm6966_vm14, %v6626_v62, %v7179_v32  ;;  %v6627_v24 = vsel %vm4911_vm7, %v4900_v14, -inf }
 0x3b2   :  { %v4709_v53 = vmul.f32 %v13547_v35, %v1891_v17  ;;  %v4773_v39 = vmul.f32 %v13549_v48, %v1955_v1  ;;  %v12880_v22 = vsel %vm6966_vm14, %v6178_v50, %v7123_v9  ;;  %v5287_v38 = vmax.f32 %v5285_v45, %v5286_v58 }
 0x3b3   :  { %v5735_v37 = vmax.f32 %v5733_v57, %v5734_v8  ;;  %v6179_v56 = vsel %vm4911_vm7, %v4836_v21, -inf  ;;  %v6628_v10 = vrot.slane %v6627_v24, 4  ;;  %v1616_v44 = vadd.f32 %v12731_v40, %v1615_v54 }
 0x3b4   :  { %v5290_v49 = vsel %vm4911_vm7, %v4709_v53, -inf  ;;  %v5738_v52 = vsel %vm4911_vm7, %v4773_v39, -inf  ;;  %v5288_v4 = vrot.slane %v5287_v38, 1  ;;  %v6180_v16 = vrot.slane %v6179_v56, 4 }
 0x3b5   :  { %v5736_v43 = vrot.slane %v5735_v37, 1  ;;  %v5291_v46 = vrot.slane %v5290_v49, 4  ;;  %v5739_v42 = vrot.slane %v5738_v52, 4  ;;  %v1808_v9 = vadd.f32 %v12731_v40, %v1807_v47  ;;  %v1618_v47 = vpop.f32.mrf.mxu2 }
 0x3b6   :  { %v5289_v32 = vmax.f32 %v5287_v38, %v5288_v4  ;;  %v6181_v60 = vmax.f32 %v6179_v56, %v6180_v16  ;;  %v6629_v59 = vmax.f32 %v6627_v24, %v6628_v10  ;;  %v2019_v26 = vmax.f32 %v1616_v44, 0.0 }
 0x3b7   :  { %v5737_v61 = vmax.f32 %v5735_v37, %v5736_v43  ;;  %v5292_v11 = vmax.f32 %v5290_v49, %v5291_v46  ;;  %v5740_v23 = vmax.f32 %v5738_v52, %v5739_v42  ;;  %v2083_v30 = vmax.f32 %v1808_v9, 0.0  ;;  %v1810_v56 = vpop.f32.mrf.mxu3  ;;  %v1237_v9 = vpop.f32.mrf.mxu0 }
 0x3b8   :  { %v7013_v7 = vsel %vm6968_vm8, %v5289_v32, %v7012_v19  ;;  %v6182_v27 = vrot.slane %v6181_v60, 2  ;;  %v6630_v25 = vrot.slane %v6629_v59, 2  ;;  %v13551_v45 = vunpack.i.l.bf16 %v13550_v3  ;;  %v1429_v32 = vpop.f32.mrf.mxu1 }
 0x3b9   :  { %v7069_v33 = vsel %vm6968_vm8, %v5737_v61, %v7068_v31  ;;  %v5293_v13 = vrot.slane %v5292_v11, 2  ;;  %v5741_v29 = vrot.slane %v5740_v23, 2  ;;  %v4901_v15 = vmul.f32 %v8416_v55, %v2083_v30 }
 0x3ba   :  { %v4837_v57 = vmul.f32 %v13551_v45, %v2019_v26  ;;  %v6183_v6 = vmax.f32 %v6181_v60, %v6182_v27  ;;  %v6631_v17 = vmax.f32 %v6629_v59, %v6630_v25  ;;  %v1235_v1 = vadd.f32 %v12731_v40, %v1234_v51 }
 0x3bb   :  { %v1427_v50 = vadd.f32 %v12731_v40, %v1426_v28  ;;  %v5294_v62 = vmax.f32 %v5292_v11, %v5293_v13  ;;  %v5742_v19 = vmax.f32 %v5740_v23, %v5741_v29  ;;  %v6634_v58 = vsel %vm4911_vm7, %v4901_v15, -inf }
 0x3bc   :  { %v6186_v31 = vsel %vm4911_vm7, %v4837_v57, -inf  ;;  %v6184_v8 = vrot.slane %v6183_v6, 1  ;;  %v6632_v41 = vrot.slane %v6631_v17, 1  ;;  %v6635_v14 = vrot.slane %v6634_v58, 4 }
 0x3bd   :  { %v6187_v21 = vrot.slane %v6186_v31, 4  ;;  %v5295_v35 = vrot.slane %v5294_v62, 1  ;;  %v5743_v53 = vrot.slane %v5742_v19, 1  ;;  %v1892_v48 = vmax.f32 %v1235_v1, 0.0 }
 0x3be   :  { %v1956_v55 = vmax.f32 %v1427_v50, 0.0  ;;  %v6185_v39 = vmax.f32 %v6183_v6, %v6184_v8  ;;  %v6633_v38 = vmax.f32 %v6631_v17, %v6632_v41  ;;  %v6636_v54 = vmax.f32 %v6634_v58, %v6635_v14  ;;  %v13557_v8 = vld [vmem:[#allocation49_spill] sm:$0xff] }
 0x3bf   :  { %v6188_v37 = vmax.f32 %v6186_v31, %v6187_v21  ;;  %v5296_v24 = vmax.f32 %v5294_v62, %v5295_v35  ;;  %v5744_v49 = vmax.f32 %v5742_v19, %v5743_v53  ;;  %v13552_v52 = vunpack.i.h.bf16 %v13546_v63  ;;  %v13555_v19 = vld [vmem:[#allocation22_spill] sm:$0xff] }
 0x3c0   :  { %v13553_v43 = vunpack.i.h.bf16 %v13548_v0  ;;  %v7125_v10 = vsel %vm6968_vm8, %v6185_v39, %v12880_v22  ;;  %v7181_v46 = vsel %vm6968_vm8, %v6633_v38, %v12883_v5  ;;  %v6637_v44 = vrot.slane %v6636_v54, 2 }
 0x3c1   :  { %v4710_v4 = vmul.f32 %v13552_v52, %v1892_v48  ;;  %v6189_v42 = vrot.slane %v6188_v37, 2  ;;  %v7014_v61 = vsel %vm6970_vm9, %v5296_v24, %v7013_v7  ;;  %v7070_v60 = vsel %vm6970_vm9, %v5744_v49, %v7069_v33 }
 0x3c2   :  { %v4774_v16 = vmul.f32 %v13553_v43, %v1956_v55  ;;  %v6638_v51 = vmax.f32 %v6636_v54, %v6637_v44  ;;  %v1619_v22 = vadd.f32 %v12731_v40, %v1618_v47  ;;  %v1811_v5 = vadd.f32 %v12731_v40, %v1810_v56  ;;  %v1621_v55 = vpop.f32.mrf.mxu2  ;;  %v1240_v44 = vpop.f32.mrf.mxu0 }
 0x3c3   :  { %v5297_v63 = vsel %vm4911_vm7, %v4710_v4, -inf  ;;  %v6190_v0 = vmax.f32 %v6188_v37, %v6189_v42  ;;  %v1238_v23 = vadd.f32 %v12731_v40, %v1237_v9  ;;  %v1430_v26 = vadd.f32 %v12731_v40, %v1429_v32  ;;  %v1432_v9 = vpop.f32.mrf.mxu1 }
 0x3c4   :  { %v5745_v59 = vsel %vm4911_vm7, %v4774_v16, -inf  ;;  %v5298_v28 = vrot.slane %v5297_v63, 4  ;;  %v6639_v7 = vrot.slane %v6638_v51, 1  ;;  %v2020_v25 = vmax.f32 %v1619_v22, 0.0 }
 0x3c5   :  { %v5746_v11 = vrot.slane %v5745_v59, 4  ;;  %v6191_v30 = vrot.slane %v6190_v0, 1  ;;  %v2084_v13 = vmax.f32 %v1811_v5, 0.0  ;;  %v1893_v29 = vmax.f32 %v1238_v23, 0.0 }
 0x3c6   :  { %v5299_v27 = vmax.f32 %v5297_v63, %v5298_v28  ;;  %v1957_v45 = vmax.f32 %v1430_v26, 0.0  ;;  %v6640_v15 = vmax.f32 %v6638_v51, %v6639_v7  ;;  %v13554_v1 = vunpack.i.h.bf16 %v13550_v3  ;;  %v1813_v3 = vpop.f32.mrf.mxu3  ;;  %v13559_v26 = vld [vmem:[#allocation52_spill] sm:$0xff] }
 0x3c7   :  { %v5747_v33 = vmax.f32 %v5745_v59, %v5746_v11  ;;  %v6192_v57 = vmax.f32 %v6190_v0, %v6191_v30  ;;  %v4902_v62 = vmul.f32 %v8421_v18, %v2084_v13  ;;  %v13556_v31 = vunpack.i.l.bf16 %v13555_v19 }
 0x3c8   :  { %v5300_v6 = vrot.slane %v5299_v27, 2  ;;  %v4838_v50 = vmul.f32 %v13554_v1, %v2020_v25  ;;  %v13558_v41 = vunpack.i.l.bf16 %v13557_v8  ;;  %v12929_v35 = vsel %vm6970_vm9, %v6640_v15, %v7181_v46 }
 0x3c9   :  { %v5748_v17 = vrot.slane %v5747_v33, 2  ;;  %v4711_v58 = vmul.f32 %v13556_v31, %v1893_v29  ;;  %v12926_v14 = vsel %vm6970_vm9, %v6192_v57, %v7125_v10  ;;  %v6641_v18 = vsel %vm4911_vm7, %v4902_v62, -inf }
 0x3ca   :  { %v4775_v21 = vmul.f32 %v13558_v41, %v1957_v45  ;;  %v5301_v53 = vmax.f32 %v5299_v27, %v5300_v6  ;;  %v6193_v39 = vsel %vm4911_vm7, %v4838_v50, -inf  ;;  %v6642_v24 = vrot.slane %v6641_v18, 4  ;;  %v1624_v62 = vpop.f32.mrf.mxu2 }
 0x3cb   :  { %v5749_v48 = vmax.f32 %v5747_v33, %v5748_v17  ;;  %v5304_v38 = vsel %vm4911_vm7, %v4711_v58, -inf  ;;  %v6194_v56 = vrot.slane %v6193_v39, 4  ;;  %v1622_v4 = vadd.f32 %v12731_v40, %v1621_v55 }
 0x3cc   :  { %v5752_v37 = vsel %vm4911_vm7, %v4775_v21, -inf  ;;  %v5302_v54 = vrot.slane %v5301_v53, 1  ;;  %v5305_v49 = vrot.slane %v5304_v38, 4  ;;  %v1814_v43 = vadd.f32 %v12731_v40, %v1813_v3 }
 0x3cd   :  { %v5750_v47 = vrot.slane %v5749_v48, 1  ;;  %v5753_v52 = vrot.slane %v5752_v37, 4  ;;  %v6195_v46 = vmax.f32 %v6193_v39, %v6194_v56  ;;  %v6643_v42 = vmax.f32 %v6641_v18, %v6642_v24 }
 0x3ce   :  { %v5303_v16 = vmax.f32 %v5301_v53, %v5302_v54  ;;  %v5306_v32 = vmax.f32 %v5304_v38, %v5305_v49  ;;  %v2021_v59 = vmax.f32 %v1622_v4, 0.0  ;;  %v2085_v0 = vmax.f32 %v1814_v43, 0.0  ;;  %v1816_v31 = vpop.f32.mrf.mxu3  ;;  %v1243_v43 = vpop.f32.mrf.mxu0 }
 0x3cf   :  { %v5751_v10 = vmax.f32 %v5749_v48, %v5750_v47  ;;  %v5754_v63 = vmax.f32 %v5752_v37, %v5753_v52  ;;  %v6196_v11 = vrot.slane %v6195_v46, 2  ;;  %v6644_v22 = vrot.slane %v6643_v42, 2 }
 0x3d0   :  { %v7015_v51 = vsel %vm6972_vm4, %v5303_v16, %v7014_v61  ;;  %v5307_v5 = vrot.slane %v5306_v32, 2  ;;  %v13560_v30 = vunpack.i.l.bf16 %v13559_v26  ;;  %v13561_v27 = vunpack.i.l.bf16 %v12450_v34  ;;  %v1435_v16 = vpop.f32.mrf.mxu1 }
 0x3d1   :  { %v7071_v28 = vsel %vm6972_vm4, %v5751_v10, %v7070_v60  ;;  %7229 = vst.msk [vmem:[%s13155_s4 + $0x30] sm:$0xff] %vm4911_vm7, %v7015_v51  ;;  %v5755_v23 = vrot.slane %v5754_v63, 2  ;;  %v6197_v61 = vmax.f32 %v6195_v46, %v6196_v11  ;;  %v6645_v60 = vmax.f32 %v6643_v42, %v6644_v22 }
 0x3d2   :  { %v4839_v7 = vmul.f32 %v13560_v30, %v2021_v59  ;;  %v4903_v33 = vmul.f32 %v13561_v27, %v2085_v0  ;;  %7237 = vst.msk [vmem:[%s13155_s4 + $0x70] sm:$0xff] %vm4911_vm7, %v7071_v28  ;;  %v1241_v25 = vadd.f32 %v12731_v40, %v1240_v44  ;;  %v1433_v13 = vadd.f32 %v12731_v40, %v1432_v9 }
 0x3d3   :  { %v5308_v29 = vmax.f32 %v5306_v32, %v5307_v5  ;;  %v5756_v45 = vmax.f32 %v5754_v63, %v5755_v23  ;;  %v6198_v6 = vrot.slane %v6197_v61, 1  ;;  %v6646_v17 = vrot.slane %v6645_v60, 1 }
 0x3d4   :  { %v6200_v57 = vsel %vm4911_vm7, %v4839_v7, -inf  ;;  %v6648_v15 = vsel %vm4911_vm7, %v4903_v33, -inf  ;;  %v1894_v21 = vmax.f32 %v1241_v25, 0.0  ;;  %v1958_v53 = vmax.f32 %v1433_v13, 0.0  ;;  %v1627_v13 = vpop.f32.mrf.mxu2 }
 0x3d5   :  { %v6201_v1 = vrot.slane %v6200_v57, 4  ;;  %v6649_v50 = vrot.slane %v6648_v15, 4  ;;  %v5309_v58 = vrot.slane %v5308_v29, 1  ;;  %v5757_v41 = vrot.slane %v5756_v45, 1 }
 0x3d6   :  { %v6199_v48 = vmax.f32 %v6197_v61, %v6198_v6  ;;  %v6647_v55 = vmax.f32 %v6645_v60, %v6646_v17  ;;  %v13562_v37 = vunpack.i.h.bf16 %v13555_v19  ;;  %v13563_v47 = vunpack.i.h.bf16 %v13557_v8  ;;  %v13568_v17 = vld [vmem:[#allocation48_spill] sm:$0xff] }
 0x3d7   :  { %v6202_v3 = vmax.f32 %v6200_v57, %v6201_v1  ;;  %v6650_v39 = vmax.f32 %v6648_v15, %v6649_v50  ;;  %v12955_v18 = vmax.f32 %v5308_v29, %v5309_v58  ;;  %v12957_v38 = vmax.f32 %v5756_v45, %v5757_v41  ;;  %v1819_v29 = vpop.f32.mrf.mxu3  ;;  %v13566_v15 = vld [vmem:[#allocation13_spill] sm:$0xff] }
 0x3d8   :  { %v4712_v54 = vmul.f32 %v13562_v37, %v1894_v21  ;;  %v4776_v56 = vmul.f32 %v13563_v47, %v1958_v53  ;;  %v7127_v24 = vsel %vm6972_vm4, %v6199_v48, %v12926_v14  ;;  %v7183_v49 = vsel %vm6972_vm4, %v6647_v55, %v12929_v35 }
 0x3d9   :  { %v6203_v52 = vrot.slane %v6202_v3, 2  ;;  %v6651_v4 = vrot.slane %v6650_v39, 2  ;;  %7245 = vst.msk [vmem:[%s13155_s4 + $0xb0] sm:$0xff] %vm4911_vm7, %v7127_v24  ;;  %v1625_v10 = vadd.f32 %v12731_v40, %v1624_v62  ;;  %v1817_v14 = vadd.f32 %v12731_v40, %v1816_v31 }
 0x3da   :  { %v5311_v19 = vsel %vm4911_vm7, %v4712_v54, -inf  ;;  %v5759_v8 = vsel %vm4911_vm7, %v4776_v56, -inf  ;;  %7253 = vst.msk [vmem:[%s13155_s4 + $0xf0] sm:$0xff] %vm4911_vm7, %v7183_v49  ;;  %v1244_v63 = vadd.f32 %v12731_v40, %v1243_v43  ;;  %v1436_v59 = vadd.f32 %v12731_v40, %v1435_v16  ;;  %v1246_v16 = vpop.f32.mrf.mxu0 }
 0x3db   :  { %v6204_v35 = vmax.f32 %v6202_v3, %v6203_v52  ;;  %v6652_v46 = vmax.f32 %v6650_v39, %v6651_v4  ;;  %v5312_v42 = vrot.slane %v5311_v19, 4  ;;  %v5760_v44 = vrot.slane %v5759_v8, 4 }
 0x3dc   :  { %v2022_v9 = vmax.f32 %v1625_v10, 0.0  ;;  %v2086_v32 = vmax.f32 %v1817_v14, 0.0  ;;  %v13564_v22 = vunpack.i.h.bf16 %v13559_v26  ;;  %v13565_v23 = vunpack.i.h.bf16 %v12450_v34  ;;  %v13570_v14 = vld [vmem:[#allocation11_spill] sm:$0xff] }
 0x3dd   :  { %v6205_v0 = vrot.slane %v6204_v35, 1  ;;  %v6653_v51 = vrot.slane %v6652_v46, 1  ;;  %v5313_v28 = vmax.f32 %v5311_v19, %v5312_v42  ;;  %v5761_v11 = vmax.f32 %v5759_v8, %v5760_v44  ;;  %v1438_v19 = vpop.f32.mrf.mxu1 }
 0x3de   :  { %v4840_v5 = vmul.f32 %v13564_v22, %v2022_v9  ;;  %v4904_v30 = vmul.f32 %v13565_v23, %v2086_v32  ;;  %v1895_v7 = vmax.f32 %v1244_v63, 0.0  ;;  %v1959_v27 = vmax.f32 %v1436_v59, 0.0 }
 0x3df   :  { %v12985_v33 = vmax.f32 %v6204_v35, %v6205_v0  ;;  %v12987_v61 = vmax.f32 %v6652_v46, %v6653_v51  ;;  %v5314_v60 = vrot.slane %v5313_v28, 2  ;;  %v5762_v25 = vrot.slane %v5761_v11, 2 }
 0x3e0   :  { %v6207_v45 = vsel %vm4911_vm7, %v4840_v5, -inf  ;;  %v6655_v57 = vsel %vm4911_vm7, %v4904_v30, -inf  ;;  %v13567_v26 = vunpack.i.l.bf16 %v13566_v15  ;;  %v13569_v34 = vunpack.i.l.bf16 %v13568_v17 }
 0x3e1   :  { %v5315_v50 = vmax.f32 %v5313_v28, %v5314_v60  ;;  %v5763_v62 = vmax.f32 %v5761_v11, %v5762_v25  ;;  %v6208_v31 = vrot.slane %v6207_v45, 4  ;;  %v6656_v58 = vrot.slane %v6655_v57, 4 }
 0x3e2   :  { %v4713_v6 = vmul.f32 %v13567_v26, %v1895_v7  ;;  %v4777_v1 = vmul.f32 %v13569_v34, %v1959_v27  ;;  %v1628_v53 = vadd.f32 %v12731_v40, %v1627_v13  ;;  %v1820_v48 = vadd.f32 %v12731_v40, %v1819_v29 }
 0x3e3   :  { %v5316_v55 = vrot.slane %v5315_v50, 1  ;;  %v5764_v3 = vrot.slane %v5763_v62, 1  ;;  %v6209_v39 = vmax.f32 %v6207_v45, %v6208_v31  ;;  %v6657_v37 = vmax.f32 %v6655_v57, %v6656_v58  ;;  %v1630_v45 = vpop.f32.mrf.mxu2  ;;  %v1822_v57 = vpop.f32.mrf.mxu3 }
 0x3e4   :  { %v5318_v41 = vsel %vm4911_vm7, %v4713_v6, -inf  ;;  %v5766_v21 = vsel %vm4911_vm7, %v4777_v1, -inf  ;;  %v2023_v56 = vmax.f32 %v1628_v53, 0.0  ;;  %v2087_v24 = vmax.f32 %v1820_v48, 0.0 }
 0x3e5   :  { %v5319_v54 = vrot.slane %v5318_v41, 4  ;;  %v5767_v47 = vrot.slane %v5766_v21, 4  ;;  %v5317_v49 = vmax.f32 %v5315_v50, %v5316_v55  ;;  %v5765_v52 = vmax.f32 %v5763_v62, %v5764_v3 }
 0x3e6   :  { %v6210_v4 = vrot.slane %v6209_v39, 2  ;;  %v6658_v43 = vrot.slane %v6657_v37, 2  ;;  %v13571_v35 = vunpack.i.l.bf16 %v13570_v14  ;;  %v13572_v42 = vunpack.i.l.bf16 %v12448_v12 }
 0x3e7   :  { %v5320_v8 = vmax.f32 %v5318_v41, %v5319_v54  ;;  %v5768_v10 = vmax.f32 %v5766_v21, %v5767_v47  ;;  %v7016_v9 = vsel %vm6960_vm3, %v5317_v49, %v12955_v18  ;;  %v7072_v32 = vsel %vm6960_vm3, %v5765_v52, %v12957_v38  ;;  %v1249_v54 = vpop.f32.mrf.mxu0  ;;  %v1441_v47 = vpop.f32.mrf.mxu1 }
 0x3e8   :  { %v4841_v46 = vmul.f32 %v13571_v35, %v2023_v56  ;;  %v4905_v44 = vmul.f32 %v13572_v42, %v2087_v24  ;;  %v6211_v63 = vmax.f32 %v6209_v39, %v6210_v4  ;;  %v6659_v59 = vmax.f32 %v6657_v37, %v6658_v43  ;;  %v13022_v37 = vld [vmem:[%s13154_s3] ss:$0 sm:$0xff] }
 0x3e9   :  { %v5321_v0 = vrot.slane %v5320_v8, 2  ;;  %v5769_v51 = vrot.slane %v5768_v10, 2  ;;  %v1247_v60 = vadd.f32 %v12731_v40, %v1246_v16  ;;  %v1439_v18 = vadd.f32 %v12731_v40, %v1438_v19 }
 0x3ea   :  { %v6214_v28 = vsel %vm4911_vm7, %v4841_v46, -inf  ;;  %v6662_v11 = vsel %vm4911_vm7, %v4905_v44, -inf  ;;  %v6212_v22 = vrot.slane %v6211_v63, 1  ;;  %v6660_v5 = vrot.slane %v6659_v59, 1 }
 0x3eb   :  { %v6215_v23 = vrot.slane %v6214_v28, 4  ;;  %v6663_v30 = vrot.slane %v6662_v11, 4  ;;  %v5322_v7 = vmax.f32 %v5320_v8, %v5321_v0  ;;  %v5770_v27 = vmax.f32 %v5768_v10, %v5769_v51 }
 0x3ec   :  { %v6213_v25 = vmax.f32 %v6211_v63, %v6212_v22  ;;  %v6661_v38 = vmax.f32 %v6659_v59, %v6660_v5  ;;  %v1896_v34 = vmax.f32 %v1247_v60, 0.0  ;;  %v1960_v1 = vmax.f32 %v1439_v18, 0.0  ;;  %v13579_v18 = vld [vmem:[#allocation41_spill] sm:$0xff] }
 0x3ed   :  { %v6216_v13 = vmax.f32 %v6214_v28, %v6215_v23  ;;  %v6664_v29 = vmax.f32 %v6662_v11, %v6663_v30  ;;  %v5323_v26 = vrot.slane %v5322_v7, 1  ;;  %v5771_v6 = vrot.slane %v5770_v27, 1  ;;  %v1633_v23 = vpop.f32.mrf.mxu2  ;;  %v1825_v30 = vpop.f32.mrf.mxu3 }
 0x3ee   :  { %v7128_v50 = vsel %vm6960_vm3, %v6213_v25, %v12985_v33  ;;  %v7184_v62 = vsel %vm6960_vm3, %v6661_v38, %v12987_v61  ;;  %v13573_v21 = vunpack.i.h.bf16 %v13566_v15  ;;  %v13574_v48 = vunpack.i.h.bf16 %v13568_v17 }
 0x3ef   :  { %v6217_v31 = vrot.slane %v6216_v13, 2  ;;  %v6665_v58 = vrot.slane %v6664_v29, 2  ;;  %v5324_v41 = vmax.f32 %v5322_v7, %v5323_v26  ;;  %v5772_v40 = vmax.f32 %v5770_v27, %v5771_v6  ;;  %v13577_v27 = vld [vmem:[#allocation26_spill] sm:$0xff] }
 0x3f0   :  { %v4714_v53 = vmul.f32 %v13573_v21, %v1896_v34  ;;  %v4778_v55 = vmul.f32 %v13574_v48, %v1960_v1  ;;  %v1631_v33 = vadd.f32 %v13022_v37, %v1630_v45  ;;  %v1823_v61 = vadd.f32 %v13022_v37, %v1822_v57 }
 0x3f1   :  { %v6218_v3 = vmax.f32 %v6216_v13, %v6217_v31  ;;  %v6666_v39 = vmax.f32 %v6664_v29, %v6665_v58  ;;  %v7017_v56 = vsel %vm6962_vm6, %v5324_v41, %v7016_v9  ;;  %v7073_v15 = vsel %vm6962_vm6, %v5772_v40, %v7072_v32 }
 0x3f2   :  { %v5325_v17 = vsel %vm4911_vm7, %v4714_v53, -inf  ;;  %v5773_v24 = vsel %vm4911_vm7, %v4778_v55, -inf  ;;  %v2024_v16 = vmax.f32 %v1631_v33, 0.0  ;;  %v2088_v19 = vmax.f32 %v1823_v61, 0.0  ;;  %v1252_v33 = vpop.f32.mrf.mxu0  ;;  %v1444_v61 = vpop.f32.mrf.mxu1 }
 0x3f3   :  { %v6219_v49 = vrot.slane %v6218_v3, 1  ;;  %v6667_v52 = vrot.slane %v6666_v39, 1  ;;  %v5326_v4 = vrot.slane %v5325_v17, 4  ;;  %v5774_v43 = vrot.slane %v5773_v24, 4 }
 0x3f4   :  { %v1250_v8 = vadd.f32 %v13022_v37, %v1249_v54  ;;  %v1442_v10 = vadd.f32 %v13022_v37, %v1441_v47  ;;  %v13575_v9 = vunpack.i.h.bf16 %v13570_v14  ;;  %v13576_v63 = vunpack.i.h.bf16 %v12448_v12 }
 0x3f5   :  { %v6220_v35 = vmax.f32 %v6218_v3, %v6219_v49  ;;  %v6668_v46 = vmax.f32 %v6666_v39, %v6667_v52  ;;  %v5327_v42 = vmax.f32 %v5325_v17, %v5326_v4  ;;  %v5775_v44 = vmax.f32 %v5773_v24, %v5774_v43  ;;  %v13581_v17 = vld [vmem:[#allocation28_spill] sm:$0xff] }
 0x3f6   :  { %v4842_v32 = vmul.f32 %v13575_v9, %v2024_v16  ;;  %v4906_v59 = vmul.f32 %v13576_v63, %v2088_v19  ;;  %v1897_v0 = vmax.f32 %v1250_v8, 0.0  ;;  %v1961_v51 = vmax.f32 %v1442_v10, 0.0 }
 0x3f7   :  { %v13037_v28 = vsel %vm6962_vm6, %v6220_v35, %v7128_v50  ;;  %v13040_v11 = vsel %vm6962_vm6, %v6668_v46, %v7184_v62  ;;  %v5328_v22 = vrot.slane %v5327_v42, 2  ;;  %v5776_v5 = vrot.slane %v5775_v44, 2 }
 0x3f8   :  { %v6221_v7 = vsel %vm4911_vm7, %v4842_v32, -inf  ;;  %v6669_v14 = vsel %vm4911_vm7, %v4906_v59, -inf  ;;  %v13578_v60 = vunpack.i.l.bf16 %v13577_v27  ;;  %v13580_v25 = vunpack.i.l.bf16 %v13579_v18 }
 0x3f9   :  { %v5329_v13 = vmax.f32 %v5327_v42, %v5328_v22  ;;  %v5777_v29 = vmax.f32 %v5775_v44, %v5776_v5  ;;  %v6222_v45 = vrot.slane %v6221_v7, 4  ;;  %v6670_v57 = vrot.slane %v6669_v14, 4 }
 0x3fa   :  { %v4715_v12 = vmul.f32 %v13578_v60, %v1897_v0  ;;  %v4779_v38 = vmul.f32 %v13580_v25, %v1961_v51  ;;  %v1634_v34 = vadd.f32 %v13022_v37, %v1633_v23  ;;  %v1826_v1 = vadd.f32 %v13022_v37, %v1825_v30  ;;  %v1636_v30 = vpop.f32.mrf.mxu2 }
 0x3fb   :  { %v5330_v50 = vrot.slane %v5329_v13, 1  ;;  %v5778_v62 = vrot.slane %v5777_v29, 1  ;;  %v6223_v31 = vmax.f32 %v6221_v7, %v6222_v45  ;;  %v6671_v58 = vmax.f32 %v6669_v14, %v6670_v57  ;;  %v1828_v7 = vpop.f32.mrf.mxu3 }
 0x3fc   :  { %v5332_v26 = vsel %vm4911_vm7, %v4715_v12, -inf  ;;  %v5780_v6 = vsel %vm4911_vm7, %v4779_v38, -inf  ;;  %v2025_v21 = vmax.f32 %v1634_v34, 0.0  ;;  %v2089_v53 = vmax.f32 %v1826_v1, 0.0 }
 0x3fd   :  { %v5333_v41 = vrot.slane %v5332_v26, 4  ;;  %v5781_v40 = vrot.slane %v5780_v6, 4  ;;  %v5331_v48 = vmax.f32 %v5329_v13, %v5330_v50  ;;  %v5779_v55 = vmax.f32 %v5777_v29, %v5778_v62 }
 0x3fe   :  { %v6224_v3 = vrot.slane %v6223_v31, 2  ;;  %v6672_v39 = vrot.slane %v6671_v58, 2  ;;  %v13582_v24 = vunpack.i.l.bf16 %v13581_v17  ;;  %v13583_v52 = vunpack.i.l.bf16 %v12253_v20 }
 0x3ff   :  { %v5334_v54 = vmax.f32 %v5332_v26, %v5333_v41  ;;  %v5782_v47 = vmax.f32 %v5780_v6, %v5781_v40  ;;  %v7018_v43 = vsel %vm6964_vm10, %v5331_v48, %v7017_v56  ;;  %v7074_v16 = vsel %vm6964_vm10, %v5779_v55, %v7073_v15  ;;  %v1255_v41 = vpop.f32.mrf.mxu0 }
 0x400   :  { %v4843_v49 = vmul.f32 %v13582_v24, %v2025_v21  ;;  %v4907_v4 = vmul.f32 %v13583_v52, %v2089_v53  ;;  %v6225_v19 = vmax.f32 %v6223_v31, %v6224_v3  ;;  %v6673_v8 = vmax.f32 %v6671_v58, %v6672_v39 }
 0x401   :  { %v5335_v10 = vrot.slane %v5334_v54, 2  ;;  %v5783_v35 = vrot.slane %v5782_v47, 2  ;;  %v1253_v51 = vadd.f32 %v13022_v37, %v1252_v33  ;;  %v1445_v56 = vadd.f32 %v13022_v37, %v1444_v61 }
 0x402   :  { %v6228_v46 = vsel %vm4911_vm7, %v4843_v49, -inf  ;;  %v6676_v42 = vsel %vm4911_vm7, %v4907_v4, -inf  ;;  %v6226_v44 = vrot.slane %v6225_v19, 1  ;;  %v6674_v9 = vrot.slane %v6673_v8, 1 }
 0x403   :  { %v6229_v32 = vrot.slane %v6228_v46, 4  ;;  %v6677_v63 = vrot.slane %v6676_v42, 4  ;;  %v5336_v59 = vmax.f32 %v5334_v54, %v5335_v10  ;;  %v5784_v0 = vmax.f32 %v5782_v47, %v5783_v35 }
 0x404   :  { %v6227_v22 = vmax.f32 %v6225_v19, %v6226_v44  ;;  %v6675_v15 = vmax.f32 %v6673_v8, %v6674_v9  ;;  %v1898_v12 = vmax.f32 %v1253_v51, 0.0  ;;  %v1962_v25 = vmax.f32 %v1445_v56, 0.0  ;;  %v1831_v44 = vpop.f32.mrf.mxu3 }
 0x405   :  { %v6230_v5 = vmax.f32 %v6228_v46, %v6229_v32  ;;  %v6678_v23 = vmax.f32 %v6676_v42, %v6677_v63  ;;  %v5337_v14 = vrot.slane %v5336_v59, 1  ;;  %v5785_v60 = vrot.slane %v5784_v0, 1  ;;  %v1639_v42 = vpop.f32.mrf.mxu2  ;;  %v13587_v32 = vld [vmem:[#allocation25_spill] sm:$0xff] }
 0x406   :  { %v7130_v38 = vsel %vm6964_vm10, %v6227_v22, %v13037_v28  ;;  %v13066_v13 = vsel %vm6964_vm10, %v6675_v15, %v13040_v11  ;;  %v13584_v6 = vunpack.i.h.bf16 %v13577_v27  ;;  %v13585_v1 = vunpack.i.h.bf16 %v13579_v18  ;;  %v1447_v11 = vpop.f32.mrf.mxu1 }
 0x407   :  { %v6231_v29 = vrot.slane %v6230_v5, 2  ;;  %v6679_v45 = vrot.slane %v6678_v23, 2  ;;  %v5338_v57 = vmax.f32 %v5336_v59, %v5337_v14  ;;  %v5786_v26 = vmax.f32 %v5784_v0, %v5785_v60  ;;  %v13589_v59 = vld [vmem:[#allocation50_spill] sm:$0xff] }
 0x408   :  { %v4716_v34 = vmul.f32 %v13584_v6, %v1898_v12  ;;  %v4780_v50 = vmul.f32 %v13585_v1, %v1962_v25  ;;  %v8412_v62 = vunpack.i.h.bf16 %v12253_v20  ;;  %v1637_v58 = vadd.f32 %v13022_v37, %v1636_v30 }
 0x409   :  { %v6232_v31 = vmax.f32 %v6230_v5, %v6231_v29  ;;  %v1829_v28 = vadd.f32 %v13022_v37, %v1828_v7  ;;  %v7019_v40 = vsel %vm6966_vm14, %v5338_v57, %v7018_v43  ;;  %v7075_v21 = vsel %vm6966_vm14, %v5786_v26, %v7074_v16 }
 0x40a   :  { %v5339_v53 = vsel %vm4911_vm7, %v4716_v34, -inf  ;;  %v5787_v27 = vsel %vm4911_vm7, %v4780_v50, -inf  ;;  %v13079_v18 = vmax.f32 %v6678_v23, %v6679_v45  ;;  %v2026_v3 = vmax.f32 %v1637_v58, 0.0  ;;  %v13591_v58 = vld [vmem:[#allocation53_spill] sm:$0xff] }
 0x40b   :  { %v6233_v48 = vrot.slane %v6232_v31, 1  ;;  %v5340_v55 = vrot.slane %v5339_v53, 4  ;;  %v5788_v20 = vrot.slane %v5787_v27, 4  ;;  %v2090_v39 = vmax.f32 %v1829_v28, 0.0 }
 0x40c   :  { %v1256_v33 = vadd.f32 %v13022_v37, %v1255_v41  ;;  %v1448_v61 = vadd.f32 %v13022_v37, %v1447_v11  ;;  %v8417_v54 = vunpack.i.h.bf16 %v12505_v36  ;;  %v13586_v52 = vunpack.i.h.bf16 %v13581_v17 }
 0x40d   :  { %v6234_v47 = vmax.f32 %v6232_v31, %v6233_v48  ;;  %v5341_v24 = vmax.f32 %v5339_v53, %v5340_v55  ;;  %v5789_v49 = vmax.f32 %v5787_v27, %v5788_v20  ;;  %v4908_v43 = vmul.f32 %v8412_v62, %v2090_v39  ;;  %v1258_v20 = vpop.f32.mrf.mxu0 }
 0x40e   :  { %v4844_v4 = vmul.f32 %v13586_v52, %v2026_v3  ;;  %v1899_v16 = vmax.f32 %v1256_v33, 0.0  ;;  %v1963_v19 = vmax.f32 %v1448_v61, 0.0  ;;  %v6681_v10 = vrot.slane %v13079_v18, 1  ;;  %v1450_v3 = vpop.f32.mrf.mxu1 }
 0x40f   :  { %v13087_v8 = vsel %vm6966_vm14, %v6234_v47, %v7130_v38  ;;  %v5342_v35 = vrot.slane %v5341_v24, 2  ;;  %v5790_v46 = vrot.slane %v5789_v49, 2  ;;  %v6683_v9 = vsel %vm4911_vm7, %v4908_v43, -inf }
 0x410   :  { %v6235_v36 = vsel %vm4911_vm7, %v4844_v4, -inf  ;;  %v13588_v63 = vunpack.i.l.bf16 %v13587_v32  ;;  %v13590_v0 = vunpack.i.l.bf16 %v13589_v59  ;;  %v6684_v5 = vrot.slane %v6683_v9, 4 }
 0x411   :  { %v5343_v56 = vmax.f32 %v5341_v24, %v5342_v35  ;;  %v5791_v22 = vmax.f32 %v5789_v49, %v5790_v46  ;;  %v6236_v15 = vrot.slane %v6235_v36, 4  ;;  %v1640_v7 = vadd.f32 %v13022_v37, %v1639_v42 }
 0x412   :  { %v4717_v17 = vmul.f32 %v13588_v63, %v1899_v16  ;;  %v4781_v51 = vmul.f32 %v13590_v0, %v1963_v19  ;;  %v1832_v14 = vadd.f32 %v13022_v37, %v1831_v44  ;;  %v6685_v38 = vmax.f32 %v6683_v9, %v6684_v5  ;;  %v1642_v63 = vpop.f32.mrf.mxu2 }
 0x413   :  { %v5344_v60 = vrot.slane %v5343_v56, 1  ;;  %v5792_v12 = vrot.slane %v5791_v22, 1  ;;  %v6237_v25 = vmax.f32 %v6235_v36, %v6236_v15  ;;  %v2027_v57 = vmax.f32 %v1640_v7, 0.0 }
 0x414   :  { %v5346_v23 = vsel %vm4911_vm7, %v4717_v17, -inf  ;;  %v5794_v30 = vsel %vm4911_vm7, %v4781_v51, -inf  ;;  %v2091_v26 = vmax.f32 %v1832_v14, 0.0  ;;  %v6686_v50 = vrot.slane %v6685_v38, 2  ;;  %v1834_v17 = vpop.f32.mrf.mxu3 }
 0x415   :  { %v5347_v29 = vrot.slane %v5346_v23, 4  ;;  %v5795_v45 = vrot.slane %v5794_v30, 4  ;;  %v5345_v6 = vmax.f32 %v5343_v56, %v5344_v60  ;;  %v5793_v34 = vmax.f32 %v5791_v22, %v5792_v12 }
 0x416   :  { %v6238_v1 = vrot.slane %v6237_v25, 2  ;;  %v13592_v28 = vunpack.i.l.bf16 %v13591_v58  ;;  %v4909_v11 = vmul.f32 %v8417_v54, %v2091_v26  ;;  %v6687_v55 = vmax.f32 %v6685_v38, %v6686_v50 }
 0x417   :  { %v5348_v62 = vmax.f32 %v5346_v23, %v5347_v29  ;;  %v5796_v31 = vmax.f32 %v5794_v30, %v5795_v45  ;;  %v7020_v53 = vsel %vm6968_vm8, %v5345_v6, %v7019_v40  ;;  %v7076_v27 = vsel %vm6968_vm8, %v5793_v34, %v7075_v21 }
 0x418   :  { %v4845_v41 = vmul.f32 %v13592_v28, %v2027_v57  ;;  %v6239_v48 = vmax.f32 %v6237_v25, %v6238_v1  ;;  %v6690_v47 = vsel %vm4911_vm7, %v4909_v11, -inf  ;;  %v6688_v49 = vrot.slane %v6687_v55, 1 }
 0x419   :  { %v5349_v39 = vrot.slane %v5348_v62, 2  ;;  %v5797_v33 = vrot.slane %v5796_v31, 2  ;;  %v6691_v4 = vrot.slane %v6690_v47, 4  ;;  %v1259_v40 = vadd.f32 %v13022_v37, %v1258_v20 }
 0x41a   :  { %v6242_v61 = vsel %vm4911_vm7, %v4845_v41, -inf  ;;  %v6240_v24 = vrot.slane %v6239_v48, 1  ;;  %v1451_v21 = vadd.f32 %v13022_v37, %v1450_v3  ;;  %v6682_v16 = vmax.f32 %v13079_v18, %v6681_v10 }
 0x41b   :  { %v6243_v52 = vrot.slane %v6242_v61, 4  ;;  %v5350_v43 = vmax.f32 %v5348_v62, %v5349_v39  ;;  %v5798_v54 = vmax.f32 %v5796_v31, %v5797_v33  ;;  %v6692_v46 = vmax.f32 %v6690_v47, %v6691_v4 }
 0x41c   :  { %v6241_v19 = vmax.f32 %v6239_v48, %v6240_v24  ;;  %v1900_v36 = vmax.f32 %v1259_v40, 0.0  ;;  %v1964_v9 = vmax.f32 %v1451_v21, 0.0  ;;  %v6689_v51 = vmax.f32 %v6687_v55, %v6688_v49 }
 0x41d   :  { %v6244_v35 = vmax.f32 %v6242_v61, %v6243_v52  ;;  %v5351_v42 = vrot.slane %v5350_v43, 1  ;;  %v5799_v44 = vrot.slane %v5798_v54, 1  ;;  %v6693_v22 = vrot.slane %v6692_v46, 2 }
 0x41e   :  { %v7132_v0 = vsel %vm6968_vm8, %v6241_v19, %v13087_v8  ;;  %v13593_v23 = vunpack.i.h.bf16 %v13587_v32  ;;  %v13594_v10 = vunpack.i.h.bf16 %v13589_v59  ;;  %v1643_v60 = vadd.f32 %v13022_v37, %v1642_v63 }
 0x41f   :  { %v6245_v56 = vrot.slane %v6244_v35, 2  ;;  %v5352_v15 = vmax.f32 %v5350_v43, %v5351_v42  ;;  %v5800_v5 = vmax.f32 %v5798_v54, %v5799_v44  ;;  %v6694_v14 = vmax.f32 %v6692_v46, %v6693_v22 }
 0x420   :  { %v4718_v18 = vmul.f32 %v13593_v23, %v1900_v36  ;;  %v4782_v30 = vmul.f32 %v13594_v10, %v1964_v9  ;;  %v1835_v12 = vadd.f32 %v13022_v37, %v1834_v17  ;;  %v8422_v59 = vunpack.i.h.bf16 %v12503_v2 }
 0x421   :  { %v6246_v7 = vmax.f32 %v6244_v35, %v6245_v56  ;;  %v7021_v25 = vsel %vm6970_vm9, %v5352_v15, %v7020_v53  ;;  %v7077_v8 = vsel %vm6970_vm9, %v5800_v5, %v7076_v27  ;;  %v6695_v32 = vrot.slane %v6694_v14, 1 }
 0x422   :  { %v5353_v38 = vsel %vm4911_vm7, %v4718_v18, -inf  ;;  %v5801_v29 = vsel %vm4911_vm7, %v4782_v30, -inf  ;;  %v7187_v6 = vsel %vm6966_vm14, %v6682_v16, %v13066_v13  ;;  %v2028_v34 = vmax.f32 %v1643_v60, 0.0 }
 0x423   :  { %v6247_v45 = vrot.slane %v6246_v7, 1  ;;  %v5354_v57 = vrot.slane %v5353_v38, 4  ;;  %v5802_v26 = vrot.slane %v5801_v29, 4  ;;  %v2092_v1 = vmax.f32 %v1835_v12, 0.0 }
 0x424   :  { %v6696_v50 = vmax.f32 %v6694_v14, %v6695_v32  ;;  %v7188_v28 = vsel %vm6968_vm8, %v6689_v51, %v7187_v6  ;;  %v13595_v41 = vunpack.i.h.bf16 %v13591_v58 }
 0x425   :  { %v6248_v37 = vmax.f32 %v6246_v7, %v6247_v45  ;;  %v5355_v62 = vmax.f32 %v5353_v38, %v5354_v57  ;;  %v5803_v31 = vmax.f32 %v5801_v29, %v5802_v26  ;;  %v4910_v53 = vmul.f32 %v8422_v59, %v2092_v1 }
 0x426   :  { %v4846_v11 = vmul.f32 %v13595_v41, %v2028_v34  ;;  %v7189_v48 = vsel %vm6970_vm9, %v6696_v50, %v7188_v28 }
 0x427   :  { %v7133_v27 = vsel %vm6970_vm9, %v6248_v37, %v7132_v0  ;;  %v5356_v2 = vrot.slane %v5355_v62, 2  ;;  %v5804_v55 = vrot.slane %v5803_v31, 2  ;;  %v6697_v20 = vsel %vm4911_vm7, %v4910_v53, -inf }
 0x428   :  { %v6249_v13 = vsel %vm4911_vm7, %v4846_v11, -inf  ;;  %v6698_v61 = vrot.slane %v6697_v20, 4 }
 0x429   :  { %v5357_v3 = vmax.f32 %v5355_v62, %v5356_v2  ;;  %v5805_v39 = vmax.f32 %v5803_v31, %v5804_v55  ;;  %v6250_v33 = vrot.slane %v6249_v13, 4 }
 0x42a   :  { %v6699_v58 = vmax.f32 %v6697_v20, %v6698_v61 }
 0x42b   :  { %v5358_v47 = vrot.slane %v5357_v3, 1  ;;  %v5806_v24 = vrot.slane %v5805_v39, 1  ;;  %v6251_v49 = vmax.f32 %v6249_v13, %v6250_v33 }
 0x42c   :  { %v6700_v54 = vrot.slane %v6699_v58, 2 }
 0x42d   :  { %v5359_v52 = vmax.f32 %v5357_v3, %v5358_v47  ;;  %v5807_v4 = vmax.f32 %v5805_v39, %v5806_v24  ;;  %v6252_v43 = vrot.slane %v6251_v49, 2 }
 0x42e   :  { %v6701_v19 = vmax.f32 %v6699_v58, %v6700_v54 }
 0x42f   :  { %v7022_v40 = vsel %vm6972_vm4, %v5359_v52, %v7021_v25  ;;  %v7078_v21 = vsel %vm6972_vm4, %v5807_v4, %v7077_v8  ;;  %v6253_v16 = vmax.f32 %v6251_v49, %v6252_v43 }
 0x430   :  { %7230 = vst.msk [vmem:[%s13155_s4 + $0x38] sm:$0xff] %vm4911_vm7, %v7022_v40  ;;  %v6702_v46 = vrot.slane %v6701_v19, 1 }
 0x431   :  { %7238 = vst.msk [vmem:[%s13155_s4 + $0x78] sm:$0xff] %vm4911_vm7, %v7078_v21  ;;  %v6254_v35 = vrot.slane %v6253_v16, 1 }
 0x432   :  { %v6703_v44 = vmax.f32 %v6701_v19, %v6702_v46 }
 0x433   :  { %v6255_v42 = vmax.f32 %v6253_v16, %v6254_v35 }
 0x434   :  { %v7190_v9 = vsel %vm6972_vm4, %v6703_v44, %v7189_v48 }
 0x435   :  { %v7134_v36 = vsel %vm6972_vm4, %v6255_v42, %v7133_v27  ;;  %7254 = vst.msk [vmem:[%s13155_s4 + $0xf8] sm:$0xff] %vm4911_vm7, %v7190_v9 }
 0x436   :  { %7246 = vst.msk [vmem:[%s13155_s4 + $0xb8] sm:$0xff] %vm4911_vm7, %v7134_v36 }

</bundles_post_ra>
